<compile_context>
chip_gen: v7x
topology: tpu7x:2x2x1
jax: 0.10.0
libtpu: 0.0.40
codegen_flags: <defaults>
</compile_context>

<pallas_src>
import functools

import numpy as np
import jax
import jax.numpy as jnp
from jax.experimental import pallas as pl
from jax.experimental.pallas import tpu as pltpu

EPS = 1e-5          # nn.InstanceNorm2d default (affine=False, biased variance)
LRELU_SLOPE = 0.2


# ----------------------------- in-kernel helpers ------------------------------

def _accumulate_conv(x_ref, w_ref, taps, m_full):
    """sum_t  W[t] @ plane_t[:, off_t : off_t + m_full]   (bf16 in, f32 out).

    x_ref : [1, P, Cin, Lq]  phase-split, flattened, padded input sample (bf16)
    w_ref : [T, Cout, Cin]   tap-major weights (bf16)
    taps  : static list of (plane, flat_offset) per tap
    """
    acc = None
    for t, (plane, off) in enumerate(taps):
        xwin = x_ref[0, plane, :, off:off + m_full]                  # [Cin, M]
        part = jnp.dot(w_ref[t], xwin, preferred_element_type=jnp.float32)
        acc = part if acc is None else acc + part
    return acc                                                       # [Cout, M] f32


def _masked_instance_norm(acc, mask, inv_count):
    """InstanceNorm over the valid spatial positions (mask==1), biased variance."""
    mean = jnp.sum(acc * mask, axis=1, keepdims=True) * inv_count
    d = (acc - mean) * mask
    var = jnp.sum(d * d, axis=1, keepdims=True) * inv_count
    return (acc - mean) * jax.lax.rsqrt(var + EPS)


# --------------------------------- kernels ------------------------------------

def _conv_bias_lrelu_kernel(x_ref, w_ref, b_ref, o_ref, *, taps, m_full):
    """First layer: 4x4/s2 conv + bias (Cout,1 column) + LeakyReLU(0.2)."""
    acc = _accumulate_conv(x_ref, w_ref, taps, m_full) + b_ref[...]
    o_ref[0] = jnp.where(acc > 0, acc, LRELU_SLOPE * acc).astype(o_ref.dtype)


def _block_a_kernel(x_ref, w1_ref, ws_ref, mask_ref, o_ref, s_ref, *,
                    taps, tap_s, m_full, inv_count):
    """ReLU(IN(conv1 3x3/s2)) and the fused shortcut IN(conv 1x1/s2) of the same x."""
    mask = mask_ref[...]
    acc = _accumulate_conv(x_ref, w1_ref, taps, m_full)
    o_ref[0] = jnp.maximum(_masked_instance_norm(acc, mask, inv_count),
                           0.0).astype(o_ref.dtype)
    plane, off = tap_s
    acc_s = jnp.dot(ws_ref[...], x_ref[0, plane, :, off:off + m_full],
                    preferred_element_type=jnp.float32)
    s_ref[0] = _masked_instance_norm(acc_s, mask, inv_count).astype(s_ref.dtype)


def _block_b_kernel(x_ref, w2_ref, res_ref, mask_ref, o_ref, *,
                    taps, m_full, inv_count):
    """ReLU( IN(conv2 3x3/s1) + shortcut )."""
    acc = _accumulate_conv(x_ref, w2_ref, taps, m_full)
    y = _masked_instance_norm(acc, mask_ref[...], inv_count)
    o_ref[0] = jnp.maximum(y + res_ref[0].astype(jnp.float32), 0.0).astype(o_ref.dtype)


def _block_b_head_kernel(x_ref, w2_ref, res_ref, mask_ref, wout_ref, bout_ref,
                         o_ref, *, taps, m_full, inv_count):
    """Last block, with the final 4x4 conv + bias + sigmoid fused into the epilogue."""
    acc = _accumulate_conv(x_ref, w2_ref, taps, m_full)
    y = _masked_instance_norm(acc, mask_ref[...], inv_count)
    y = jnp.maximum(y + res_ref[0].astype(jnp.float32), 0.0)
    # 4x4 conv producing a 1x1 map == dot-reduce against head weights laid out in
    # the same garbage-column format (zeros on garbage columns); sigmoid -> EUP.
    r = jnp.sum(y * wout_ref[...], axis=1, keepdims=True)            # [C, 1]
    r = jnp.sum(r, axis=0, keepdims=True)                            # [1, 1]
    o_ref[0] = jax.nn.sigmoid(r + bout_ref[...])


# ------------------------------ plain-JAX glue ---------------------------------

def _prep_input(x, ksize, stride, pad):
    """[N,C,H,W] -> (planes [N,P,C,Lq] bf16, taps [(plane, flat_off)], geometry).

    For stride 2 the padded image is split into its 4 (h%2, w%2) phase planes so
    every conv tap becomes a *contiguous* slice of a flattened plane.  Kernel
    outputs are computed at full plane width Wq (>= Wo); the extra columns are
    garbage that gets masked / sliced off.
    """
    n, c, h, w = x.shape
    if pad:
        x = jnp.pad(x, ((0, 0), (0, 0), (pad, pad), (pad, pad)))
    hp, wp = h + 2 * pad, w + 2 * pad
    ho = (hp - ksize) // stride + 1
    wo = (wp - ksize) // stride + 1
    if stride == 1:
        hq, wq = hp, wp
        planes = x[:, None]                                          # [N,1,C,Hp,Wp]
    else:
        assert stride == 2
        if hp % 2:
            x = jnp.pad(x, ((0, 0), (0, 0), (0, 1), (0, 0)))
            hp += 1
        if wp % 2:
            x = jnp.pad(x, ((0, 0), (0, 0), (0, 0), (0, 1)))
            wp += 1
        hq, wq = hp // 2, wp // 2
        planes = jnp.transpose(x.reshape(n, c, hq, 2, wq, 2),
                               (0, 3, 5, 1, 2, 4)).reshape(n, 4, c, hq, wq)
    taps = []
    for kh in range(ksize):
        for kw in range(ksize):
            if stride == 1:
                taps.append((0, kh * wq + kw))
            else:
                taps.append(((kh % 2) * 2 + (kw % 2), (kh // 2) * wq + kw // 2))
    m_full = ho * wq
    lq = hq * wq
    p = planes.shape[1]
    planes = planes.reshape(n, p, c, lq)
    slack = max(off for _, off in taps) + m_full - lq
    if slack > 0:
        planes = jnp.pad(planes, ((0, 0), (0, 0), (0, 0), (0, slack)))
        lq += slack
    geom = dict(ho=ho, wo=wo, wq=wq, m_full=m_full, lq=lq, p=p)
    return planes.astype(jnp.bfloat16), taps, geom


def _valid_mask(ho, wo, wq):
    """f32 [1, ho*wq]: 1 on real output columns, 0 on the garbage columns."""
    m = np.zeros((ho, wq), np.float32)
    m[:, :wo] = 1.0
    return jnp.asarray(m.reshape(1, ho * wq))


def _to_spatial(y, ho, wo, wq):
    """[N, C, Ho*Wq] -> [N, C, Ho, Wo] (drop garbage columns)."""
    n, c, _ = y.shape
    return y.reshape(n, c, ho, wq)[:, :, :, :wo]


def _parallel_params():
    return pltpu.CompilerParams(dimension_semantics=("parallel",))


# ------------------------------ fused conv layers -------------------------------

def conv_bias_lrelu(x, w, b):
    """x [N,Cin,H,W], w [16,Cout,Cin] (tap-major), b [Cout,1] -> [N,Cout,H/2,W/2]."""
    planes, taps, g = _prep_input(x, 4, 2, 1)
    n, cin = x.shape[0], x.shape[1]
    cout = w.shape[1]
    out = pl.pallas_call(
        functools.partial(_conv_bias_lrelu_kernel, taps=taps, m_full=g["m_full"]),
        out_shape=jax.ShapeDtypeStruct((n, cout, g["m_full"]), jnp.bfloat16),
        grid=(n,),
        in_specs=[
            pl.BlockSpec((1, g["p"], cin, g["lq"]), lambda i: (i, 0, 0, 0)),
            pl.BlockSpec((16, cout, cin), lambda i: (0, 0, 0)),       # resident
            pl.BlockSpec((cout, 1), lambda i: (0, 0)),
        ],
        out_specs=pl.BlockSpec((1, cout, g["m_full"]), lambda i: (i, 0, 0)),
        compiler_params=_parallel_params(),
    )(planes, w.astype(jnp.bfloat16), b.astype(jnp.float32))
    return _to_spatial(out, g["ho"], g["wo"], g["wq"])


def block_conv_a(x, w1, ws):
    """conv1(3x3,s2,p1)+IN+ReLU and shortcut conv(1x1,s2)+IN, one fused kernel."""
    assert x.shape[2] % 2 == 0 and x.shape[3] % 2 == 0
    planes, taps, g = _prep_input(x, 3, 2, 1)
    n, cin = x.shape[0], x.shape[1]
    cout = w1.shape[1]
    m_full = g["m_full"]
    mask = _valid_mask(g["ho"], g["wo"], g["wq"])
    inv_count = 1.0 / float(g["ho"] * g["wo"])
    # The un-padded stride-2 1x1 shortcut conv reads exactly phase plane (1,1) of
    # the pad-1 phase split, at flat offset 0 -> reuse the same VMEM input planes.
    tap_s = (3, 0)
    out, sc = pl.pallas_call(
        functools.partial(_block_a_kernel, taps=taps, tap_s=tap_s,
                          m_full=m_full, inv_count=inv_count),
        out_shape=(jax.ShapeDtypeStruct((n, cout, m_full), jnp.bfloat16),
                   jax.ShapeDtypeStruct((n, cout, m_full), jnp.bfloat16)),
        grid=(n,),
        in_specs=[
            pl.BlockSpec((1, g["p"], cin, g["lq"]), lambda i: (i, 0, 0, 0)),
            pl.BlockSpec((9, cout, cin), lambda i: (0, 0, 0)),
            pl.BlockSpec((cout, cin), lambda i: (0, 0)),
            pl.BlockSpec((1, m_full), lambda i: (0, 0)),
        ],
        out_specs=(pl.BlockSpec((1, cout, m_full), lambda i: (i, 0, 0)),
                   pl.BlockSpec((1, cout, m_full), lambda i: (i, 0, 0))),
        compiler_params=_parallel_params(),
    )(planes, w1.astype(jnp.bfloat16), ws.astype(jnp.bfloat16), mask)
    return (_to_spatial(out, g["ho"], g["wo"], g["wq"]),
            _to_spatial(sc, g["ho"], g["wo"], g["wq"]))


def block_conv_b(x1, sc, w2, head=None):
    """conv2(3x3,s1,p1)+IN + shortcut residual + ReLU.

    head=None  -> returns the block activation [N,C2,Ho,Wo].
    head=(w,b) -> also fuses the final 4x4 conv + bias + sigmoid (Ho==Wo==4) and
                  returns the per-sample logits [N].
    """
    planes, taps, g = _prep_input(x1, 3, 1, 1)
    n, cout = x1.shape[0], x1.shape[1]
    m_full, wq, wo, ho = g["m_full"], g["wq"], g["wo"], g["ho"]
    mask = _valid_mask(ho, wo, wq)
    inv_count = 1.0 / float(ho * wo)
    # Residual re-laid-out to the same garbage-column layout (zeros on garbage).
    res = jnp.pad(sc, ((0, 0), (0, 0), (0, 0), (0, wq - wo))).reshape(n, cout, m_full)

    x_spec = pl.BlockSpec((1, g["p"], cout, g["lq"]), lambda i: (i, 0, 0, 0))
    w_spec = pl.BlockSpec((9, cout, cout), lambda i: (0, 0, 0))
    res_spec = pl.BlockSpec((1, cout, m_full), lambda i: (i, 0, 0))
    mask_spec = pl.BlockSpec((1, m_full), lambda i: (0, 0))

    if head is None:
        out = pl.pallas_call(
            functools.partial(_block_b_kernel, taps=taps, m_full=m_full,
                              inv_count=inv_count),
            out_shape=jax.ShapeDtypeStruct((n, cout, m_full), jnp.bfloat16),
            grid=(n,),
            in_specs=[x_spec, w_spec, res_spec, mask_spec],
            out_specs=pl.BlockSpec((1, cout, m_full), lambda i: (i, 0, 0)),
            compiler_params=_parallel_params(),
        )(planes, w2.astype(jnp.bfloat16), res, mask)
        return _to_spatial(out, ho, wo, wq)

    w_out, b_out = head
    assert ho == w_out.shape[1] and wo == w_out.shape[2], (
        "fused head expects the final 4x4 conv to see a 4x4 map (64x64 inputs)")
    wout_flat = jnp.pad(w_out, ((0, 0), (0, 0), (0, wq - wo))
                        ).reshape(cout, m_full).astype(jnp.float32)
    bout = jnp.reshape(b_out, (1, 1)).astype(jnp.float32)
    out = pl.pallas_call(
        functools.partial(_block_b_head_kernel, taps=taps, m_full=m_full,
                          inv_count=inv_count),
        out_shape=jax.ShapeDtypeStruct((n, 1, 1), jnp.float32),
        grid=(n,),
        in_specs=[x_spec, w_spec, res_spec, mask_spec,
                  pl.BlockSpec((cout, m_full), lambda i: (0, 0)),
                  pl.BlockSpec((1, 1), lambda i: (0, 0))],
        out_specs=pl.BlockSpec((1, 1, 1), lambda i: (i, 0, 0)),
        compiler_params=_parallel_params(),
    )(planes, w2.astype(jnp.bfloat16), res, mask, wout_flat, bout)
    return out.reshape(n)


# ---------------------------------- model ---------------------------------------

def resnet_discriminator(x_nchw, params):
    """ResNetDiscriminator forward (is_critic=False). x: [N, in_dim, H, W] NCHW."""
    x = x_nchw.astype(jnp.float32)
    x = conv_bias_lrelu(x, params["w0"], params["b0"])
    for name in ("block1", "block2"):
        w1, w2, ws = params[name]
        x1, sc = block_conv_a(x, w1, ws)
        x = block_conv_b(x1, sc, w2)
    w1, w2, ws = params["block3"]
    x1, sc = block_conv_a(x, w1, ws)
    # Final Conv2d(8*fd, 1, k=4, s=1, p=0) + Sigmoid fused into the last block kernel.
    # TODO(synk): inputs other than 64x64 give a >1x1 head map; that path would need a
    # separate (unfused) head kernel to reproduce x.view(-1) exactly.
    return block_conv_b(x1, sc, w2, head=(params["w_out"], params["b_out"]))


# ----------------------------- pure-JAX reference --------------------------------

def _instance_norm_ref(x):
    mean = jnp.mean(x, axis=(2, 3), keepdims=True)
    var = jnp.mean((x - mean) ** 2, axis=(2, 3), keepdims=True)
    return (x - mean) * jax.lax.rsqrt(var + EPS)


def _conv_ref(x, w_tap, k, stride, pad):
    cout, cin = w_tap.shape[1], w_tap.shape[2]
    w = w_tap.reshape(k, k, cout, cin).transpose(2, 3, 0, 1)          # OIHW
    return jax.lax.conv_general_dilated(
        x, w, (stride, stride), [(pad, pad), (pad, pad)],
        dimension_numbers=("NCHW", "OIHW", "NCHW"))


def resnet_discriminator_ref(x_nchw, params):
    """f32 reference of the PyTorch module (is_critic=False)."""
    x = x_nchw.astype(jnp.float32)
    x = _conv_ref(x, params["w0"], 4, 2, 1) + params["b0"].reshape(1, -1, 1, 1)
    x = jnp.where(x > 0, x, LRELU_SLOPE * x)
    for name in ("block1", "block2", "block3"):
        w1, w2, ws = params[name]
        out = jax.nn.relu(_instance_norm_ref(_conv_ref(x, w1, 3, 2, 1)))
        out = _instance_norm_ref(_conv_ref(out, w2, 3, 1, 1))
        sc = _instance_norm_ref(_conv_ref(x, ws[None], 1, 2, 0))
        x = jax.nn.relu(out + sc)
    y = jax.lax.conv_general_dilated(
        x, params["w_out"][None], (1, 1), [(0, 0), (0, 0)],
        dimension_numbers=("NCHW", "OIHW", "NCHW"))
    y = y + params["b_out"].reshape(1, 1, 1, 1)
    return jax.nn.sigmoid(y).reshape(-1)


# ----------------------------------- init ----------------------------------------

def init_params(key, in_dim, feature_dim):
    """Synthetic init mirroring weights_init (conv W ~ N(0, 0.02)).

    Weights are stored tap-major: [KH*KW, Cout, Cin].  Real PyTorch weights
    w_pt [Cout, Cin, KH, KW] convert via w_pt.transpose(2, 3, 0, 1).reshape(T, Cout, Cin).
    """
    ks = iter(jax.random.split(key, 16))

    def conv_w(k, cin, cout):
        return 0.02 * jax.random.normal(next(ks), (k * k, cout, cin), jnp.float32)

    def bias_col(cout):
        return 0.01 * jax.random.normal(next(ks), (cout, 1), jnp.float32)

    fd = feature_dim
    return {
        "w0": conv_w(4, in_dim, fd), "b0": bias_col(fd),
        "block1": (conv_w(3, fd, 2 * fd), conv_w(3, 2 * fd, 2 * fd),
                   conv_w(1, fd, 2 * fd)[0]),
        "block2": (conv_w(3, 2 * fd, 4 * fd), conv_w(3, 4 * fd, 4 * fd),
                   conv_w(1, 2 * fd, 4 * fd)[0]),
        "block3": (conv_w(3, 4 * fd, 8 * fd), conv_w(3, 8 * fd, 8 * fd),
                   conv_w(1, 4 * fd, 8 * fd)[0]),
        # final conv: single output channel, weight [8*fd, 4, 4] (= PyTorch w[0])
        "w_out": 0.02 * jax.random.normal(next(ks), (8 * fd, 4, 4), jnp.float32),
        "b_out": 0.01 * jax.random.normal(next(ks), (1,), jnp.float32),
    }


if __name__ == "__main__":
    key = jax.random.PRNGKey(0)
    k_x, k_p = jax.random.split(key)

    # 64x64 is the smallest input the module's 4x4 head supports
    # (4 stride-2 stages -> 4x4 -> 1x1 logits); keep feature_dim small.
    N, IN_DIM, H, W = 2, 3, 64, 64
    FEATURE_DIM = 8
    x = jax.random.normal(k_x, (N, IN_DIM, H, W), dtype=jnp.float32)

    params = init_params(k_p, IN_DIM, FEATURE_DIM)

    out = jax.jit(resnet_discriminator)(x, params)
    out = jax.block_until_ready(out)

    assert out.shape == (N,), out.shape
    assert bool(jnp.all(jnp.isfinite(out)))
    assert bool(jnp.all((out >= 0.0) & (out <= 1.0)))  # sigmoid output

    # Correctness against a pure-JAX f32 reference (kernels use bf16 MXU operands,
    # so allow a generous elementwise tolerance on the sigmoid outputs).
    ref = jax.block_until_ready(jax.jit(resnet_discriminator_ref)(x, params))
    assert bool(jnp.allclose(out, ref, atol=6e-2)), (out, ref)

    print("KERNEL_OK")
</pallas_src>

<mosaic_0001>
module attributes {stable_mosaic.version = 11 : i64} {
  func.func @_conv_bias_lrelu_kernel(%arg0: i32, %arg1: memref<1x4x3x1090xbf16, #tpu.memory_space<vmem>>, %arg2: memref<16x8x3xbf16, #tpu.memory_space<vmem>>, %arg3: memref<8x1xf32, #tpu.memory_space<vmem>>, %arg4: memref<1x8x1056xbf16, #tpu.memory_space<vmem>>) attributes {dimension_semantics = [#tpu.dimension_semantics<parallel>], iteration_bounds = array<i64: 2>, scalar_prefetch = 0 : i64, scratch_operands = 0 : i64, tpu.core_type = #tpu.core_type<tc>, window_params = [{transform_indices = @transform_0, window_bounds = array<i64: 1, 4, 3, 1090>}, {pipeline_mode = #tpu.pipeline_mode<synchronous>, transform_indices = @transform_1, window_bounds = array<i64: 16, 8, 3>}, {pipeline_mode = #tpu.pipeline_mode<synchronous>, transform_indices = @transform_2, window_bounds = array<i64: 8, 1>}, {transform_indices = @transform_3, window_bounds = array<i64: 1, 8, 1056>}]} {
    %c0 = arith.constant 0 : index
    %c0_0 = arith.constant 0 : index
    %c0_1 = arith.constant 0 : index
    %c0_2 = arith.constant 0 : index
    %0 = vector.load %arg1[%c0, %c0_0, %c0_1, %c0_2] : memref<1x4x3x1090xbf16, #tpu.memory_space<vmem>>, vector<1x1x3x1056xbf16>
    %1 = vector.shape_cast %0 : vector<1x1x3x1056xbf16> to vector<3x1056xbf16>
    %c0_3 = arith.constant 0 : index
    %c0_4 = arith.constant 0 : index
    %c0_5 = arith.constant 0 : index
    %2 = vector.load %arg2[%c0_3, %c0_4, %c0_5] : memref<16x8x3xbf16, #tpu.memory_space<vmem>>, vector<1x8x3xbf16>
    %3 = vector.shape_cast %2 : vector<1x8x3xbf16> to vector<8x3xbf16>
    %cst = arith.constant dense<0.000000e+00> : vector<8x1056xf32>
    %4 = tpu.matmul %3, %1, %cst {dimension_numbers = #tpu.dot_dimension_numbers<[1], [0], [0], [1], [0, 0, 1, 1], [], []>} : vector<8x3xbf16>, vector<3x1056xbf16>, vector<8x1056xf32> -> vector<8x1056xf32>
    %c0_6 = arith.constant 0 : index
    %c1 = arith.constant 1 : index
    %c0_7 = arith.constant 0 : index
    %c0_8 = arith.constant 0 : index
    %5 = vector.load %arg1[%c0_6, %c1, %c0_7, %c0_8] : memref<1x4x3x1090xbf16, #tpu.memory_space<vmem>>, vector<1x1x3x1056xbf16>
    %6 = vector.shape_cast %5 : vector<1x1x3x1056xbf16> to vector<3x1056xbf16>
    %c1_9 = arith.constant 1 : index
    %c0_10 = arith.constant 0 : index
    %c0_11 = arith.constant 0 : index
    %7 = vector.load %arg2[%c1_9, %c0_10, %c0_11] : memref<16x8x3xbf16, #tpu.memory_space<vmem>>, vector<1x8x3xbf16>
    %8 = vector.shape_cast %7 : vector<1x8x3xbf16> to vector<8x3xbf16>
    %cst_12 = arith.constant dense<0.000000e+00> : vector<8x1056xf32>
    %9 = tpu.matmul %8, %6, %cst_12 {dimension_numbers = #tpu.dot_dimension_numbers<[1], [0], [0], [1], [0, 0, 1, 1], [], []>} : vector<8x3xbf16>, vector<3x1056xbf16>, vector<8x1056xf32> -> vector<8x1056xf32>
    %10 = arith.addf %4, %9 : vector<8x1056xf32>
    %c0_13 = arith.constant 0 : index
    %c0_14 = arith.constant 0 : index
    %c0_15 = arith.constant 0 : index
    %c1_16 = arith.constant 1 : index
    %11 = vector.load %arg1[%c0_13, %c0_14, %c0_15, %c1_16] : memref<1x4x3x1090xbf16, #tpu.memory_space<vmem>>, vector<1x1x3x1056xbf16>
    %12 = vector.shape_cast %11 : vector<1x1x3x1056xbf16> to vector<3x1056xbf16>
    %c2 = arith.constant 2 : index
    %c0_17 = arith.constant 0 : index
    %c0_18 = arith.constant 0 : index
    %13 = vector.load %arg2[%c2, %c0_17, %c0_18] : memref<16x8x3xbf16, #tpu.memory_space<vmem>>, vector<1x8x3xbf16>
    %14 = vector.shape_cast %13 : vector<1x8x3xbf16> to vector<8x3xbf16>
    %cst_19 = arith.constant dense<0.000000e+00> : vector<8x1056xf32>
    %15 = tpu.matmul %14, %12, %cst_19 {dimension_numbers = #tpu.dot_dimension_numbers<[1], [0], [0], [1], [0, 0, 1, 1], [], []>} : vector<8x3xbf16>, vector<3x1056xbf16>, vector<8x1056xf32> -> vector<8x1056xf32>
    %16 = arith.addf %10, %15 : vector<8x1056xf32>
    %c0_20 = arith.constant 0 : index
    %c1_21 = arith.constant 1 : index
    %c0_22 = arith.constant 0 : index
    %c1_23 = arith.constant 1 : index
    %17 = vector.load %arg1[%c0_20, %c1_21, %c0_22, %c1_23] : memref<1x4x3x1090xbf16, #tpu.memory_space<vmem>>, vector<1x1x3x1056xbf16>
    %18 = vector.shape_cast %17 : vector<1x1x3x1056xbf16> to vector<3x1056xbf16>
    %c3 = arith.constant 3 : index
    %c0_24 = arith.constant 0 : index
    %c0_25 = arith.constant 0 : index
    %19 = vector.load %arg2[%c3, %c0_24, %c0_25] : memref<16x8x3xbf16, #tpu.memory_space<vmem>>, vector<1x8x3xbf16>
    %20 = vector.shape_cast %19 : vector<1x8x3xbf16> to vector<8x3xbf16>
    %cst_26 = arith.constant dense<0.000000e+00> : vector<8x1056xf32>
    %21 = tpu.matmul %20, %18, %cst_26 {dimension_numbers = #tpu.dot_dimension_numbers<[1], [0], [0], [1], [0, 0, 1, 1], [], []>} : vector<8x3xbf16>, vector<3x1056xbf16>, vector<8x1056xf32> -> vector<8x1056xf32>
    %22 = arith.addf %16, %21 : vector<8x1056xf32>
    %c0_27 = arith.constant 0 : index
    %c2_28 = arith.constant 2 : index
    %c0_29 = arith.constant 0 : index
    %c0_30 = arith.constant 0 : index
    %23 = vector.load %arg1[%c0_27, %c2_28, %c0_29, %c0_30] : memref<1x4x3x1090xbf16, #tpu.memory_space<vmem>>, vector<1x1x3x1056xbf16>
    %24 = vector.shape_cast %23 : vector<1x1x3x1056xbf16> to vector<3x1056xbf16>
    %c4 = arith.constant 4 : index
    %c0_31 = arith.constant 0 : index
    %c0_32 = arith.constant 0 : index
    %25 = vector.load %arg2[%c4, %c0_31, %c0_32] : memref<16x8x3xbf16, #tpu.memory_space<vmem>>, vector<1x8x3xbf16>
    %26 = vector.shape_cast %25 : vector<1x8x3xbf16> to vector<8x3xbf16>
    %cst_33 = arith.constant dense<0.000000e+00> : vector<8x1056xf32>
    %27 = tpu.matmul %26, %24, %cst_33 {dimension_numbers = #tpu.dot_dimension_numbers<[1], [0], [0], [1], [0, 0, 1, 1], [], []>} : vector<8x3xbf16>, vector<3x1056xbf16>, vector<8x1056xf32> -> vector<8x1056xf32>
    %28 = arith.addf %22, %27 : vector<8x1056xf32>
    %c0_34 = arith.constant 0 : index
    %c3_35 = arith.constant 3 : index
    %c0_36 = arith.constant 0 : index
    %c0_37 = arith.constant 0 : index
    %29 = vector.load %arg1[%c0_34, %c3_35, %c0_36, %c0_37] : memref<1x4x3x1090xbf16, #tpu.memory_space<vmem>>, vector<1x1x3x1056xbf16>
    %30 = vector.shape_cast %29 : vector<1x1x3x1056xbf16> to vector<3x1056xbf16>
    %c5 = arith.constant 5 : index
    %c0_38 = arith.constant 0 : index
    %c0_39 = arith.constant 0 : index
    %31 = vector.load %arg2[%c5, %c0_38, %c0_39] : memref<16x8x3xbf16, #tpu.memory_space<vmem>>, vector<1x8x3xbf16>
    %32 = vector.shape_cast %31 : vector<1x8x3xbf16> to vector<8x3xbf16>
    %cst_40 = arith.constant dense<0.000000e+00> : vector<8x1056xf32>
    %33 = tpu.matmul %32, %30, %cst_40 {dimension_numbers = #tpu.dot_dimension_numbers<[1], [0], [0], [1], [0, 0, 1, 1], [], []>} : vector<8x3xbf16>, vector<3x1056xbf16>, vector<8x1056xf32> -> vector<8x1056xf32>
    %34 = arith.addf %28, %33 : vector<8x1056xf32>
    %c0_41 = arith.constant 0 : index
    %c2_42 = arith.constant 2 : index
    %c0_43 = arith.constant 0 : index
    %c1_44 = arith.constant 1 : index
    %35 = vector.load %arg1[%c0_41, %c2_42, %c0_43, %c1_44] : memref<1x4x3x1090xbf16, #tpu.memory_space<vmem>>, vector<1x1x3x1056xbf16>
    %36 = vector.shape_cast %35 : vector<1x1x3x1056xbf16> to vector<3x1056xbf16>
    %c6 = arith.constant 6 : index
    %c0_45 = arith.constant 0 : index
    %c0_46 = arith.constant 0 : index
    %37 = vector.load %arg2[%c6, %c0_45, %c0_46] : memref<16x8x3xbf16, #tpu.memory_space<vmem>>, vector<1x8x3xbf16>
    %38 = vector.shape_cast %37 : vector<1x8x3xbf16> to vector<8x3xbf16>
    %cst_47 = arith.constant dense<0.000000e+00> : vector<8x1056xf32>
    %39 = tpu.matmul %38, %36, %cst_47 {dimension_numbers = #tpu.dot_dimension_numbers<[1], [0], [0], [1], [0, 0, 1, 1], [], []>} : vector<8x3xbf16>, vector<3x1056xbf16>, vector<8x1056xf32> -> vector<8x1056xf32>
    %40 = arith.addf %34, %39 : vector<8x1056xf32>
    %c0_48 = arith.constant 0 : index
    %c3_49 = arith.constant 3 : index
    %c0_50 = arith.constant 0 : index
    %c1_51 = arith.constant 1 : index
    %41 = vector.load %arg1[%c0_48, %c3_49, %c0_50, %c1_51] : memref<1x4x3x1090xbf16, #tpu.memory_space<vmem>>, vector<1x1x3x1056xbf16>
    %42 = vector.shape_cast %41 : vector<1x1x3x1056xbf16> to vector<3x1056xbf16>
    %c7 = arith.constant 7 : index
    %c0_52 = arith.constant 0 : index
    %c0_53 = arith.constant 0 : index
    %43 = vector.load %arg2[%c7, %c0_52, %c0_53] : memref<16x8x3xbf16, #tpu.memory_space<vmem>>, vector<1x8x3xbf16>
    %44 = vector.shape_cast %43 : vector<1x8x3xbf16> to vector<8x3xbf16>
    %cst_54 = arith.constant dense<0.000000e+00> : vector<8x1056xf32>
    %45 = tpu.matmul %44, %42, %cst_54 {dimension_numbers = #tpu.dot_dimension_numbers<[1], [0], [0], [1], [0, 0, 1, 1], [], []>} : vector<8x3xbf16>, vector<3x1056xbf16>, vector<8x1056xf32> -> vector<8x1056xf32>
    %46 = arith.addf %40, %45 : vector<8x1056xf32>
    %c0_55 = arith.constant 0 : index
    %c0_56 = arith.constant 0 : index
    %c0_57 = arith.constant 0 : index
    %c33 = arith.constant 33 : index
    %47 = vector.load %arg1[%c0_55, %c0_56, %c0_57, %c33] : memref<1x4x3x1090xbf16, #tpu.memory_space<vmem>>, vector<1x1x3x1056xbf16>
    %48 = vector.shape_cast %47 : vector<1x1x3x1056xbf16> to vector<3x1056xbf16>
    %c8 = arith.constant 8 : index
    %c0_58 = arith.constant 0 : index
    %c0_59 = arith.constant 0 : index
    %49 = vector.load %arg2[%c8, %c0_58, %c0_59] : memref<16x8x3xbf16, #tpu.memory_space<vmem>>, vector<1x8x3xbf16>
    %50 = vector.shape_cast %49 : vector<1x8x3xbf16> to vector<8x3xbf16>
    %cst_60 = arith.constant dense<0.000000e+00> : vector<8x1056xf32>
    %51 = tpu.matmul %50, %48, %cst_60 {dimension_numbers = #tpu.dot_dimension_numbers<[1], [0], [0], [1], [0, 0, 1, 1], [], []>} : vector<8x3xbf16>, vector<3x1056xbf16>, vector<8x1056xf32> -> vector<8x1056xf32>
    %52 = arith.addf %46, %51 : vector<8x1056xf32>
    %c0_61 = arith.constant 0 : index
    %c1_62 = arith.constant 1 : index
    %c0_63 = arith.constant 0 : index
    %c33_64 = arith.constant 33 : index
    %53 = vector.load %arg1[%c0_61, %c1_62, %c0_63, %c33_64] : memref<1x4x3x1090xbf16, #tpu.memory_space<vmem>>, vector<1x1x3x1056xbf16>
    %54 = vector.shape_cast %53 : vector<1x1x3x1056xbf16> to vector<3x1056xbf16>
    %c9 = arith.constant 9 : index
    %c0_65 = arith.constant 0 : index
    %c0_66 = arith.constant 0 : index
    %55 = vector.load %arg2[%c9, %c0_65, %c0_66] : memref<16x8x3xbf16, #tpu.memory_space<vmem>>, vector<1x8x3xbf16>
    %56 = vector.shape_cast %55 : vector<1x8x3xbf16> to vector<8x3xbf16>
    %cst_67 = arith.constant dense<0.000000e+00> : vector<8x1056xf32>
    %57 = tpu.matmul %56, %54, %cst_67 {dimension_numbers = #tpu.dot_dimension_numbers<[1], [0], [0], [1], [0, 0, 1, 1], [], []>} : vector<8x3xbf16>, vector<3x1056xbf16>, vector<8x1056xf32> -> vector<8x1056xf32>
    %58 = arith.addf %52, %57 : vector<8x1056xf32>
    %c0_68 = arith.constant 0 : index
    %c0_69 = arith.constant 0 : index
    %c0_70 = arith.constant 0 : index
    %c34 = arith.constant 34 : index
    %59 = vector.load %arg1[%c0_68, %c0_69, %c0_70, %c34] : memref<1x4x3x1090xbf16, #tpu.memory_space<vmem>>, vector<1x1x3x1056xbf16>
    %60 = vector.shape_cast %59 : vector<1x1x3x1056xbf16> to vector<3x1056xbf16>
    %c10 = arith.constant 10 : index
    %c0_71 = arith.constant 0 : index
    %c0_72 = arith.constant 0 : index
    %61 = vector.load %arg2[%c10, %c0_71, %c0_72] : memref<16x8x3xbf16, #tpu.memory_space<vmem>>, vector<1x8x3xbf16>
    %62 = vector.shape_cast %61 : vector<1x8x3xbf16> to vector<8x3xbf16>
    %cst_73 = arith.constant dense<0.000000e+00> : vector<8x1056xf32>
    %63 = tpu.matmul %62, %60, %cst_73 {dimension_numbers = #tpu.dot_dimension_numbers<[1], [0], [0], [1], [0, 0, 1, 1], [], []>} : vector<8x3xbf16>, vector<3x1056xbf16>, vector<8x1056xf32> -> vector<8x1056xf32>
    %64 = arith.addf %58, %63 : vector<8x1056xf32>
    %c0_74 = arith.constant 0 : index
    %c1_75 = arith.constant 1 : index
    %c0_76 = arith.constant 0 : index
    %c34_77 = arith.constant 34 : index
    %65 = vector.load %arg1[%c0_74, %c1_75, %c0_76, %c34_77] : memref<1x4x3x1090xbf16, #tpu.memory_space<vmem>>, vector<1x1x3x1056xbf16>
    %66 = vector.shape_cast %65 : vector<1x1x3x1056xbf16> to vector<3x1056xbf16>
    %c11 = arith.constant 11 : index
    %c0_78 = arith.constant 0 : index
    %c0_79 = arith.constant 0 : index
    %67 = vector.load %arg2[%c11, %c0_78, %c0_79] : memref<16x8x3xbf16, #tpu.memory_space<vmem>>, vector<1x8x3xbf16>
    %68 = vector.shape_cast %67 : vector<1x8x3xbf16> to vector<8x3xbf16>
    %cst_80 = arith.constant dense<0.000000e+00> : vector<8x1056xf32>
    %69 = tpu.matmul %68, %66, %cst_80 {dimension_numbers = #tpu.dot_dimension_numbers<[1], [0], [0], [1], [0, 0, 1, 1], [], []>} : vector<8x3xbf16>, vector<3x1056xbf16>, vector<8x1056xf32> -> vector<8x1056xf32>
    %70 = arith.addf %64, %69 : vector<8x1056xf32>
    %c0_81 = arith.constant 0 : index
    %c2_82 = arith.constant 2 : index
    %c0_83 = arith.constant 0 : index
    %c33_84 = arith.constant 33 : index
    %71 = vector.load %arg1[%c0_81, %c2_82, %c0_83, %c33_84] : memref<1x4x3x1090xbf16, #tpu.memory_space<vmem>>, vector<1x1x3x1056xbf16>
    %72 = vector.shape_cast %71 : vector<1x1x3x1056xbf16> to vector<3x1056xbf16>
    %c12 = arith.constant 12 : index
    %c0_85 = arith.constant 0 : index
    %c0_86 = arith.constant 0 : index
    %73 = vector.load %arg2[%c12, %c0_85, %c0_86] : memref<16x8x3xbf16, #tpu.memory_space<vmem>>, vector<1x8x3xbf16>
    %74 = vector.shape_cast %73 : vector<1x8x3xbf16> to vector<8x3xbf16>
    %cst_87 = arith.constant dense<0.000000e+00> : vector<8x1056xf32>
    %75 = tpu.matmul %74, %72, %cst_87 {dimension_numbers = #tpu.dot_dimension_numbers<[1], [0], [0], [1], [0, 0, 1, 1], [], []>} : vector<8x3xbf16>, vector<3x1056xbf16>, vector<8x1056xf32> -> vector<8x1056xf32>
    %76 = arith.addf %70, %75 : vector<8x1056xf32>
    %c0_88 = arith.constant 0 : index
    %c3_89 = arith.constant 3 : index
    %c0_90 = arith.constant 0 : index
    %c33_91 = arith.constant 33 : index
    %77 = vector.load %arg1[%c0_88, %c3_89, %c0_90, %c33_91] : memref<1x4x3x1090xbf16, #tpu.memory_space<vmem>>, vector<1x1x3x1056xbf16>
    %78 = vector.shape_cast %77 : vector<1x1x3x1056xbf16> to vector<3x1056xbf16>
    %c13 = arith.constant 13 : index
    %c0_92 = arith.constant 0 : index
    %c0_93 = arith.constant 0 : index
    %79 = vector.load %arg2[%c13, %c0_92, %c0_93] : memref<16x8x3xbf16, #tpu.memory_space<vmem>>, vector<1x8x3xbf16>
    %80 = vector.shape_cast %79 : vector<1x8x3xbf16> to vector<8x3xbf16>
    %cst_94 = arith.constant dense<0.000000e+00> : vector<8x1056xf32>
    %81 = tpu.matmul %80, %78, %cst_94 {dimension_numbers = #tpu.dot_dimension_numbers<[1], [0], [0], [1], [0, 0, 1, 1], [], []>} : vector<8x3xbf16>, vector<3x1056xbf16>, vector<8x1056xf32> -> vector<8x1056xf32>
    %82 = arith.addf %76, %81 : vector<8x1056xf32>
    %c0_95 = arith.constant 0 : index
    %c2_96 = arith.constant 2 : index
    %c0_97 = arith.constant 0 : index
    %c34_98 = arith.constant 34 : index
    %83 = vector.load %arg1[%c0_95, %c2_96, %c0_97, %c34_98] : memref<1x4x3x1090xbf16, #tpu.memory_space<vmem>>, vector<1x1x3x1056xbf16>
    %84 = vector.shape_cast %83 : vector<1x1x3x1056xbf16> to vector<3x1056xbf16>
    %c14 = arith.constant 14 : index
    %c0_99 = arith.constant 0 : index
    %c0_100 = arith.constant 0 : index
    %85 = vector.load %arg2[%c14, %c0_99, %c0_100] : memref<16x8x3xbf16, #tpu.memory_space<vmem>>, vector<1x8x3xbf16>
    %86 = vector.shape_cast %85 : vector<1x8x3xbf16> to vector<8x3xbf16>
    %cst_101 = arith.constant dense<0.000000e+00> : vector<8x1056xf32>
    %87 = tpu.matmul %86, %84, %cst_101 {dimension_numbers = #tpu.dot_dimension_numbers<[1], [0], [0], [1], [0, 0, 1, 1], [], []>} : vector<8x3xbf16>, vector<3x1056xbf16>, vector<8x1056xf32> -> vector<8x1056xf32>
    %88 = arith.addf %82, %87 : vector<8x1056xf32>
    %c0_102 = arith.constant 0 : index
    %c3_103 = arith.constant 3 : index
    %c0_104 = arith.constant 0 : index
    %c34_105 = arith.constant 34 : index
    %89 = vector.load %arg1[%c0_102, %c3_103, %c0_104, %c34_105] : memref<1x4x3x1090xbf16, #tpu.memory_space<vmem>>, vector<1x1x3x1056xbf16>
    %90 = vector.shape_cast %89 : vector<1x1x3x1056xbf16> to vector<3x1056xbf16>
    %c15 = arith.constant 15 : index
    %c0_106 = arith.constant 0 : index
    %c0_107 = arith.constant 0 : index
    %91 = vector.load %arg2[%c15, %c0_106, %c0_107] : memref<16x8x3xbf16, #tpu.memory_space<vmem>>, vector<1x8x3xbf16>
    %92 = vector.shape_cast %91 : vector<1x8x3xbf16> to vector<8x3xbf16>
    %cst_108 = arith.constant dense<0.000000e+00> : vector<8x1056xf32>
    %93 = tpu.matmul %92, %90, %cst_108 {dimension_numbers = #tpu.dot_dimension_numbers<[1], [0], [0], [1], [0, 0, 1, 1], [], []>} : vector<8x3xbf16>, vector<3x1056xbf16>, vector<8x1056xf32> -> vector<8x1056xf32>
    %94 = arith.addf %88, %93 : vector<8x1056xf32>
    %c0_109 = arith.constant 0 : index
    %c0_110 = arith.constant 0 : index
    %95 = vector.load %arg3[%c0_109, %c0_110] : memref<8x1xf32, #tpu.memory_space<vmem>>, vector<8x1xf32>
    %96 = vector.broadcast %95 : vector<8x1xf32> to vector<8x1056xf32>
    %97 = arith.addf %94, %96 : vector<8x1056xf32>
    %cst_111 = arith.constant 0.000000e+00 : f32
    %98 = vector.broadcast %cst_111 : f32 to vector<8x1056xf32>
    %99 = arith.cmpf ogt, %97, %98 : vector<8x1056xf32>
    %cst_112 = arith.constant 2.000000e-01 : f32
    %100 = vector.broadcast %cst_112 : f32 to vector<8x1056xf32>
    %101 = arith.mulf %100, %97 : vector<8x1056xf32>
    %102 = arith.select %99, %97, %101 : vector<8x1056xi1>, vector<8x1056xf32>
    %103 = arith.truncf %102 : vector<8x1056xf32> to vector<8x1056xbf16>
    %c0_113 = arith.constant 0 : index
    %c0_114 = arith.constant 0 : index
    %c0_115 = arith.constant 0 : index
    %104 = vector.load %arg4[%c0_113, %c0_114, %c0_115] : memref<1x8x1056xbf16, #tpu.memory_space<vmem>>, vector<1x8x1056xbf16>
    %105 = vector.shape_cast %104 : vector<1x8x1056xbf16> to vector<8x1056xbf16>
    %106 = vector.shape_cast %103 : vector<8x1056xbf16> to vector<1x8x1056xbf16>
    tpu.vector_store %arg4[%c0_113, %c0_114, %c0_115], %106 {strides = array<i32>} : memref<1x8x1056xbf16, #tpu.memory_space<vmem>>, vector<1x8x1056xbf16>,
    return
  }
  func.func @transform_0(%arg0: i32) -> (i32, i32, i32, i32) {
    %c0_i32 = arith.constant 0 : i32
    %c0_i32_0 = arith.constant 0 : i32
    %c0_i32_1 = arith.constant 0 : i32
    %c0_i32_2 = arith.constant 0 : i32
    return %arg0, %c0_i32, %c0_i32_0, %c0_i32_1 : i32, i32, i32, i32
  }
  func.func @transform_1(%arg0: i32) -> (i32, i32, i32) {
    %c0_i32 = arith.constant 0 : i32
    %c0_i32_0 = arith.constant 0 : i32
    %c0_i32_1 = arith.constant 0 : i32
    %c0_i32_2 = arith.constant 0 : i32
    return %c0_i32, %c0_i32_0, %c0_i32_1 : i32, i32, i32
  }
  func.func @transform_2(%arg0: i32) -> (i32, i32) {
    %c0_i32 = arith.constant 0 : i32
    %c0_i32_0 = arith.constant 0 : i32
    %c0_i32_1 = arith.constant 0 : i32
    return %c0_i32, %c0_i32_0 : i32, i32
  }
  func.func @transform_3(%arg0: i32) -> (i32, i32, i32) {
    %c0_i32 = arith.constant 0 : i32
    %c0_i32_0 = arith.constant 0 : i32
    %c0_i32_1 = arith.constant 0 : i32
    return %arg0, %c0_i32, %c0_i32_0 : i32, i32, i32
  }
}

module attributes {stable_mosaic.version = 11 : i64} {
  func.func @_block_a_kernel(%arg0: i32, %arg1: memref<1x4x8x290xbf16, #tpu.memory_space<vmem>>, %arg2: memref<9x16x8xbf16, #tpu.memory_space<vmem>>, %arg3: memref<16x8xbf16, #tpu.memory_space<vmem>>, %arg4: memref<1x272xf32, #tpu.memory_space<vmem>>, %arg5: memref<1x16x272xbf16, #tpu.memory_space<vmem>>, %arg6: memref<1x16x272xbf16, #tpu.memory_space<vmem>>) attributes {dimension_semantics = [#tpu.dimension_semantics<parallel>], iteration_bounds = array<i64: 2>, scalar_prefetch = 0 : i64, scratch_operands = 0 : i64, tpu.core_type = #tpu.core_type<tc>, window_params = [{transform_indices = @transform_0, window_bounds = array<i64: 1, 4, 8, 290>}, {pipeline_mode = #tpu.pipeline_mode<synchronous>, transform_indices = @transform_1, window_bounds = array<i64: 9, 16, 8>}, {pipeline_mode = #tpu.pipeline_mode<synchronous>, transform_indices = @transform_2, window_bounds = array<i64: 16, 8>}, {pipeline_mode = #tpu.pipeline_mode<synchronous>, transform_indices = @transform_3, window_bounds = array<i64: 1, 272>}, {transform_indices = @transform_4, window_bounds = array<i64: 1, 16, 272>}, {transform_indices = @transform_5, window_bounds = array<i64: 1, 16, 272>}]} {
    %c0 = arith.constant 0 : index
    %c0_0 = arith.constant 0 : index
    %0 = vector.load %arg4[%c0, %c0_0] : memref<1x272xf32, #tpu.memory_space<vmem>>, vector<1x272xf32>
    %c0_1 = arith.constant 0 : index
    %c0_2 = arith.constant 0 : index
    %c0_3 = arith.constant 0 : index
    %c0_4 = arith.constant 0 : index
    %1 = vector.load %arg1[%c0_1, %c0_2, %c0_3, %c0_4] : memref<1x4x8x290xbf16, #tpu.memory_space<vmem>>, vector<1x1x8x272xbf16>
    %2 = vector.shape_cast %1 : vector<1x1x8x272xbf16> to vector<8x272xbf16>
    %c0_5 = arith.constant 0 : index
    %c0_6 = arith.constant 0 : index
    %c0_7 = arith.constant 0 : index
    %3 = vector.load %arg2[%c0_5, %c0_6, %c0_7] : memref<9x16x8xbf16, #tpu.memory_space<vmem>>, vector<1x16x8xbf16>
    %4 = vector.shape_cast %3 : vector<1x16x8xbf16> to vector<16x8xbf16>
    %cst = arith.constant dense<0.000000e+00> : vector<16x272xf32>
    %5 = tpu.matmul %4, %2, %cst {dimension_numbers = #tpu.dot_dimension_numbers<[1], [0], [0], [1], [0, 0, 1, 1], [], []>} : vector<16x8xbf16>, vector<8x272xbf16>, vector<16x272xf32> -> vector<16x272xf32>
    %c0_8 = arith.constant 0 : index
    %c1 = arith.constant 1 : index
    %c0_9 = arith.constant 0 : index
    %c0_10 = arith.constant 0 : index
    %6 = vector.load %arg1[%c0_8, %c1, %c0_9, %c0_10] : memref<1x4x8x290xbf16, #tpu.memory_space<vmem>>, vector<1x1x8x272xbf16>
    %7 = vector.shape_cast %6 : vector<1x1x8x272xbf16> to vector<8x272xbf16>
    %c1_11 = arith.constant 1 : index
    %c0_12 = arith.constant 0 : index
    %c0_13 = arith.constant 0 : index
    %8 = vector.load %arg2[%c1_11, %c0_12, %c0_13] : memref<9x16x8xbf16, #tpu.memory_space<vmem>>, vector<1x16x8xbf16>
    %9 = vector.shape_cast %8 : vector<1x16x8xbf16> to vector<16x8xbf16>
    %cst_14 = arith.constant dense<0.000000e+00> : vector<16x272xf32>
    %10 = tpu.matmul %9, %7, %cst_14 {dimension_numbers = #tpu.dot_dimension_numbers<[1], [0], [0], [1], [0, 0, 1, 1], [], []>} : vector<16x8xbf16>, vector<8x272xbf16>, vector<16x272xf32> -> vector<16x272xf32>
    %11 = arith.addf %5, %10 : vector<16x272xf32>
    %c0_15 = arith.constant 0 : index
    %c0_16 = arith.constant 0 : index
    %c0_17 = arith.constant 0 : index
    %c1_18 = arith.constant 1 : index
    %12 = vector.load %arg1[%c0_15, %c0_16, %c0_17, %c1_18] : memref<1x4x8x290xbf16, #tpu.memory_space<vmem>>, vector<1x1x8x272xbf16>
    %13 = vector.shape_cast %12 : vector<1x1x8x272xbf16> to vector<8x272xbf16>
    %c2 = arith.constant 2 : index
    %c0_19 = arith.constant 0 : index
    %c0_20 = arith.constant 0 : index
    %14 = vector.load %arg2[%c2, %c0_19, %c0_20] : memref<9x16x8xbf16, #tpu.memory_space<vmem>>, vector<1x16x8xbf16>
    %15 = vector.shape_cast %14 : vector<1x16x8xbf16> to vector<16x8xbf16>
    %cst_21 = arith.constant dense<0.000000e+00> : vector<16x272xf32>
    %16 = tpu.matmul %15, %13, %cst_21 {dimension_numbers = #tpu.dot_dimension_numbers<[1], [0], [0], [1], [0, 0, 1, 1], [], []>} : vector<16x8xbf16>, vector<8x272xbf16>, vector<16x272xf32> -> vector<16x272xf32>
    %17 = arith.addf %11, %16 : vector<16x272xf32>
    %c0_22 = arith.constant 0 : index
    %c2_23 = arith.constant 2 : index
    %c0_24 = arith.constant 0 : index
    %c0_25 = arith.constant 0 : index
    %18 = vector.load %arg1[%c0_22, %c2_23, %c0_24, %c0_25] : memref<1x4x8x290xbf16, #tpu.memory_space<vmem>>, vector<1x1x8x272xbf16>
    %19 = vector.shape_cast %18 : vector<1x1x8x272xbf16> to vector<8x272xbf16>
    %c3 = arith.constant 3 : index
    %c0_26 = arith.constant 0 : index
    %c0_27 = arith.constant 0 : index
    %20 = vector.load %arg2[%c3, %c0_26, %c0_27] : memref<9x16x8xbf16, #tpu.memory_space<vmem>>, vector<1x16x8xbf16>
    %21 = vector.shape_cast %20 : vector<1x16x8xbf16> to vector<16x8xbf16>
    %cst_28 = arith.constant dense<0.000000e+00> : vector<16x272xf32>
    %22 = tpu.matmul %21, %19, %cst_28 {dimension_numbers = #tpu.dot_dimension_numbers<[1], [0], [0], [1], [0, 0, 1, 1], [], []>} : vector<16x8xbf16>, vector<8x272xbf16>, vector<16x272xf32> -> vector<16x272xf32>
    %23 = arith.addf %17, %22 : vector<16x272xf32>
    %c0_29 = arith.constant 0 : index
    %c3_30 = arith.constant 3 : index
    %c0_31 = arith.constant 0 : index
    %c0_32 = arith.constant 0 : index
    %24 = vector.load %arg1[%c0_29, %c3_30, %c0_31, %c0_32] : memref<1x4x8x290xbf16, #tpu.memory_space<vmem>>, vector<1x1x8x272xbf16>
    %25 = vector.shape_cast %24 : vector<1x1x8x272xbf16> to vector<8x272xbf16>
    %c4 = arith.constant 4 : index
    %c0_33 = arith.constant 0 : index
    %c0_34 = arith.constant 0 : index
    %26 = vector.load %arg2[%c4, %c0_33, %c0_34] : memref<9x16x8xbf16, #tpu.memory_space<vmem>>, vector<1x16x8xbf16>
    %27 = vector.shape_cast %26 : vector<1x16x8xbf16> to vector<16x8xbf16>
    %cst_35 = arith.constant dense<0.000000e+00> : vector<16x272xf32>
    %28 = tpu.matmul %27, %25, %cst_35 {dimension_numbers = #tpu.dot_dimension_numbers<[1], [0], [0], [1], [0, 0, 1, 1], [], []>} : vector<16x8xbf16>, vector<8x272xbf16>, vector<16x272xf32> -> vector<16x272xf32>
    %29 = arith.addf %23, %28 : vector<16x272xf32>
    %c0_36 = arith.constant 0 : index
    %c2_37 = arith.constant 2 : index
    %c0_38 = arith.constant 0 : index
    %c1_39 = arith.constant 1 : index
    %30 = vector.load %arg1[%c0_36, %c2_37, %c0_38, %c1_39] : memref<1x4x8x290xbf16, #tpu.memory_space<vmem>>, vector<1x1x8x272xbf16>
    %31 = vector.shape_cast %30 : vector<1x1x8x272xbf16> to vector<8x272xbf16>
    %c5 = arith.constant 5 : index
    %c0_40 = arith.constant 0 : index
    %c0_41 = arith.constant 0 : index
    %32 = vector.load %arg2[%c5, %c0_40, %c0_41] : memref<9x16x8xbf16, #tpu.memory_space<vmem>>, vector<1x16x8xbf16>
    %33 = vector.shape_cast %32 : vector<1x16x8xbf16> to vector<16x8xbf16>
    %cst_42 = arith.constant dense<0.000000e+00> : vector<16x272xf32>
    %34 = tpu.matmul %33, %31, %cst_42 {dimension_numbers = #tpu.dot_dimension_numbers<[1], [0], [0], [1], [0, 0, 1, 1], [], []>} : vector<16x8xbf16>, vector<8x272xbf16>, vector<16x272xf32> -> vector<16x272xf32>
    %35 = arith.addf %29, %34 : vector<16x272xf32>
    %c0_43 = arith.constant 0 : index
    %c0_44 = arith.constant 0 : index
    %c0_45 = arith.constant 0 : index
    %c17 = arith.constant 17 : index
    %36 = vector.load %arg1[%c0_43, %c0_44, %c0_45, %c17] : memref<1x4x8x290xbf16, #tpu.memory_space<vmem>>, vector<1x1x8x272xbf16>
    %37 = vector.shape_cast %36 : vector<1x1x8x272xbf16> to vector<8x272xbf16>
    %c6 = arith.constant 6 : index
    %c0_46 = arith.constant 0 : index
    %c0_47 = arith.constant 0 : index
    %38 = vector.load %arg2[%c6, %c0_46, %c0_47] : memref<9x16x8xbf16, #tpu.memory_space<vmem>>, vector<1x16x8xbf16>
    %39 = vector.shape_cast %38 : vector<1x16x8xbf16> to vector<16x8xbf16>
    %cst_48 = arith.constant dense<0.000000e+00> : vector<16x272xf32>
    %40 = tpu.matmul %39, %37, %cst_48 {dimension_numbers = #tpu.dot_dimension_numbers<[1], [0], [0], [1], [0, 0, 1, 1], [], []>} : vector<16x8xbf16>, vector<8x272xbf16>, vector<16x272xf32> -> vector<16x272xf32>
    %41 = arith.addf %35, %40 : vector<16x272xf32>
    %c0_49 = arith.constant 0 : index
    %c1_50 = arith.constant 1 : index
    %c0_51 = arith.constant 0 : index
    %c17_52 = arith.constant 17 : index
    %42 = vector.load %arg1[%c0_49, %c1_50, %c0_51, %c17_52] : memref<1x4x8x290xbf16, #tpu.memory_space<vmem>>, vector<1x1x8x272xbf16>
    %43 = vector.shape_cast %42 : vector<1x1x8x272xbf16> to vector<8x272xbf16>
    %c7 = arith.constant 7 : index
    %c0_53 = arith.constant 0 : index
    %c0_54 = arith.constant 0 : index
    %44 = vector.load %arg2[%c7, %c0_53, %c0_54] : memref<9x16x8xbf16, #tpu.memory_space<vmem>>, vector<1x16x8xbf16>
    %45 = vector.shape_cast %44 : vector<1x16x8xbf16> to vector<16x8xbf16>
    %cst_55 = arith.constant dense<0.000000e+00> : vector<16x272xf32>
    %46 = tpu.matmul %45, %43, %cst_55 {dimension_numbers = #tpu.dot_dimension_numbers<[1], [0], [0], [1], [0, 0, 1, 1], [], []>} : vector<16x8xbf16>, vector<8x272xbf16>, vector<16x272xf32> -> vector<16x272xf32>
    %47 = arith.addf %41, %46 : vector<16x272xf32>
    %c0_56 = arith.constant 0 : index
    %c0_57 = arith.constant 0 : index
    %c0_58 = arith.constant 0 : index
    %c18 = arith.constant 18 : index
    %48 = vector.load %arg1[%c0_56, %c0_57, %c0_58, %c18] : memref<1x4x8x290xbf16, #tpu.memory_space<vmem>>, vector<1x1x8x272xbf16>
    %49 = vector.shape_cast %48 : vector<1x1x8x272xbf16> to vector<8x272xbf16>
    %c8 = arith.constant 8 : index
    %c0_59 = arith.constant 0 : index
    %c0_60 = arith.constant 0 : index
    %50 = vector.load %arg2[%c8, %c0_59, %c0_60] : memref<9x16x8xbf16, #tpu.memory_space<vmem>>, vector<1x16x8xbf16>
    %51 = vector.shape_cast %50 : vector<1x16x8xbf16> to vector<16x8xbf16>
    %cst_61 = arith.constant dense<0.000000e+00> : vector<16x272xf32>
    %52 = tpu.matmul %51, %49, %cst_61 {dimension_numbers = #tpu.dot_dimension_numbers<[1], [0], [0], [1], [0, 0, 1, 1], [], []>} : vector<16x8xbf16>, vector<8x272xbf16>, vector<16x272xf32> -> vector<16x272xf32>
    %53 = arith.addf %47, %52 : vector<16x272xf32>
    %54 = vector.broadcast %0 : vector<1x272xf32> to vector<16x272xf32>
    %55 = arith.mulf %53, %54 : vector<16x272xf32>
    %cst_62 = arith.constant dense<0.000000e+00> : vector<16xf32>
    %56 = vector.multi_reduction <add>, %55, %cst_62 [1] : vector<16x272xf32> to vector<16xf32>
    %57 = vector.shape_cast %56 : vector<16xf32> to vector<16x1xf32>
    %cst_63 = arith.constant 3.906250e-03 : f32
    %58 = vector.broadcast %cst_63 : f32 to vector<16x1xf32>
    %59 = arith.mulf %57, %58 : vector<16x1xf32>
    %60 = vector.broadcast %59 : vector<16x1xf32> to vector<16x272xf32>
    %61 = arith.subf %53, %60 : vector<16x272xf32>
    %62 = vector.broadcast %0 : vector<1x272xf32> to vector<16x272xf32>
    %63 = arith.mulf %61, %62 : vector<16x272xf32>
    %64 = arith.mulf %63, %63 : vector<16x272xf32>
    %cst_64 = arith.constant dense<0.000000e+00> : vector<16xf32>
    %65 = vector.multi_reduction <add>, %64, %cst_64 [1] : vector<16x272xf32> to vector<16xf32>
    %66 = vector.shape_cast %65 : vector<16xf32> to vector<16x1xf32>
    %cst_65 = arith.constant 3.906250e-03 : f32
    %67 = vector.broadcast %cst_65 : f32 to vector<16x1xf32>
    %68 = arith.mulf %66, %67 : vector<16x1xf32>
    %69 = vector.broadcast %59 : vector<16x1xf32> to vector<16x272xf32>
    %70 = arith.subf %53, %69 : vector<16x272xf32>
    %cst_66 = arith.constant 9.99999974E-6 : f32
    %71 = vector.broadcast %cst_66 : f32 to vector<16x1xf32>
    %72 = arith.addf %68, %71 : vector<16x1xf32>
    %73 = math.rsqrt %72 : vector<16x1xf32>
    %74 = vector.broadcast %73 : vector<16x1xf32> to vector<16x272xf32>
    %75 = arith.mulf %70, %74 : vector<16x272xf32>
    %cst_67 = arith.constant 0.000000e+00 : f32
    %76 = vector.broadcast %cst_67 : f32 to vector<16x272xf32>
    %77 = arith.maximumf %75, %76 : vector<16x272xf32>
    %78 = arith.truncf %77 : vector<16x272xf32> to vector<16x272xbf16>
    %c0_68 = arith.constant 0 : index
    %c0_69 = arith.constant 0 : index
    %c0_70 = arith.constant 0 : index
    %79 = vector.load %arg5[%c0_68, %c0_69, %c0_70] : memref<1x16x272xbf16, #tpu.memory_space<vmem>>, vector<1x16x272xbf16>
    %80 = vector.shape_cast %79 : vector<1x16x272xbf16> to vector<16x272xbf16>
    %81 = vector.shape_cast %78 : vector<16x272xbf16> to vector<1x16x272xbf16>
    tpu.vector_store %arg5[%c0_68, %c0_69, %c0_70], %81 {strides = array<i32>} : memref<1x16x272xbf16, #tpu.memory_space<vmem>>, vector<1x16x272xbf16>,
    %c0_71 = arith.constant 0 : index
    %c0_72 = arith.constant 0 : index
    %82 = vector.load %arg3[%c0_71, %c0_72] : memref<16x8xbf16, #tpu.memory_space<vmem>>, vector<16x8xbf16>
    %c0_73 = arith.constant 0 : index
    %c3_74 = arith.constant 3 : index
    %c0_75 = arith.constant 0 : index
    %c0_76 = arith.constant 0 : index
    %83 = vector.load %arg1[%c0_73, %c3_74, %c0_75, %c0_76] : memref<1x4x8x290xbf16, #tpu.memory_space<vmem>>, vector<1x1x8x272xbf16>
    %84 = vector.shape_cast %83 : vector<1x1x8x272xbf16> to vector<8x272xbf16>
    %cst_77 = arith.constant dense<0.000000e+00> : vector<16x272xf32>
    %85 = tpu.matmul %82, %84, %cst_77 {dimension_numbers = #tpu.dot_dimension_numbers<[1], [0], [0], [1], [0, 0, 1, 1], [], []>} : vector<16x8xbf16>, vector<8x272xbf16>, vector<16x272xf32> -> vector<16x272xf32>
    %86 = vector.broadcast %0 : vector<1x272xf32> to vector<16x272xf32>
    %87 = arith.mulf %85, %86 : vector<16x272xf32>
    %cst_78 = arith.constant dense<0.000000e+00> : vector<16xf32>
    %88 = vector.multi_reduction <add>, %87, %cst_78 [1] : vector<16x272xf32> to vector<16xf32>
    %89 = vector.shape_cast %88 : vector<16xf32> to vector<16x1xf32>
    %cst_79 = arith.constant 3.906250e-03 : f32
    %90 = vector.broadcast %cst_79 : f32 to vector<16x1xf32>
    %91 = arith.mulf %89, %90 : vector<16x1xf32>
    %92 = vector.broadcast %91 : vector<16x1xf32> to vector<16x272xf32>
    %93 = arith.subf %85, %92 : vector<16x272xf32>
    %94 = vector.broadcast %0 : vector<1x272xf32> to vector<16x272xf32>
    %95 = arith.mulf %93, %94 : vector<16x272xf32>
    %96 = arith.mulf %95, %95 : vector<16x272xf32>
    %cst_80 = arith.constant dense<0.000000e+00> : vector<16xf32>
    %97 = vector.multi_reduction <add>, %96, %cst_80 [1] : vector<16x272xf32> to vector<16xf32>
    %98 = vector.shape_cast %97 : vector<16xf32> to vector<16x1xf32>
    %cst_81 = arith.constant 3.906250e-03 : f32
    %99 = vector.broadcast %cst_81 : f32 to vector<16x1xf32>
    %100 = arith.mulf %98, %99 : vector<16x1xf32>
    %101 = vector.broadcast %91 : vector<16x1xf32> to vector<16x272xf32>
    %102 = arith.subf %85, %101 : vector<16x272xf32>
    %cst_82 = arith.constant 9.99999974E-6 : f32
    %103 = vector.broadcast %cst_82 : f32 to vector<16x1xf32>
    %104 = arith.addf %100, %103 : vector<16x1xf32>
    %105 = math.rsqrt %104 : vector<16x1xf32>
    %106 = vector.broadcast %105 : vector<16x1xf32> to vector<16x272xf32>
    %107 = arith.mulf %102, %106 : vector<16x272xf32>
    %108 = arith.truncf %107 : vector<16x272xf32> to vector<16x272xbf16>
    %c0_83 = arith.constant 0 : index
    %c0_84 = arith.constant 0 : index
    %c0_85 = arith.constant 0 : index
    %109 = vector.load %arg6[%c0_83, %c0_84, %c0_85] : memref<1x16x272xbf16, #tpu.memory_space<vmem>>, vector<1x16x272xbf16>
    %110 = vector.shape_cast %109 : vector<1x16x272xbf16> to vector<16x272xbf16>
    %111 = vector.shape_cast %108 : vector<16x272xbf16> to vector<1x16x272xbf16>
    tpu.vector_store %arg6[%c0_83, %c0_84, %c0_85], %111 {strides = array<i32>} : memref<1x16x272xbf16, #tpu.memory_space<vmem>>, vector<1x16x272xbf16>,
    return
  }
  func.func @transform_0(%arg0: i32) -> (i32, i32, i32, i32) {
    %c0_i32 = arith.constant 0 : i32
    %c0_i32_0 = arith.constant 0 : i32
    %c0_i32_1 = arith.constant 0 : i32
    %c0_i32_2 = arith.constant 0 : i32
    return %arg0, %c0_i32, %c0_i32_0, %c0_i32_1 : i32, i32, i32, i32
  }
  func.func @transform_1(%arg0: i32) -> (i32, i32, i32) {
    %c0_i32 = arith.constant 0 : i32
    %c0_i32_0 = arith.constant 0 : i32
    %c0_i32_1 = arith.constant 0 : i32
    %c0_i32_2 = arith.constant 0 : i32
    return %c0_i32, %c0_i32_0, %c0_i32_1 : i32, i32, i32
  }
  func.func @transform_2(%arg0: i32) -> (i32, i32) {
    %c0_i32 = arith.constant 0 : i32
    %c0_i32_0 = arith.constant 0 : i32
    %c0_i32_1 = arith.constant 0 : i32
    return %c0_i32, %c0_i32_0 : i32, i32
  }
  func.func @transform_3(%arg0: i32) -> (i32, i32) {
    %c0_i32 = arith.constant 0 : i32
    %c0_i32_0 = arith.constant 0 : i32
    %c0_i32_1 = arith.constant 0 : i32
    return %c0_i32, %c0_i32_0 : i32, i32
  }
  func.func @transform_4(%arg0: i32) -> (i32, i32, i32) {
    %c0_i32 = arith.constant 0 : i32
    %c0_i32_0 = arith.constant 0 : i32
    %c0_i32_1 = arith.constant 0 : i32
    return %arg0, %c0_i32, %c0_i32_0 : i32, i32, i32
  }
  func.func @transform_5(%arg0: i32) -> (i32, i32, i32) {
    %c0_i32 = arith.constant 0 : i32
    %c0_i32_0 = arith.constant 0 : i32
    %c0_i32_1 = arith.constant 0 : i32
    return %arg0, %c0_i32, %c0_i32_0 : i32, i32, i32
  }
}

module attributes {stable_mosaic.version = 11 : i64} {
  func.func @_block_b_kernel(%arg0: i32, %arg1: memref<1x1x16x326xbf16, #tpu.memory_space<vmem>>, %arg2: memref<9x16x16xbf16, #tpu.memory_space<vmem>>, %arg3: memref<1x16x288xbf16, #tpu.memory_space<vmem>>, %arg4: memref<1x288xf32, #tpu.memory_space<vmem>>, %arg5: memref<1x16x288xbf16, #tpu.memory_space<vmem>>) attributes {dimension_semantics = [#tpu.dimension_semantics<parallel>], iteration_bounds = array<i64: 2>, scalar_prefetch = 0 : i64, scratch_operands = 0 : i64, tpu.core_type = #tpu.core_type<tc>, window_params = [{transform_indices = @transform_0, window_bounds = array<i64: 1, 1, 16, 326>}, {pipeline_mode = #tpu.pipeline_mode<synchronous>, transform_indices = @transform_1, window_bounds = array<i64: 9, 16, 16>}, {transform_indices = @transform_2, window_bounds = array<i64: 1, 16, 288>}, {pipeline_mode = #tpu.pipeline_mode<synchronous>, transform_indices = @transform_3, window_bounds = array<i64: 1, 288>}, {transform_indices = @transform_4, window_bounds = array<i64: 1, 16, 288>}]} {
    %c0 = arith.constant 0 : index
    %c0_0 = arith.constant 0 : index
    %c0_1 = arith.constant 0 : index
    %c0_2 = arith.constant 0 : index
    %0 = vector.load %arg1[%c0, %c0_0, %c0_1, %c0_2] : memref<1x1x16x326xbf16, #tpu.memory_space<vmem>>, vector<1x1x16x288xbf16>
    %1 = vector.shape_cast %0 : vector<1x1x16x288xbf16> to vector<16x288xbf16>
    %c0_3 = arith.constant 0 : index
    %c0_4 = arith.constant 0 : index
    %c0_5 = arith.constant 0 : index
    %2 = vector.load %arg2[%c0_3, %c0_4, %c0_5] : memref<9x16x16xbf16, #tpu.memory_space<vmem>>, vector<1x16x16xbf16>
    %3 = vector.shape_cast %2 : vector<1x16x16xbf16> to vector<16x16xbf16>
    %cst = arith.constant dense<0.000000e+00> : vector<16x288xf32>
    %4 = tpu.matmul %3, %1, %cst {dimension_numbers = #tpu.dot_dimension_numbers<[1], [0], [0], [1], [0, 0, 1, 1], [], []>} : vector<16x16xbf16>, vector<16x288xbf16>, vector<16x288xf32> -> vector<16x288xf32>
    %c0_6 = arith.constant 0 : index
    %c0_7 = arith.constant 0 : index
    %c0_8 = arith.constant 0 : index
    %c1 = arith.constant 1 : index
    %5 = vector.load %arg1[%c0_6, %c0_7, %c0_8, %c1] : memref<1x1x16x326xbf16, #tpu.memory_space<vmem>>, vector<1x1x16x288xbf16>
    %6 = vector.shape_cast %5 : vector<1x1x16x288xbf16> to vector<16x288xbf16>
    %c1_9 = arith.constant 1 : index
    %c0_10 = arith.constant 0 : index
    %c0_11 = arith.constant 0 : index
    %7 = vector.load %arg2[%c1_9, %c0_10, %c0_11] : memref<9x16x16xbf16, #tpu.memory_space<vmem>>, vector<1x16x16xbf16>
    %8 = vector.shape_cast %7 : vector<1x16x16xbf16> to vector<16x16xbf16>
    %cst_12 = arith.constant dense<0.000000e+00> : vector<16x288xf32>
    %9 = tpu.matmul %8, %6, %cst_12 {dimension_numbers = #tpu.dot_dimension_numbers<[1], [0], [0], [1], [0, 0, 1, 1], [], []>} : vector<16x16xbf16>, vector<16x288xbf16>, vector<16x288xf32> -> vector<16x288xf32>
    %10 = arith.addf %4, %9 : vector<16x288xf32>
    %c0_13 = arith.constant 0 : index
    %c0_14 = arith.constant 0 : index
    %c0_15 = arith.constant 0 : index
    %c2 = arith.constant 2 : index
    %11 = vector.load %arg1[%c0_13, %c0_14, %c0_15, %c2] : memref<1x1x16x326xbf16, #tpu.memory_space<vmem>>, vector<1x1x16x288xbf16>
    %12 = vector.shape_cast %11 : vector<1x1x16x288xbf16> to vector<16x288xbf16>
    %c2_16 = arith.constant 2 : index
    %c0_17 = arith.constant 0 : index
    %c0_18 = arith.constant 0 : index
    %13 = vector.load %arg2[%c2_16, %c0_17, %c0_18] : memref<9x16x16xbf16, #tpu.memory_space<vmem>>, vector<1x16x16xbf16>
    %14 = vector.shape_cast %13 : vector<1x16x16xbf16> to vector<16x16xbf16>
    %cst_19 = arith.constant dense<0.000000e+00> : vector<16x288xf32>
    %15 = tpu.matmul %14, %12, %cst_19 {dimension_numbers = #tpu.dot_dimension_numbers<[1], [0], [0], [1], [0, 0, 1, 1], [], []>} : vector<16x16xbf16>, vector<16x288xbf16>, vector<16x288xf32> -> vector<16x288xf32>
    %16 = arith.addf %10, %15 : vector<16x288xf32>
    %c0_20 = arith.constant 0 : index
    %c0_21 = arith.constant 0 : index
    %c0_22 = arith.constant 0 : index
    %c18 = arith.constant 18 : index
    %17 = vector.load %arg1[%c0_20, %c0_21, %c0_22, %c18] : memref<1x1x16x326xbf16, #tpu.memory_space<vmem>>, vector<1x1x16x288xbf16>
    %18 = vector.shape_cast %17 : vector<1x1x16x288xbf16> to vector<16x288xbf16>
    %c3 = arith.constant 3 : index
    %c0_23 = arith.constant 0 : index
    %c0_24 = arith.constant 0 : index
    %19 = vector.load %arg2[%c3, %c0_23, %c0_24] : memref<9x16x16xbf16, #tpu.memory_space<vmem>>, vector<1x16x16xbf16>
    %20 = vector.shape_cast %19 : vector<1x16x16xbf16> to vector<16x16xbf16>
    %cst_25 = arith.constant dense<0.000000e+00> : vector<16x288xf32>
    %21 = tpu.matmul %20, %18, %cst_25 {dimension_numbers = #tpu.dot_dimension_numbers<[1], [0], [0], [1], [0, 0, 1, 1], [], []>} : vector<16x16xbf16>, vector<16x288xbf16>, vector<16x288xf32> -> vector<16x288xf32>
    %22 = arith.addf %16, %21 : vector<16x288xf32>
    %c0_26 = arith.constant 0 : index
    %c0_27 = arith.constant 0 : index
    %c0_28 = arith.constant 0 : index
    %c19 = arith.constant 19 : index
    %23 = vector.load %arg1[%c0_26, %c0_27, %c0_28, %c19] : memref<1x1x16x326xbf16, #tpu.memory_space<vmem>>, vector<1x1x16x288xbf16>
    %24 = vector.shape_cast %23 : vector<1x1x16x288xbf16> to vector<16x288xbf16>
    %c4 = arith.constant 4 : index
    %c0_29 = arith.constant 0 : index
    %c0_30 = arith.constant 0 : index
    %25 = vector.load %arg2[%c4, %c0_29, %c0_30] : memref<9x16x16xbf16, #tpu.memory_space<vmem>>, vector<1x16x16xbf16>
    %26 = vector.shape_cast %25 : vector<1x16x16xbf16> to vector<16x16xbf16>
    %cst_31 = arith.constant dense<0.000000e+00> : vector<16x288xf32>
    %27 = tpu.matmul %26, %24, %cst_31 {dimension_numbers = #tpu.dot_dimension_numbers<[1], [0], [0], [1], [0, 0, 1, 1], [], []>} : vector<16x16xbf16>, vector<16x288xbf16>, vector<16x288xf32> -> vector<16x288xf32>
    %28 = arith.addf %22, %27 : vector<16x288xf32>
    %c0_32 = arith.constant 0 : index
    %c0_33 = arith.constant 0 : index
    %c0_34 = arith.constant 0 : index
    %c20 = arith.constant 20 : index
    %29 = vector.load %arg1[%c0_32, %c0_33, %c0_34, %c20] : memref<1x1x16x326xbf16, #tpu.memory_space<vmem>>, vector<1x1x16x288xbf16>
    %30 = vector.shape_cast %29 : vector<1x1x16x288xbf16> to vector<16x288xbf16>
    %c5 = arith.constant 5 : index
    %c0_35 = arith.constant 0 : index
    %c0_36 = arith.constant 0 : index
    %31 = vector.load %arg2[%c5, %c0_35, %c0_36] : memref<9x16x16xbf16, #tpu.memory_space<vmem>>, vector<1x16x16xbf16>
    %32 = vector.shape_cast %31 : vector<1x16x16xbf16> to vector<16x16xbf16>
    %cst_37 = arith.constant dense<0.000000e+00> : vector<16x288xf32>
    %33 = tpu.matmul %32, %30, %cst_37 {dimension_numbers = #tpu.dot_dimension_numbers<[1], [0], [0], [1], [0, 0, 1, 1], [], []>} : vector<16x16xbf16>, vector<16x288xbf16>, vector<16x288xf32> -> vector<16x288xf32>
    %34 = arith.addf %28, %33 : vector<16x288xf32>
    %c0_38 = arith.constant 0 : index
    %c0_39 = arith.constant 0 : index
    %c0_40 = arith.constant 0 : index
    %c36 = arith.constant 36 : index
    %35 = vector.load %arg1[%c0_38, %c0_39, %c0_40, %c36] : memref<1x1x16x326xbf16, #tpu.memory_space<vmem>>, vector<1x1x16x288xbf16>
    %36 = vector.shape_cast %35 : vector<1x1x16x288xbf16> to vector<16x288xbf16>
    %c6 = arith.constant 6 : index
    %c0_41 = arith.constant 0 : index
    %c0_42 = arith.constant 0 : index
    %37 = vector.load %arg2[%c6, %c0_41, %c0_42] : memref<9x16x16xbf16, #tpu.memory_space<vmem>>, vector<1x16x16xbf16>
    %38 = vector.shape_cast %37 : vector<1x16x16xbf16> to vector<16x16xbf16>
    %cst_43 = arith.constant dense<0.000000e+00> : vector<16x288xf32>
    %39 = tpu.matmul %38, %36, %cst_43 {dimension_numbers = #tpu.dot_dimension_numbers<[1], [0], [0], [1], [0, 0, 1, 1], [], []>} : vector<16x16xbf16>, vector<16x288xbf16>, vector<16x288xf32> -> vector<16x288xf32>
    %40 = arith.addf %34, %39 : vector<16x288xf32>
    %c0_44 = arith.constant 0 : index
    %c0_45 = arith.constant 0 : index
    %c0_46 = arith.constant 0 : index
    %c37 = arith.constant 37 : index
    %41 = vector.load %arg1[%c0_44, %c0_45, %c0_46, %c37] : memref<1x1x16x326xbf16, #tpu.memory_space<vmem>>, vector<1x1x16x288xbf16>
    %42 = vector.shape_cast %41 : vector<1x1x16x288xbf16> to vector<16x288xbf16>
    %c7 = arith.constant 7 : index
    %c0_47 = arith.constant 0 : index
    %c0_48 = arith.constant 0 : index
    %43 = vector.load %arg2[%c7, %c0_47, %c0_48] : memref<9x16x16xbf16, #tpu.memory_space<vmem>>, vector<1x16x16xbf16>
    %44 = vector.shape_cast %43 : vector<1x16x16xbf16> to vector<16x16xbf16>
    %cst_49 = arith.constant dense<0.000000e+00> : vector<16x288xf32>
    %45 = tpu.matmul %44, %42, %cst_49 {dimension_numbers = #tpu.dot_dimension_numbers<[1], [0], [0], [1], [0, 0, 1, 1], [], []>} : vector<16x16xbf16>, vector<16x288xbf16>, vector<16x288xf32> -> vector<16x288xf32>
    %46 = arith.addf %40, %45 : vector<16x288xf32>
    %c0_50 = arith.constant 0 : index
    %c0_51 = arith.constant 0 : index
    %c0_52 = arith.constant 0 : index
    %c38 = arith.constant 38 : index
    %47 = vector.load %arg1[%c0_50, %c0_51, %c0_52, %c38] : memref<1x1x16x326xbf16, #tpu.memory_space<vmem>>, vector<1x1x16x288xbf16>
    %48 = vector.shape_cast %47 : vector<1x1x16x288xbf16> to vector<16x288xbf16>
    %c8 = arith.constant 8 : index
    %c0_53 = arith.constant 0 : index
    %c0_54 = arith.constant 0 : index
    %49 = vector.load %arg2[%c8, %c0_53, %c0_54] : memref<9x16x16xbf16, #tpu.memory_space<vmem>>, vector<1x16x16xbf16>
    %50 = vector.shape_cast %49 : vector<1x16x16xbf16> to vector<16x16xbf16>
    %cst_55 = arith.constant dense<0.000000e+00> : vector<16x288xf32>
    %51 = tpu.matmul %50, %48, %cst_55 {dimension_numbers = #tpu.dot_dimension_numbers<[1], [0], [0], [1], [0, 0, 1, 1], [], []>} : vector<16x16xbf16>, vector<16x288xbf16>, vector<16x288xf32> -> vector<16x288xf32>
    %52 = arith.addf %46, %51 : vector<16x288xf32>
    %c0_56 = arith.constant 0 : index
    %c0_57 = arith.constant 0 : index
    %53 = vector.load %arg4[%c0_56, %c0_57] : memref<1x288xf32, #tpu.memory_space<vmem>>, vector<1x288xf32>
    %54 = vector.broadcast %53 : vector<1x288xf32> to vector<16x288xf32>
    %55 = arith.mulf %52, %54 : vector<16x288xf32>
    %cst_58 = arith.constant dense<0.000000e+00> : vector<16xf32>
    %56 = vector.multi_reduction <add>, %55, %cst_58 [1] : vector<16x288xf32> to vector<16xf32>
    %57 = vector.shape_cast %56 : vector<16xf32> to vector<16x1xf32>
    %cst_59 = arith.constant 3.906250e-03 : f32
    %58 = vector.broadcast %cst_59 : f32 to vector<16x1xf32>
    %59 = arith.mulf %57, %58 : vector<16x1xf32>
    %60 = vector.broadcast %59 : vector<16x1xf32> to vector<16x288xf32>
    %61 = arith.subf %52, %60 : vector<16x288xf32>
    %62 = vector.broadcast %53 : vector<1x288xf32> to vector<16x288xf32>
    %63 = arith.mulf %61, %62 : vector<16x288xf32>
    %64 = arith.mulf %63, %63 : vector<16x288xf32>
    %cst_60 = arith.constant dense<0.000000e+00> : vector<16xf32>
    %65 = vector.multi_reduction <add>, %64, %cst_60 [1] : vector<16x288xf32> to vector<16xf32>
    %66 = vector.shape_cast %65 : vector<16xf32> to vector<16x1xf32>
    %cst_61 = arith.constant 3.906250e-03 : f32
    %67 = vector.broadcast %cst_61 : f32 to vector<16x1xf32>
    %68 = arith.mulf %66, %67 : vector<16x1xf32>
    %69 = vector.broadcast %59 : vector<16x1xf32> to vector<16x288xf32>
    %70 = arith.subf %52, %69 : vector<16x288xf32>
    %cst_62 = arith.constant 9.99999974E-6 : f32
    %71 = vector.broadcast %cst_62 : f32 to vector<16x1xf32>
    %72 = arith.addf %68, %71 : vector<16x1xf32>
    %73 = math.rsqrt %72 : vector<16x1xf32>
    %74 = vector.broadcast %73 : vector<16x1xf32> to vector<16x288xf32>
    %75 = arith.mulf %70, %74 : vector<16x288xf32>
    %c0_63 = arith.constant 0 : index
    %c0_64 = arith.constant 0 : index
    %c0_65 = arith.constant 0 : index
    %76 = vector.load %arg3[%c0_63, %c0_64, %c0_65] : memref<1x16x288xbf16, #tpu.memory_space<vmem>>, vector<1x16x288xbf16>
    %77 = vector.shape_cast %76 : vector<1x16x288xbf16> to vector<16x288xbf16>
    %78 = arith.extf %77 : vector<16x288xbf16> to vector<16x288xf32>
    %79 = arith.addf %75, %78 : vector<16x288xf32>
    %cst_66 = arith.constant 0.000000e+00 : f32
    %80 = vector.broadcast %cst_66 : f32 to vector<16x288xf32>
    %81 = arith.maximumf %79, %80 : vector<16x288xf32>
    %82 = arith.truncf %81 : vector<16x288xf32> to vector<16x288xbf16>
    %c0_67 = arith.constant 0 : index
    %c0_68 = arith.constant 0 : index
    %c0_69 = arith.constant 0 : index
    %83 = vector.load %arg5[%c0_67, %c0_68, %c0_69] : memref<1x16x288xbf16, #tpu.memory_space<vmem>>, vector<1x16x288xbf16>
    %84 = vector.shape_cast %83 : vector<1x16x288xbf16> to vector<16x288xbf16>
    %85 = vector.shape_cast %82 : vector<16x288xbf16> to vector<1x16x288xbf16>
    tpu.vector_store %arg5[%c0_67, %c0_68, %c0_69], %85 {strides = array<i32>} : memref<1x16x288xbf16, #tpu.memory_space<vmem>>, vector<1x16x288xbf16>,
    return
  }
  func.func @transform_0(%arg0: i32) -> (i32, i32, i32, i32) {
    %c0_i32 = arith.constant 0 : i32
    %c0_i32_0 = arith.constant 0 : i32
    %c0_i32_1 = arith.constant 0 : i32
    %c0_i32_2 = arith.constant 0 : i32
    return %arg0, %c0_i32, %c0_i32_0, %c0_i32_1 : i32, i32, i32, i32
  }
  func.func @transform_1(%arg0: i32) -> (i32, i32, i32) {
    %c0_i32 = arith.constant 0 : i32
    %c0_i32_0 = arith.constant 0 : i32
    %c0_i32_1 = arith.constant 0 : i32
    %c0_i32_2 = arith.constant 0 : i32
    return %c0_i32, %c0_i32_0, %c0_i32_1 : i32, i32, i32
  }
  func.func @transform_2(%arg0: i32) -> (i32, i32, i32) {
    %c0_i32 = arith.constant 0 : i32
    %c0_i32_0 = arith.constant 0 : i32
    %c0_i32_1 = arith.constant 0 : i32
    return %arg0, %c0_i32, %c0_i32_0 : i32, i32, i32
  }
  func.func @transform_3(%arg0: i32) -> (i32, i32) {
    %c0_i32 = arith.constant 0 : i32
    %c0_i32_0 = arith.constant 0 : i32
    %c0_i32_1 = arith.constant 0 : i32
    return %c0_i32, %c0_i32_0 : i32, i32
  }
  func.func @transform_4(%arg0: i32) -> (i32, i32, i32) {
    %c0_i32 = arith.constant 0 : i32
    %c0_i32_0 = arith.constant 0 : i32
    %c0_i32_1 = arith.constant 0 : i32
    return %arg0, %c0_i32, %c0_i32_0 : i32, i32, i32
  }
}

module attributes {stable_mosaic.version = 11 : i64} {
  func.func @_block_a_kernel(%arg0: i32, %arg1: memref<1x4x16x82xbf16, #tpu.memory_space<vmem>>, %arg2: memref<9x32x16xbf16, #tpu.memory_space<vmem>>, %arg3: memref<32x16xbf16, #tpu.memory_space<vmem>>, %arg4: memref<1x72xf32, #tpu.memory_space<vmem>>, %arg5: memref<1x32x72xbf16, #tpu.memory_space<vmem>>, %arg6: memref<1x32x72xbf16, #tpu.memory_space<vmem>>) attributes {dimension_semantics = [#tpu.dimension_semantics<parallel>], iteration_bounds = array<i64: 2>, scalar_prefetch = 0 : i64, scratch_operands = 0 : i64, tpu.core_type = #tpu.core_type<tc>, window_params = [{transform_indices = @transform_0, window_bounds = array<i64: 1, 4, 16, 82>}, {pipeline_mode = #tpu.pipeline_mode<synchronous>, transform_indices = @transform_1, window_bounds = array<i64: 9, 32, 16>}, {pipeline_mode = #tpu.pipeline_mode<synchronous>, transform_indices = @transform_2, window_bounds = array<i64: 32, 16>}, {pipeline_mode = #tpu.pipeline_mode<synchronous>, transform_indices = @transform_3, window_bounds = array<i64: 1, 72>}, {transform_indices = @transform_4, window_bounds = array<i64: 1, 32, 72>}, {transform_indices = @transform_5, window_bounds = array<i64: 1, 32, 72>}]} {
    %c0 = arith.constant 0 : index
    %c0_0 = arith.constant 0 : index
    %0 = vector.load %arg4[%c0, %c0_0] : memref<1x72xf32, #tpu.memory_space<vmem>>, vector<1x72xf32>
    %c0_1 = arith.constant 0 : index
    %c0_2 = arith.constant 0 : index
    %c0_3 = arith.constant 0 : index
    %c0_4 = arith.constant 0 : index
    %1 = vector.load %arg1[%c0_1, %c0_2, %c0_3, %c0_4] : memref<1x4x16x82xbf16, #tpu.memory_space<vmem>>, vector<1x1x16x72xbf16>
    %2 = vector.shape_cast %1 : vector<1x1x16x72xbf16> to vector<16x72xbf16>
    %c0_5 = arith.constant 0 : index
    %c0_6 = arith.constant 0 : index
    %c0_7 = arith.constant 0 : index
    %3 = vector.load %arg2[%c0_5, %c0_6, %c0_7] : memref<9x32x16xbf16, #tpu.memory_space<vmem>>, vector<1x32x16xbf16>
    %4 = vector.shape_cast %3 : vector<1x32x16xbf16> to vector<32x16xbf16>
    %cst = arith.constant dense<0.000000e+00> : vector<32x72xf32>
    %5 = tpu.matmul %4, %2, %cst {dimension_numbers = #tpu.dot_dimension_numbers<[1], [0], [0], [1], [0, 0, 1, 1], [], []>} : vector<32x16xbf16>, vector<16x72xbf16>, vector<32x72xf32> -> vector<32x72xf32>
    %c0_8 = arith.constant 0 : index
    %c1 = arith.constant 1 : index
    %c0_9 = arith.constant 0 : index
    %c0_10 = arith.constant 0 : index
    %6 = vector.load %arg1[%c0_8, %c1, %c0_9, %c0_10] : memref<1x4x16x82xbf16, #tpu.memory_space<vmem>>, vector<1x1x16x72xbf16>
    %7 = vector.shape_cast %6 : vector<1x1x16x72xbf16> to vector<16x72xbf16>
    %c1_11 = arith.constant 1 : index
    %c0_12 = arith.constant 0 : index
    %c0_13 = arith.constant 0 : index
    %8 = vector.load %arg2[%c1_11, %c0_12, %c0_13] : memref<9x32x16xbf16, #tpu.memory_space<vmem>>, vector<1x32x16xbf16>
    %9 = vector.shape_cast %8 : vector<1x32x16xbf16> to vector<32x16xbf16>
    %cst_14 = arith.constant dense<0.000000e+00> : vector<32x72xf32>
    %10 = tpu.matmul %9, %7, %cst_14 {dimension_numbers = #tpu.dot_dimension_numbers<[1], [0], [0], [1], [0, 0, 1, 1], [], []>} : vector<32x16xbf16>, vector<16x72xbf16>, vector<32x72xf32> -> vector<32x72xf32>
    %11 = arith.addf %5, %10 : vector<32x72xf32>
    %c0_15 = arith.constant 0 : index
    %c0_16 = arith.constant 0 : index
    %c0_17 = arith.constant 0 : index
    %c1_18 = arith.constant 1 : index
    %12 = vector.load %arg1[%c0_15, %c0_16, %c0_17, %c1_18] : memref<1x4x16x82xbf16, #tpu.memory_space<vmem>>, vector<1x1x16x72xbf16>
    %13 = vector.shape_cast %12 : vector<1x1x16x72xbf16> to vector<16x72xbf16>
    %c2 = arith.constant 2 : index
    %c0_19 = arith.constant 0 : index
    %c0_20 = arith.constant 0 : index
    %14 = vector.load %arg2[%c2, %c0_19, %c0_20] : memref<9x32x16xbf16, #tpu.memory_space<vmem>>, vector<1x32x16xbf16>
    %15 = vector.shape_cast %14 : vector<1x32x16xbf16> to vector<32x16xbf16>
    %cst_21 = arith.constant dense<0.000000e+00> : vector<32x72xf32>
    %16 = tpu.matmul %15, %13, %cst_21 {dimension_numbers = #tpu.dot_dimension_numbers<[1], [0], [0], [1], [0, 0, 1, 1], [], []>} : vector<32x16xbf16>, vector<16x72xbf16>, vector<32x72xf32> -> vector<32x72xf32>
    %17 = arith.addf %11, %16 : vector<32x72xf32>
    %c0_22 = arith.constant 0 : index
    %c2_23 = arith.constant 2 : index
    %c0_24 = arith.constant 0 : index
    %c0_25 = arith.constant 0 : index
    %18 = vector.load %arg1[%c0_22, %c2_23, %c0_24, %c0_25] : memref<1x4x16x82xbf16, #tpu.memory_space<vmem>>, vector<1x1x16x72xbf16>
    %19 = vector.shape_cast %18 : vector<1x1x16x72xbf16> to vector<16x72xbf16>
    %c3 = arith.constant 3 : index
    %c0_26 = arith.constant 0 : index
    %c0_27 = arith.constant 0 : index
    %20 = vector.load %arg2[%c3, %c0_26, %c0_27] : memref<9x32x16xbf16, #tpu.memory_space<vmem>>, vector<1x32x16xbf16>
    %21 = vector.shape_cast %20 : vector<1x32x16xbf16> to vector<32x16xbf16>
    %cst_28 = arith.constant dense<0.000000e+00> : vector<32x72xf32>
    %22 = tpu.matmul %21, %19, %cst_28 {dimension_numbers = #tpu.dot_dimension_numbers<[1], [0], [0], [1], [0, 0, 1, 1], [], []>} : vector<32x16xbf16>, vector<16x72xbf16>, vector<32x72xf32> -> vector<32x72xf32>
    %23 = arith.addf %17, %22 : vector<32x72xf32>
    %c0_29 = arith.constant 0 : index
    %c3_30 = arith.constant 3 : index
    %c0_31 = arith.constant 0 : index
    %c0_32 = arith.constant 0 : index
    %24 = vector.load %arg1[%c0_29, %c3_30, %c0_31, %c0_32] : memref<1x4x16x82xbf16, #tpu.memory_space<vmem>>, vector<1x1x16x72xbf16>
    %25 = vector.shape_cast %24 : vector<1x1x16x72xbf16> to vector<16x72xbf16>
    %c4 = arith.constant 4 : index
    %c0_33 = arith.constant 0 : index
    %c0_34 = arith.constant 0 : index
    %26 = vector.load %arg2[%c4, %c0_33, %c0_34] : memref<9x32x16xbf16, #tpu.memory_space<vmem>>, vector<1x32x16xbf16>
    %27 = vector.shape_cast %26 : vector<1x32x16xbf16> to vector<32x16xbf16>
    %cst_35 = arith.constant dense<0.000000e+00> : vector<32x72xf32>
    %28 = tpu.matmul %27, %25, %cst_35 {dimension_numbers = #tpu.dot_dimension_numbers<[1], [0], [0], [1], [0, 0, 1, 1], [], []>} : vector<32x16xbf16>, vector<16x72xbf16>, vector<32x72xf32> -> vector<32x72xf32>
    %29 = arith.addf %23, %28 : vector<32x72xf32>
    %c0_36 = arith.constant 0 : index
    %c2_37 = arith.constant 2 : index
    %c0_38 = arith.constant 0 : index
    %c1_39 = arith.constant 1 : index
    %30 = vector.load %arg1[%c0_36, %c2_37, %c0_38, %c1_39] : memref<1x4x16x82xbf16, #tpu.memory_space<vmem>>, vector<1x1x16x72xbf16>
    %31 = vector.shape_cast %30 : vector<1x1x16x72xbf16> to vector<16x72xbf16>
    %c5 = arith.constant 5 : index
    %c0_40 = arith.constant 0 : index
    %c0_41 = arith.constant 0 : index
    %32 = vector.load %arg2[%c5, %c0_40, %c0_41] : memref<9x32x16xbf16, #tpu.memory_space<vmem>>, vector<1x32x16xbf16>
    %33 = vector.shape_cast %32 : vector<1x32x16xbf16> to vector<32x16xbf16>
    %cst_42 = arith.constant dense<0.000000e+00> : vector<32x72xf32>
    %34 = tpu.matmul %33, %31, %cst_42 {dimension_numbers = #tpu.dot_dimension_numbers<[1], [0], [0], [1], [0, 0, 1, 1], [], []>} : vector<32x16xbf16>, vector<16x72xbf16>, vector<32x72xf32> -> vector<32x72xf32>
    %35 = arith.addf %29, %34 : vector<32x72xf32>
    %c0_43 = arith.constant 0 : index
    %c0_44 = arith.constant 0 : index
    %c0_45 = arith.constant 0 : index
    %c9 = arith.constant 9 : index
    %36 = vector.load %arg1[%c0_43, %c0_44, %c0_45, %c9] : memref<1x4x16x82xbf16, #tpu.memory_space<vmem>>, vector<1x1x16x72xbf16>
    %37 = vector.shape_cast %36 : vector<1x1x16x72xbf16> to vector<16x72xbf16>
    %c6 = arith.constant 6 : index
    %c0_46 = arith.constant 0 : index
    %c0_47 = arith.constant 0 : index
    %38 = vector.load %arg2[%c6, %c0_46, %c0_47] : memref<9x32x16xbf16, #tpu.memory_space<vmem>>, vector<1x32x16xbf16>
    %39 = vector.shape_cast %38 : vector<1x32x16xbf16> to vector<32x16xbf16>
    %cst_48 = arith.constant dense<0.000000e+00> : vector<32x72xf32>
    %40 = tpu.matmul %39, %37, %cst_48 {dimension_numbers = #tpu.dot_dimension_numbers<[1], [0], [0], [1], [0, 0, 1, 1], [], []>} : vector<32x16xbf16>, vector<16x72xbf16>, vector<32x72xf32> -> vector<32x72xf32>
    %41 = arith.addf %35, %40 : vector<32x72xf32>
    %c0_49 = arith.constant 0 : index
    %c1_50 = arith.constant 1 : index
    %c0_51 = arith.constant 0 : index
    %c9_52 = arith.constant 9 : index
    %42 = vector.load %arg1[%c0_49, %c1_50, %c0_51, %c9_52] : memref<1x4x16x82xbf16, #tpu.memory_space<vmem>>, vector<1x1x16x72xbf16>
    %43 = vector.shape_cast %42 : vector<1x1x16x72xbf16> to vector<16x72xbf16>
    %c7 = arith.constant 7 : index
    %c0_53 = arith.constant 0 : index
    %c0_54 = arith.constant 0 : index
    %44 = vector.load %arg2[%c7, %c0_53, %c0_54] : memref<9x32x16xbf16, #tpu.memory_space<vmem>>, vector<1x32x16xbf16>
    %45 = vector.shape_cast %44 : vector<1x32x16xbf16> to vector<32x16xbf16>
    %cst_55 = arith.constant dense<0.000000e+00> : vector<32x72xf32>
    %46 = tpu.matmul %45, %43, %cst_55 {dimension_numbers = #tpu.dot_dimension_numbers<[1], [0], [0], [1], [0, 0, 1, 1], [], []>} : vector<32x16xbf16>, vector<16x72xbf16>, vector<32x72xf32> -> vector<32x72xf32>
    %47 = arith.addf %41, %46 : vector<32x72xf32>
    %c0_56 = arith.constant 0 : index
    %c0_57 = arith.constant 0 : index
    %c0_58 = arith.constant 0 : index
    %c10 = arith.constant 10 : index
    %48 = vector.load %arg1[%c0_56, %c0_57, %c0_58, %c10] : memref<1x4x16x82xbf16, #tpu.memory_space<vmem>>, vector<1x1x16x72xbf16>
    %49 = vector.shape_cast %48 : vector<1x1x16x72xbf16> to vector<16x72xbf16>
    %c8 = arith.constant 8 : index
    %c0_59 = arith.constant 0 : index
    %c0_60 = arith.constant 0 : index
    %50 = vector.load %arg2[%c8, %c0_59, %c0_60] : memref<9x32x16xbf16, #tpu.memory_space<vmem>>, vector<1x32x16xbf16>
    %51 = vector.shape_cast %50 : vector<1x32x16xbf16> to vector<32x16xbf16>
    %cst_61 = arith.constant dense<0.000000e+00> : vector<32x72xf32>
    %52 = tpu.matmul %51, %49, %cst_61 {dimension_numbers = #tpu.dot_dimension_numbers<[1], [0], [0], [1], [0, 0, 1, 1], [], []>} : vector<32x16xbf16>, vector<16x72xbf16>, vector<32x72xf32> -> vector<32x72xf32>
    %53 = arith.addf %47, %52 : vector<32x72xf32>
    %54 = vector.broadcast %0 : vector<1x72xf32> to vector<32x72xf32>
    %55 = arith.mulf %53, %54 : vector<32x72xf32>
    %cst_62 = arith.constant dense<0.000000e+00> : vector<32xf32>
    %56 = vector.multi_reduction <add>, %55, %cst_62 [1] : vector<32x72xf32> to vector<32xf32>
    %57 = vector.shape_cast %56 : vector<32xf32> to vector<32x1xf32>
    %cst_63 = arith.constant 1.562500e-02 : f32
    %58 = vector.broadcast %cst_63 : f32 to vector<32x1xf32>
    %59 = arith.mulf %57, %58 : vector<32x1xf32>
    %60 = vector.broadcast %59 : vector<32x1xf32> to vector<32x72xf32>
    %61 = arith.subf %53, %60 : vector<32x72xf32>
    %62 = vector.broadcast %0 : vector<1x72xf32> to vector<32x72xf32>
    %63 = arith.mulf %61, %62 : vector<32x72xf32>
    %64 = arith.mulf %63, %63 : vector<32x72xf32>
    %cst_64 = arith.constant dense<0.000000e+00> : vector<32xf32>
    %65 = vector.multi_reduction <add>, %64, %cst_64 [1] : vector<32x72xf32> to vector<32xf32>
    %66 = vector.shape_cast %65 : vector<32xf32> to vector<32x1xf32>
    %cst_65 = arith.constant 1.562500e-02 : f32
    %67 = vector.broadcast %cst_65 : f32 to vector<32x1xf32>
    %68 = arith.mulf %66, %67 : vector<32x1xf32>
    %69 = vector.broadcast %59 : vector<32x1xf32> to vector<32x72xf32>
    %70 = arith.subf %53, %69 : vector<32x72xf32>
    %cst_66 = arith.constant 9.99999974E-6 : f32
    %71 = vector.broadcast %cst_66 : f32 to vector<32x1xf32>
    %72 = arith.addf %68, %71 : vector<32x1xf32>
    %73 = math.rsqrt %72 : vector<32x1xf32>
    %74 = vector.broadcast %73 : vector<32x1xf32> to vector<32x72xf32>
    %75 = arith.mulf %70, %74 : vector<32x72xf32>
    %cst_67 = arith.constant 0.000000e+00 : f32
    %76 = vector.broadcast %cst_67 : f32 to vector<32x72xf32>
    %77 = arith.maximumf %75, %76 : vector<32x72xf32>
    %78 = arith.truncf %77 : vector<32x72xf32> to vector<32x72xbf16>
    %c0_68 = arith.constant 0 : index
    %c0_69 = arith.constant 0 : index
    %c0_70 = arith.constant 0 : index
    %79 = vector.load %arg5[%c0_68, %c0_69, %c0_70] : memref<1x32x72xbf16, #tpu.memory_space<vmem>>, vector<1x32x72xbf16>
    %80 = vector.shape_cast %79 : vector<1x32x72xbf16> to vector<32x72xbf16>
    %81 = vector.shape_cast %78 : vector<32x72xbf16> to vector<1x32x72xbf16>
    tpu.vector_store %arg5[%c0_68, %c0_69, %c0_70], %81 {strides = array<i32>} : memref<1x32x72xbf16, #tpu.memory_space<vmem>>, vector<1x32x72xbf16>,
    %c0_71 = arith.constant 0 : index
    %c0_72 = arith.constant 0 : index
    %82 = vector.load %arg3[%c0_71, %c0_72] : memref<32x16xbf16, #tpu.memory_space<vmem>>, vector<32x16xbf16>
    %c0_73 = arith.constant 0 : index
    %c3_74 = arith.constant 3 : index
    %c0_75 = arith.constant 0 : index
    %c0_76 = arith.constant 0 : index
    %83 = vector.load %arg1[%c0_73, %c3_74, %c0_75, %c0_76] : memref<1x4x16x82xbf16, #tpu.memory_space<vmem>>, vector<1x1x16x72xbf16>
    %84 = vector.shape_cast %83 : vector<1x1x16x72xbf16> to vector<16x72xbf16>
    %cst_77 = arith.constant dense<0.000000e+00> : vector<32x72xf32>
    %85 = tpu.matmul %82, %84, %cst_77 {dimension_numbers = #tpu.dot_dimension_numbers<[1], [0], [0], [1], [0, 0, 1, 1], [], []>} : vector<32x16xbf16>, vector<16x72xbf16>, vector<32x72xf32> -> vector<32x72xf32>
    %86 = vector.broadcast %0 : vector<1x72xf32> to vector<32x72xf32>
    %87 = arith.mulf %85, %86 : vector<32x72xf32>
    %cst_78 = arith.constant dense<0.000000e+00> : vector<32xf32>
    %88 = vector.multi_reduction <add>, %87, %cst_78 [1] : vector<32x72xf32> to vector<32xf32>
    %89 = vector.shape_cast %88 : vector<32xf32> to vector<32x1xf32>
    %cst_79 = arith.constant 1.562500e-02 : f32
    %90 = vector.broadcast %cst_79 : f32 to vector<32x1xf32>
    %91 = arith.mulf %89, %90 : vector<32x1xf32>
    %92 = vector.broadcast %91 : vector<32x1xf32> to vector<32x72xf32>
    %93 = arith.subf %85, %92 : vector<32x72xf32>
    %94 = vector.broadcast %0 : vector<1x72xf32> to vector<32x72xf32>
    %95 = arith.mulf %93, %94 : vector<32x72xf32>
    %96 = arith.mulf %95, %95 : vector<32x72xf32>
    %cst_80 = arith.constant dense<0.000000e+00> : vector<32xf32>
    %97 = vector.multi_reduction <add>, %96, %cst_80 [1] : vector<32x72xf32> to vector<32xf32>
    %98 = vector.shape_cast %97 : vector<32xf32> to vector<32x1xf32>
    %cst_81 = arith.constant 1.562500e-02 : f32
    %99 = vector.broadcast %cst_81 : f32 to vector<32x1xf32>
    %100 = arith.mulf %98, %99 : vector<32x1xf32>
    %101 = vector.broadcast %91 : vector<32x1xf32> to vector<32x72xf32>
    %102 = arith.subf %85, %101 : vector<32x72xf32>
    %cst_82 = arith.constant 9.99999974E-6 : f32
    %103 = vector.broadcast %cst_82 : f32 to vector<32x1xf32>
    %104 = arith.addf %100, %103 : vector<32x1xf32>
    %105 = math.rsqrt %104 : vector<32x1xf32>
    %106 = vector.broadcast %105 : vector<32x1xf32> to vector<32x72xf32>
    %107 = arith.mulf %102, %106 : vector<32x72xf32>
    %108 = arith.truncf %107 : vector<32x72xf32> to vector<32x72xbf16>
    %c0_83 = arith.constant 0 : index
    %c0_84 = arith.constant 0 : index
    %c0_85 = arith.constant 0 : index
    %109 = vector.load %arg6[%c0_83, %c0_84, %c0_85] : memref<1x32x72xbf16, #tpu.memory_space<vmem>>, vector<1x32x72xbf16>
    %110 = vector.shape_cast %109 : vector<1x32x72xbf16> to vector<32x72xbf16>
    %111 = vector.shape_cast %108 : vector<32x72xbf16> to vector<1x32x72xbf16>
    tpu.vector_store %arg6[%c0_83, %c0_84, %c0_85], %111 {strides = array<i32>} : memref<1x32x72xbf16, #tpu.memory_space<vmem>>, vector<1x32x72xbf16>,
    return
  }
  func.func @transform_0(%arg0: i32) -> (i32, i32, i32, i32) {
    %c0_i32 = arith.constant 0 : i32
    %c0_i32_0 = arith.constant 0 : i32
    %c0_i32_1 = arith.constant 0 : i32
    %c0_i32_2 = arith.constant 0 : i32
    return %arg0, %c0_i32, %c0_i32_0, %c0_i32_1 : i32, i32, i32, i32
  }
  func.func @transform_1(%arg0: i32) -> (i32, i32, i32) {
    %c0_i32 = arith.constant 0 : i32
    %c0_i32_0 = arith.constant 0 : i32
    %c0_i32_1 = arith.constant 0 : i32
    %c0_i32_2 = arith.constant 0 : i32
    return %c0_i32, %c0_i32_0, %c0_i32_1 : i32, i32, i32
  }
  func.func @transform_2(%arg0: i32) -> (i32, i32) {
    %c0_i32 = arith.constant 0 : i32
    %c0_i32_0 = arith.constant 0 : i32
    %c0_i32_1 = arith.constant 0 : i32
    return %c0_i32, %c0_i32_0 : i32, i32
  }
  func.func @transform_3(%arg0: i32) -> (i32, i32) {
    %c0_i32 = arith.constant 0 : i32
    %c0_i32_0 = arith.constant 0 : i32
    %c0_i32_1 = arith.constant 0 : i32
    return %c0_i32, %c0_i32_0 : i32, i32
  }
  func.func @transform_4(%arg0: i32) -> (i32, i32, i32) {
    %c0_i32 = arith.constant 0 : i32
    %c0_i32_0 = arith.constant 0 : i32
    %c0_i32_1 = arith.constant 0 : i32
    return %arg0, %c0_i32, %c0_i32_0 : i32, i32, i32
  }
  func.func @transform_5(%arg0: i32) -> (i32, i32, i32) {
    %c0_i32 = arith.constant 0 : i32
    %c0_i32_0 = arith.constant 0 : i32
    %c0_i32_1 = arith.constant 0 : i32
    return %arg0, %c0_i32, %c0_i32_0 : i32, i32, i32
  }
}

module attributes {stable_mosaic.version = 11 : i64} {
  func.func @_block_b_kernel(%arg0: i32, %arg1: memref<1x1x32x102xbf16, #tpu.memory_space<vmem>>, %arg2: memref<9x32x32xbf16, #tpu.memory_space<vmem>>, %arg3: memref<1x32x80xbf16, #tpu.memory_space<vmem>>, %arg4: memref<1x80xf32, #tpu.memory_space<vmem>>, %arg5: memref<1x32x80xbf16, #tpu.memory_space<vmem>>) attributes {dimension_semantics = [#tpu.dimension_semantics<parallel>], iteration_bounds = array<i64: 2>, scalar_prefetch = 0 : i64, scratch_operands = 0 : i64, tpu.core_type = #tpu.core_type<tc>, window_params = [{transform_indices = @transform_0, window_bounds = array<i64: 1, 1, 32, 102>}, {pipeline_mode = #tpu.pipeline_mode<synchronous>, transform_indices = @transform_1, window_bounds = array<i64: 9, 32, 32>}, {transform_indices = @transform_2, window_bounds = array<i64: 1, 32, 80>}, {pipeline_mode = #tpu.pipeline_mode<synchronous>, transform_indices = @transform_3, window_bounds = array<i64: 1, 80>}, {transform_indices = @transform_4, window_bounds = array<i64: 1, 32, 80>}]} {
    %c0 = arith.constant 0 : index
    %c0_0 = arith.constant 0 : index
    %c0_1 = arith.constant 0 : index
    %c0_2 = arith.constant 0 : index
    %0 = vector.load %arg1[%c0, %c0_0, %c0_1, %c0_2] : memref<1x1x32x102xbf16, #tpu.memory_space<vmem>>, vector<1x1x32x80xbf16>
    %1 = vector.shape_cast %0 : vector<1x1x32x80xbf16> to vector<32x80xbf16>
    %c0_3 = arith.constant 0 : index
    %c0_4 = arith.constant 0 : index
    %c0_5 = arith.constant 0 : index
    %2 = vector.load %arg2[%c0_3, %c0_4, %c0_5] : memref<9x32x32xbf16, #tpu.memory_space<vmem>>, vector<1x32x32xbf16>
    %3 = vector.shape_cast %2 : vector<1x32x32xbf16> to vector<32x32xbf16>
    %cst = arith.constant dense<0.000000e+00> : vector<32x80xf32>
    %4 = tpu.matmul %3, %1, %cst {dimension_numbers = #tpu.dot_dimension_numbers<[1], [0], [0], [1], [0, 0, 1, 1], [], []>} : vector<32x32xbf16>, vector<32x80xbf16>, vector<32x80xf32> -> vector<32x80xf32>
    %c0_6 = arith.constant 0 : index
    %c0_7 = arith.constant 0 : index
    %c0_8 = arith.constant 0 : index
    %c1 = arith.constant 1 : index
    %5 = vector.load %arg1[%c0_6, %c0_7, %c0_8, %c1] : memref<1x1x32x102xbf16, #tpu.memory_space<vmem>>, vector<1x1x32x80xbf16>
    %6 = vector.shape_cast %5 : vector<1x1x32x80xbf16> to vector<32x80xbf16>
    %c1_9 = arith.constant 1 : index
    %c0_10 = arith.constant 0 : index
    %c0_11 = arith.constant 0 : index
    %7 = vector.load %arg2[%c1_9, %c0_10, %c0_11] : memref<9x32x32xbf16, #tpu.memory_space<vmem>>, vector<1x32x32xbf16>
    %8 = vector.shape_cast %7 : vector<1x32x32xbf16> to vector<32x32xbf16>
    %cst_12 = arith.constant dense<0.000000e+00> : vector<32x80xf32>
    %9 = tpu.matmul %8, %6, %cst_12 {dimension_numbers = #tpu.dot_dimension_numbers<[1], [0], [0], [1], [0, 0, 1, 1], [], []>} : vector<32x32xbf16>, vector<32x80xbf16>, vector<32x80xf32> -> vector<32x80xf32>
    %10 = arith.addf %4, %9 : vector<32x80xf32>
    %c0_13 = arith.constant 0 : index
    %c0_14 = arith.constant 0 : index
    %c0_15 = arith.constant 0 : index
    %c2 = arith.constant 2 : index
    %11 = vector.load %arg1[%c0_13, %c0_14, %c0_15, %c2] : memref<1x1x32x102xbf16, #tpu.memory_space<vmem>>, vector<1x1x32x80xbf16>
    %12 = vector.shape_cast %11 : vector<1x1x32x80xbf16> to vector<32x80xbf16>
    %c2_16 = arith.constant 2 : index
    %c0_17 = arith.constant 0 : index
    %c0_18 = arith.constant 0 : index
    %13 = vector.load %arg2[%c2_16, %c0_17, %c0_18] : memref<9x32x32xbf16, #tpu.memory_space<vmem>>, vector<1x32x32xbf16>
    %14 = vector.shape_cast %13 : vector<1x32x32xbf16> to vector<32x32xbf16>
    %cst_19 = arith.constant dense<0.000000e+00> : vector<32x80xf32>
    %15 = tpu.matmul %14, %12, %cst_19 {dimension_numbers = #tpu.dot_dimension_numbers<[1], [0], [0], [1], [0, 0, 1, 1], [], []>} : vector<32x32xbf16>, vector<32x80xbf16>, vector<32x80xf32> -> vector<32x80xf32>
    %16 = arith.addf %10, %15 : vector<32x80xf32>
    %c0_20 = arith.constant 0 : index
    %c0_21 = arith.constant 0 : index
    %c0_22 = arith.constant 0 : index
    %c10 = arith.constant 10 : index
    %17 = vector.load %arg1[%c0_20, %c0_21, %c0_22, %c10] : memref<1x1x32x102xbf16, #tpu.memory_space<vmem>>, vector<1x1x32x80xbf16>
    %18 = vector.shape_cast %17 : vector<1x1x32x80xbf16> to vector<32x80xbf16>
    %c3 = arith.constant 3 : index
    %c0_23 = arith.constant 0 : index
    %c0_24 = arith.constant 0 : index
    %19 = vector.load %arg2[%c3, %c0_23, %c0_24] : memref<9x32x32xbf16, #tpu.memory_space<vmem>>, vector<1x32x32xbf16>
    %20 = vector.shape_cast %19 : vector<1x32x32xbf16> to vector<32x32xbf16>
    %cst_25 = arith.constant dense<0.000000e+00> : vector<32x80xf32>
    %21 = tpu.matmul %20, %18, %cst_25 {dimension_numbers = #tpu.dot_dimension_numbers<[1], [0], [0], [1], [0, 0, 1, 1], [], []>} : vector<32x32xbf16>, vector<32x80xbf16>, vector<32x80xf32> -> vector<32x80xf32>
    %22 = arith.addf %16, %21 : vector<32x80xf32>
    %c0_26 = arith.constant 0 : index
    %c0_27 = arith.constant 0 : index
    %c0_28 = arith.constant 0 : index
    %c11 = arith.constant 11 : index
    %23 = vector.load %arg1[%c0_26, %c0_27, %c0_28, %c11] : memref<1x1x32x102xbf16, #tpu.memory_space<vmem>>, vector<1x1x32x80xbf16>
    %24 = vector.shape_cast %23 : vector<1x1x32x80xbf16> to vector<32x80xbf16>
    %c4 = arith.constant 4 : index
    %c0_29 = arith.constant 0 : index
    %c0_30 = arith.constant 0 : index
    %25 = vector.load %arg2[%c4, %c0_29, %c0_30] : memref<9x32x32xbf16, #tpu.memory_space<vmem>>, vector<1x32x32xbf16>
    %26 = vector.shape_cast %25 : vector<1x32x32xbf16> to vector<32x32xbf16>
    %cst_31 = arith.constant dense<0.000000e+00> : vector<32x80xf32>
    %27 = tpu.matmul %26, %24, %cst_31 {dimension_numbers = #tpu.dot_dimension_numbers<[1], [0], [0], [1], [0, 0, 1, 1], [], []>} : vector<32x32xbf16>, vector<32x80xbf16>, vector<32x80xf32> -> vector<32x80xf32>
    %28 = arith.addf %22, %27 : vector<32x80xf32>
    %c0_32 = arith.constant 0 : index
    %c0_33 = arith.constant 0 : index
    %c0_34 = arith.constant 0 : index
    %c12 = arith.constant 12 : index
    %29 = vector.load %arg1[%c0_32, %c0_33, %c0_34, %c12] : memref<1x1x32x102xbf16, #tpu.memory_space<vmem>>, vector<1x1x32x80xbf16>
    %30 = vector.shape_cast %29 : vector<1x1x32x80xbf16> to vector<32x80xbf16>
    %c5 = arith.constant 5 : index
    %c0_35 = arith.constant 0 : index
    %c0_36 = arith.constant 0 : index
    %31 = vector.load %arg2[%c5, %c0_35, %c0_36] : memref<9x32x32xbf16, #tpu.memory_space<vmem>>, vector<1x32x32xbf16>
    %32 = vector.shape_cast %31 : vector<1x32x32xbf16> to vector<32x32xbf16>
    %cst_37 = arith.constant dense<0.000000e+00> : vector<32x80xf32>
    %33 = tpu.matmul %32, %30, %cst_37 {dimension_numbers = #tpu.dot_dimension_numbers<[1], [0], [0], [1], [0, 0, 1, 1], [], []>} : vector<32x32xbf16>, vector<32x80xbf16>, vector<32x80xf32> -> vector<32x80xf32>
    %34 = arith.addf %28, %33 : vector<32x80xf32>
    %c0_38 = arith.constant 0 : index
    %c0_39 = arith.constant 0 : index
    %c0_40 = arith.constant 0 : index
    %c20 = arith.constant 20 : index
    %35 = vector.load %arg1[%c0_38, %c0_39, %c0_40, %c20] : memref<1x1x32x102xbf16, #tpu.memory_space<vmem>>, vector<1x1x32x80xbf16>
    %36 = vector.shape_cast %35 : vector<1x1x32x80xbf16> to vector<32x80xbf16>
    %c6 = arith.constant 6 : index
    %c0_41 = arith.constant 0 : index
    %c0_42 = arith.constant 0 : index
    %37 = vector.load %arg2[%c6, %c0_41, %c0_42] : memref<9x32x32xbf16, #tpu.memory_space<vmem>>, vector<1x32x32xbf16>
    %38 = vector.shape_cast %37 : vector<1x32x32xbf16> to vector<32x32xbf16>
    %cst_43 = arith.constant dense<0.000000e+00> : vector<32x80xf32>
    %39 = tpu.matmul %38, %36, %cst_43 {dimension_numbers = #tpu.dot_dimension_numbers<[1], [0], [0], [1], [0, 0, 1, 1], [], []>} : vector<32x32xbf16>, vector<32x80xbf16>, vector<32x80xf32> -> vector<32x80xf32>
    %40 = arith.addf %34, %39 : vector<32x80xf32>
    %c0_44 = arith.constant 0 : index
    %c0_45 = arith.constant 0 : index
    %c0_46 = arith.constant 0 : index
    %c21 = arith.constant 21 : index
    %41 = vector.load %arg1[%c0_44, %c0_45, %c0_46, %c21] : memref<1x1x32x102xbf16, #tpu.memory_space<vmem>>, vector<1x1x32x80xbf16>
    %42 = vector.shape_cast %41 : vector<1x1x32x80xbf16> to vector<32x80xbf16>
    %c7 = arith.constant 7 : index
    %c0_47 = arith.constant 0 : index
    %c0_48 = arith.constant 0 : index
    %43 = vector.load %arg2[%c7, %c0_47, %c0_48] : memref<9x32x32xbf16, #tpu.memory_space<vmem>>, vector<1x32x32xbf16>
    %44 = vector.shape_cast %43 : vector<1x32x32xbf16> to vector<32x32xbf16>
    %cst_49 = arith.constant dense<0.000000e+00> : vector<32x80xf32>
    %45 = tpu.matmul %44, %42, %cst_49 {dimension_numbers = #tpu.dot_dimension_numbers<[1], [0], [0], [1], [0, 0, 1, 1], [], []>} : vector<32x32xbf16>, vector<32x80xbf16>, vector<32x80xf32> -> vector<32x80xf32>
    %46 = arith.addf %40, %45 : vector<32x80xf32>
    %c0_50 = arith.constant 0 : index
    %c0_51 = arith.constant 0 : index
    %c0_52 = arith.constant 0 : index
    %c22 = arith.constant 22 : index
    %47 = vector.load %arg1[%c0_50, %c0_51, %c0_52, %c22] : memref<1x1x32x102xbf16, #tpu.memory_space<vmem>>, vector<1x1x32x80xbf16>
    %48 = vector.shape_cast %47 : vector<1x1x32x80xbf16> to vector<32x80xbf16>
    %c8 = arith.constant 8 : index
    %c0_53 = arith.constant 0 : index
    %c0_54 = arith.constant 0 : index
    %49 = vector.load %arg2[%c8, %c0_53, %c0_54] : memref<9x32x32xbf16, #tpu.memory_space<vmem>>, vector<1x32x32xbf16>
    %50 = vector.shape_cast %49 : vector<1x32x32xbf16> to vector<32x32xbf16>
    %cst_55 = arith.constant dense<0.000000e+00> : vector<32x80xf32>
    %51 = tpu.matmul %50, %48, %cst_55 {dimension_numbers = #tpu.dot_dimension_numbers<[1], [0], [0], [1], [0, 0, 1, 1], [], []>} : vector<32x32xbf16>, vector<32x80xbf16>, vector<32x80xf32> -> vector<32x80xf32>
    %52 = arith.addf %46, %51 : vector<32x80xf32>
    %c0_56 = arith.constant 0 : index
    %c0_57 = arith.constant 0 : index
    %53 = vector.load %arg4[%c0_56, %c0_57] : memref<1x80xf32, #tpu.memory_space<vmem>>, vector<1x80xf32>
    %54 = vector.broadcast %53 : vector<1x80xf32> to vector<32x80xf32>
    %55 = arith.mulf %52, %54 : vector<32x80xf32>
    %cst_58 = arith.constant dense<0.000000e+00> : vector<32xf32>
    %56 = vector.multi_reduction <add>, %55, %cst_58 [1] : vector<32x80xf32> to vector<32xf32>
    %57 = vector.shape_cast %56 : vector<32xf32> to vector<32x1xf32>
    %cst_59 = arith.constant 1.562500e-02 : f32
    %58 = vector.broadcast %cst_59 : f32 to vector<32x1xf32>
    %59 = arith.mulf %57, %58 : vector<32x1xf32>
    %60 = vector.broadcast %59 : vector<32x1xf32> to vector<32x80xf32>
    %61 = arith.subf %52, %60 : vector<32x80xf32>
    %62 = vector.broadcast %53 : vector<1x80xf32> to vector<32x80xf32>
    %63 = arith.mulf %61, %62 : vector<32x80xf32>
    %64 = arith.mulf %63, %63 : vector<32x80xf32>
    %cst_60 = arith.constant dense<0.000000e+00> : vector<32xf32>
    %65 = vector.multi_reduction <add>, %64, %cst_60 [1] : vector<32x80xf32> to vector<32xf32>
    %66 = vector.shape_cast %65 : vector<32xf32> to vector<32x1xf32>
    %cst_61 = arith.constant 1.562500e-02 : f32
    %67 = vector.broadcast %cst_61 : f32 to vector<32x1xf32>
    %68 = arith.mulf %66, %67 : vector<32x1xf32>
    %69 = vector.broadcast %59 : vector<32x1xf32> to vector<32x80xf32>
    %70 = arith.subf %52, %69 : vector<32x80xf32>
    %cst_62 = arith.constant 9.99999974E-6 : f32
    %71 = vector.broadcast %cst_62 : f32 to vector<32x1xf32>
    %72 = arith.addf %68, %71 : vector<32x1xf32>
    %73 = math.rsqrt %72 : vector<32x1xf32>
    %74 = vector.broadcast %73 : vector<32x1xf32> to vector<32x80xf32>
    %75 = arith.mulf %70, %74 : vector<32x80xf32>
    %c0_63 = arith.constant 0 : index
    %c0_64 = arith.constant 0 : index
    %c0_65 = arith.constant 0 : index
    %76 = vector.load %arg3[%c0_63, %c0_64, %c0_65] : memref<1x32x80xbf16, #tpu.memory_space<vmem>>, vector<1x32x80xbf16>
    %77 = vector.shape_cast %76 : vector<1x32x80xbf16> to vector<32x80xbf16>
    %78 = arith.extf %77 : vector<32x80xbf16> to vector<32x80xf32>
    %79 = arith.addf %75, %78 : vector<32x80xf32>
    %cst_66 = arith.constant 0.000000e+00 : f32
    %80 = vector.broadcast %cst_66 : f32 to vector<32x80xf32>
    %81 = arith.maximumf %79, %80 : vector<32x80xf32>
    %82 = arith.truncf %81 : vector<32x80xf32> to vector<32x80xbf16>
    %c0_67 = arith.constant 0 : index
    %c0_68 = arith.constant 0 : index
    %c0_69 = arith.constant 0 : index
    %83 = vector.load %arg5[%c0_67, %c0_68, %c0_69] : memref<1x32x80xbf16, #tpu.memory_space<vmem>>, vector<1x32x80xbf16>
    %84 = vector.shape_cast %83 : vector<1x32x80xbf16> to vector<32x80xbf16>
    %85 = vector.shape_cast %82 : vector<32x80xbf16> to vector<1x32x80xbf16>
    tpu.vector_store %arg5[%c0_67, %c0_68, %c0_69], %85 {strides = array<i32>} : memref<1x32x80xbf16, #tpu.memory_space<vmem>>, vector<1x32x80xbf16>,
    return
  }
  func.func @transform_0(%arg0: i32) -> (i32, i32, i32, i32) {
    %c0_i32 = arith.constant 0 : i32
    %c0_i32_0 = arith.constant 0 : i32
    %c0_i32_1 = arith.constant 0 : i32
    %c0_i32_2 = arith.constant 0 : i32
    return %arg0, %c0_i32, %c0_i32_0, %c0_i32_1 : i32, i32, i32, i32
  }
  func.func @transform_1(%arg0: i32) -> (i32, i32, i32) {
    %c0_i32 = arith.constant 0 : i32
    %c0_i32_0 = arith.constant 0 : i32
    %c0_i32_1 = arith.constant 0 : i32
    %c0_i32_2 = arith.constant 0 : i32
    return %c0_i32, %c0_i32_0, %c0_i32_1 : i32, i32, i32
  }
  func.func @transform_2(%arg0: i32) -> (i32, i32, i32) {
    %c0_i32 = arith.constant 0 : i32
    %c0_i32_0 = arith.constant 0 : i32
    %c0_i32_1 = arith.constant 0 : i32
    return %arg0, %c0_i32, %c0_i32_0 : i32, i32, i32
  }
  func.func @transform_3(%arg0: i32) -> (i32, i32) {
    %c0_i32 = arith.constant 0 : i32
    %c0_i32_0 = arith.constant 0 : i32
    %c0_i32_1 = arith.constant 0 : i32
    return %c0_i32, %c0_i32_0 : i32, i32
  }
  func.func @transform_4(%arg0: i32) -> (i32, i32, i32) {
    %c0_i32 = arith.constant 0 : i32
    %c0_i32_0 = arith.constant 0 : i32
    %c0_i32_1 = arith.constant 0 : i32
    return %arg0, %c0_i32, %c0_i32_0 : i32, i32, i32
  }
}

module attributes {stable_mosaic.version = 11 : i64} {
  func.func @_block_a_kernel(%arg0: i32, %arg1: memref<1x4x32x26xbf16, #tpu.memory_space<vmem>>, %arg2: memref<9x64x32xbf16, #tpu.memory_space<vmem>>, %arg3: memref<64x32xbf16, #tpu.memory_space<vmem>>, %arg4: memref<1x20xf32, #tpu.memory_space<vmem>>, %arg5: memref<1x64x20xbf16, #tpu.memory_space<vmem>>, %arg6: memref<1x64x20xbf16, #tpu.memory_space<vmem>>) attributes {dimension_semantics = [#tpu.dimension_semantics<parallel>], iteration_bounds = array<i64: 2>, scalar_prefetch = 0 : i64, scratch_operands = 0 : i64, tpu.core_type = #tpu.core_type<tc>, window_params = [{transform_indices = @transform_0, window_bounds = array<i64: 1, 4, 32, 26>}, {pipeline_mode = #tpu.pipeline_mode<synchronous>, transform_indices = @transform_1, window_bounds = array<i64: 9, 64, 32>}, {pipeline_mode = #tpu.pipeline_mode<synchronous>, transform_indices = @transform_2, window_bounds = array<i64: 64, 32>}, {pipeline_mode = #tpu.pipeline_mode<synchronous>, transform_indices = @transform_3, window_bounds = array<i64: 1, 20>}, {transform_indices = @transform_4, window_bounds = array<i64: 1, 64, 20>}, {transform_indices = @transform_5, window_bounds = array<i64: 1, 64, 20>}]} {
    %c0 = arith.constant 0 : index
    %c0_0 = arith.constant 0 : index
    %0 = vector.load %arg4[%c0, %c0_0] : memref<1x20xf32, #tpu.memory_space<vmem>>, vector<1x20xf32>
    %c0_1 = arith.constant 0 : index
    %c0_2 = arith.constant 0 : index
    %c0_3 = arith.constant 0 : index
    %c0_4 = arith.constant 0 : index
    %1 = vector.load %arg1[%c0_1, %c0_2, %c0_3, %c0_4] : memref<1x4x32x26xbf16, #tpu.memory_space<vmem>>, vector<1x1x32x20xbf16>
    %2 = vector.shape_cast %1 : vector<1x1x32x20xbf16> to vector<32x20xbf16>
    %c0_5 = arith.constant 0 : index
    %c0_6 = arith.constant 0 : index
    %c0_7 = arith.constant 0 : index
    %3 = vector.load %arg2[%c0_5, %c0_6, %c0_7] : memref<9x64x32xbf16, #tpu.memory_space<vmem>>, vector<1x64x32xbf16>
    %4 = vector.shape_cast %3 : vector<1x64x32xbf16> to vector<64x32xbf16>
    %cst = arith.constant dense<0.000000e+00> : vector<64x20xf32>
    %5 = tpu.matmul %4, %2, %cst {dimension_numbers = #tpu.dot_dimension_numbers<[1], [0], [0], [1], [0, 0, 1, 1], [], []>} : vector<64x32xbf16>, vector<32x20xbf16>, vector<64x20xf32> -> vector<64x20xf32>
    %c0_8 = arith.constant 0 : index
    %c1 = arith.constant 1 : index
    %c0_9 = arith.constant 0 : index
    %c0_10 = arith.constant 0 : index
    %6 = vector.load %arg1[%c0_8, %c1, %c0_9, %c0_10] : memref<1x4x32x26xbf16, #tpu.memory_space<vmem>>, vector<1x1x32x20xbf16>
    %7 = vector.shape_cast %6 : vector<1x1x32x20xbf16> to vector<32x20xbf16>
    %c1_11 = arith.constant 1 : index
    %c0_12 = arith.constant 0 : index
    %c0_13 = arith.constant 0 : index
    %8 = vector.load %arg2[%c1_11, %c0_12, %c0_13] : memref<9x64x32xbf16, #tpu.memory_space<vmem>>, vector<1x64x32xbf16>
    %9 = vector.shape_cast %8 : vector<1x64x32xbf16> to vector<64x32xbf16>
    %cst_14 = arith.constant dense<0.000000e+00> : vector<64x20xf32>
    %10 = tpu.matmul %9, %7, %cst_14 {dimension_numbers = #tpu.dot_dimension_numbers<[1], [0], [0], [1], [0, 0, 1, 1], [], []>} : vector<64x32xbf16>, vector<32x20xbf16>, vector<64x20xf32> -> vector<64x20xf32>
    %11 = arith.addf %5, %10 : vector<64x20xf32>
    %c0_15 = arith.constant 0 : index
    %c0_16 = arith.constant 0 : index
    %c0_17 = arith.constant 0 : index
    %c1_18 = arith.constant 1 : index
    %12 = vector.load %arg1[%c0_15, %c0_16, %c0_17, %c1_18] : memref<1x4x32x26xbf16, #tpu.memory_space<vmem>>, vector<1x1x32x20xbf16>
    %13 = vector.shape_cast %12 : vector<1x1x32x20xbf16> to vector<32x20xbf16>
    %c2 = arith.constant 2 : index
    %c0_19 = arith.constant 0 : index
    %c0_20 = arith.constant 0 : index
    %14 = vector.load %arg2[%c2, %c0_19, %c0_20] : memref<9x64x32xbf16, #tpu.memory_space<vmem>>, vector<1x64x32xbf16>
    %15 = vector.shape_cast %14 : vector<1x64x32xbf16> to vector<64x32xbf16>
    %cst_21 = arith.constant dense<0.000000e+00> : vector<64x20xf32>
    %16 = tpu.matmul %15, %13, %cst_21 {dimension_numbers = #tpu.dot_dimension_numbers<[1], [0], [0], [1], [0, 0, 1, 1], [], []>} : vector<64x32xbf16>, vector<32x20xbf16>, vector<64x20xf32> -> vector<64x20xf32>
    %17 = arith.addf %11, %16 : vector<64x20xf32>
    %c0_22 = arith.constant 0 : index
    %c2_23 = arith.constant 2 : index
    %c0_24 = arith.constant 0 : index
    %c0_25 = arith.constant 0 : index
    %18 = vector.load %arg1[%c0_22, %c2_23, %c0_24, %c0_25] : memref<1x4x32x26xbf16, #tpu.memory_space<vmem>>, vector<1x1x32x20xbf16>
    %19 = vector.shape_cast %18 : vector<1x1x32x20xbf16> to vector<32x20xbf16>
    %c3 = arith.constant 3 : index
    %c0_26 = arith.constant 0 : index
    %c0_27 = arith.constant 0 : index
    %20 = vector.load %arg2[%c3, %c0_26, %c0_27] : memref<9x64x32xbf16, #tpu.memory_space<vmem>>, vector<1x64x32xbf16>
    %21 = vector.shape_cast %20 : vector<1x64x32xbf16> to vector<64x32xbf16>
    %cst_28 = arith.constant dense<0.000000e+00> : vector<64x20xf32>
    %22 = tpu.matmul %21, %19, %cst_28 {dimension_numbers = #tpu.dot_dimension_numbers<[1], [0], [0], [1], [0, 0, 1, 1], [], []>} : vector<64x32xbf16>, vector<32x20xbf16>, vector<64x20xf32> -> vector<64x20xf32>
    %23 = arith.addf %17, %22 : vector<64x20xf32>
    %c0_29 = arith.constant 0 : index
    %c3_30 = arith.constant 3 : index
    %c0_31 = arith.constant 0 : index
    %c0_32 = arith.constant 0 : index
    %24 = vector.load %arg1[%c0_29, %c3_30, %c0_31, %c0_32] : memref<1x4x32x26xbf16, #tpu.memory_space<vmem>>, vector<1x1x32x20xbf16>
    %25 = vector.shape_cast %24 : vector<1x1x32x20xbf16> to vector<32x20xbf16>
    %c4 = arith.constant 4 : index
    %c0_33 = arith.constant 0 : index
    %c0_34 = arith.constant 0 : index
    %26 = vector.load %arg2[%c4, %c0_33, %c0_34] : memref<9x64x32xbf16, #tpu.memory_space<vmem>>, vector<1x64x32xbf16>
    %27 = vector.shape_cast %26 : vector<1x64x32xbf16> to vector<64x32xbf16>
    %cst_35 = arith.constant dense<0.000000e+00> : vector<64x20xf32>
    %28 = tpu.matmul %27, %25, %cst_35 {dimension_numbers = #tpu.dot_dimension_numbers<[1], [0], [0], [1], [0, 0, 1, 1], [], []>} : vector<64x32xbf16>, vector<32x20xbf16>, vector<64x20xf32> -> vector<64x20xf32>
    %29 = arith.addf %23, %28 : vector<64x20xf32>
    %c0_36 = arith.constant 0 : index
    %c2_37 = arith.constant 2 : index
    %c0_38 = arith.constant 0 : index
    %c1_39 = arith.constant 1 : index
    %30 = vector.load %arg1[%c0_36, %c2_37, %c0_38, %c1_39] : memref<1x4x32x26xbf16, #tpu.memory_space<vmem>>, vector<1x1x32x20xbf16>
    %31 = vector.shape_cast %30 : vector<1x1x32x20xbf16> to vector<32x20xbf16>
    %c5 = arith.constant 5 : index
    %c0_40 = arith.constant 0 : index
    %c0_41 = arith.constant 0 : index
    %32 = vector.load %arg2[%c5, %c0_40, %c0_41] : memref<9x64x32xbf16, #tpu.memory_space<vmem>>, vector<1x64x32xbf16>
    %33 = vector.shape_cast %32 : vector<1x64x32xbf16> to vector<64x32xbf16>
    %cst_42 = arith.constant dense<0.000000e+00> : vector<64x20xf32>
    %34 = tpu.matmul %33, %31, %cst_42 {dimension_numbers = #tpu.dot_dimension_numbers<[1], [0], [0], [1], [0, 0, 1, 1], [], []>} : vector<64x32xbf16>, vector<32x20xbf16>, vector<64x20xf32> -> vector<64x20xf32>
    %35 = arith.addf %29, %34 : vector<64x20xf32>
    %c0_43 = arith.constant 0 : index
    %c0_44 = arith.constant 0 : index
    %c0_45 = arith.constant 0 : index
    %c5_46 = arith.constant 5 : index
    %36 = vector.load %arg1[%c0_43, %c0_44, %c0_45, %c5_46] : memref<1x4x32x26xbf16, #tpu.memory_space<vmem>>, vector<1x1x32x20xbf16>
    %37 = vector.shape_cast %36 : vector<1x1x32x20xbf16> to vector<32x20xbf16>
    %c6 = arith.constant 6 : index
    %c0_47 = arith.constant 0 : index
    %c0_48 = arith.constant 0 : index
    %38 = vector.load %arg2[%c6, %c0_47, %c0_48] : memref<9x64x32xbf16, #tpu.memory_space<vmem>>, vector<1x64x32xbf16>
    %39 = vector.shape_cast %38 : vector<1x64x32xbf16> to vector<64x32xbf16>
    %cst_49 = arith.constant dense<0.000000e+00> : vector<64x20xf32>
    %40 = tpu.matmul %39, %37, %cst_49 {dimension_numbers = #tpu.dot_dimension_numbers<[1], [0], [0], [1], [0, 0, 1, 1], [], []>} : vector<64x32xbf16>, vector<32x20xbf16>, vector<64x20xf32> -> vector<64x20xf32>
    %41 = arith.addf %35, %40 : vector<64x20xf32>
    %c0_50 = arith.constant 0 : index
    %c1_51 = arith.constant 1 : index
    %c0_52 = arith.constant 0 : index
    %c5_53 = arith.constant 5 : index
    %42 = vector.load %arg1[%c0_50, %c1_51, %c0_52, %c5_53] : memref<1x4x32x26xbf16, #tpu.memory_space<vmem>>, vector<1x1x32x20xbf16>
    %43 = vector.shape_cast %42 : vector<1x1x32x20xbf16> to vector<32x20xbf16>
    %c7 = arith.constant 7 : index
    %c0_54 = arith.constant 0 : index
    %c0_55 = arith.constant 0 : index
    %44 = vector.load %arg2[%c7, %c0_54, %c0_55] : memref<9x64x32xbf16, #tpu.memory_space<vmem>>, vector<1x64x32xbf16>
    %45 = vector.shape_cast %44 : vector<1x64x32xbf16> to vector<64x32xbf16>
    %cst_56 = arith.constant dense<0.000000e+00> : vector<64x20xf32>
    %46 = tpu.matmul %45, %43, %cst_56 {dimension_numbers = #tpu.dot_dimension_numbers<[1], [0], [0], [1], [0, 0, 1, 1], [], []>} : vector<64x32xbf16>, vector<32x20xbf16>, vector<64x20xf32> -> vector<64x20xf32>
    %47 = arith.addf %41, %46 : vector<64x20xf32>
    %c0_57 = arith.constant 0 : index
    %c0_58 = arith.constant 0 : index
    %c0_59 = arith.constant 0 : index
    %c6_60 = arith.constant 6 : index
    %48 = vector.load %arg1[%c0_57, %c0_58, %c0_59, %c6_60] : memref<1x4x32x26xbf16, #tpu.memory_space<vmem>>, vector<1x1x32x20xbf16>
    %49 = vector.shape_cast %48 : vector<1x1x32x20xbf16> to vector<32x20xbf16>
    %c8 = arith.constant 8 : index
    %c0_61 = arith.constant 0 : index
    %c0_62 = arith.constant 0 : index
    %50 = vector.load %arg2[%c8, %c0_61, %c0_62] : memref<9x64x32xbf16, #tpu.memory_space<vmem>>, vector<1x64x32xbf16>
    %51 = vector.shape_cast %50 : vector<1x64x32xbf16> to vector<64x32xbf16>
    %cst_63 = arith.constant dense<0.000000e+00> : vector<64x20xf32>
    %52 = tpu.matmul %51, %49, %cst_63 {dimension_numbers = #tpu.dot_dimension_numbers<[1], [0], [0], [1], [0, 0, 1, 1], [], []>} : vector<64x32xbf16>, vector<32x20xbf16>, vector<64x20xf32> -> vector<64x20xf32>
    %53 = arith.addf %47, %52 : vector<64x20xf32>
    %54 = vector.broadcast %0 : vector<1x20xf32> to vector<64x20xf32>
    %55 = arith.mulf %53, %54 : vector<64x20xf32>
    %cst_64 = arith.constant dense<0.000000e+00> : vector<64xf32>
    %56 = vector.multi_reduction <add>, %55, %cst_64 [1] : vector<64x20xf32> to vector<64xf32>
    %57 = vector.shape_cast %56 : vector<64xf32> to vector<64x1xf32>
    %cst_65 = arith.constant 6.250000e-02 : f32
    %58 = vector.broadcast %cst_65 : f32 to vector<64x1xf32>
    %59 = arith.mulf %57, %58 : vector<64x1xf32>
    %60 = vector.broadcast %59 : vector<64x1xf32> to vector<64x20xf32>
    %61 = arith.subf %53, %60 : vector<64x20xf32>
    %62 = vector.broadcast %0 : vector<1x20xf32> to vector<64x20xf32>
    %63 = arith.mulf %61, %62 : vector<64x20xf32>
    %64 = arith.mulf %63, %63 : vector<64x20xf32>
    %cst_66 = arith.constant dense<0.000000e+00> : vector<64xf32>
    %65 = vector.multi_reduction <add>, %64, %cst_66 [1] : vector<64x20xf32> to vector<64xf32>
    %66 = vector.shape_cast %65 : vector<64xf32> to vector<64x1xf32>
    %cst_67 = arith.constant 6.250000e-02 : f32
    %67 = vector.broadcast %cst_67 : f32 to vector<64x1xf32>
    %68 = arith.mulf %66, %67 : vector<64x1xf32>
    %69 = vector.broadcast %59 : vector<64x1xf32> to vector<64x20xf32>
    %70 = arith.subf %53, %69 : vector<64x20xf32>
    %cst_68 = arith.constant 9.99999974E-6 : f32
    %71 = vector.broadcast %cst_68 : f32 to vector<64x1xf32>
    %72 = arith.addf %68, %71 : vector<64x1xf32>
    %73 = math.rsqrt %72 : vector<64x1xf32>
    %74 = vector.broadcast %73 : vector<64x1xf32> to vector<64x20xf32>
    %75 = arith.mulf %70, %74 : vector<64x20xf32>
    %cst_69 = arith.constant 0.000000e+00 : f32
    %76 = vector.broadcast %cst_69 : f32 to vector<64x20xf32>
    %77 = arith.maximumf %75, %76 : vector<64x20xf32>
    %78 = arith.truncf %77 : vector<64x20xf32> to vector<64x20xbf16>
    %c0_70 = arith.constant 0 : index
    %c0_71 = arith.constant 0 : index
    %c0_72 = arith.constant 0 : index
    %79 = vector.load %arg5[%c0_70, %c0_71, %c0_72] : memref<1x64x20xbf16, #tpu.memory_space<vmem>>, vector<1x64x20xbf16>
    %80 = vector.shape_cast %79 : vector<1x64x20xbf16> to vector<64x20xbf16>
    %81 = vector.shape_cast %78 : vector<64x20xbf16> to vector<1x64x20xbf16>
    tpu.vector_store %arg5[%c0_70, %c0_71, %c0_72], %81 {strides = array<i32>} : memref<1x64x20xbf16, #tpu.memory_space<vmem>>, vector<1x64x20xbf16>,
    %c0_73 = arith.constant 0 : index
    %c0_74 = arith.constant 0 : index
    %82 = vector.load %arg3[%c0_73, %c0_74] : memref<64x32xbf16, #tpu.memory_space<vmem>>, vector<64x32xbf16>
    %c0_75 = arith.constant 0 : index
    %c3_76 = arith.constant 3 : index
    %c0_77 = arith.constant 0 : index
    %c0_78 = arith.constant 0 : index
    %83 = vector.load %arg1[%c0_75, %c3_76, %c0_77, %c0_78] : memref<1x4x32x26xbf16, #tpu.memory_space<vmem>>, vector<1x1x32x20xbf16>
    %84 = vector.shape_cast %83 : vector<1x1x32x20xbf16> to vector<32x20xbf16>
    %cst_79 = arith.constant dense<0.000000e+00> : vector<64x20xf32>
    %85 = tpu.matmul %82, %84, %cst_79 {dimension_numbers = #tpu.dot_dimension_numbers<[1], [0], [0], [1], [0, 0, 1, 1], [], []>} : vector<64x32xbf16>, vector<32x20xbf16>, vector<64x20xf32> -> vector<64x20xf32>
    %86 = vector.broadcast %0 : vector<1x20xf32> to vector<64x20xf32>
    %87 = arith.mulf %85, %86 : vector<64x20xf32>
    %cst_80 = arith.constant dense<0.000000e+00> : vector<64xf32>
    %88 = vector.multi_reduction <add>, %87, %cst_80 [1] : vector<64x20xf32> to vector<64xf32>
    %89 = vector.shape_cast %88 : vector<64xf32> to vector<64x1xf32>
    %cst_81 = arith.constant 6.250000e-02 : f32
    %90 = vector.broadcast %cst_81 : f32 to vector<64x1xf32>
    %91 = arith.mulf %89, %90 : vector<64x1xf32>
    %92 = vector.broadcast %91 : vector<64x1xf32> to vector<64x20xf32>
    %93 = arith.subf %85, %92 : vector<64x20xf32>
    %94 = vector.broadcast %0 : vector<1x20xf32> to vector<64x20xf32>
    %95 = arith.mulf %93, %94 : vector<64x20xf32>
    %96 = arith.mulf %95, %95 : vector<64x20xf32>
    %cst_82 = arith.constant dense<0.000000e+00> : vector<64xf32>
    %97 = vector.multi_reduction <add>, %96, %cst_82 [1] : vector<64x20xf32> to vector<64xf32>
    %98 = vector.shape_cast %97 : vector<64xf32> to vector<64x1xf32>
    %cst_83 = arith.constant 6.250000e-02 : f32
    %99 = vector.broadcast %cst_83 : f32 to vector<64x1xf32>
    %100 = arith.mulf %98, %99 : vector<64x1xf32>
    %101 = vector.broadcast %91 : vector<64x1xf32> to vector<64x20xf32>
    %102 = arith.subf %85, %101 : vector<64x20xf32>
    %cst_84 = arith.constant 9.99999974E-6 : f32
    %103 = vector.broadcast %cst_84 : f32 to vector<64x1xf32>
    %104 = arith.addf %100, %103 : vector<64x1xf32>
    %105 = math.rsqrt %104 : vector<64x1xf32>
    %106 = vector.broadcast %105 : vector<64x1xf32> to vector<64x20xf32>
    %107 = arith.mulf %102, %106 : vector<64x20xf32>
    %108 = arith.truncf %107 : vector<64x20xf32> to vector<64x20xbf16>
    %c0_85 = arith.constant 0 : index
    %c0_86 = arith.constant 0 : index
    %c0_87 = arith.constant 0 : index
    %109 = vector.load %arg6[%c0_85, %c0_86, %c0_87] : memref<1x64x20xbf16, #tpu.memory_space<vmem>>, vector<1x64x20xbf16>
    %110 = vector.shape_cast %109 : vector<1x64x20xbf16> to vector<64x20xbf16>
    %111 = vector.shape_cast %108 : vector<64x20xbf16> to vector<1x64x20xbf16>
    tpu.vector_store %arg6[%c0_85, %c0_86, %c0_87], %111 {strides = array<i32>} : memref<1x64x20xbf16, #tpu.memory_space<vmem>>, vector<1x64x20xbf16>,
    return
  }
  func.func @transform_0(%arg0: i32) -> (i32, i32, i32, i32) {
    %c0_i32 = arith.constant 0 : i32
    %c0_i32_0 = arith.constant 0 : i32
    %c0_i32_1 = arith.constant 0 : i32
    %c0_i32_2 = arith.constant 0 : i32
    return %arg0, %c0_i32, %c0_i32_0, %c0_i32_1 : i32, i32, i32, i32
  }
  func.func @transform_1(%arg0: i32) -> (i32, i32, i32) {
    %c0_i32 = arith.constant 0 : i32
    %c0_i32_0 = arith.constant 0 : i32
    %c0_i32_1 = arith.constant 0 : i32
    %c0_i32_2 = arith.constant 0 : i32
    return %c0_i32, %c0_i32_0, %c0_i32_1 : i32, i32, i32
  }
  func.func @transform_2(%arg0: i32) -> (i32, i32) {
    %c0_i32 = arith.constant 0 : i32
    %c0_i32_0 = arith.constant 0 : i32
    %c0_i32_1 = arith.constant 0 : i32
    return %c0_i32, %c0_i32_0 : i32, i32
  }
  func.func @transform_3(%arg0: i32) -> (i32, i32) {
    %c0_i32 = arith.constant 0 : i32
    %c0_i32_0 = arith.constant 0 : i32
    %c0_i32_1 = arith.constant 0 : i32
    return %c0_i32, %c0_i32_0 : i32, i32
  }
  func.func @transform_4(%arg0: i32) -> (i32, i32, i32) {
    %c0_i32 = arith.constant 0 : i32
    %c0_i32_0 = arith.constant 0 : i32
    %c0_i32_1 = arith.constant 0 : i32
    return %arg0, %c0_i32, %c0_i32_0 : i32, i32, i32
  }
  func.func @transform_5(%arg0: i32) -> (i32, i32, i32) {
    %c0_i32 = arith.constant 0 : i32
    %c0_i32_0 = arith.constant 0 : i32
    %c0_i32_1 = arith.constant 0 : i32
    return %arg0, %c0_i32, %c0_i32_0 : i32, i32, i32
  }
}

module attributes {stable_mosaic.version = 11 : i64} {
  func.func @_block_b_head_kernel(%arg0: i32, %arg1: memref<1x1x64x38xbf16, #tpu.memory_space<vmem>>, %arg2: memref<9x64x64xbf16, #tpu.memory_space<vmem>>, %arg3: memref<1x64x24xbf16, #tpu.memory_space<vmem>>, %arg4: memref<1x24xf32, #tpu.memory_space<vmem>>, %arg5: memref<64x24xf32, #tpu.memory_space<vmem>>, %arg6: memref<1x1xf32, #tpu.memory_space<vmem>>, %arg7: memref<1x1x1xf32, #tpu.memory_space<vmem>>) attributes {dimension_semantics = [#tpu.dimension_semantics<parallel>], iteration_bounds = array<i64: 2>, scalar_prefetch = 0 : i64, scratch_operands = 0 : i64, tpu.core_type = #tpu.core_type<tc>, window_params = [{transform_indices = @transform_0, window_bounds = array<i64: 1, 1, 64, 38>}, {pipeline_mode = #tpu.pipeline_mode<synchronous>, transform_indices = @transform_1, window_bounds = array<i64: 9, 64, 64>}, {transform_indices = @transform_2, window_bounds = array<i64: 1, 64, 24>}, {pipeline_mode = #tpu.pipeline_mode<synchronous>, transform_indices = @transform_3, window_bounds = array<i64: 1, 24>}, {pipeline_mode = #tpu.pipeline_mode<synchronous>, transform_indices = @transform_4, window_bounds = array<i64: 64, 24>}, {pipeline_mode = #tpu.pipeline_mode<synchronous>, transform_indices = @transform_5, window_bounds = array<i64: 1, 1>}, {transform_indices = @transform_6, window_bounds = array<i64: 1, 1, 1>}]} {
    %c0 = arith.constant 0 : index
    %c0_0 = arith.constant 0 : index
    %c0_1 = arith.constant 0 : index
    %c0_2 = arith.constant 0 : index
    %0 = vector.load %arg1[%c0, %c0_0, %c0_1, %c0_2] : memref<1x1x64x38xbf16, #tpu.memory_space<vmem>>, vector<1x1x64x24xbf16>
    %1 = vector.shape_cast %0 : vector<1x1x64x24xbf16> to vector<64x24xbf16>
    %c0_3 = arith.constant 0 : index
    %c0_4 = arith.constant 0 : index
    %c0_5 = arith.constant 0 : index
    %2 = vector.load %arg2[%c0_3, %c0_4, %c0_5] : memref<9x64x64xbf16, #tpu.memory_space<vmem>>, vector<1x64x64xbf16>
    %3 = vector.shape_cast %2 : vector<1x64x64xbf16> to vector<64x64xbf16>
    %cst = arith.constant dense<0.000000e+00> : vector<64x24xf32>
    %4 = tpu.matmul %3, %1, %cst {dimension_numbers = #tpu.dot_dimension_numbers<[1], [0], [0], [1], [0, 0, 1, 1], [], []>} : vector<64x64xbf16>, vector<64x24xbf16>, vector<64x24xf32> -> vector<64x24xf32>
    %c0_6 = arith.constant 0 : index
    %c0_7 = arith.constant 0 : index
    %c0_8 = arith.constant 0 : index
    %c1 = arith.constant 1 : index
    %5 = vector.load %arg1[%c0_6, %c0_7, %c0_8, %c1] : memref<1x1x64x38xbf16, #tpu.memory_space<vmem>>, vector<1x1x64x24xbf16>
    %6 = vector.shape_cast %5 : vector<1x1x64x24xbf16> to vector<64x24xbf16>
    %c1_9 = arith.constant 1 : index
    %c0_10 = arith.constant 0 : index
    %c0_11 = arith.constant 0 : index
    %7 = vector.load %arg2[%c1_9, %c0_10, %c0_11] : memref<9x64x64xbf16, #tpu.memory_space<vmem>>, vector<1x64x64xbf16>
    %8 = vector.shape_cast %7 : vector<1x64x64xbf16> to vector<64x64xbf16>
    %cst_12 = arith.constant dense<0.000000e+00> : vector<64x24xf32>
    %9 = tpu.matmul %8, %6, %cst_12 {dimension_numbers = #tpu.dot_dimension_numbers<[1], [0], [0], [1], [0, 0, 1, 1], [], []>} : vector<64x64xbf16>, vector<64x24xbf16>, vector<64x24xf32> -> vector<64x24xf32>
    %10 = arith.addf %4, %9 : vector<64x24xf32>
    %c0_13 = arith.constant 0 : index
    %c0_14 = arith.constant 0 : index
    %c0_15 = arith.constant 0 : index
    %c2 = arith.constant 2 : index
    %11 = vector.load %arg1[%c0_13, %c0_14, %c0_15, %c2] : memref<1x1x64x38xbf16, #tpu.memory_space<vmem>>, vector<1x1x64x24xbf16>
    %12 = vector.shape_cast %11 : vector<1x1x64x24xbf16> to vector<64x24xbf16>
    %c2_16 = arith.constant 2 : index
    %c0_17 = arith.constant 0 : index
    %c0_18 = arith.constant 0 : index
    %13 = vector.load %arg2[%c2_16, %c0_17, %c0_18] : memref<9x64x64xbf16, #tpu.memory_space<vmem>>, vector<1x64x64xbf16>
    %14 = vector.shape_cast %13 : vector<1x64x64xbf16> to vector<64x64xbf16>
    %cst_19 = arith.constant dense<0.000000e+00> : vector<64x24xf32>
    %15 = tpu.matmul %14, %12, %cst_19 {dimension_numbers = #tpu.dot_dimension_numbers<[1], [0], [0], [1], [0, 0, 1, 1], [], []>} : vector<64x64xbf16>, vector<64x24xbf16>, vector<64x24xf32> -> vector<64x24xf32>
    %16 = arith.addf %10, %15 : vector<64x24xf32>
    %c0_20 = arith.constant 0 : index
    %c0_21 = arith.constant 0 : index
    %c0_22 = arith.constant 0 : index
    %c6 = arith.constant 6 : index
    %17 = vector.load %arg1[%c0_20, %c0_21, %c0_22, %c6] : memref<1x1x64x38xbf16, #tpu.memory_space<vmem>>, vector<1x1x64x24xbf16>
    %18 = vector.shape_cast %17 : vector<1x1x64x24xbf16> to vector<64x24xbf16>
    %c3 = arith.constant 3 : index
    %c0_23 = arith.constant 0 : index
    %c0_24 = arith.constant 0 : index
    %19 = vector.load %arg2[%c3, %c0_23, %c0_24] : memref<9x64x64xbf16, #tpu.memory_space<vmem>>, vector<1x64x64xbf16>
    %20 = vector.shape_cast %19 : vector<1x64x64xbf16> to vector<64x64xbf16>
    %cst_25 = arith.constant dense<0.000000e+00> : vector<64x24xf32>
    %21 = tpu.matmul %20, %18, %cst_25 {dimension_numbers = #tpu.dot_dimension_numbers<[1], [0], [0], [1], [0, 0, 1, 1], [], []>} : vector<64x64xbf16>, vector<64x24xbf16>, vector<64x24xf32> -> vector<64x24xf32>
    %22 = arith.addf %16, %21 : vector<64x24xf32>
    %c0_26 = arith.constant 0 : index
    %c0_27 = arith.constant 0 : index
    %c0_28 = arith.constant 0 : index
    %c7 = arith.constant 7 : index
    %23 = vector.load %arg1[%c0_26, %c0_27, %c0_28, %c7] : memref<1x1x64x38xbf16, #tpu.memory_space<vmem>>, vector<1x1x64x24xbf16>
    %24 = vector.shape_cast %23 : vector<1x1x64x24xbf16> to vector<64x24xbf16>
    %c4 = arith.constant 4 : index
    %c0_29 = arith.constant 0 : index
    %c0_30 = arith.constant 0 : index
    %25 = vector.load %arg2[%c4, %c0_29, %c0_30] : memref<9x64x64xbf16, #tpu.memory_space<vmem>>, vector<1x64x64xbf16>
    %26 = vector.shape_cast %25 : vector<1x64x64xbf16> to vector<64x64xbf16>
    %cst_31 = arith.constant dense<0.000000e+00> : vector<64x24xf32>
    %27 = tpu.matmul %26, %24, %cst_31 {dimension_numbers = #tpu.dot_dimension_numbers<[1], [0], [0], [1], [0, 0, 1, 1], [], []>} : vector<64x64xbf16>, vector<64x24xbf16>, vector<64x24xf32> -> vector<64x24xf32>
    %28 = arith.addf %22, %27 : vector<64x24xf32>
    %c0_32 = arith.constant 0 : index
    %c0_33 = arith.constant 0 : index
    %c0_34 = arith.constant 0 : index
    %c8 = arith.constant 8 : index
    %29 = vector.load %arg1[%c0_32, %c0_33, %c0_34, %c8] : memref<1x1x64x38xbf16, #tpu.memory_space<vmem>>, vector<1x1x64x24xbf16>
    %30 = vector.shape_cast %29 : vector<1x1x64x24xbf16> to vector<64x24xbf16>
    %c5 = arith.constant 5 : index
    %c0_35 = arith.constant 0 : index
    %c0_36 = arith.constant 0 : index
    %31 = vector.load %arg2[%c5, %c0_35, %c0_36] : memref<9x64x64xbf16, #tpu.memory_space<vmem>>, vector<1x64x64xbf16>
    %32 = vector.shape_cast %31 : vector<1x64x64xbf16> to vector<64x64xbf16>
    %cst_37 = arith.constant dense<0.000000e+00> : vector<64x24xf32>
    %33 = tpu.matmul %32, %30, %cst_37 {dimension_numbers = #tpu.dot_dimension_numbers<[1], [0], [0], [1], [0, 0, 1, 1], [], []>} : vector<64x64xbf16>, vector<64x24xbf16>, vector<64x24xf32> -> vector<64x24xf32>
    %34 = arith.addf %28, %33 : vector<64x24xf32>
    %c0_38 = arith.constant 0 : index
    %c0_39 = arith.constant 0 : index
    %c0_40 = arith.constant 0 : index
    %c12 = arith.constant 12 : index
    %35 = vector.load %arg1[%c0_38, %c0_39, %c0_40, %c12] : memref<1x1x64x38xbf16, #tpu.memory_space<vmem>>, vector<1x1x64x24xbf16>
    %36 = vector.shape_cast %35 : vector<1x1x64x24xbf16> to vector<64x24xbf16>
    %c6_41 = arith.constant 6 : index
    %c0_42 = arith.constant 0 : index
    %c0_43 = arith.constant 0 : index
    %37 = vector.load %arg2[%c6_41, %c0_42, %c0_43] : memref<9x64x64xbf16, #tpu.memory_space<vmem>>, vector<1x64x64xbf16>
    %38 = vector.shape_cast %37 : vector<1x64x64xbf16> to vector<64x64xbf16>
    %cst_44 = arith.constant dense<0.000000e+00> : vector<64x24xf32>
    %39 = tpu.matmul %38, %36, %cst_44 {dimension_numbers = #tpu.dot_dimension_numbers<[1], [0], [0], [1], [0, 0, 1, 1], [], []>} : vector<64x64xbf16>, vector<64x24xbf16>, vector<64x24xf32> -> vector<64x24xf32>
    %40 = arith.addf %34, %39 : vector<64x24xf32>
    %c0_45 = arith.constant 0 : index
    %c0_46 = arith.constant 0 : index
    %c0_47 = arith.constant 0 : index
    %c13 = arith.constant 13 : index
    %41 = vector.load %arg1[%c0_45, %c0_46, %c0_47, %c13] : memref<1x1x64x38xbf16, #tpu.memory_space<vmem>>, vector<1x1x64x24xbf16>
    %42 = vector.shape_cast %41 : vector<1x1x64x24xbf16> to vector<64x24xbf16>
    %c7_48 = arith.constant 7 : index
    %c0_49 = arith.constant 0 : index
    %c0_50 = arith.constant 0 : index
    %43 = vector.load %arg2[%c7_48, %c0_49, %c0_50] : memref<9x64x64xbf16, #tpu.memory_space<vmem>>, vector<1x64x64xbf16>
    %44 = vector.shape_cast %43 : vector<1x64x64xbf16> to vector<64x64xbf16>
    %cst_51 = arith.constant dense<0.000000e+00> : vector<64x24xf32>
    %45 = tpu.matmul %44, %42, %cst_51 {dimension_numbers = #tpu.dot_dimension_numbers<[1], [0], [0], [1], [0, 0, 1, 1], [], []>} : vector<64x64xbf16>, vector<64x24xbf16>, vector<64x24xf32> -> vector<64x24xf32>
    %46 = arith.addf %40, %45 : vector<64x24xf32>
    %c0_52 = arith.constant 0 : index
    %c0_53 = arith.constant 0 : index
    %c0_54 = arith.constant 0 : index
    %c14 = arith.constant 14 : index
    %47 = vector.load %arg1[%c0_52, %c0_53, %c0_54, %c14] : memref<1x1x64x38xbf16, #tpu.memory_space<vmem>>, vector<1x1x64x24xbf16>
    %48 = vector.shape_cast %47 : vector<1x1x64x24xbf16> to vector<64x24xbf16>
    %c8_55 = arith.constant 8 : index
    %c0_56 = arith.constant 0 : index
    %c0_57 = arith.constant 0 : index
    %49 = vector.load %arg2[%c8_55, %c0_56, %c0_57] : memref<9x64x64xbf16, #tpu.memory_space<vmem>>, vector<1x64x64xbf16>
    %50 = vector.shape_cast %49 : vector<1x64x64xbf16> to vector<64x64xbf16>
    %cst_58 = arith.constant dense<0.000000e+00> : vector<64x24xf32>
    %51 = tpu.matmul %50, %48, %cst_58 {dimension_numbers = #tpu.dot_dimension_numbers<[1], [0], [0], [1], [0, 0, 1, 1], [], []>} : vector<64x64xbf16>, vector<64x24xbf16>, vector<64x24xf32> -> vector<64x24xf32>
    %52 = arith.addf %46, %51 : vector<64x24xf32>
    %c0_59 = arith.constant 0 : index
    %c0_60 = arith.constant 0 : index
    %53 = vector.load %arg4[%c0_59, %c0_60] : memref<1x24xf32, #tpu.memory_space<vmem>>, vector<1x24xf32>
    %54 = vector.broadcast %53 : vector<1x24xf32> to vector<64x24xf32>
    %55 = arith.mulf %52, %54 : vector<64x24xf32>
    %cst_61 = arith.constant dense<0.000000e+00> : vector<64xf32>
    %56 = vector.multi_reduction <add>, %55, %cst_61 [1] : vector<64x24xf32> to vector<64xf32>
    %57 = vector.shape_cast %56 : vector<64xf32> to vector<64x1xf32>
    %cst_62 = arith.constant 6.250000e-02 : f32
    %58 = vector.broadcast %cst_62 : f32 to vector<64x1xf32>
    %59 = arith.mulf %57, %58 : vector<64x1xf32>
    %60 = vector.broadcast %59 : vector<64x1xf32> to vector<64x24xf32>
    %61 = arith.subf %52, %60 : vector<64x24xf32>
    %62 = vector.broadcast %53 : vector<1x24xf32> to vector<64x24xf32>
    %63 = arith.mulf %61, %62 : vector<64x24xf32>
    %64 = arith.mulf %63, %63 : vector<64x24xf32>
    %cst_63 = arith.constant dense<0.000000e+00> : vector<64xf32>
    %65 = vector.multi_reduction <add>, %64, %cst_63 [1] : vector<64x24xf32> to vector<64xf32>
    %66 = vector.shape_cast %65 : vector<64xf32> to vector<64x1xf32>
    %cst_64 = arith.constant 6.250000e-02 : f32
    %67 = vector.broadcast %cst_64 : f32 to vector<64x1xf32>
    %68 = arith.mulf %66, %67 : vector<64x1xf32>
    %69 = vector.broadcast %59 : vector<64x1xf32> to vector<64x24xf32>
    %70 = arith.subf %52, %69 : vector<64x24xf32>
    %cst_65 = arith.constant 9.99999974E-6 : f32
    %71 = vector.broadcast %cst_65 : f32 to vector<64x1xf32>
    %72 = arith.addf %68, %71 : vector<64x1xf32>
    %73 = math.rsqrt %72 : vector<64x1xf32>
    %74 = vector.broadcast %73 : vector<64x1xf32> to vector<64x24xf32>
    %75 = arith.mulf %70, %74 : vector<64x24xf32>
    %c0_66 = arith.constant 0 : index
    %c0_67 = arith.constant 0 : index
    %c0_68 = arith.constant 0 : index
    %76 = vector.load %arg3[%c0_66, %c0_67, %c0_68] : memref<1x64x24xbf16, #tpu.memory_space<vmem>>, vector<1x64x24xbf16>
    %77 = vector.shape_cast %76 : vector<1x64x24xbf16> to vector<64x24xbf16>
    %78 = arith.extf %77 : vector<64x24xbf16> to vector<64x24xf32>
    %79 = arith.addf %75, %78 : vector<64x24xf32>
    %cst_69 = arith.constant 0.000000e+00 : f32
    %80 = vector.broadcast %cst_69 : f32 to vector<64x24xf32>
    %81 = arith.maximumf %79, %80 : vector<64x24xf32>
    %c0_70 = arith.constant 0 : index
    %c0_71 = arith.constant 0 : index
    %82 = vector.load %arg5[%c0_70, %c0_71] : memref<64x24xf32, #tpu.memory_space<vmem>>, vector<64x24xf32>
    %83 = arith.mulf %81, %82 : vector<64x24xf32>
    %cst_72 = arith.constant dense<0.000000e+00> : vector<64xf32>
    %84 = vector.multi_reduction <add>, %83, %cst_72 [1] : vector<64x24xf32> to vector<64xf32>
    %85 = vector.shape_cast %84 : vector<64xf32> to vector<64x1xf32>
    %cst_73 = arith.constant dense<0.000000e+00> : vector<1xf32>
    %86 = vector.multi_reduction <add>, %85, %cst_73 [0] : vector<64x1xf32> to vector<1xf32>
    %87 = vector.shape_cast %86 : vector<1xf32> to vector<1x1xf32>
    %c0_74 = arith.constant 0 : index
    %c0_75 = arith.constant 0 : index
    %88 = vector.load %arg6[%c0_74, %c0_75] : memref<1x1xf32, #tpu.memory_space<vmem>>, vector<1x1xf32>
    %89 = arith.addf %87, %88 : vector<1x1xf32>
    %90 = arith.negf %89 : vector<1x1xf32>
    %91 = math.exp %90 : vector<1x1xf32>
    %cst_76 = arith.constant 1.000000e+00 : f32
    %92 = vector.broadcast %cst_76 : f32 to vector<1x1xf32>
    %93 = arith.addf %92, %91 : vector<1x1xf32>
    %94 = arith.divf %92, %93 : vector<1x1xf32>
    %c0_77 = arith.constant 0 : index
    %c0_78 = arith.constant 0 : index
    %c0_79 = arith.constant 0 : index
    %95 = vector.load %arg7[%c0_77, %c0_78, %c0_79] : memref<1x1x1xf32, #tpu.memory_space<vmem>>, vector<1x1x1xf32>
    %96 = vector.shape_cast %95 : vector<1x1x1xf32> to vector<1x1xf32>
    %97 = vector.shape_cast %94 : vector<1x1xf32> to vector<1x1x1xf32>
    tpu.vector_store %arg7[%c0_77, %c0_78, %c0_79], %97 {strides = array<i32>} : memref<1x1x1xf32, #tpu.memory_space<vmem>>, vector<1x1x1xf32>,
    return
  }
  func.func @transform_0(%arg0: i32) -> (i32, i32, i32, i32) {
    %c0_i32 = arith.constant 0 : i32
    %c0_i32_0 = arith.constant 0 : i32
    %c0_i32_1 = arith.constant 0 : i32
    %c0_i32_2 = arith.constant 0 : i32
    return %arg0, %c0_i32, %c0_i32_0, %c0_i32_1 : i32, i32, i32, i32
  }
  func.func @transform_1(%arg0: i32) -> (i32, i32, i32) {
    %c0_i32 = arith.constant 0 : i32
    %c0_i32_0 = arith.constant 0 : i32
    %c0_i32_1 = arith.constant 0 : i32
    %c0_i32_2 = arith.constant 0 : i32
    return %c0_i32, %c0_i32_0, %c0_i32_1 : i32, i32, i32
  }
  func.func @transform_2(%arg0: i32) -> (i32, i32, i32) {
    %c0_i32 = arith.constant 0 : i32
    %c0_i32_0 = arith.constant 0 : i32
    %c0_i32_1 = arith.constant 0 : i32
    return %arg0, %c0_i32, %c0_i32_0 : i32, i32, i32
  }
  func.func @transform_3(%arg0: i32) -> (i32, i32) {
    %c0_i32 = arith.constant 0 : i32
    %c0_i32_0 = arith.constant 0 : i32
    %c0_i32_1 = arith.constant 0 : i32
    return %c0_i32, %c0_i32_0 : i32, i32
  }
  func.func @transform_4(%arg0: i32) -> (i32, i32) {
    %c0_i32 = arith.constant 0 : i32
    %c0_i32_0 = arith.constant 0 : i32
    %c0_i32_1 = arith.constant 0 : i32
    return %c0_i32, %c0_i32_0 : i32, i32
  }
  func.func @transform_5(%arg0: i32) -> (i32, i32) {
    %c0_i32 = arith.constant 0 : i32
    %c0_i32_0 = arith.constant 0 : i32
    %c0_i32_1 = arith.constant 0 : i32
    return %c0_i32, %c0_i32_0 : i32, i32
  }
  func.func @transform_6(%arg0: i32) -> (i32, i32, i32) {
    %c0_i32 = arith.constant 0 : i32
    %c0_i32_0 = arith.constant 0 : i32
    %c0_i32_1 = arith.constant 0 : i32
    return %arg0, %c0_i32, %c0_i32_0 : i32, i32, i32
  }
}

</mosaic_0001>

<bundles_post_ra>
// kernel: resnet_discriminator.7
= control target key start
LH: loop header
LB: loop body
LE: loop exit
PB: predicated region body
PF: predicated region fallthrough
CT: control target
= control target key end

     0   :  { %s5649_s12 = smov 0   ;;  %s7010_s0 = inlined_call_operand.vmem [shape: bf16[2,4,3,1090], index: 0, kind: input, shape index: {}]   ;;  %s7011_s1 = inlined_call_operand.vmem [shape: bf16[16,8,3], index: 1, kind: input, shape index: {}]   ;;  %s7012_s2 = inlined_call_operand.vmem [shape: f32[8,1], index: 2, kind: input, shape index: {}]   ;;  %s7013_s3 = inlined_call_operand.vmem [shape: bf16[2,8,1056], index: 3, kind: output, shape index: {}]  }
   0x1 LB: > { %s5288_s13 = sadd.s32 4294967295, %s5619_s12   ;;  %p5292_p0 = scmp.ge.s32.totalorder %s5619_s12, 1  ;;  %s5619_s12 = sphi %s5649_s12, %s13_s12  }
   0x2   : > { %p137_p1 = scmp.lt.s32.totalorder %s5619_s12, 3 }
   0x4   : > { %p138_p2 = pnand %p5292_p0, %p137_p1 }
   0x5   : > { %p161_p3 = scmp.lt.s32.totalorder (!%p138_p2), %s5288_s13, 1  ;;  %v189_v0 = vlaneseq (!%p138_p2)  ;;  %v5621_v1 = vmov (!%p138_p2), 1983009808   ;;  %vm230_vm0 = vcmask (!%p138_p2), 1040384   ;;  %v5622_v4 = vmov (!%p138_p2), 0   ;;  %s5624_s18 = smov (!%p138_p2), 127  }
   0x6   : > { %141 = sbr.rel (%p138_p2) target bundleno = 646 (0x286), region = 32  ;;  %v187_v2 = vunpack.c.l.s4 (!%p138_p2), %v5621_v1  ;;  %293 = vmatprep.mubr.bf16.mxu0 (!%p138_p2), %v5622_v4  ;;  %334 = vmatprep.mubr.bf16.mxu1 (!%p138_p2), %v5622_v4  ;;  %vm231_vm1 = vcmask (!%p138_p2), 1041408   ;;  %v5623_v7 = vmov (!%p138_p2), 65535   ;;  %v5298_v39 = vld [vmem:[%s7011_s1 + $0x4] sm:$0xf] (!%p138_p2)  ;;  %vm226_vm2 = vcmask (!%p138_p2), 23552  }
   0x7   : > { %v190_v3 = vshrl.u32 (!%p138_p2), %v189_v0, 7  ;;  %5600 = vset.pattern.permute.xlu0 (!%p138_p2), %v5622_v4  ;;  %v232_v8 = vsel (!%p138_p2), %vm230_vm0, 4294967295, %v5623_v7  ;;  %v5625_v45 = vmov (!%p138_p2), 0.0   ;;  %vm5626_vm3 = vmmov (!%p138_p2), 0   ;;  %v175_v52 = vld [vmem:[%s7011_s1] sm:$0xf] (!%p138_p2) }
   0x8   : > { %v188_v5 = vunpack.c.0.s8 (!%p138_p2), %v187_v2  ;;  %v5677_v15 = vsel (!%p138_p2), %vm231_vm1, %v232_v8, 0  ;;  %s5627_s23 = smov (!%p138_p2), 95   ;;  %s5628_s24 = smov (!%p138_p2), 94   ;;  %vm810_vm4 = vcmask (!%p138_p2), 1039360   ;;  %vm2669_vm5 = vcmask (!%p138_p2), 777216  }
   0x9   : > { %vm3306_vm6 = vcmask (!%p138_p2), 769024   ;;  %vm5231_vm0 = vcmask (!%p138_p2), 257024  }
   0xa   : > { %v5663_v6 = vsub.s32 (!%p138_p2), %v188_v5, %v190_v3 }
   0xd   : > { %s7015_s13 = smov (!%p161_p3, %s5288_s13), 1 }
   0xe   : > { %s5582_s14 = smul.u32 72, %s7015_s13 }
   0xf   : > { %s5583_s30 = smul.u32 36, %s7015_s13 }
  0x10   : > { %s5668_s17 = scalar_lea.vmem %s7010_s0, %s5582_s14 }
  0x11   : > { %v743_v9 = vld [vmem:[%s5668_s17] sm:$0xff]  ;;  %v744_v10 = vld [vmem:[%s5668_s17 + $0x8] sm:$0xff]  ;;  %v5318_v13 = vld [vmem:[%s5668_s17 + $0x12] sm:$0xff]  ;;  %s6993_s6 = scalar_lea.vmem %s7013_s3, %s5583_s30 }
  0x12   : > { %v5673_v11 = vrot.slane %v743_v9, %v5663_v6  ;;  %v751_v12 = vcombine.high %v743_v9, %v743_v9  ;;  %v5319_v14 = vld [vmem:[%s5668_s17 + $0x1a] sm:$0xff]  ;;  %v5680_v16 = vrot.slane %v744_v10, %v5663_v6  ;;  %v5683_v17 = vrot.slane %v5318_v13, %v5663_v6  ;;  %v5771_v44 = vld.sshfl [vmem:[%s5668_s17 + $0x22] sm:$0x3 pattern:$0x76325410]  ;;  %v5348_v55 = vld [vmem:[%s5668_s17 + $0x24] sm:$0xff] }
  0x13   : > { %v1070_v18 = vcombine.high %v5318_v13, %v5318_v13  ;;  %v1087_v19 = vcombine.high %v5319_v14, %v5319_v14  ;;  %v768_v22 = vcombine.high %v744_v10, %v744_v10  ;;  %v5695_v23 = vrot.slane %v5319_v14, %v5663_v6  ;;  %v5780_v47 = vld.sshfl [vmem:[%s5668_s17 + $0x10] sm:$0x3 pattern:$0x76325410]  ;;  %v5358_v3 = vld [vmem:[%s5668_s17 + $0x36] sm:$0xff]  ;;  %v5359_v13 = vld [vmem:[%s5668_s17 + $0x3e] sm:$0xff] }
  0x14   : > { %792 = vrot.lane.b32.xlu1 %v5673_v11, %s5624_s18  ;;  %v5689_v20 = vcombine.high %v5673_v11, %v5673_v11  ;;  %v5692_v21 = vrot.slane %v751_v12, %v5663_v6  ;;  %v5699_v24 = vcombine.high %v5683_v17, %v5683_v17  ;;  %v235_v29 = vand.u32 %v5683_v17, %v5677_v15  ;;  %v5349_v62 = vld [vmem:[%s5668_s17 + $0x2c] sm:$0xff]  ;;  %v5895_v12 = vld.sshfl [vmem:[%s5668_s17 + $0x34] sm:$0x3 pattern:$0x76325410] }
  0x15   : > { %v5702_v25 = vrot.slane %v1070_v18, %v5663_v6  ;;  %v5705_v26 = vrot.slane %v1087_v19, %v5663_v6  ;;  %v5715_v28 = vcombine.high %v5695_v23, %v5695_v23  ;;  %v5733_v33 = vcombine.high %v5680_v16, %v5680_v16 }
  0x16   : > { %794 = vrot.lane.b32.xlu0 %v5689_v20, %s5624_s18  ;;  %v5711_v27 = vcombine.high %v5692_v21, %v5692_v21  ;;  %v238_v32 = vand.u32 %v5699_v24, %v5677_v15  ;;  %v5736_v34 = vrot.slane %v768_v22, %v5663_v6  ;;  %v247_v40 = vand.u32 %v5695_v23, %v5677_v15 }
  0x17   : > { %v5721_v30 = vcombine.high %v5702_v25, %v5702_v25  ;;  %v5725_v31 = vcombine.high %v5705_v26, %v5705_v26  ;;  %v241_v35 = vand.u32 %v5702_v25, %v5677_v15  ;;  %v250_v36 = vand.u32 %v5715_v28, %v5677_v15 }
  0x18   : > { %798 = vrot.lane.b32.xlu1 %v5711_v27, %s5624_s18  ;;  %261 = vmatprep.subr.bf16.mxu0 %v238_v32  ;;  %v5757_v41 = vcombine.high %v5736_v34, %v5736_v34  ;;  %v253_v42 = vand.u32 %v5705_v26, %v5677_v15  ;;  %v516_v43 = vand.u32 %v5689_v20, %v5677_v15 }
  0x19   : > { %v244_v37 = vand.u32 %v5721_v30, %v5677_v15  ;;  %v256_v38 = vand.u32 %v5725_v31, %v5677_v15  ;;  %262 = vmatpush1.bf16.msra.mxu0 %v235_v29  ;;  %v259_v46 = vand.u32 %v5771_v44, %v5677_v15  ;;  %v513_v48 = vand.u32 %v5673_v11, %v5677_v15 }
  0x1a   : > { %796 = vrot.lane.b32.xlu0 %v5692_v21, %s5624_s18  ;;  %343 = vmatprep.subr.bf16.mxu0 %v250_v36  ;;  %v522_v49 = vand.u32 %v5711_v27, %v5677_v15  ;;  %v528_v50 = vand.u32 %v5733_v33, %v5677_v15  ;;  %v519_v51 = vand.u32 %v5692_v21, %v5677_v15 }
  0x1b   : > { %302 = vmatprep.subr.bf16.mxu1 %v244_v37  ;;  %v525_v53 = vand.u32 %v5680_v16, %v5677_v15  ;;  %v534_v54 = vand.u32 %v5757_v41, %v5677_v15  ;;  %v1974_v56 = vcombine.high %v5348_v55, %v5348_v55  ;;  %v5824_v57 = vrot.slane %v5348_v55, %v5663_v6 }
  0x1c   : > { %802 = vrot.lane.b32.xlu1 %v5733_v33, %s5624_s18  ;;  %303 = vmatpush1.bf16.msra.mxu1 %v241_v35  ;;  %v531_v58 = vand.u32 %v5736_v34, %v5677_v15  ;;  %v537_v60 = vand.u32 %v5780_v47, %v5677_v15  ;;  %v5857_v0 = vrot.slane %v5349_v62, %v5663_v6  ;;  %v5930_v35 = vld.sshfl [vmem:[%s5668_s17 + $0x46] sm:$0x3 pattern:$0x76325410] }
  0x1d   : > { %5300 = vmatmul.mubr.msk.bf16.vlgmr.msra.gmra.mrb[0].mxu0 %vm226_vm2, %v5298_v39  ;;  %384 = vmatprep.subr.bf16.mxu1 %v256_v38  ;;  %v5832_v59 = vrot.slane %v1974_v56, %v5663_v6  ;;  %v5841_v61 = vcombine.high %v5824_v57, %v5824_v57  ;;  %v1991_v1 = vcombine.high %v5349_v62, %v5349_v62 }
  0x1e   : > { %800 = vrot.lane.b32.xlu0 %v5680_v16, %s5624_s18  ;;  %344 = vmatpush1.bf16.msra.mxu0 %v247_v40  ;;  %v5863_v2 = vcombine.high %v5857_v0, %v5857_v0  ;;  %v5881_v8 = vrot.slane %v5358_v3, %v5663_v6  ;;  %v2292_v10 = vcombine.high %v5358_v3, %v5358_v3 }
  0x1f   : > { %5301 = vmatmul.mubr.msk.bf16.vlgmr.msra.gmra.mrb[0].mxu1 %vm226_vm2, %v5298_v39  ;;  %375 = vmatprep.mubr.bf16.mxu0 %v5622_v4  ;;  %v5850_v63 = vcombine.high %v5832_v59, %v5832_v59  ;;  %v5870_v5 = vrot.slane %v1991_v1, %v5663_v6  ;;  %v5908_v18 = vrot.slane %v5359_v13, %v5663_v6 }
  0x20   : > { %806 = vrot.lane.b32.xlu1 %v5757_v41, %s5624_s18  ;;  %385 = vmatpush1.bf16.msra.mxu1 %v253_v42  ;;  %v5890_v9 = vcombine.high %v5881_v8, %v5881_v8  ;;  %v5903_v14 = vrot.slane %v2292_v10, %v5663_v6  ;;  %v2309_v19 = vcombine.high %v5359_v13, %v5359_v13 }
  0x21   : > { %5486 = vmatprep.subr.bf16.mxu0 %v5625_v45  ;;  %416 = vmatprep.mubr.bf16.mxu1 %v5622_v4  ;;  %v5878_v7 = vcombine.high %v5870_v5, %v5870_v5  ;;  %v5925_v32 = vcombine.high %v5908_v18, %v5908_v18 }
  0x22   : > { %804 = vrot.lane.b32.xlu0 %v5736_v34, %s5624_s18  ;;  %539 = vmatprep.subr.bf16.mxu1 %v516_v43  ;;  %v5914_v22 = vcombine.high %v5903_v14, %v5903_v14  ;;  %v5919_v29 = vrot.slane %v2309_v19, %v5663_v6 }
  0x24   : > { %1113 = vrot.lane.b32.xlu1 %v5699_v24, %s5624_s18  ;;  %v5936_v36 = vcombine.high %v5919_v29, %v5919_v29 }
  0x25   : > { %5302 = vmatmul.mubr.msk.bf16.vlgmr.msra.gmra.mrb[4].mxu0 %vm226_vm2, %v5298_v39 }
  0x26   : > { %808 = vrot.lane.b32.xlu0 %v5780_v47, %s5624_s18  ;;  %5487 = vmatpush3.bf16.msra.mxu0 %v259_v46 }
  0x27   : > { %5303 = vmatmul.mubr.msk.bf16.vlgmr.msra.gmra.mrb[4].mxu1 %vm226_vm2, %v5298_v39  ;;  %5488 = vmatprep.mubr.msk.bf16.mxu0 %vm5626_vm3, %v5625_v45 }
  0x28   : > { %1111 = vrot.lane.b32.xlu1 %v5683_v17, %s5624_s18  ;;  %540 = vmatpush1.bf16.msra.mxu1 %v513_v48 }
  0x29   : > { %580 = vmatprep.subr.bf16.mxu0 %v522_v49  ;;  %571 = vmatprep.mubr.bf16.mxu1 %v5622_v4 }
  0x2a   : > { %1115 = vrot.lane.b32.xlu0 %v5702_v25, %s5624_s18  ;;  %621 = vmatprep.subr.bf16.mxu1 %v528_v50 }
  0x2c   : > { %1119 = vrot.lane.b32.xlu1 %v5695_v23, %s5624_s18 }
  0x2d   : > { %5489 = vmatmul.mubr.msk.bf16.vlgmr.msra.gmra.mrb[8].mxu0 %vm226_vm2, %v5298_v39 }
  0x2e   : > { %1117 = vrot.lane.b32.xlu0 %v5721_v30, %s5624_s18  ;;  %581 = vmatpush1.bf16.msra.mxu0 %v519_v51 }
  0x2f   : > { %5306 = vmatmul.mubr.msk.bf16.vlgmr.msra.gmra.mrb[8].mxu1 %vm226_vm2, %v175_v52  ;;  %612 = vmatprep.mubr.bf16.mxu0 %v5622_v4 }
  0x30   : > { %1123 = vrot.lane.b32.xlu1 %v5705_v26, %s5624_s18  ;;  %622 = vmatpush1.bf16.msra.mxu1 %v525_v53 }
  0x31   : > { %662 = vmatprep.subr.bf16.mxu0 %v534_v54  ;;  %653 = vmatprep.mubr.bf16.mxu1 %v5622_v4 }
  0x32   : > { %1121 = vrot.lane.b32.xlu0 %v5715_v28, %s5624_s18  ;;  %5492 = vmatprep.subr.bf16.mxu1 %v5625_v45 }
  0x34   : > { %1127 = vrot.lane.b32.xlu1 %v5771_v44, %s5624_s18 }
  0x35   : > { %5307 = vmatmul.mubr.msk.bf16.vlgmr.msra.gmra.mrb[12].mxu0 %vm226_vm2, %v175_v52 }
  0x36   : > { %1125 = vrot.lane.b32.xlu0 %v5725_v31, %s5624_s18  ;;  %663 = vmatpush1.bf16.msra.mxu0 %v531_v58 }
  0x37   : > { %5308 = vmatmul.mubr.msk.bf16.vlgmr.msra.gmra.mrb[12].mxu1 %vm226_vm2, %v175_v52  ;;  %694 = vmatprep.mubr.bf16.mxu0 %v5622_v4 }
  0x38   : > { %2019 = vrot.lane.b32.xlu1 %v5832_v59, %s5624_s18  ;;  %5493 = vmatpush3.bf16.msra.mxu1 %v537_v60 }
  0x39   : > { %5494 = vmatprep.mubr.msk.bf16.mxu1 %vm5626_vm3, %v5625_v45 }
  0x3a   : > { %2017 = vrot.lane.b32.xlu0 %v5841_v61, %s5624_s18 }
  0x3c   : > { %2021 = vrot.lane.b32.xlu1 %v5850_v63, %s5624_s18 }
  0x3d   : > { %5309 = vmatmul.mubr.msk.bf16.vlgmr.msra.gmra.mrb[16].mxu0 %vm226_vm2, %v175_v52 }
  0x3e   : > { %2015 = vrot.lane.b32.xlu0 %v5824_v57, %s5624_s18  ;;  %881 = vmatprep.mubr.bf16.mxu0 %v5622_v4 }
  0x3f   : > { %5495 = vmatmul.mubr.msk.bf16.vlgmr.msra.gmra.mrb[16].mxu1 %vm226_vm2, %v175_v52 }
  0x40   : > { %2025 = vrot.lane.b32.xlu1 %v5863_v2, %s5624_s18  ;;  %922 = vmatprep.mubr.bf16.mxu1 %v5622_v4 }
  0x42   : > { %2023 = vrot.lane.b32.xlu0 %v5857_v0, %s5624_s18 }
  0x44   : > { %2029 = vrot.lane.b32.xlu1 %v5878_v7, %s5624_s18 }
  0x46   : > { %2027 = vrot.lane.b32.xlu0 %v5870_v5, %s5624_s18 }
  0x48   : > { %2335 = vrot.lane.b32.xlu1 %v5890_v9, %s5624_s18 }
  0x4a   : > { %2031 = vrot.lane.b32.xlu0 %v5895_v12, %s5624_s18 }
  0x4c   : > { %2333 = vrot.lane.b32.xlu1 %v5881_v8, %s5624_s18 }
  0x4e   : > { %2337 = vrot.lane.b32.xlu0 %v5903_v14, %s5624_s18 }
  0x50   : > { %2341 = vrot.lane.b32.xlu1 %v5908_v18, %s5624_s18 }
  0x52   : > { %2339 = vrot.lane.b32.xlu0 %v5914_v22, %s5624_s18 }
  0x54   : > { %2345 = vrot.lane.b32.xlu1 %v5919_v29, %s5624_s18 }
  0x56   : > { %2343 = vrot.lane.b32.xlu0 %v5925_v32, %s5624_s18 }
  0x58   : > { %2349 = vrot.lane.b32.xlu1 %v5930_v35, %s5624_s18 }
  0x5a   : > { %2347 = vrot.lane.b32.xlu0 %v5936_v36, %s5624_s18 }
  0x5c   : > { %2655 = vrot.lane.b32.xlu1 %v5692_v21, %s5627_s23 }
  0x5e   : > { %2653 = vrot.lane.b32.xlu0 %v5689_v20, %s5627_s23 }
  0x60   : > { %2657 = vrot.lane.b32.xlu1 %v5711_v27, %s5627_s23 }
  0x62   : > { %2651 = vrot.lane.b32.xlu0 %v5673_v11, %s5627_s23 }
  0x64   : > { %2661 = vrot.lane.b32.xlu1 %v5733_v33, %s5627_s23 }
  0x66   : > { %2659 = vrot.lane.b32.xlu0 %v5680_v16, %s5627_s23 }
  0x68   : > { %2665 = vrot.lane.b32.xlu1 %v5757_v41, %s5627_s23 }
  0x6a   : > { %2663 = vrot.lane.b32.xlu0 %v5736_v34, %s5627_s23 }
  0x6c   : > { %2972 = vrot.lane.b32.xlu1 %v5699_v24, %s5627_s23 }
  0x6e   : > { %2667 = vrot.lane.b32.xlu0 %v5780_v47, %s5627_s23 }
  0x70   : > { %2970 = vrot.lane.b32.xlu1 %v5683_v17, %s5627_s23 }
  0x72   : > { %2974 = vrot.lane.b32.xlu0 %v5702_v25, %s5627_s23 }
  0x74   : > { %2978 = vrot.lane.b32.xlu1 %v5695_v23, %s5627_s23 }
  0x76   : > { %2976 = vrot.lane.b32.xlu0 %v5721_v30, %s5627_s23 }
  0x78   : > { %2982 = vrot.lane.b32.xlu1 %v5705_v26, %s5627_s23 }
  0x7a   : > { %2980 = vrot.lane.b32.xlu0 %v5715_v28, %s5627_s23 }
  0x7c   : > { %2986 = vrot.lane.b32.xlu1 %v5771_v44, %s5627_s23 }
  0x7e   : > { %2984 = vrot.lane.b32.xlu0 %v5725_v31, %s5627_s23 }
  0x80   : > { %3292 = vrot.lane.b32.xlu1 %v5692_v21, %s5628_s24 }
  0x82   : > { %3290 = vrot.lane.b32.xlu0 %v5689_v20, %s5628_s24 }
  0x84   : > { %3294 = vrot.lane.b32.xlu1 %v5711_v27, %s5628_s24 }
  0x86   : > { %v793_v37 = vpop.permute.xlu1 %792  ;;  %3288 = vrot.lane.b32.xlu0 %v5673_v11, %s5628_s24 }
  0x88   : > { %v795_v38 = vpop.permute.xlu0 %794  ;;  %3298 = vrot.lane.b32.xlu1 %v5733_v33, %s5628_s24 }
  0x89   : > { %v811_v21 = vsel %vm810_vm4, %v793_v37, %v795_v38 }
  0x8a   : > { %v799_v39 = vpop.permute.xlu1 %798  ;;  %3296 = vrot.lane.b32.xlu0 %v5680_v16, %s5628_s24  ;;  %v823_v33 = vand.u32 %v811_v21, %v5677_v15 }
  0x8c   : > { %v797_v40 = vpop.permute.xlu0 %796  ;;  %3302 = vrot.lane.b32.xlu1 %v5757_v41, %s5628_s24  ;;  %v5311_v41 = vld [vmem:[%s7011_s1 + $0x8] sm:$0xf] }
  0x8d   : > { %v812_v20 = vsel %vm810_vm4, %v795_v38, %v797_v40  ;;  %v813_v42 = vsel %vm810_vm4, %v797_v40, %v799_v39  ;;  %v5321_v40 = vld [vmem:[%s7011_s1 + $0xc] sm:$0xf] }
  0x8e   : > { %v803_v27 = vpop.permute.xlu1 %802  ;;  %v826_v11 = vand.u32 %v812_v20, %v5677_v15  ;;  %3300 = vrot.lane.b32.xlu0 %v5736_v34, %s5628_s24  ;;  %v829_v34 = vand.u32 %v813_v42, %v5677_v15 }
  0x90   : > { %v801_v43 = vpop.permute.xlu0 %800  ;;  %849 = vmatprep.subr.bf16.mxu0 %v826_v11  ;;  %3609 = vrot.lane.b32.xlu1 %v5699_v24, %s5628_s24 }
  0x91   : > { %v814_v16 = vsel %vm810_vm4, %v799_v39, %v801_v43  ;;  %850 = vmatpush1.bf16.msra.mxu0 %v823_v33  ;;  %v815_v49 = vsel %vm810_vm4, %v801_v43, %v803_v27 }
  0x92   : > { %v807_v46 = vpop.permute.xlu1 %806  ;;  %v832_v48 = vand.u32 %v814_v16, %v5677_v15  ;;  %3304 = vrot.lane.b32.xlu0 %v5780_v47, %s5628_s24  ;;  %v835_v47 = vand.u32 %v815_v49, %v5677_v15  ;;  %v1437_v16 = vand.u32 %v5841_v61, %v5677_v15 }
  0x94   : > { %v805_v50 = vpop.permute.xlu0 %804  ;;  %5313 = vmatmul.mubr.msk.bf16.vlgmr.msra.gmra.mrb[20].mxu0 %vm226_vm2, %v5311_v41  ;;  %890 = vmatprep.subr.bf16.mxu1 %v832_v48 }
  0x95   : > { %v816_v24 = vsel %vm810_vm4, %v803_v27, %v805_v50  ;;  %891 = vmatpush1.bf16.msra.mxu1 %v829_v34  ;;  %963 = vmatprep.mubr.bf16.mxu0 %v5622_v4  ;;  %v817_v53 = vsel %vm810_vm4, %v805_v50, %v807_v46  ;;  %v1434_v50 = vand.u32 %v5824_v57, %v5677_v15 }
  0x96   : > { %v1114_v51 = vpop.permute.xlu1 %1113  ;;  %v838_v52 = vand.u32 %v816_v24, %v5677_v15  ;;  %3611 = vrot.lane.b32.xlu0 %v5702_v25, %s5628_s24  ;;  %3607 = vrot.lane.b32.xlu1 %v5683_v17, %s5628_s24  ;;  %v841_v17 = vand.u32 %v817_v53, %v5677_v15 }
  0x98   : > { %v809_v54 = vpop.permute.xlu0 %808  ;;  %5314 = vmatmul.mubr.msk.bf16.vlgmr.msra.gmra.mrb[20].mxu1 %vm226_vm2, %v5311_v41  ;;  %931 = vmatprep.subr.bf16.mxu0 %v838_v52 }
  0x99   : > { %v818_v55 = vsel %vm810_vm4, %v807_v46, %v809_v54  ;;  %932 = vmatpush1.bf16.msra.mxu0 %v835_v47  ;;  %1004 = vmatprep.mubr.bf16.mxu1 %v5622_v4  ;;  %v847_v25 = vand.u32 %v809_v54, %v5677_v15 }
  0x9a   : > { %v1112_v56 = vpop.permute.xlu1 %1111  ;;  %v844_v58 = vand.u32 %v818_v55, %v5677_v15  ;;  %5498 = vmatprep.subr.bf16.mxu0 %v5625_v45  ;;  %3613 = vrot.lane.b32.xlu0 %v5721_v30, %s5628_s24  ;;  %v1452_v55 = vand.u32 %v5870_v5, %v5677_v15 }
  0x9b   : > { %v1129_v60 = vsel %vm810_vm4, %v1112_v56, %v1114_v51  ;;  %3615 = vrot.lane.b32.xlu1 %v5695_v23, %s5628_s24 }
  0x9c   : > { %v1116_v62 = vpop.permute.xlu0 %1115  ;;  %5315 = vmatmul.mubr.msk.bf16.vlgmr.msra.gmra.mrb[24].mxu0 %vm226_vm2, %v5311_v41  ;;  %972 = vmatprep.subr.bf16.mxu1 %v844_v58  ;;  %v1141_v3 = vand.u32 %v1129_v60, %v5677_v15  ;;  %v5422_v58 = vld [vmem:[%s5668_s17 + $0x24] sm:$0xff] }
  0x9d   : > { %v1130_v1 = vsel %vm810_vm4, %v1114_v51, %v1116_v62  ;;  %973 = vmatpush1.bf16.msra.mxu1 %v841_v17  ;;  %5499 = vmatpush3.bf16.msra.mxu0 %v847_v25  ;;  %v4527_v60 = vrot.slane %v5422_v58, %v5663_v6 }
  0x9e   : > { %v1120_v30 = vpop.permute.xlu1 %1119  ;;  %v1144_v10 = vand.u32 %v1130_v1, %v5677_v15  ;;  %5500 = vmatprep.mubr.msk.bf16.mxu0 %vm5626_vm3, %v5625_v45  ;;  %3617 = vrot.lane.b32.xlu0 %v5715_v28, %s5628_s24 }
  0x9f   : > { %3619 = vrot.lane.b32.xlu1 %v5705_v26, %s5628_s24 }
  0xa0   : > { %v1118_v23 = vpop.permute.xlu0 %1117  ;;  %5316 = vmatmul.mubr.msk.bf16.vlgmr.msra.gmra.mrb[24].mxu1 %vm226_vm2, %v5311_v41  ;;  %1167 = vmatprep.subr.bf16.mxu1 %v1144_v10 }
  0xa1   : > { %v1131_v13 = vsel %vm810_vm4, %v1116_v62, %v1118_v23  ;;  %v1132_v19 = vsel %vm810_vm4, %v1118_v23, %v1120_v30  ;;  %1168 = vmatpush1.bf16.msra.mxu1 %v1141_v3  ;;  %1199 = vmatprep.mubr.bf16.mxu1 %v5622_v4  ;;  %v4520_v62 = vcombine.high %v5422_v58, %v5422_v58 }
  0xa2   : > { %v1147_v37 = vand.u32 %v1131_v13, %v5677_v15  ;;  %v1150_v38 = vand.u32 %v1132_v19, %v5677_v15  ;;  %v1124_v39 = vpop.permute.xlu1 %1123  ;;  %3621 = vrot.lane.b32.xlu0 %v5725_v31, %s5628_s24  ;;  %v5423_v19 = vld [vmem:[%s5668_s17 + $0x2c] sm:$0xff] }
  0xa3   : > { %3623 = vrot.lane.b32.xlu1 %v5771_v44, %s5628_s24  ;;  %v4534_v10 = vrot.slane %v4520_v62, %v5663_v6 }
  0xa4   : > { %v1122_v26 = vpop.permute.xlu0 %1121  ;;  %5501 = vmatmul.mubr.msk.bf16.vlgmr.msra.gmra.mrb[28].mxu0 %vm226_vm2, %v5311_v41  ;;  %1208 = vmatprep.subr.bf16.mxu0 %v1150_v38 }
  0xa5   : > { %v1133_v28 = vsel %vm810_vm4, %v1120_v30, %v1122_v26  ;;  %v1134_v21 = vsel %vm810_vm4, %v1122_v26, %v1124_v39  ;;  %1209 = vmatpush1.bf16.msra.mxu0 %v1147_v37  ;;  %1240 = vmatprep.mubr.bf16.mxu0 %v5622_v4  ;;  %v4535_v30 = vcombine.high %v4527_v60, %v4527_v60 }
  0xa6   : > { %v1153_v31 = vand.u32 %v1133_v28, %v5677_v15  ;;  %v1156_v20 = vand.u32 %v1134_v21, %v5677_v15  ;;  %v1128_v44 = vpop.permute.xlu1 %1127  ;;  %3927 = vrot.lane.b32.xlu0 %v5841_v61, %s5627_s23  ;;  %v1443_v61 = vand.u32 %v5850_v63, %v5677_v15  ;;  %v4536_v37 = vcombine.high %v4534_v10, %v4534_v10 }
  0xa7   : > { %3929 = vrot.lane.b32.xlu1 %v5832_v59, %s5627_s23  ;;  %v1165_v48 = vand.u32 %v1128_v44, %v5677_v15  ;;  %v4537_v26 = vcombine.high %v5423_v19, %v5423_v19 }
  0xa8   : > { %v1126_v27 = vpop.permute.xlu0 %1125  ;;  %5323 = vmatmul.mubr.msk.bf16.vlgmr.msra.gmra.mrb[28].mxu1 %vm226_vm2, %v5321_v40  ;;  %1249 = vmatprep.subr.bf16.mxu1 %v1156_v20  ;;  %v1745_v20 = vand.u32 %v5919_v29, %v5677_v15 }
  0xa9   : > { %v1135_v11 = vsel %vm810_vm4, %v1124_v39, %v1126_v27  ;;  %v1136_v33 = vsel %vm810_vm4, %v1126_v27, %v1128_v44  ;;  %1250 = vmatpush1.bf16.msra.mxu1 %v1153_v31  ;;  %1281 = vmatprep.mubr.bf16.mxu1 %v5622_v4  ;;  %v4544_v39 = vrot.slane %v5423_v19, %v5663_v6 }
  0xaa   : > { %v1159_v42 = vand.u32 %v1135_v11, %v5677_v15  ;;  %v1162_v43 = vand.u32 %v1136_v33, %v5677_v15  ;;  %5504 = vmatprep.subr.bf16.mxu1 %v5625_v45  ;;  %v6074_v41 = vpop.permute.xlu1 %2019  ;;  %3925 = vrot.lane.b32.xlu0 %v5824_v57, %s5627_s23  ;;  %v1440_v57 = vand.u32 %v5832_v59, %v5677_v15  ;;  %v5331_v59 = vld [vmem:[%s7011_s1 + $0x10] sm:$0xf] }
  0xab   : > { %3931 = vrot.lane.b32.xlu1 %v5850_v63, %s5627_s23  ;;  %v1449_v63 = vand.u32 %v5863_v2, %v5677_v15  ;;  %v4551_v44 = vrot.slane %v4537_v26, %v5663_v6 }
  0xac   : > { %5324 = vmatmul.mubr.msk.bf16.vlgmr.msra.gmra.mrb[32].mxu0 %vm226_vm2, %v5321_v40  ;;  %1290 = vmatprep.subr.bf16.mxu0 %v1162_v43  ;;  %v6081_v46 = vpop.permute.xlu0 %2017 }
  0xad   : > { %1291 = vmatpush1.bf16.msra.mxu0 %v1159_v42  ;;  %1322 = vmatprep.mubr.bf16.mxu0 %v5622_v4  ;;  %v2034_v21 = vsel %vm810_vm4, %v6081_v46, %v6074_v41  ;;  %v4553_v42 = vcombine.high %v4551_v44, %v4551_v44 }
  0xae   : > { %1460 = vmatprep.subr.bf16.mxu0 %v1437_v16  ;;  %v6087_v34 = vpop.permute.xlu1 %2021  ;;  %3933 = vrot.lane.b32.xlu0 %v5857_v0, %s5627_s23  ;;  %v2048_v27 = vand.u32 %v2034_v21, %v5677_v15  ;;  %v1751_v16 = vand.u32 %v5930_v35, %v5677_v15 }
  0xaf   : > { %3935 = vrot.lane.b32.xlu1 %v5863_v2, %s5627_s23  ;;  %v1455_v2 = vand.u32 %v5878_v7, %v5677_v15 }
  0xb0   : > { %5325 = vmatmul.mubr.msk.bf16.vlgmr.msra.gmra.mrb[32].mxu1 %vm226_vm2, %v5321_v40  ;;  %v6094_v49 = vpop.permute.xlu0 %2015 }
  0xb1   : > { %5505 = vmatpush3.bf16.msra.mxu1 %v1165_v48  ;;  %5506 = vmatprep.mubr.msk.bf16.mxu1 %vm5626_vm3, %v5625_v45  ;;  %v2033_v48 = vsel %vm810_vm4, %v6094_v49, %v6081_v46 }
  0xb2   : > { %1501 = vmatprep.subr.bf16.mxu1 %v1443_v61  ;;  %v6102_v24 = vpop.permute.xlu1 %2025  ;;  %3937 = vrot.lane.b32.xlu0 %v5870_v5, %s5627_s23  ;;  %v1458_v5 = vand.u32 %v5895_v12, %v5677_v15  ;;  %v2045_v49 = vand.u32 %v2033_v48, %v5677_v15 }
  0xb3   : > { %3939 = vrot.lane.b32.xlu1 %v5878_v7, %s5627_s23  ;;  %v1446_v7 = vand.u32 %v5857_v0, %v5677_v15  ;;  %v1730_v0 = vand.u32 %v5890_v9, %v5677_v15 }
  0xb4   : > { %5326 = vmatmul.mubr.msk.bf16.vlgmr.msra.gmra.mrb[36].mxu0 %vm226_vm2, %v5321_v40  ;;  %v6109_v51 = vpop.permute.xlu0 %2023 }
  0xb5   : > { %1461 = vmatpush1.bf16.msra.mxu0 %v1434_v50  ;;  %1492 = vmatprep.mubr.bf16.mxu0 %v5622_v4  ;;  %v2036_v33 = vsel %vm810_vm4, %v6087_v34, %v6109_v51 }
  0xb6   : > { %1542 = vmatprep.subr.bf16.mxu0 %v1449_v63  ;;  %v6116_v52 = vpop.permute.xlu1 %2029  ;;  %3941 = vrot.lane.b32.xlu0 %v5895_v12, %s5627_s23  ;;  %v1727_v12 = vand.u32 %v5881_v8, %v5677_v15  ;;  %v2054_v61 = vand.u32 %v2036_v33, %v5677_v15 }
  0xb7   : > { %4245 = vrot.lane.b32.xlu1 %v5890_v9, %s5627_s23  ;;  %v1736_v9 = vand.u32 %v5914_v22, %v5677_v15 }
  0xb8   : > { %5507 = vmatmul.mubr.msk.bf16.vlgmr.msra.gmra.mrb[36].mxu1 %vm226_vm2, %v5321_v40  ;;  %v6123_v47 = vpop.permute.xlu0 %2027  ;;  %v4552_v40 = vcombine.high %v4544_v39, %v4544_v39 }
  0xb9   : > { %1502 = vmatpush1.bf16.msra.mxu1 %v1440_v57  ;;  %1533 = vmatprep.mubr.bf16.mxu1 %v5622_v4  ;;  %v2038_v57 = vsel %vm810_vm4, %v6102_v24, %v6123_v47 }
  0xba   : > { %1583 = vmatprep.subr.bf16.mxu1 %v1455_v2  ;;  %v6131_v53 = vpop.permute.xlu1 %2335  ;;  %4247 = vrot.lane.b32.xlu0 %v5903_v14, %s5627_s23  ;;  %v5426_v2 = vld.sshfl [vmem:[%s5668_s17 + $0x34] sm:$0x3 pattern:$0x76325410] }
  0xbb   : > { %4243 = vrot.lane.b32.xlu1 %v5881_v8, %s5627_s23  ;;  %v1733_v8 = vand.u32 %v5903_v14, %v5677_v15  ;;  %v6203_v14 = vld [vmem:[%s7011_s1 + $0x14] sm:$0xf] }
  0xbc   : > { %5333 = vmatmul.mubr.msk.bf16.vlgmr.msra.gmra.mrb[40].mxu0 %vm226_vm2, %v5331_v59  ;;  %v6138_v54 = vpop.permute.xlu0 %2031 }
  0xbd   : > { %1543 = vmatpush1.bf16.msra.mxu0 %v1446_v7  ;;  %1574 = vmatprep.mubr.bf16.mxu0 %v5622_v4  ;;  %v2060_v7 = vand.u32 %v2038_v57, %v5677_v15  ;;  %v2040_v58 = vsel %vm810_vm4, %v6116_v52, %v6138_v54 }
  0xbe   : > { %5510 = vmatprep.subr.bf16.mxu0 %v5625_v45  ;;  %v6146_v56 = vpop.permute.xlu1 %2333  ;;  %4249 = vrot.lane.b32.xlu0 %v5914_v22, %s5627_s23  ;;  %v1742_v22 = vand.u32 %v5925_v32, %v5677_v15 }
  0xbf   : > { %4251 = vrot.lane.b32.xlu1 %v5908_v18, %s5627_s23 }
  0xc0   : > { %5334 = vmatmul.mubr.msk.bf16.vlgmr.msra.gmra.mrb[40].mxu1 %vm226_vm2, %v5331_v59  ;;  %v6154_v17 = vpop.permute.xlu0 %2337 }
  0xc1   : > { %1584 = vmatpush1.bf16.msra.mxu1 %v1452_v55  ;;  %1615 = vmatprep.mubr.bf16.mxu1 %v5622_v4 }
  0xc2   : > { %1753 = vmatprep.subr.bf16.mxu1 %v1730_v0  ;;  %v6161_v25 = vpop.permute.xlu1 %2341  ;;  %4253 = vrot.lane.b32.xlu0 %v5925_v32, %s5627_s23  ;;  %v1748_v32 = vand.u32 %v5936_v36, %v5677_v15 }
  0xc3   : > { %4255 = vrot.lane.b32.xlu1 %v5919_v29, %s5627_s23 }
  0xc4   : > { %5335 = vmatmul.mubr.msk.bf16.vlgmr.msra.gmra.mrb[44].mxu0 %vm226_vm2, %v5331_v59  ;;  %v6169_v1 = vpop.permute.xlu0 %2339 }
  0xc5   : > { %5511 = vmatpush3.bf16.msra.mxu0 %v1458_v5  ;;  %5512 = vmatprep.mubr.msk.bf16.mxu0 %vm5626_vm3, %v5625_v45 }
  0xc6   : > { %1794 = vmatprep.subr.bf16.mxu0 %v1736_v9  ;;  %v6177_v3 = vpop.permute.xlu1 %2345  ;;  %4257 = vrot.lane.b32.xlu0 %v5936_v36, %s5627_s23  ;;  %v1739_v36 = vand.u32 %v5908_v18, %v5677_v15  ;;  %v5432_v18 = vld [vmem:[%s5668_s17 + $0x36] sm:$0xff]  ;;  %v2037_v9 = vsel %vm810_vm4, %v6109_v51, %v6102_v24 }
  0xc7   : > { %4259 = vrot.lane.b32.xlu1 %v5930_v35, %s5627_s23  ;;  %v4845_v29 = vrot.slane %v5432_v18, %v5663_v6  ;;  %v4838_v63 = vcombine.high %v5432_v18, %v5432_v18  ;;  %v2057_v24 = vand.u32 %v2037_v9, %v5677_v15  ;;  %v5351_v51 = vld [vmem:[%s7011_s1 + $0x18] sm:$0xf]  ;;  %v2069_v18 = vand.u32 %v6138_v54, %v5677_v15 }
  0xc8   : > { %5336 = vmatmul.mubr.msk.bf16.vlgmr.msra.gmra.mrb[44].mxu1 %vm226_vm2, %v5331_v59  ;;  %v6185_v23 = vpop.permute.xlu0 %2343 }
  0xc9   : > { %1754 = vmatpush1.bf16.msra.mxu1 %v1727_v12  ;;  %1785 = vmatprep.mubr.bf16.mxu1 %v5622_v4  ;;  %v4853_v35 = vcombine.high %v4845_v29, %v4845_v29  ;;  %v4852_v0 = vrot.slane %v4838_v63, %v5663_v6  ;;  %v2356_v33 = vsel %vm810_vm4, %v6185_v23, %v6177_v3 }
  0xca   : > { %1835 = vmatprep.subr.bf16.mxu1 %v1742_v22  ;;  %v6192_v13 = vpop.permute.xlu1 %2349  ;;  %4563 = vrot.lane.b32.xlu0 %v4535_v30, %s5628_s24 }
  0xcb   : > { %4565 = vrot.lane.b32.xlu1 %v4534_v10, %s5628_s24  ;;  %v4854_v12 = vcombine.high %v4852_v0, %v4852_v0 }
  0xcc   : > { %5513 = vmatmul.mubr.msk.bf16.vlgmr.msra.gmra.mrb[48].mxu0 %vm226_vm2, %v5331_v59  ;;  %v6198_v38 = vpop.permute.xlu0 %2347  ;;  %v2035_v59 = vsel %vm810_vm4, %v6074_v41, %v6087_v34  ;;  %v5433_v41 = vld [vmem:[%s5668_s17 + $0x3e] sm:$0xff] }
  0xcd   : > { %1795 = vmatpush1.bf16.msra.mxu0 %v1733_v8  ;;  %1826 = vmatprep.mubr.bf16.mxu0 %v5622_v4  ;;  %v2051_v34 = vand.u32 %v2035_v59, %v5677_v15  ;;  %v4862_v22 = vrot.slane %v5433_v41, %v5663_v6  ;;  %v4855_v30 = vcombine.high %v5433_v41, %v5433_v41 }
  0xce   : > { %1876 = vmatprep.subr.bf16.mxu0 %v1748_v32  ;;  %v6209_v28 = vpop.permute.xlu1 %2655  ;;  %4561 = vrot.lane.b32.xlu0 %v4527_v60, %s5628_s24  ;;  %v2066_v60 = vand.u32 %v2040_v58, %v5677_v15  ;;  %v2039_v8 = vsel %vm810_vm4, %v6123_v47, %v6116_v52  ;;  %v2357_v41 = vsel %vm810_vm4, %v6177_v3, %v6198_v38 }
  0xcf   : > { %4567 = vrot.lane.b32.xlu1 %v4536_v37, %s5628_s24  ;;  %v4870_v19 = vcombine.high %v4862_v22, %v4862_v22  ;;  %v2352_v37 = vsel %vm810_vm4, %v6131_v53, %v6154_v17  ;;  %v2063_v52 = vand.u32 %v2039_v8, %v5677_v15 }
  0xd0   : > { %5343 = vmatmul.mubr.msk.bf16.vlgmr.msra.gmra.mrb[48].mxu1 %vm226_vm2, %v6203_v14  ;;  %v6218_v31 = vpop.permute.xlu0 %2653  ;;  %v2366_v47 = vand.u32 %v2352_v37, %v5677_v15 }
  0xd1   : > { %1836 = vmatpush1.bf16.msra.mxu1 %v1739_v36  ;;  %1867 = vmatprep.mubr.bf16.mxu1 %v5622_v4 }
  0xd2   : > { %5516 = vmatprep.subr.bf16.mxu1 %v5625_v45  ;;  %v6227_v11 = vpop.permute.xlu1 %2657  ;;  %4569 = vrot.lane.b32.xlu0 %v4544_v39, %s5628_s24 }
  0xd3   : > { %4571 = vrot.lane.b32.xlu1 %v4552_v40, %s5628_s24  ;;  %v5436_v40 = vld.sshfl [vmem:[%s5668_s17 + $0x46] sm:$0x3 pattern:$0x76325410] }
  0xd4   : > { %5344 = vmatmul.mubr.msk.bf16.vlgmr.msra.gmra.mrb[52].mxu0 %vm226_vm2, %v6203_v14  ;;  %v6237_v43 = vpop.permute.xlu0 %2651 }
  0xd5   : > { %1877 = vmatpush1.bf16.msra.mxu0 %v1745_v20  ;;  %1908 = vmatprep.mubr.bf16.mxu0 %v5622_v4  ;;  %v2351_v20 = vsel %vm810_vm4, %v6146_v56, %v6131_v53  ;;  %v2353_v53 = vsel %vm810_vm4, %v6154_v17, %v6169_v1  ;;  %v2378_v56 = vand.u32 %v2356_v33, %v5677_v15 }
  0xd6   : > { %2071 = vmatprep.subr.bf16.mxu0 %v2048_v27  ;;  %v6246_v50 = vpop.permute.xlu1 %2661  ;;  %4573 = vrot.lane.b32.xlu0 %v4551_v44, %s5628_s24  ;;  %v2369_v63 = vand.u32 %v2353_v53, %v5677_v15 }
  0xd7   : > { %4575 = vrot.lane.b32.xlu1 %v4553_v42, %s5628_s24  ;;  %v2363_v42 = vand.u32 %v2351_v20, %v5677_v15 }
  0xd8   : > { %5345 = vmatmul.mubr.msk.bf16.vlgmr.msra.gmra.mrb[52].mxu1 %vm226_vm2, %v6203_v14  ;;  %v6256_v46 = vpop.permute.xlu0 %2659 }
  0xd9   : > { %5517 = vmatpush3.bf16.msra.mxu1 %v1751_v16  ;;  %5518 = vmatprep.mubr.msk.bf16.mxu1 %vm5626_vm3, %v5625_v45  ;;  %v2358_v16 = vsel %vm810_vm4, %v6198_v38, %v6192_v13 }
  0xda   : > { %2112 = vmatprep.subr.bf16.mxu1 %v2054_v61  ;;  %v6265_v55 = vpop.permute.xlu1 %2665  ;;  %4577 = vrot.lane.b32.xlu0 %v5426_v2, %s5628_s24  ;;  %v2384_v57 = vand.u32 %v2358_v16, %v5677_v15 }
  0xdb   : > { %4881 = vrot.lane.b32.xlu1 %v4853_v35, %s5628_s24 }
  0xdc   : > { %5346 = vmatmul.mubr.msk.bf16.vlgmr.msra.gmra.mrb[56].mxu0 %vm226_vm2, %v6203_v14  ;;  %v6275_v5 = vpop.permute.xlu0 %2663 }
  0xdd   : > { %2072 = vmatpush1.bf16.msra.mxu0 %v2045_v49  ;;  %2103 = vmatprep.mubr.bf16.mxu0 %v5622_v4 }
  0xde   : > { %2153 = vmatprep.subr.bf16.mxu0 %v2060_v7  ;;  %v6284_v62 = vpop.permute.xlu1 %2972  ;;  %4883 = vrot.lane.b32.xlu0 %v4852_v0, %s5628_s24 }
  0xdf   : > { %4879 = vrot.lane.b32.xlu1 %v4845_v29, %s5628_s24 }
  0xe0   : > { %5519 = vmatmul.mubr.msk.bf16.vlgmr.msra.gmra.mrb[56].mxu1 %vm226_vm2, %v6203_v14  ;;  %v6291_v10 = vpop.permute.xlu0 %2667  ;;  %v4869_v14 = vrot.slane %v4855_v30, %v5663_v6  ;;  %v2354_v6 = vsel %vm810_vm4, %v6169_v1, %v6161_v25  ;;  %v2355_v1 = vsel %vm810_vm4, %v6161_v25, %v6185_v23  ;;  %v5361_v25 = vld [vmem:[%s7011_s1 + $0x1c] sm:$0xf] }
  0xe1   : > { %2113 = vmatpush1.bf16.msra.mxu1 %v2051_v34  ;;  %2144 = vmatprep.mubr.bf16.mxu1 %v5622_v4  ;;  %v2372_v44 = vand.u32 %v2354_v6, %v5677_v15  ;;  %v2375_v58 = vand.u32 %v2355_v1, %v5677_v15 }
  0xe2   : > { %2194 = vmatprep.subr.bf16.mxu1 %v2066_v60  ;;  %v6301_v32 = vpop.permute.xlu1 %2970  ;;  %4885 = vrot.lane.b32.xlu0 %v4854_v12, %s5628_s24  ;;  %v4871_v26 = vcombine.high %v4869_v14, %v4869_v14  ;;  %v2671_v60 = vsel %vm2669_vm5, %v6218_v31, %v6209_v28 }
  0xe3   : > { %4887 = vrot.lane.b32.xlu1 %v4862_v22, %s5628_s24  ;;  %v2381_v22 = vand.u32 %v2357_v41, %v5677_v15  ;;  %v2685_v3 = vand.u32 %v2671_v60, %v5677_v15 }
  0xe4   : > { %5353 = vmatmul.mubr.msk.bf16.vlgmr.msra.gmra.mrb[60].mxu0 %vm226_vm2, %v5351_v51  ;;  %v6310_v36 = vpop.permute.xlu0 %2974 }
  0xe5   : > { %2154 = vmatpush1.bf16.msra.mxu0 %v2057_v24  ;;  %2185 = vmatprep.mubr.bf16.mxu0 %v5622_v4 }
  0xe6   : > { %5522 = vmatprep.subr.bf16.mxu0 %v5625_v45  ;;  %v6316_v39 = vpop.permute.xlu1 %2978  ;;  %4889 = vrot.lane.b32.xlu0 %v4870_v19, %s5628_s24 }
  0xe7   : > { %4891 = vrot.lane.b32.xlu1 %v4869_v14, %s5628_s24 }
  0xe8   : > { %5354 = vmatmul.mubr.msk.bf16.vlgmr.msra.gmra.mrb[60].mxu1 %vm226_vm2, %v5351_v51  ;;  %v6324_v21 = vpop.permute.xlu0 %2976 }
  0xe9   : > { %2195 = vmatpush1.bf16.msra.mxu1 %v2063_v52  ;;  %2226 = vmatprep.mubr.bf16.mxu1 %v5622_v4  ;;  %v2387_v52 = vand.u32 %v6192_v13, %v5677_v15 }
  0xea   : > { %2389 = vmatprep.subr.bf16.mxu1 %v2366_v47  ;;  %v6334_v27 = vpop.permute.xlu1 %2982  ;;  %4893 = vrot.lane.b32.xlu0 %v4871_v26, %s5628_s24  ;;  %v2670_v26 = vsel %vm2669_vm5, %v6237_v43, %v6218_v31  ;;  %v2672_v43 = vsel %vm2669_vm5, %v6209_v28, %v6227_v11 }
  0xeb   : > { %4895 = vrot.lane.b32.xlu1 %v5436_v40, %s5628_s24  ;;  %v2688_v28 = vand.u32 %v2672_v43, %v5677_v15 }
  0xec   : > { %5355 = vmatmul.mubr.msk.bf16.vlgmr.msra.gmra.mrb[64].mxu0 %vm226_vm2, %v5351_v51  ;;  %v6342_v54 = vpop.permute.xlu0 %2980 }
  0xed   : > { %5523 = vmatpush3.bf16.msra.mxu0 %v2069_v18  ;;  %5524 = vmatprep.mubr.msk.bf16.mxu0 %vm5626_vm3, %v5625_v45  ;;  %v2675_v18 = vsel %vm2669_vm5, %v6246_v50, %v6275_v5 }
  0xee   : > { %2430 = vmatprep.subr.bf16.mxu0 %v2372_v44  ;;  %v6351_v29 = vpop.permute.xlu1 %2986  ;;  %v2682_v44 = vand.u32 %v2670_v26, %v5677_v15  ;;  %v2697_v33 = vand.u32 %v2675_v18, %v5677_v15  ;;  %v2706_v18 = vand.u32 %v6291_v10, %v5677_v15 }
  0xf0   : > { %5356 = vmatmul.mubr.msk.bf16.vlgmr.msra.gmra.mrb[64].mxu1 %vm226_vm2, %v5351_v51  ;;  %v6357_v48 = vpop.permute.xlu0 %2984  ;;  %v6359_v61 = vpop.f32.mrb[0].mxu0 }
  0xf1   : > { %2390 = vmatpush1.bf16.msra.mxu1 %v2363_v42  ;;  %2421 = vmatprep.mubr.bf16.mxu1 %v5622_v4  ;;  %v6363_v17 = vpop.f32.mrb[1].mxu0 }
  0xf2   : > { %2471 = vmatprep.subr.bf16.mxu1 %v2378_v56  ;;  %v6369_v2 = vpop.permute.xlu1 %3292  ;;  %v299_v35 = vpop.f32.mrb[2].mxu0  ;;  %v2677_v56 = vsel %vm2669_vm5, %v6265_v55, %v6291_v10 }
  0xf3   : > { %v300_v49 = vpop.f32.mrb[3].mxu0  ;;  %v6371_v59 = vpop.f32.mrb[0].mxu1 }
  0xf4   : > { %5525 = vmatmul.mubr.msk.bf16.vlgmr.msra.gmra.mrb[68].mxu0 %vm226_vm2, %v5351_v51  ;;  %v6374_v7 = vpop.permute.xlu0 %3290  ;;  %v6376_v0 = vpop.f32.mrb[1].mxu1  ;;  %v2673_v51 = vsel %vm2669_vm5, %v6227_v11, %v6256_v46  ;;  %v2674_v49 = vsel %vm2669_vm5, %v6256_v46, %v6246_v50  ;;  %v2676_v46 = vsel %vm2669_vm5, %v6275_v5, %v6265_v55 }
  0xf5   : > { %2431 = vmatpush1.bf16.msra.mxu0 %v2369_v63  ;;  %2462 = vmatprep.mubr.bf16.mxu0 %v5622_v4  ;;  %v340_v23 = vpop.f32.mrb[2].mxu1  ;;  %v2691_v6 = vand.u32 %v2673_v51, %v5677_v15  ;;  %v2694_v41 = vand.u32 %v2674_v49, %v5677_v15  ;;  %v2995_v49 = vsel %vm2669_vm5, %v6357_v48, %v6351_v29 }
  0xf6   : > { %2512 = vmatprep.subr.bf16.mxu0 %v2384_v57  ;;  %v6386_v34 = vpop.permute.xlu1 %3294  ;;  %v341_v9 = vpop.f32.mrb[3].mxu1 }
  0xf8   : > { %5363 = vmatmul.mubr.msk.bf16.vlgmr.msra.gmra.mrb[68].mxu1 %vm226_vm2, %v5361_v25  ;;  %v6392_v12 = vpop.f32.mrb[4].mxu0  ;;  %v6400_v38 = vpop.permute.xlu0 %3288 }
  0xf9   : > { %2472 = vmatpush1.bf16.msra.mxu1 %v2375_v58  ;;  %2503 = vmatprep.mubr.bf16.mxu1 %v5622_v4  ;;  %v6396_v30 = vpop.f32.mrb[5].mxu0  ;;  %v2703_v58 = vand.u32 %v2677_v56, %v5677_v15 }
  0xfa   : > { %5528 = vmatprep.subr.bf16.mxu1 %v5625_v45  ;;  %v381_v24 = vpop.f32.mrb[6].mxu0  ;;  %v6405_v19 = vpop.f32.mrb[4].mxu1 }
  0xfb   : > { %v382_v8 = vpop.f32.mrb[7].mxu0  ;;  %v6408_v37 = vpop.permute.xlu1 %3298 }
  0xfc   : > { %5364 = vmatmul.mubr.msk.bf16.vlgmr.msra.gmra.mrb[72].mxu0 %vm226_vm2, %v5361_v25  ;;  %v6410_v14 = vpop.f32.mrb[5].mxu1  ;;  %v6423_v20 = vpop.permute.xlu0 %3296 }
  0xfd   : > { %2513 = vmatpush1.bf16.msra.mxu0 %v2381_v22  ;;  %2544 = vmatprep.mubr.bf16.mxu0 %v5622_v4  ;;  %v422_v47 = vpop.f32.mrb[6].mxu1 }
  0xfe   : > { %2708 = vmatprep.subr.bf16.mxu0 %v2685_v3  ;;  %v423_v40 = vpop.f32.mrb[7].mxu1  ;;  %v2989_v3 = vsel %vm2669_vm5, %v6284_v62, %v6310_v36  ;;  %v2700_v47 = vand.u32 %v2676_v46, %v5677_v15  ;;  %v5378_v46 = vld [vmem:[%s7011_s1 + $0x24] sm:$0xf] }
  0xff   : > { %v6434_v42 = vpop.permute.xlu1 %3302  ;;  %v3003_v26 = vand.u32 %v2989_v3, %v5677_v15 }
 0x100   : > { %5365 = vmatmul.mubr.msk.bf16.vlgmr.msra.gmra.mrb[72].mxu1 %vm226_vm2, %v5361_v25  ;;  %v6425_v13 = vpop.f32.mrb[8].mxu0  ;;  %v6452_v23 = vpop.permute.xlu0 %3300 }
 0x101   : > { %5529 = vmatpush3.bf16.msra.mxu1 %v2387_v52  ;;  %5530 = vmatprep.mubr.msk.bf16.mxu1 %vm5626_vm3, %v5625_v45  ;;  %v5490_v31 = vpop.f32.mrb[9].mxu0 }
 0x102   : > { %2749 = vmatprep.subr.bf16.mxu1 %v2691_v6  ;;  %v462_v53 = vpop.f32.mrb[10].mxu0  ;;  %v573_v63 = vpop.f32.mrb[8].mxu1  ;;  %v2991_v6 = vsel %vm2669_vm5, %v6324_v21, %v6316_v39 }
 0x103   : > { %v5491_v16 = vpop.f32.mrb[11].mxu0  ;;  %v6441_v1 = vadd.f32 %v573_v63, %v6359_v61  ;;  %v575_v57 = vpop.f32.mrb[9].mxu1  ;;  %v3009_v53 = vand.u32 %v2991_v6, %v5677_v15  ;;  %v2993_v63 = vsel %vm2669_vm5, %v6342_v54, %v6334_v27 }
 0x104   : > { %5366 = vmatmul.mubr.msk.bf16.vlgmr.msra.gmra.mrb[76].mxu0 %vm226_vm2, %v5361_v25  ;;  %v6446_v11 = vadd.f32 %v575_v57, %v6363_v17  ;;  %v577_v35 = vpop.f32.mrb[10].mxu1  ;;  %v6459_v17 = vld [vmem:[%s7011_s1 + $0x20] sm:$0xf]  ;;  %v6462_v9 = vpop.permute.xlu1 %3609 }
 0x105   : > { %2709 = vmatpush1.bf16.msra.mxu0 %v2682_v44  ;;  %2740 = vmatprep.mubr.bf16.mxu0 %v5622_v4  ;;  %v578_v61 = vpop.f32.mrb[11].mxu1  ;;  %v6481_v55 = vpop.permute.xlu0 %3304  ;;  %v2990_v35 = vsel %vm2669_vm5, %v6310_v36, %v6324_v21  ;;  %v2992_v36 = vsel %vm2669_vm5, %v6316_v39, %v6342_v54  ;;  %v3021_v21 = vand.u32 %v2995_v49, %v5677_v15 }
 0x106   : > { %2790 = vmatprep.subr.bf16.mxu0 %v2697_v33  ;;  %v2988_v33 = vsel %vm2669_vm5, %v6301_v32, %v6284_v62  ;;  %v2994_v39 = vsel %vm2669_vm5, %v6334_v27, %v6357_v48  ;;  %v3310_v27 = vsel %vm3306_vm6, %v6386_v34, %v6423_v20  ;;  %v3314_v6 = vsel %vm3306_vm6, %v6434_v42, %v6481_v55 }
 0x107   : > { %v3000_v32 = vand.u32 %v2988_v33, %v5677_v15 }
 0x108   : > { %5531 = vmatmul.mubr.msk.bf16.vlgmr.msra.gmra.mrb[76].mxu1 %vm226_vm2, %v5361_v25  ;;  %v614_v50 = vpop.f32.mrb[12].mxu0  ;;  %v6500_v44 = vpop.permute.xlu1 %3607 }
 0x109   : > { %2750 = vmatpush1.bf16.msra.mxu1 %v2688_v28  ;;  %2781 = vmatprep.mubr.bf16.mxu1 %v5622_v4  ;;  %v6468_v25 = vadd.f32 %v614_v50, %v6371_v59  ;;  %v616_v60 = vpop.f32.mrb[13].mxu0  ;;  %v3012_v50 = vand.u32 %v2992_v36, %v5677_v15 }
 0x10a   : > { %2831 = vmatprep.subr.bf16.mxu1 %v2703_v58  ;;  %v655_v22 = vpop.f32.mrb[12].mxu1  ;;  %v6474_v24 = vadd.f32 %v616_v60, %v6376_v0  ;;  %v618_v51 = vpop.f32.mrb[14].mxu0 }
 0x10b   : > { %v6477_v8 = vadd.f32 %v655_v22, %v6392_v12  ;;  %v657_v52 = vpop.f32.mrb[13].mxu1  ;;  %v619_v5 = vpop.f32.mrb[15].mxu0  ;;  %v3018_v22 = vand.u32 %v2994_v39, %v5677_v15 }
 0x10c   : > { %5370 = vmatmul.mubr.msk.bf16.vlgmr.msra.gmra.mrb[80].mxu0 %vm226_vm2, %v6459_v17  ;;  %v6484_v59 = vadd.f32 %v657_v52, %v6396_v30  ;;  %v659_v0 = vpop.f32.mrb[14].mxu1  ;;  %v6495_v30 = vpop.permute.xlu0 %3611  ;;  %v3024_v52 = vand.u32 %v6351_v29, %v5677_v15  ;;  %v3307_v5 = vsel %vm3306_vm6, %v6400_v38, %v6374_v7 }
 0x10d   : > { %2791 = vmatpush1.bf16.msra.mxu0 %v2694_v41  ;;  %2822 = vmatprep.mubr.bf16.mxu0 %v5622_v4  ;;  %v660_v12 = vpop.f32.mrb[15].mxu1  ;;  %v6534_v61 = vpop.permute.xlu1 %3615  ;;  %v3006_v41 = vand.u32 %v2990_v35, %v5677_v15  ;;  %v3312_v0 = vsel %vm3306_vm6, %v6408_v37, %v6452_v23  ;;  %v3319_v29 = vand.u32 %v3307_v5, %v5677_v15 }
 0x10e   : > { %5534 = vmatprep.subr.bf16.mxu0 %v5625_v45  ;;  %v3334_v38 = vand.u32 %v3312_v0, %v5677_v15 }
 0x110   : > { %5371 = vmatmul.mubr.msk.bf16.vlgmr.msra.gmra.mrb[80].mxu1 %vm226_vm2, %v6459_v17  ;;  %v696_v40 = vpop.f32.mrb[16].mxu0  ;;  %v6530_v58 = vpop.permute.xlu0 %3613 }
 0x111   : > { %2832 = vmatpush1.bf16.msra.mxu1 %v2700_v47  ;;  %2863 = vmatprep.mubr.bf16.mxu1 %v5622_v4  ;;  %v6503_v31 = vadd.f32 %v696_v40, %v6405_v19  ;;  %v698_v43 = vpop.f32.mrb[17].mxu0  ;;  %v6554_v54 = vpop.permute.xlu1 %3619  ;;  %v3328_v47 = vand.u32 %v3310_v27, %v5677_v15 }
 0x112   : > { %3026 = vmatprep.subr.bf16.mxu1 %v3003_v26  ;;  %v6510_v56 = vadd.f32 %v698_v43, %v6410_v14  ;;  %v737_v10 = vpop.f32.mrb[16].mxu1  ;;  %v700_v16 = vpop.f32.mrb[18].mxu0 }
 0x113   : > { %v6516_v19 = vadd.f32 %v737_v10, %v6425_v13  ;;  %v701_v57 = vpop.f32.mrb[19].mxu0  ;;  %v5496_v28 = vpop.f32.mrb[17].mxu1  ;;  %v3015_v13 = vand.u32 %v2993_v63, %v5677_v15 }
 0x114   : > { %5372 = vmatmul.mubr.msk.bf16.vlgmr.msra.gmra.mrb[84].mxu0 %vm226_vm2, %v6459_v17  ;;  %v740_v62 = vpop.f32.mrb[18].mxu1  ;;  %v6549_v60 = vpop.permute.xlu0 %3617  ;;  %v3625_v28 = vsel %vm3306_vm6, %v6500_v44, %v6462_v9 }
 0x115   : > { %5535 = vmatpush3.bf16.msra.mxu0 %v2706_v18  ;;  %5536 = vmatprep.mubr.msk.bf16.mxu0 %vm5626_vm3, %v5625_v45  ;;  %v5497_v14 = vpop.f32.mrb[19].mxu1  ;;  %v6570_v51 = vpop.permute.xlu1 %3623  ;;  %v3311_v18 = vsel %vm3306_vm6, %v6423_v20, %v6408_v37  ;;  %v3313_v37 = vsel %vm3306_vm6, %v6452_v23, %v6434_v42  ;;  %v3626_v20 = vsel %vm3306_vm6, %v6462_v9, %v6495_v30 }
 0x116   : > { %3067 = vmatprep.subr.bf16.mxu0 %v3009_v53  ;;  %v3331_v33 = vand.u32 %v3311_v18, %v5677_v15  ;;  %v5385_v53 = vld [vmem:[%s7011_s1 + $0x28] sm:$0xf]  ;;  %v3337_v16 = vand.u32 %v3313_v37, %v5677_v15  ;;  %v3640_v57 = vand.u32 %v3626_v20, %v5677_v15  ;;  %v3628_v42 = vsel %vm3306_vm6, %v6530_v58, %v6534_v61 }
 0x117   : > { %v3343_v23 = vand.u32 %v6481_v55, %v5677_v15  ;;  %v3646_v62 = vand.u32 %v3628_v42, %v5677_v15  ;;  %v3630_v14 = vsel %vm3306_vm6, %v6549_v60, %v6554_v54  ;;  %v3637_v55 = vand.u32 %v3625_v28, %v5677_v15 }
 0x118   : > { %5373 = vmatmul.mubr.msk.bf16.vlgmr.msra.gmra.mrb[84].mxu1 %vm226_vm2, %v6459_v17  ;;  %v6567_v48 = vpop.permute.xlu0 %3621  ;;  %v3627_v9 = vsel %vm3306_vm6, %v6495_v30, %v6530_v58  ;;  %v3652_v44 = vand.u32 %v3630_v14, %v5677_v15  ;;  %v3629_v30 = vsel %vm3306_vm6, %v6534_v61, %v6549_v60 }
 0x119   : > { %3027 = vmatpush1.bf16.msra.mxu1 %v3000_v32  ;;  %3058 = vmatprep.mubr.bf16.mxu1 %v5622_v4  ;;  %v6583_v26 = vpop.permute.xlu1 %3929  ;;  %v3631_v61 = vsel %vm3306_vm6, %v6554_v54, %v6567_v48 }
 0x11a   : > { %3108 = vmatprep.subr.bf16.mxu1 %v3015_v13  ;;  %v3632_v13 = vsel %vm3306_vm6, %v6567_v48, %v6570_v51  ;;  %v3661_v48 = vand.u32 %v6570_v51, %v5677_v15 }
 0x11b   : > { %v3658_v58 = vand.u32 %v3632_v13, %v5677_v15 }
 0x11c   : > { %5537 = vmatmul.mubr.msk.bf16.vlgmr.msra.gmra.mrb[88].mxu0 %vm226_vm2, %v6459_v17  ;;  %v3308_v17 = vsel %vm3306_vm6, %v6374_v7, %v6369_v2  ;;  %v6588_v12 = vpop.permute.xlu0 %3927  ;;  %v3309_v7 = vsel %vm3306_vm6, %v6369_v2, %v6386_v34  ;;  %v3340_v2 = vand.u32 %v3314_v6, %v5677_v15 }
 0x11d   : > { %3068 = vmatpush1.bf16.msra.mxu0 %v3006_v41  ;;  %3099 = vmatprep.mubr.bf16.mxu0 %v5622_v4  ;;  %v3322_v3 = vand.u32 %v3308_v17, %v5677_v15  ;;  %v3325_v40 = vand.u32 %v3309_v7, %v5677_v15  ;;  %v6604_v34 = vpop.permute.xlu1 %3931  ;;  %v3643_v41 = vand.u32 %v3627_v9, %v5677_v15 }
 0x11e   : > { %3149 = vmatprep.subr.bf16.mxu0 %v3021_v21  ;;  %v3649_v21 = vand.u32 %v3629_v30, %v5677_v15  ;;  %v3944_v39 = vsel %vm2669_vm5, %v6588_v12, %v6583_v26  ;;  %v3655_v17 = vand.u32 %v3631_v61, %v5677_v15 }
 0x120   : > { %5380 = vmatmul.mubr.msk.bf16.vlgmr.msra.gmra.mrb[88].mxu1 %vm226_vm2, %v5378_v46  ;;  %v6606_v43 = vpop.permute.xlu0 %3925 }
 0x121   : > { %3109 = vmatpush1.bf16.msra.mxu1 %v3012_v50  ;;  %3140 = vmatprep.mubr.bf16.mxu1 %v5622_v4  ;;  %v6621_v10 = vpop.permute.xlu1 %3935  ;;  %v5395_v50 = vld [vmem:[%s7011_s1 + $0x2c] sm:$0xf] }
 0x122   : > { %5540 = vmatprep.subr.bf16.mxu1 %v5625_v45 }
 0x124   : > { %5381 = vmatmul.mubr.msk.bf16.vlgmr.msra.gmra.mrb[92].mxu0 %vm226_vm2, %v5378_v46  ;;  %v6625_v63 = vpop.permute.xlu0 %3933 }
 0x125   : > { %3150 = vmatpush1.bf16.msra.mxu0 %v3018_v22  ;;  %3181 = vmatprep.mubr.bf16.mxu0 %v5622_v4  ;;  %v6640_v32 = vpop.permute.xlu1 %3939  ;;  %v3958_v22 = vand.u32 %v3944_v39, %v5677_v15  ;;  %v3946_v54 = vsel %vm2669_vm5, %v6604_v34, %v6625_v63 }
 0x126   : > { %3345 = vmatprep.subr.bf16.mxu0 %v3322_v3  ;;  %v3964_v5 = vand.u32 %v3946_v54, %v5677_v15  ;;  %v6801_v54 = vld [vmem:[%s7011_s1 + $0x34] sm:$0xf] }
 0x128   : > { %5382 = vmatmul.mubr.msk.bf16.vlgmr.msra.gmra.mrb[92].mxu1 %vm226_vm2, %v5378_v46  ;;  %v6645_v35 = vpop.permute.xlu0 %3937 }
 0x129   : > { %5541 = vmatpush3.bf16.msra.mxu1 %v3024_v52  ;;  %5542 = vmatprep.mubr.msk.bf16.mxu1 %vm5626_vm3, %v5625_v45  ;;  %v6659_v49 = vpop.permute.xlu1 %4245  ;;  %v3943_v52 = vsel %vm2669_vm5, %v6606_v43, %v6588_v12  ;;  %v5405_v43 = vld [vmem:[%s7011_s1 + $0x30] sm:$0xf] }
 0x12a   : > { %3386 = vmatprep.subr.bf16.mxu1 %v3328_v47  ;;  %v3948_v47 = vsel %vm2669_vm5, %v6621_v10, %v6645_v35  ;;  %v3955_v0 = vand.u32 %v3943_v52, %v5677_v15 }
 0x12b   : > { %v3970_v12 = vand.u32 %v3948_v47, %v5677_v15 }
 0x12c   : > { %5383 = vmatmul.mubr.msk.bf16.vlgmr.msra.gmra.mrb[96].mxu0 %vm226_vm2, %v5378_v46  ;;  %v6663_v36 = vpop.permute.xlu0 %3941 }
 0x12d   : > { %3346 = vmatpush1.bf16.msra.mxu0 %v3319_v29  ;;  %3377 = vmatprep.mubr.bf16.mxu0 %v5622_v4  ;;  %v4244_v60 = vpop.permute.xlu1 %4243  ;;  %v3945_v29 = vsel %vm2669_vm5, %v6583_v26, %v6604_v34  ;;  %v3947_v26 = vsel %vm2669_vm5, %v6625_v63, %v6621_v10 }
 0x12e   : > { %3427 = vmatprep.subr.bf16.mxu0 %v3334_v38  ;;  %v3950_v38 = vsel %vm2669_vm5, %v6640_v32, %v6663_v36  ;;  %v3961_v6 = vand.u32 %v3945_v29, %v5677_v15  ;;  %v3967_v34 = vand.u32 %v3947_v26, %v5677_v15  ;;  %v4261_v42 = vsel %vm2669_vm5, %v4244_v60, %v6659_v49 }
 0x12f   : > { %v4273_v14 = vand.u32 %v4261_v42, %v5677_v15 }
 0x130   : > { %5543 = vmatmul.mubr.msk.bf16.vlgmr.msra.gmra.mrb[96].mxu1 %vm226_vm2, %v5378_v46  ;;  %v6675_v46 = vpop.permute.xlu0 %4247 }
 0x131   : > { %3387 = vmatpush1.bf16.msra.mxu1 %v3325_v40  ;;  %3418 = vmatprep.mubr.bf16.mxu1 %v5622_v4  ;;  %v6692_v27 = vpop.permute.xlu1 %4251  ;;  %v3976_v40 = vand.u32 %v3950_v38, %v5677_v15 }
 0x132   : > { %3468 = vmatprep.subr.bf16.mxu1 %v3340_v2 }
 0x134   : > { %5387 = vmatmul.mubr.msk.bf16.vlgmr.msra.gmra.mrb[100].mxu0 %vm226_vm2, %v5385_v53  ;;  %v4250_v3 = vpop.permute.xlu0 %4249 }
 0x135   : > { %3428 = vmatpush1.bf16.msra.mxu0 %v3331_v33  ;;  %3459 = vmatprep.mubr.bf16.mxu0 %v5622_v4  ;;  %v6712_v7 = vpop.permute.xlu1 %4255  ;;  %v3949_v33 = vsel %vm2669_vm5, %v6645_v35, %v6640_v32  ;;  %v4264_v63 = vsel %vm2669_vm5, %v4250_v3, %v6692_v27  ;;  %v4263_v35 = vsel %vm2669_vm5, %v6675_v46, %v4250_v3 }
 0x136   : > { %5546 = vmatprep.subr.bf16.mxu0 %v5625_v45  ;;  %v3973_v20 = vand.u32 %v3949_v33, %v5677_v15 }
 0x138   : > { %5388 = vmatmul.mubr.msk.bf16.vlgmr.msra.gmra.mrb[100].mxu1 %vm226_vm2, %v5385_v53  ;;  %v4254_v51 = vpop.permute.xlu0 %4253 }
 0x139   : > { %3469 = vmatpush1.bf16.msra.mxu1 %v3337_v16  ;;  %3500 = vmatprep.mubr.bf16.mxu1 %v5622_v4  ;;  %v6727_v2 = vpop.permute.xlu1 %4259 }
 0x13a   : > { %3663 = vmatprep.subr.bf16.mxu1 %v3640_v57  ;;  %v3979_v57 = vand.u32 %v6663_v36, %v5677_v15  ;;  %v4279_v36 = vand.u32 %v4263_v35, %v5677_v15 }
 0x13c   : > { %5389 = vmatmul.mubr.msk.bf16.vlgmr.msra.gmra.mrb[104].mxu0 %vm226_vm2, %v5385_v53  ;;  %v6724_v18 = vpop.permute.xlu0 %4257 }
 0x13d   : > { %5547 = vmatpush3.bf16.msra.mxu0 %v3343_v23  ;;  %5548 = vmatprep.mubr.msk.bf16.mxu0 %vm5626_vm3, %v5625_v45  ;;  %v6741_v37 = vpop.permute.xlu1 %4565  ;;  %v4282_v23 = vand.u32 %v4264_v63, %v5677_v15  ;;  %v4267_v3 = vsel %vm2669_vm5, %v6712_v7, %v6724_v18 }
 0x13e   : > { %3704 = vmatprep.subr.bf16.mxu0 %v3646_v62  ;;  %v4266_v62 = vsel %vm2669_vm5, %v4254_v51, %v6712_v7 }
 0x140   : > { %5390 = vmatmul.mubr.msk.bf16.vlgmr.msra.gmra.mrb[104].mxu1 %vm226_vm2, %v5385_v53  ;;  %v6745_v10 = vpop.permute.xlu0 %4563 }
 0x141   : > { %3664 = vmatpush1.bf16.msra.mxu1 %v3637_v55  ;;  %3695 = vmatprep.mubr.bf16.mxu1 %v5622_v4  ;;  %v6758_v28 = vpop.permute.xlu1 %4567  ;;  %v4288_v55 = vand.u32 %v4266_v62, %v5677_v15  ;;  %v4580_v52 = vsel %vm3306_vm6, %v6745_v10, %v6741_v37 }
 0x142   : > { %3745 = vmatprep.subr.bf16.mxu1 %v3652_v44  ;;  %v4268_v44 = vsel %vm2669_vm5, %v6724_v18, %v6727_v2  ;;  %v4594_v38 = vand.u32 %v4580_v52, %v5677_v15  ;;  %v4297_v18 = vand.u32 %v6727_v2, %v5677_v15 }
 0x144   : > { %5549 = vmatmul.mubr.msk.bf16.vlgmr.msra.gmra.mrb[108].mxu0 %vm226_vm2, %v5385_v53  ;;  %v4262_v53 = vsel %vm2669_vm5, %v6659_v49, %v6675_v46  ;;  %v6762_v32 = vpop.permute.xlu0 %4561  ;;  %v4294_v46 = vand.u32 %v4268_v44, %v5677_v15 }
 0x145   : > { %3705 = vmatpush1.bf16.msra.mxu0 %v3643_v41  ;;  %3736 = vmatprep.mubr.bf16.mxu0 %v5622_v4  ;;  %v4276_v16 = vand.u32 %v4262_v53, %v5677_v15  ;;  %v6778_v41 = vpop.permute.xlu1 %4571 }
 0x146   : > { %3786 = vmatprep.subr.bf16.mxu0 %v3658_v58 }
 0x148   : > { %5397 = vmatmul.mubr.msk.bf16.vlgmr.msra.gmra.mrb[108].mxu1 %vm226_vm2, %v5395_v50 }
 0x149   : > { %3746 = vmatpush1.bf16.msra.mxu1 %v3649_v21  ;;  %3777 = vmatprep.mubr.bf16.mxu1 %v5622_v4  ;;  %v6785_v21 = vpop.permute.xlu0 %4569 }
 0x14a   : > { %5552 = vmatprep.subr.bf16.mxu1 %v5625_v45 }
 0x14c   : > { %5398 = vmatmul.mubr.msk.bf16.vlgmr.msra.gmra.mrb[112].mxu0 %vm226_vm2, %v5395_v50 }
 0x14d   : > { %3787 = vmatpush1.bf16.msra.mxu0 %v3655_v17  ;;  %3818 = vmatprep.mubr.bf16.mxu0 %v5622_v4 }
 0x14e   : > { %3981 = vmatprep.subr.bf16.mxu0 %v3958_v22 }
 0x150   : > { %5399 = vmatmul.mubr.msk.bf16.vlgmr.msra.gmra.mrb[112].mxu1 %vm226_vm2, %v5395_v50 }
 0x151   : > { %5553 = vmatpush3.bf16.msra.mxu1 %v3661_v48  ;;  %5554 = vmatprep.mubr.msk.bf16.mxu1 %vm5626_vm3, %v5625_v45 }
 0x152   : > { %4022 = vmatprep.subr.bf16.mxu1 %v3964_v5  ;;  %v6815_v5 = vpop.permute.xlu0 %4573 }
 0x154   : > { %5400 = vmatmul.mubr.msk.bf16.vlgmr.msra.gmra.mrb[116].mxu0 %vm226_vm2, %v5395_v50 }
 0x155   : > { %3982 = vmatpush1.bf16.msra.mxu0 %v3955_v0  ;;  %4013 = vmatprep.mubr.bf16.mxu0 %v5622_v4 }
 0x156   : > { %4063 = vmatprep.subr.bf16.mxu0 %v3970_v12  ;;  %v6845_v33 = vpop.permute.xlu0 %4577 }
 0x158   : > { %5555 = vmatmul.mubr.msk.bf16.vlgmr.msra.gmra.mrb[116].mxu1 %vm226_vm2, %v5395_v50 }
 0x159   : > { %4023 = vmatpush1.bf16.msra.mxu1 %v3961_v6  ;;  %4054 = vmatprep.mubr.bf16.mxu1 %v5622_v4  ;;  %v4582_v6 = vsel %vm3306_vm6, %v6758_v28, %v6785_v21 }
 0x15a   : > { %4104 = vmatprep.subr.bf16.mxu1 %v3976_v40  ;;  %v6862_v42 = vpop.permute.xlu0 %4883 }
 0x15c   : > { %5407 = vmatmul.mubr.msk.bf16.vlgmr.msra.gmra.mrb[120].mxu0 %vm226_vm2, %v5405_v43 }
 0x15d   : > { %4064 = vmatpush1.bf16.msra.mxu0 %v3967_v34  ;;  %4095 = vmatprep.mubr.bf16.mxu0 %v5622_v4 }
 0x15e   : > { %5558 = vmatprep.subr.bf16.mxu0 %v5625_v45 }
 0x160   : > { %5408 = vmatmul.mubr.msk.bf16.vlgmr.msra.gmra.mrb[120].mxu1 %vm226_vm2, %v5405_v43 }
 0x161   : > { %4105 = vmatpush1.bf16.msra.mxu1 %v3973_v20  ;;  %4136 = vmatprep.mubr.bf16.mxu1 %v5622_v4  ;;  %v4600_v20 = vand.u32 %v4582_v6, %v5677_v15 }
 0x162   : > { %4299 = vmatprep.subr.bf16.mxu1 %v4276_v16 }
 0x164   : > { %5409 = vmatmul.mubr.msk.bf16.vlgmr.msra.gmra.mrb[124].mxu0 %vm226_vm2, %v5405_v43 }
 0x165   : > { %5559 = vmatpush3.bf16.msra.mxu0 %v3979_v57  ;;  %5560 = vmatprep.mubr.msk.bf16.mxu0 %vm5626_vm3, %v5625_v45 }
 0x166   : > { %4340 = vmatprep.subr.bf16.mxu0 %v4282_v23  ;;  %v4581_v23 = vsel %vm3306_vm6, %v6741_v37, %v6758_v28 }
 0x167   : > { %v883_v9 = vpop.f32.mrb[20].mxu0  ;;  %v4597_v44 = vand.u32 %v4581_v23, %v5677_v15 }
 0x168   : > { %v6775_v13 = vadd.f32 %v883_v9, %v6441_v1  ;;  %v885_v49 = vpop.f32.mrb[21].mxu0  ;;  %5410 = vmatmul.mubr.msk.bf16.vlgmr.msra.gmra.mrb[124].mxu1 %vm226_vm2, %v5405_v43  ;;  %v4265_v1 = vsel %vm2669_vm5, %v6692_v27, %v4254_v51  ;;  %v4291_v51 = vand.u32 %v4267_v3, %v5677_v15 }
 0x169   : > { %v6782_v30 = vadd.f32 %v885_v49, %v6446_v11  ;;  %4300 = vmatpush1.bf16.msra.mxu1 %v4273_v14  ;;  %v887_v58 = vpop.f32.mrb[22].mxu0  ;;  %4331 = vmatprep.mubr.bf16.mxu1 %v5622_v4  ;;  %v4285_v11 = vand.u32 %v4265_v1, %v5677_v15  ;;  %v4583_v49 = vsel %vm3306_vm6, %v6785_v21, %v6778_v41  ;;  %v4886_v1 = vpop.permute.xlu0 %4885 }
 0x16a   : > { %v888_v50 = vpop.f32.mrb[23].mxu0  ;;  %4381 = vmatprep.subr.bf16.mxu1 %v4288_v55 }
 0x16b   : > { %v924_v61 = vpop.f32.mrb[20].mxu1 }
 0x16c   : > { %v6791_v60 = vadd.f32 %v924_v61, %v6468_v25  ;;  %v926_v39 = vpop.f32.mrb[21].mxu1  ;;  %5561 = vmatmul.mubr.msk.bf16.vlgmr.msra.gmra.mrb[128].mxu0 %vm226_vm2, %v5405_v43  ;;  %v5148_v25 = vld [vmem:[%s7012_s2] sm:$0xff]  ;;  %v4603_v61 = vand.u32 %v4583_v49, %v5677_v15 }
 0x16d   : > { %v6796_v17 = vadd.f32 %v926_v39, %v6474_v24  ;;  %4341 = vmatpush1.bf16.msra.mxu0 %v4279_v36  ;;  %v928_v22 = vpop.f32.mrb[22].mxu1  ;;  %4372 = vmatprep.mubr.bf16.mxu0 %v5622_v4  ;;  %v6810_v24 = vpop.permute.xlu1 %4575 }
 0x16e   : > { %v929_v27 = vpop.f32.mrb[23].mxu1  ;;  %4422 = vmatprep.subr.bf16.mxu0 %v4294_v46  ;;  %5151 = vperm.xlu0 %5600, %v5148_v25   ;;  %v4586_v35 = vsel %vm3306_vm6, %v6810_v24, %v6845_v33 }
 0x16f   : > { %v965_v48 = vpop.f32.mrb[24].mxu0 }
 0x170   : > { %v6818_v47 = vadd.f32 %v965_v48, %v6477_v8  ;;  %v967_v0 = vpop.f32.mrb[25].mxu0  ;;  %5417 = vmatmul.mubr.msk.bf16.vlgmr.msra.gmra.mrb[128].mxu1 %vm226_vm2, %v6801_v54  ;;  %v4890_v48 = vpop.permute.xlu0 %4889 }
 0x171   : > { %v6824_v29 = vadd.f32 %v967_v0, %v6484_v59  ;;  %4382 = vmatpush1.bf16.msra.mxu1 %v4285_v11  ;;  %v969_v12 = vpop.f32.mrb[26].mxu0  ;;  %4413 = vmatprep.mubr.bf16.mxu1 %v5622_v4  ;;  %v6837_v59 = vpop.permute.xlu1 %4881 }
 0x172   : > { %v970_v7 = vpop.f32.mrb[27].mxu0  ;;  %5564 = vmatprep.subr.bf16.mxu1 %v5625_v45 }
 0x173   : > { %v1006_v8 = vpop.f32.mrb[24].mxu1  ;;  %v4615_v7 = vand.u32 %v6845_v33, %v5677_v15 }
 0x174   : > { %v6833_v26 = vadd.f32 %v1006_v8, %v6503_v31  ;;  %v1008_v40 = vpop.f32.mrb[25].mxu1  ;;  %5418 = vmatmul.mubr.msk.bf16.vlgmr.msra.gmra.mrb[132].mxu0 %vm226_vm2, %v6801_v54  ;;  %v4579_v31 = vsel %vm3306_vm6, %v6762_v32, %v6745_v10 }
 0x175   : > { %v6842_v34 = vadd.f32 %v1008_v40, %v6510_v56  ;;  %4423 = vmatpush1.bf16.msra.mxu0 %v4291_v51  ;;  %v1010_v43 = vpop.f32.mrb[26].mxu1  ;;  %4454 = vmatprep.mubr.bf16.mxu0 %v5622_v4  ;;  %v4584_v56 = vsel %vm3306_vm6, %v6778_v41, %v6815_v5  ;;  %v4591_v57 = vand.u32 %v4579_v31, %v5677_v15  ;;  %v4880_v32 = vpop.permute.xlu1 %4879  ;;  %v6899_v41 = vld [vmem:[%s7011_s1 + $0x38] sm:$0xf] }
 0x176   : > { %v1011_v53 = vpop.f32.mrb[27].mxu1  ;;  %4617 = vmatprep.subr.bf16.mxu0 %v4594_v38  ;;  %v4897_v6 = vsel %vm3306_vm6, %v4880_v32, %v6837_v59  ;;  %v4894_v31 = vpop.permute.xlu0 %4893 }
 0x177   : > { %v1047_v16 = vpop.f32.mrb[28].mxu0 }
 0x178   : > { %v6855_v2 = vadd.f32 %v1047_v16, %v6516_v19  ;;  %5419 = vmatmul.mubr.msk.bf16.vlgmr.msra.gmra.mrb[132].mxu1 %vm226_vm2, %v6801_v54  ;;  %v5502_v63 = vpop.f32.mrb[29].mxu0  ;;  %v4606_v19 = vand.u32 %v4584_v56, %v5677_v15 }
 0x179   : > { %5565 = vmatpush3.bf16.msra.mxu1 %v4297_v18  ;;  %v1050_v10 = vpop.f32.mrb[30].mxu0  ;;  %5566 = vmatprep.mubr.msk.bf16.mxu1 %vm5626_vm3, %v5625_v45 }
 0x17a   : > { %v5503_v62 = vpop.f32.mrb[31].mxu0  ;;  %4658 = vmatprep.subr.bf16.mxu1 %v4600_v20  ;;  %v4909_v20 = vand.u32 %v4897_v6, %v5677_v15 }
 0x17b   : > { %v1201_v14 = vpop.f32.mrb[28].mxu1 }
 0x17c   : > { %v6872_v55 = vadd.f32 %v1201_v14, %v6775_v13  ;;  %v1203_v9 = vpop.f32.mrb[29].mxu1  ;;  %5420 = vmatmul.mubr.msk.bf16.vlgmr.msra.gmra.mrb[136].mxu0 %vm226_vm2, %v6801_v54  ;;  %v4612_v13 = vand.u32 %v4586_v35, %v5677_v15 }
 0x17d   : > { %v6878_v37 = vadd.f32 %v1203_v9, %v6782_v30  ;;  %4618 = vmatpush1.bf16.msra.mxu0 %v4591_v57  ;;  %v1205_v28 = vpop.f32.mrb[30].mxu1  ;;  %4649 = vmatprep.mubr.bf16.mxu0 %v5622_v4  ;;  %v6890_v30 = vpop.permute.xlu1 %4887 }
 0x17e   : > { %v1206_v36 = vpop.f32.mrb[31].mxu1  ;;  %4699 = vmatprep.subr.bf16.mxu0 %v4606_v19  ;;  %v4900_v51 = vsel %vm3306_vm6, %v4886_v1, %v6890_v30 }
 0x17f   : > { %v1242_v58 = vpop.f32.mrb[32].mxu0  ;;  %v5435_v36 = vld [vmem:[%s7011_s1 + $0x3c] sm:$0xf] }
 0x180   : > { %v6886_v50 = vadd.f32 %v1242_v58, %v6791_v60  ;;  %v1244_v46 = vpop.f32.mrb[33].mxu0  ;;  %5567 = vmatmul.mubr.msk.bf16.vlgmr.msra.gmra.mrb[136].mxu1 %vm226_vm2, %v6801_v54  ;;  %v4585_v60 = vsel %vm3306_vm6, %v6815_v5, %v6810_v24 }
 0x181   : > { %v6894_v39 = vadd.f32 %v1244_v46, %v6796_v17  ;;  %4659 = vmatpush1.bf16.msra.mxu1 %v4597_v44  ;;  %v1246_v21 = vpop.f32.mrb[34].mxu0  ;;  %4690 = vmatprep.mubr.bf16.mxu1 %v5622_v4  ;;  %v4898_v17 = vsel %vm3306_vm6, %v6837_v59, %v6862_v42  ;;  %v4609_v3 = vand.u32 %v4585_v60, %v5677_v15 }
 0x182   : > { %v1247_v11 = vpop.f32.mrb[35].mxu0  ;;  %4740 = vmatprep.subr.bf16.mxu1 %v4612_v13  ;;  %v4912_v5 = vand.u32 %v4898_v17, %v5677_v15  ;;  %v4899_v59 = vsel %vm3306_vm6, %v6862_v42, %v4886_v1  ;;  %v4901_v42 = vsel %vm3306_vm6, %v6890_v30, %v4890_v48 }
 0x183   : > { %v1283_v22 = vpop.f32.mrb[32].mxu1  ;;  %v4915_v62 = vand.u32 %v4899_v59, %v5677_v15 }
 0x184   : > { %v6909_v54 = vadd.f32 %v1283_v22, %v6818_v47  ;;  %v1285_v25 = vpop.f32.mrb[33].mxu1  ;;  %5427 = vmatmul.mubr.msk.bf16.vlgmr.msra.gmra.mrb[140].mxu0 %vm226_vm2, %v6899_v41  ;;  %v4892_v47 = vpop.permute.xlu1 %4891 }
 0x185   : > { %v6915_v27 = vadd.f32 %v1285_v25, %v6824_v29  ;;  %4700 = vmatpush1.bf16.msra.mxu0 %v4603_v61  ;;  %v1287_v24 = vpop.f32.mrb[34].mxu1  ;;  %4731 = vmatprep.mubr.bf16.mxu0 %v5622_v4  ;;  %v4902_v43 = vsel %vm3306_vm6, %v4890_v48, %v4892_v47  ;;  %v4903_v13 = vsel %vm3306_vm6, %v4892_v47, %v4894_v31 }
 0x186   : > { %v1288_v52 = vpop.f32.mrb[35].mxu1  ;;  %5570 = vmatprep.subr.bf16.mxu0 %v5625_v45  ;;  %v4924_v63 = vand.u32 %v4902_v43, %v5677_v15  ;;  %v4927_v30 = vand.u32 %v4903_v13, %v5677_v15 }
 0x187   : > { %v1324_v0 = vpop.f32.mrb[36].mxu0 }
 0x188   : > { %v6923_v12 = vadd.f32 %v1324_v0, %v6833_v26  ;;  %v1326_v29 = vpop.f32.mrb[37].mxu0  ;;  %5428 = vmatmul.mubr.msk.bf16.vlgmr.msra.gmra.mrb[140].mxu1 %vm226_vm2, %v6899_v41  ;;  %v4918_v26 = vand.u32 %v4900_v51, %v5677_v15  ;;  %v4896_v53 = vpop.permute.xlu1 %4895 }
 0x189   : > { %v6930_v38 = vadd.f32 %v1326_v29, %v6842_v34  ;;  %4741 = vmatpush1.bf16.msra.mxu1 %v4609_v3  ;;  %v1328_v8 = vpop.f32.mrb[38].mxu0  ;;  %4772 = vmatprep.mubr.bf16.mxu1 %v5622_v4  ;;  %v4904_v57 = vsel %vm3306_vm6, %v4894_v31, %v4896_v53  ;;  %v4933_v22 = vand.u32 %v4896_v53, %v5677_v15 }
 0x18a   : > { %v1329_v40 = vpop.f32.mrb[39].mxu0  ;;  %4935 = vmatprep.subr.bf16.mxu1 %v4912_v5  ;;  %v4930_v35 = vand.u32 %v4904_v57, %v5677_v15 }
 0x18b   : > { %v1365_v18 = vpop.f32.mrb[36].mxu1 }
 0x18c   : > { %v1379_v33 = vadd.f32 %v1365_v18, %v6855_v2  ;;  %5429 = vmatmul.mubr.msk.bf16.vlgmr.msra.gmra.mrb[144].mxu0 %vm226_vm2, %v6899_v41  ;;  %v5508_v34 = vpop.f32.mrb[37].mxu1 }
 0x18d   : > { %5571 = vmatpush3.bf16.msra.mxu0 %v4615_v7  ;;  %v1368_v16 = vpop.f32.mrb[38].mxu1  ;;  %5572 = vmatprep.mubr.msk.bf16.mxu0 %vm5626_vm3, %v5625_v45 }
 0x18e   : > { %v5509_v56 = vpop.f32.mrb[39].mxu1  ;;  %4976 = vmatprep.subr.bf16.mxu0 %v4918_v26 }
 0x18f   : > { %v1494_v2 = vpop.f32.mrb[40].mxu0 }
 0x190   : > { %v1664_v10 = vadd.f32 %v1494_v2, %v6872_v55  ;;  %v1496_v23 = vpop.f32.mrb[41].mxu0  ;;  %5430 = vmatmul.mubr.msk.bf16.vlgmr.msra.gmra.mrb[144].mxu1 %vm226_vm2, %v6899_v41 }
 0x191   : > { %v1665_v19 = vadd.f32 %v1496_v23, %v6878_v37  ;;  %4936 = vmatpush1.bf16.msra.mxu1 %v4909_v20  ;;  %v1498_v32 = vpop.f32.mrb[42].mxu0  ;;  %4967 = vmatprep.mubr.bf16.mxu1 %v5622_v4  ;;  %v4921_v37 = vand.u32 %v4901_v42, %v5677_v15 }
 0x192   : > { %v1499_v14 = vpop.f32.mrb[43].mxu0  ;;  %5017 = vmatprep.subr.bf16.mxu1 %v4924_v63 }
 0x193   : > { %v1535_v55 = vpop.f32.mrb[40].mxu1 }
 0x194   : > { %v1666_v9 = vadd.f32 %v1535_v55, %v6886_v50  ;;  %v1537_v44 = vpop.f32.mrb[41].mxu1  ;;  %5573 = vmatmul.mubr.msk.bf16.vlgmr.msra.gmra.mrb[148].mxu0 %vm226_vm2, %v6899_v41 }
 0x195   : > { %v1667_v28 = vadd.f32 %v1537_v44, %v6894_v39  ;;  %4977 = vmatpush1.bf16.msra.mxu0 %v4915_v62  ;;  %v1539_v49 = vpop.f32.mrb[42].mxu1  ;;  %5008 = vmatprep.mubr.bf16.mxu0 %v5622_v4 }
 0x196   : > { %v1540_v58 = vpop.f32.mrb[43].mxu1  ;;  %5058 = vmatprep.subr.bf16.mxu0 %v4930_v35 }
 0x197   : > { %v1576_v1 = vpop.f32.mrb[44].mxu0 }
 0x198   : > { %v1668_v50 = vadd.f32 %v1576_v1, %v6909_v54  ;;  %v1578_v46 = vpop.f32.mrb[45].mxu0  ;;  %5437 = vmatmul.mubr.msk.bf16.vlgmr.msra.gmra.mrb[148].mxu1 %vm226_vm2, %v5435_v36 }
 0x199   : > { %v1669_v61 = vadd.f32 %v1578_v46, %v6915_v27  ;;  %5018 = vmatpush1.bf16.msra.mxu1 %v4921_v37  ;;  %v1580_v39 = vpop.f32.mrb[46].mxu0  ;;  %5049 = vmatprep.mubr.bf16.mxu1 %v5622_v4 }
 0x19a   : > { %v1581_v41 = vpop.f32.mrb[47].mxu0  ;;  %5576 = vmatprep.subr.bf16.mxu1 %v5625_v45 }
 0x19b   : > { %v1617_v21 = vpop.f32.mrb[44].mxu1 }
 0x19c   : > { %v1670_v60 = vadd.f32 %v1617_v21, %v6923_v12  ;;  %v1619_v11 = vpop.f32.mrb[45].mxu1  ;;  %5438 = vmatmul.mubr.msk.bf16.vlgmr.msra.gmra.mrb[152].mxu0 %vm226_vm2, %v5435_v36 }
 0x19d   : > { %v1671_v17 = vadd.f32 %v1619_v11, %v6930_v38  ;;  %5059 = vmatpush1.bf16.msra.mxu0 %v4927_v30  ;;  %v1621_v54 = vpop.f32.mrb[46].mxu1  ;;  %5090 = vmatprep.mubr.bf16.mxu0 %v5622_v4 }
 0x19e   : > { %v1622_v25 = vpop.f32.mrb[47].mxu1 }
 0x19f   : > { %v1658_v3 = vpop.f32.mrb[48].mxu0 }
 0x1a0   : > { %v1672_v27 = vadd.f32 %v1658_v3, %v1379_v33  ;;  %5439 = vmatmul.mubr.msk.bf16.vlgmr.msra.gmra.mrb[152].mxu1 %vm226_vm2, %v5435_v36  ;;  %v5514_v24 = vpop.f32.mrb[49].mxu0 }
 0x1a1   : > { %5577 = vmatpush3.bf16.msra.mxu1 %v4933_v22  ;;  %v1661_v48 = vpop.f32.mrb[50].mxu0  ;;  %5578 = vmatprep.mubr.msk.bf16.mxu1 %vm5626_vm3, %v5625_v45 }
 0x1a2   : > { %v5515_v52 = vpop.f32.mrb[51].mxu0 }
 0x1a3   : > { %v1787_v5 = vpop.f32.mrb[48].mxu1 }
 0x1a4   : > { %v1957_v15 = vadd.f32 %v1787_v5, %v1664_v10  ;;  %v1789_v47 = vpop.f32.mrb[49].mxu1  ;;  %5440 = vmatmul.mubr.msk.bf16.vlgmr.msra.gmra.mrb[156].mxu0 %vm226_vm2, %v5435_v36 }
 0x1a5   : > { %v1958_v0 = vadd.f32 %v1789_v47, %v1665_v19  ;;  %v1791_v51 = vpop.f32.mrb[50].mxu1 }
 0x1a6   : > { %v1792_v4 = vpop.f32.mrb[51].mxu1 }
 0x1a7   : > { %v1828_v12 = vpop.f32.mrb[52].mxu0 }
 0x1a8   : > { %v1959_v29 = vadd.f32 %v1828_v12, %v1666_v9  ;;  %v1830_v7 = vpop.f32.mrb[53].mxu0  ;;  %5579 = vmatmul.mubr.msk.bf16.vlgmr.msra.gmra.mrb[156].mxu1 %vm226_vm2, %v5435_v36 }
 0x1a9   : > { %v1960_v38 = vadd.f32 %v1830_v7, %v1667_v28  ;;  %v1832_v8 = vpop.f32.mrb[54].mxu0 }
 0x1aa   : > { %v1833_v6 = vpop.f32.mrb[55].mxu0 }
 0x1ab   : > { %v1869_v40 = vpop.f32.mrb[52].mxu1 }
 0x1ac   : > { %v1961_v26 = vadd.f32 %v1869_v40, %v1668_v50  ;;  %v1871_v45 = vpop.f32.mrb[53].mxu1 }
 0x1ad   : > { %v1962_v18 = vadd.f32 %v1871_v45, %v1669_v61  ;;  %v1873_v43 = vpop.f32.mrb[54].mxu1 }
 0x1ae   : > { %v1874_v31 = vpop.f32.mrb[55].mxu1 }
 0x1af   : > { %v1910_v33 = vpop.f32.mrb[56].mxu0 }
 0x1b0   : > { %v1963_v34 = vadd.f32 %v1910_v33, %v1670_v60  ;;  %v1912_v53 = vpop.f32.mrb[57].mxu0 }
 0x1b1   : > { %v1964_v20 = vadd.f32 %v1912_v53, %v1671_v17  ;;  %v1914_v16 = vpop.f32.mrb[58].mxu0 }
 0x1b2   : > { %v1915_v59 = vpop.f32.mrb[59].mxu0 }
 0x1b3   : > { %v1951_v56 = vpop.f32.mrb[56].mxu1 }
 0x1b4   : > { %v1965_v63 = vadd.f32 %v1951_v56, %v1672_v27  ;;  %v5520_v2 = vpop.f32.mrb[57].mxu1 }
 0x1b5   : > { %v1954_v57 = vpop.f32.mrb[58].mxu1 }
 0x1b6   : > { %v5521_v10 = vpop.f32.mrb[59].mxu1 }
 0x1b7   : > { %v2105_v23 = vpop.f32.mrb[60].mxu0 }
 0x1b8   : > { %v2275_v62 = vadd.f32 %v2105_v23, %v1957_v15  ;;  %v2107_v19 = vpop.f32.mrb[61].mxu0 }
 0x1b9   : > { %v2276_v32 = vadd.f32 %v2107_v19, %v1958_v0  ;;  %v2109_v42 = vpop.f32.mrb[62].mxu0 }
 0x1ba   : > { %v2110_v14 = vpop.f32.mrb[63].mxu0 }
 0x1bb   : > { %v2146_v35 = vpop.f32.mrb[60].mxu1 }
 0x1bc   : > { %v2277_v55 = vadd.f32 %v2146_v35, %v1959_v29  ;;  %v2148_v9 = vpop.f32.mrb[61].mxu1 }
 0x1bd   : > { %v2278_v44 = vadd.f32 %v2148_v9, %v1960_v38  ;;  %v2150_v37 = vpop.f32.mrb[62].mxu1 }
 0x1be   : > { %v2151_v28 = vpop.f32.mrb[63].mxu1 }
 0x1bf   : > { %v2187_v49 = vpop.f32.mrb[64].mxu0 }
 0x1c0   : > { %v2279_v36 = vadd.f32 %v2187_v49, %v1961_v26  ;;  %v2189_v13 = vpop.f32.mrb[65].mxu0 }
 0x1c1   : > { %v2280_v58 = vadd.f32 %v2189_v13, %v1962_v18  ;;  %v2191_v1 = vpop.f32.mrb[66].mxu0 }
 0x1c2   : > { %v2192_v50 = vpop.f32.mrb[67].mxu0 }
 0x1c3   : > { %v2228_v46 = vpop.f32.mrb[64].mxu1 }
 0x1c4   : > { %v2281_v30 = vadd.f32 %v2228_v46, %v1963_v34  ;;  %v2230_v61 = vpop.f32.mrb[65].mxu1 }
 0x1c5   : > { %v2282_v39 = vadd.f32 %v2230_v61, %v1964_v20  ;;  %v2232_v41 = vpop.f32.mrb[66].mxu1 }
 0x1c6   : > { %v2233_v21 = vpop.f32.mrb[67].mxu1 }
 0x1c7   : > { %v2269_v60 = vpop.f32.mrb[68].mxu0 }
 0x1c8   : > { %v2283_v11 = vadd.f32 %v2269_v60, %v1965_v63  ;;  %v5526_v22 = vpop.f32.mrb[69].mxu0 }
 0x1c9   : > { %v2272_v17 = vpop.f32.mrb[70].mxu0 }
 0x1ca   : > { %v5527_v54 = vpop.f32.mrb[71].mxu0 }
 0x1cb   : > { %v2423_v25 = vpop.f32.mrb[68].mxu1 }
 0x1cc   : > { %v2593_v3 = vadd.f32 %v2423_v25, %v2275_v62  ;;  %v2425_v27 = vpop.f32.mrb[69].mxu1 }
 0x1cd   : > { %v2594_v24 = vadd.f32 %v2425_v27, %v2276_v32  ;;  %v2427_v48 = vpop.f32.mrb[70].mxu1 }
 0x1ce   : > { %v2428_v52 = vpop.f32.mrb[71].mxu1 }
 0x1cf   : > { %v2464_v5 = vpop.f32.mrb[72].mxu0 }
 0x1d0   : > { %v2595_v15 = vadd.f32 %v2464_v5, %v2277_v55  ;;  %v2466_v47 = vpop.f32.mrb[73].mxu0 }
 0x1d1   : > { %v2596_v0 = vadd.f32 %v2466_v47, %v2278_v44  ;;  %v2468_v51 = vpop.f32.mrb[74].mxu0 }
 0x1d2   : > { %v2469_v4 = vpop.f32.mrb[75].mxu0 }
 0x1d3   : > { %v2505_v12 = vpop.f32.mrb[72].mxu1 }
 0x1d4   : > { %v2597_v29 = vadd.f32 %v2505_v12, %v2279_v36  ;;  %v2507_v7 = vpop.f32.mrb[73].mxu1 }
 0x1d5   : > { %v2598_v38 = vadd.f32 %v2507_v7, %v2280_v58  ;;  %v2509_v8 = vpop.f32.mrb[74].mxu1 }
 0x1d6   : > { %v2510_v6 = vpop.f32.mrb[75].mxu1 }
 0x1d7   : > { %v2546_v40 = vpop.f32.mrb[76].mxu0 }
 0x1d8   : > { %v2599_v26 = vadd.f32 %v2546_v40, %v2281_v30  ;;  %v2548_v45 = vpop.f32.mrb[77].mxu0 }
 0x1d9   : > { %v2600_v18 = vadd.f32 %v2548_v45, %v2282_v39  ;;  %v2550_v43 = vpop.f32.mrb[78].mxu0 }
 0x1da   : > { %v2551_v31 = vpop.f32.mrb[79].mxu0 }
 0x1db   : > { %v2587_v33 = vpop.f32.mrb[76].mxu1 }
 0x1dc   : > { %v2601_v34 = vadd.f32 %v2587_v33, %v2283_v11  ;;  %v5532_v53 = vpop.f32.mrb[77].mxu1 }
 0x1dd   : > { %v2590_v20 = vpop.f32.mrb[78].mxu1 }
 0x1de   : > { %v5533_v16 = vpop.f32.mrb[79].mxu1 }
 0x1df   : > { %v2742_v59 = vpop.f32.mrb[80].mxu0 }
 0x1e0   : > { %v2912_v56 = vadd.f32 %v2742_v59, %v2593_v3  ;;  %v2744_v63 = vpop.f32.mrb[81].mxu0 }
 0x1e1   : > { %v2913_v2 = vadd.f32 %v2744_v63, %v2594_v24  ;;  %v2746_v57 = vpop.f32.mrb[82].mxu0 }
 0x1e2   : > { %v2747_v10 = vpop.f32.mrb[83].mxu0 }
 0x1e3   : > { %v2783_v23 = vpop.f32.mrb[80].mxu1 }
 0x1e4   : > { %v2914_v62 = vadd.f32 %v2783_v23, %v2595_v15  ;;  %v2785_v19 = vpop.f32.mrb[81].mxu1 }
 0x1e5   : > { %v2915_v32 = vadd.f32 %v2785_v19, %v2596_v0  ;;  %v2787_v42 = vpop.f32.mrb[82].mxu1 }
 0x1e6   : > { %v2788_v14 = vpop.f32.mrb[83].mxu1 }
 0x1e7   : > { %v2824_v35 = vpop.f32.mrb[84].mxu0 }
 0x1e8   : > { %v2916_v55 = vadd.f32 %v2824_v35, %v2597_v29  ;;  %v2826_v9 = vpop.f32.mrb[85].mxu0 }
 0x1e9   : > { %v2917_v44 = vadd.f32 %v2826_v9, %v2598_v38  ;;  %v2828_v37 = vpop.f32.mrb[86].mxu0 }
 0x1ea   : > { %v2829_v28 = vpop.f32.mrb[87].mxu0 }
 0x1eb   : > { %v2865_v49 = vpop.f32.mrb[84].mxu1 }
 0x1ec   : > { %v2918_v36 = vadd.f32 %v2865_v49, %v2599_v26  ;;  %v2867_v13 = vpop.f32.mrb[85].mxu1 }
 0x1ed   : > { %v2919_v58 = vadd.f32 %v2867_v13, %v2600_v18  ;;  %v2869_v1 = vpop.f32.mrb[86].mxu1 }
 0x1ee   : > { %v2870_v50 = vpop.f32.mrb[87].mxu1 }
 0x1ef   : > { %v2906_v46 = vpop.f32.mrb[88].mxu0 }
 0x1f0   : > { %v2920_v30 = vadd.f32 %v2906_v46, %v2601_v34  ;;  %v5538_v61 = vpop.f32.mrb[89].mxu0 }
 0x1f1   : > { %v2909_v39 = vpop.f32.mrb[90].mxu0 }
 0x1f2   : > { %v5539_v41 = vpop.f32.mrb[91].mxu0 }
 0x1f3   : > { %v3060_v21 = vpop.f32.mrb[88].mxu1 }
 0x1f4   : > { %v3230_v60 = vadd.f32 %v3060_v21, %v2912_v56  ;;  %v3062_v11 = vpop.f32.mrb[89].mxu1 }
 0x1f5   : > { %v3231_v22 = vadd.f32 %v3062_v11, %v2913_v2  ;;  %v3064_v17 = vpop.f32.mrb[90].mxu1 }
 0x1f6   : > { %v3065_v54 = vpop.f32.mrb[91].mxu1 }
 0x1f7   : > { %v3101_v25 = vpop.f32.mrb[92].mxu0 }
 0x1f8   : > { %v3232_v3 = vadd.f32 %v3101_v25, %v2914_v62  ;;  %v3103_v27 = vpop.f32.mrb[93].mxu0 }
 0x1f9   : > { %v3233_v24 = vadd.f32 %v3103_v27, %v2915_v32  ;;  %v3105_v48 = vpop.f32.mrb[94].mxu0 }
 0x1fa   : > { %v3106_v52 = vpop.f32.mrb[95].mxu0 }
 0x1fb   : > { %v3142_v5 = vpop.f32.mrb[92].mxu1 }
 0x1fc   : > { %v3234_v15 = vadd.f32 %v3142_v5, %v2916_v55  ;;  %v3144_v47 = vpop.f32.mrb[93].mxu1 }
 0x1fd   : > { %v3235_v0 = vadd.f32 %v3144_v47, %v2917_v44  ;;  %v3146_v51 = vpop.f32.mrb[94].mxu1 }
 0x1fe   : > { %v3147_v4 = vpop.f32.mrb[95].mxu1 }
 0x1ff   : > { %v3183_v12 = vpop.f32.mrb[96].mxu0 }
 0x200   : > { %v3236_v29 = vadd.f32 %v3183_v12, %v2918_v36  ;;  %v3185_v7 = vpop.f32.mrb[97].mxu0 }
 0x201   : > { %v3237_v38 = vadd.f32 %v3185_v7, %v2919_v58  ;;  %v3187_v8 = vpop.f32.mrb[98].mxu0 }
 0x202   : > { %v3188_v6 = vpop.f32.mrb[99].mxu0 }
 0x203   : > { %v3224_v40 = vpop.f32.mrb[96].mxu1 }
 0x204   : > { %v3238_v26 = vadd.f32 %v3224_v40, %v2920_v30  ;;  %v5544_v45 = vpop.f32.mrb[97].mxu1 }
 0x205   : > { %v3227_v18 = vpop.f32.mrb[98].mxu1 }
 0x206   : > { %v5545_v43 = vpop.f32.mrb[99].mxu1 }
 0x207   : > { %v3379_v31 = vpop.f32.mrb[100].mxu0 }
 0x208   : > { %v3549_v33 = vadd.f32 %v3379_v31, %v3230_v60  ;;  %v3381_v34 = vpop.f32.mrb[101].mxu0 }
 0x209   : > { %v3550_v53 = vadd.f32 %v3381_v34, %v3231_v22  ;;  %v3383_v20 = vpop.f32.mrb[102].mxu0 }
 0x20a   : > { %v3384_v16 = vpop.f32.mrb[103].mxu0 }
 0x20b   : > { %v3420_v59 = vpop.f32.mrb[100].mxu1 }
 0x20c   : > { %v3551_v56 = vadd.f32 %v3420_v59, %v3232_v3  ;;  %v3422_v63 = vpop.f32.mrb[101].mxu1 }
 0x20d   : > { %v3552_v2 = vadd.f32 %v3422_v63, %v3233_v24  ;;  %v3424_v57 = vpop.f32.mrb[102].mxu1 }
 0x20e   : > { %v3425_v10 = vpop.f32.mrb[103].mxu1 }
 0x20f   : > { %v3461_v23 = vpop.f32.mrb[104].mxu0 }
 0x210   : > { %v3553_v62 = vadd.f32 %v3461_v23, %v3234_v15  ;;  %v3463_v19 = vpop.f32.mrb[105].mxu0 }
 0x211   : > { %v3554_v32 = vadd.f32 %v3463_v19, %v3235_v0  ;;  %v3465_v42 = vpop.f32.mrb[106].mxu0 }
 0x212   : > { %v3466_v14 = vpop.f32.mrb[107].mxu0 }
 0x213   : > { %v3502_v35 = vpop.f32.mrb[104].mxu1 }
 0x214   : > { %v3555_v55 = vadd.f32 %v3502_v35, %v3236_v29  ;;  %v3504_v9 = vpop.f32.mrb[105].mxu1 }
 0x215   : > { %v3556_v44 = vadd.f32 %v3504_v9, %v3237_v38  ;;  %v3506_v37 = vpop.f32.mrb[106].mxu1 }
 0x216   : > { %v3507_v28 = vpop.f32.mrb[107].mxu1 }
 0x217   : > { %v3543_v49 = vpop.f32.mrb[108].mxu0 }
 0x218   : > { %v3557_v36 = vadd.f32 %v3543_v49, %v3238_v26  ;;  %v5550_v13 = vpop.f32.mrb[109].mxu0 }
 0x219   : > { %v3546_v58 = vpop.f32.mrb[110].mxu0 }
 0x21a   : > { %v5551_v1 = vpop.f32.mrb[111].mxu0 }
 0x21b   : > { %v3697_v50 = vpop.f32.mrb[108].mxu1 }
 0x21c   : > { %v3867_v46 = vadd.f32 %v3697_v50, %v3549_v33  ;;  %v3699_v30 = vpop.f32.mrb[109].mxu1 }
 0x21d   : > { %v3868_v61 = vadd.f32 %v3699_v30, %v3550_v53  ;;  %v3701_v39 = vpop.f32.mrb[110].mxu1 }
 0x21e   : > { %v3702_v41 = vpop.f32.mrb[111].mxu1 }
 0x21f   : > { %v3738_v21 = vpop.f32.mrb[112].mxu0 }
 0x220   : > { %v3869_v60 = vadd.f32 %v3738_v21, %v3551_v56  ;;  %v3740_v11 = vpop.f32.mrb[113].mxu0 }
 0x221   : > { %v3870_v22 = vadd.f32 %v3740_v11, %v3552_v2  ;;  %v3742_v17 = vpop.f32.mrb[114].mxu0 }
 0x222   : > { %v3743_v54 = vpop.f32.mrb[115].mxu0 }
 0x223   : > { %v3779_v25 = vpop.f32.mrb[112].mxu1 }
 0x224   : > { %v3871_v3 = vadd.f32 %v3779_v25, %v3553_v62  ;;  %v3781_v27 = vpop.f32.mrb[113].mxu1 }
 0x225   : > { %v3872_v24 = vadd.f32 %v3781_v27, %v3554_v32  ;;  %v3783_v48 = vpop.f32.mrb[114].mxu1 }
 0x226   : > { %v3784_v52 = vpop.f32.mrb[115].mxu1 }
 0x227   : > { %v3820_v5 = vpop.f32.mrb[116].mxu0 }
 0x228   : > { %v3873_v15 = vadd.f32 %v3820_v5, %v3555_v55  ;;  %v3822_v47 = vpop.f32.mrb[117].mxu0 }
 0x229   : > { %v3874_v0 = vadd.f32 %v3822_v47, %v3556_v44  ;;  %v3824_v51 = vpop.f32.mrb[118].mxu0 }
 0x22a   : > { %v3825_v4 = vpop.f32.mrb[119].mxu0 }
 0x22b   : > { %v3861_v12 = vpop.f32.mrb[116].mxu1 }
 0x22c   : > { %v3875_v29 = vadd.f32 %v3861_v12, %v3557_v36  ;;  %v5556_v7 = vpop.f32.mrb[117].mxu1 }
 0x22d   : > { %v3864_v38 = vpop.f32.mrb[118].mxu1 }
 0x22e   : > { %v5557_v8 = vpop.f32.mrb[119].mxu1 }
 0x22f   : > { %v4015_v6 = vpop.f32.mrb[120].mxu0 }
 0x230   : > { %v4185_v40 = vadd.f32 %v4015_v6, %v3867_v46  ;;  %v4017_v26 = vpop.f32.mrb[121].mxu0 }
 0x231   : > { %v4186_v45 = vadd.f32 %v4017_v26, %v3868_v61  ;;  %v4019_v18 = vpop.f32.mrb[122].mxu0 }
 0x232   : > { %v4020_v43 = vpop.f32.mrb[123].mxu0 }
 0x233   : > { %v4056_v31 = vpop.f32.mrb[120].mxu1 }
 0x234   : > { %v4187_v33 = vadd.f32 %v4056_v31, %v3869_v60  ;;  %v4058_v34 = vpop.f32.mrb[121].mxu1 }
 0x235   : > { %v4188_v53 = vadd.f32 %v4058_v34, %v3870_v22  ;;  %v4060_v20 = vpop.f32.mrb[122].mxu1 }
 0x236   : > { %v4061_v16 = vpop.f32.mrb[123].mxu1 }
 0x237   : > { %v4097_v59 = vpop.f32.mrb[124].mxu0 }
 0x238   : > { %v4189_v56 = vadd.f32 %v4097_v59, %v3871_v3  ;;  %v4099_v63 = vpop.f32.mrb[125].mxu0 }
 0x239   : > { %v4190_v2 = vadd.f32 %v4099_v63, %v3872_v24  ;;  %v4101_v57 = vpop.f32.mrb[126].mxu0 }
 0x23a   : > { %v4102_v10 = vpop.f32.mrb[127].mxu0 }
 0x23b   : > { %v4138_v23 = vpop.f32.mrb[124].mxu1 }
 0x23c   : > { %v4191_v62 = vadd.f32 %v4138_v23, %v3873_v15  ;;  %v4140_v19 = vpop.f32.mrb[125].mxu1 }
 0x23d   : > { %v4192_v32 = vadd.f32 %v4140_v19, %v3874_v0  ;;  %v4142_v42 = vpop.f32.mrb[126].mxu1 }
 0x23e   : > { %v4143_v14 = vpop.f32.mrb[127].mxu1 }
 0x23f   : > { %v4179_v35 = vpop.f32.mrb[128].mxu0 }
 0x240   : > { %v4193_v55 = vadd.f32 %v4179_v35, %v3875_v29  ;;  %v5562_v9 = vpop.f32.mrb[129].mxu0  ;;  %v6984_v35 = vpop.permute.xlu0 %5151 }
 0x241   : > { %v4182_v44 = vpop.f32.mrb[130].mxu0 }
 0x242   : > { %v5563_v37 = vpop.f32.mrb[131].mxu0 }
 0x243   : > { %v4333_v28 = vpop.f32.mrb[128].mxu1 }
 0x244   : > { %v4503_v49 = vadd.f32 %v4333_v28, %v4185_v40  ;;  %v4335_v36 = vpop.f32.mrb[129].mxu1 }
 0x245   : > { %v4504_v13 = vadd.f32 %v4335_v36, %v4186_v45  ;;  %v4337_v58 = vpop.f32.mrb[130].mxu1 }
 0x246   : > { %v4338_v1 = vpop.f32.mrb[131].mxu1 }
 0x247   : > { %v4374_v50 = vpop.f32.mrb[132].mxu0 }
 0x248   : > { %v4505_v46 = vadd.f32 %v4374_v50, %v4187_v33  ;;  %v4376_v30 = vpop.f32.mrb[133].mxu0 }
 0x249   : > { %v4506_v61 = vadd.f32 %v4376_v30, %v4188_v53  ;;  %v4378_v39 = vpop.f32.mrb[134].mxu0 }
 0x24a   : > { %v4379_v41 = vpop.f32.mrb[135].mxu0 }
 0x24b   : > { %v4415_v21 = vpop.f32.mrb[132].mxu1 }
 0x24c   : > { %v4507_v60 = vadd.f32 %v4415_v21, %v4189_v56  ;;  %v4417_v11 = vpop.f32.mrb[133].mxu1 }
 0x24d   : > { %v4508_v22 = vadd.f32 %v4417_v11, %v4190_v2  ;;  %v4419_v17 = vpop.f32.mrb[134].mxu1 }
 0x24e   : > { %v4420_v54 = vpop.f32.mrb[135].mxu1 }
 0x24f   : > { %v4456_v25 = vpop.f32.mrb[136].mxu0 }
 0x250   : > { %v4509_v3 = vadd.f32 %v4456_v25, %v4191_v62  ;;  %v4458_v27 = vpop.f32.mrb[137].mxu0 }
 0x251   : > { %v4510_v24 = vadd.f32 %v4458_v27, %v4192_v32  ;;  %v4460_v48 = vpop.f32.mrb[138].mxu0 }
 0x252   : > { %v4461_v52 = vpop.f32.mrb[139].mxu0 }
 0x253   : > { %v4497_v5 = vpop.f32.mrb[136].mxu1 }
 0x254   : > { %v4511_v15 = vadd.f32 %v4497_v5, %v4193_v55  ;;  %v5568_v47 = vpop.f32.mrb[137].mxu1 }
 0x255   : > { %v4500_v0 = vpop.f32.mrb[138].mxu1 }
 0x256   : > { %v5569_v51 = vpop.f32.mrb[139].mxu1 }
 0x257   : > { %v4651_v4 = vpop.f32.mrb[140].mxu0 }
 0x258   : > { %v4821_v12 = vadd.f32 %v4651_v4, %v4503_v49  ;;  %v4653_v29 = vpop.f32.mrb[141].mxu0 }
 0x259   : > { %v4822_v7 = vadd.f32 %v4653_v29, %v4504_v13  ;;  %v4655_v38 = vpop.f32.mrb[142].mxu0 }
 0x25a   : > { %v4656_v8 = vpop.f32.mrb[143].mxu0 }
 0x25b   : > { %v4692_v6 = vpop.f32.mrb[140].mxu1 }
 0x25c   : > { %v4823_v40 = vadd.f32 %v4692_v6, %v4505_v46  ;;  %v4694_v26 = vpop.f32.mrb[141].mxu1 }
 0x25d   : > { %v4824_v45 = vadd.f32 %v4694_v26, %v4506_v61  ;;  %v4696_v18 = vpop.f32.mrb[142].mxu1 }
 0x25e   : > { %v4697_v43 = vpop.f32.mrb[143].mxu1 }
 0x25f   : > { %v4733_v31 = vpop.f32.mrb[144].mxu0 }
 0x260   : > { %v4825_v33 = vadd.f32 %v4733_v31, %v4507_v60  ;;  %v4735_v34 = vpop.f32.mrb[145].mxu0 }
 0x261   : > { %v4826_v53 = vadd.f32 %v4735_v34, %v4508_v22  ;;  %v4737_v20 = vpop.f32.mrb[146].mxu0 }
 0x262   : > { %v4738_v16 = vpop.f32.mrb[147].mxu0 }
 0x263   : > { %v4774_v59 = vpop.f32.mrb[144].mxu1 }
 0x264   : > { %v4827_v56 = vadd.f32 %v4774_v59, %v4509_v3  ;;  %v4776_v63 = vpop.f32.mrb[145].mxu1 }
 0x265   : > { %v4828_v2 = vadd.f32 %v4776_v63, %v4510_v24  ;;  %v4778_v57 = vpop.f32.mrb[146].mxu1 }
 0x266   : > { %v4779_v10 = vpop.f32.mrb[147].mxu1 }
 0x267   : > { %v4815_v23 = vpop.f32.mrb[148].mxu0 }
 0x268   : > { %v6982_v62 = vadd.f32 %v4815_v23, %v4511_v15  ;;  %v5574_v19 = vpop.f32.mrb[149].mxu0 }
 0x269   : > { %v4818_v32 = vpop.f32.mrb[150].mxu0 }
 0x26a   : > { %v5575_v42 = vpop.f32.mrb[151].mxu0 }
 0x26b   : > { %v4969_v14 = vpop.f32.mrb[148].mxu1 }
 0x26c   : > { %v5139_v55 = vadd.f32 %v4969_v14, %v4821_v12  ;;  %v4971_v9 = vpop.f32.mrb[149].mxu1 }
 0x26d   : > { %v5140_v44 = vadd.f32 %v4971_v9, %v4822_v7  ;;  %v4973_v37 = vpop.f32.mrb[150].mxu1 }
 0x26e   : > { %v5154_v28 = vadd.f32 %v6984_v35, %v5139_v55  ;;  %v4974_v49 = vpop.f32.mrb[151].mxu1 }
 0x26f   : > { %v5155_v36 = vadd.f32 %v6984_v35, %v5140_v44  ;;  %v5010_v13 = vpop.f32.mrb[152].mxu0 }
 0x270   : > { %vm5163_vm7 = vcmp.gt.f32.partialorder %v5154_v28, 0.0  ;;  %v5172_v58 = vmul.f32 0.2, %v5154_v28  ;;  %v5141_v1 = vadd.f32 %v5010_v13, %v4823_v40  ;;  %v5012_v50 = vpop.f32.mrb[153].mxu0 }
 0x271   : > { %vm5164_vm8 = vcmp.gt.f32.partialorder %v5155_v36, 0.0  ;;  %v5173_v46 = vmul.f32 0.2, %v5155_v36  ;;  %v5142_v30 = vadd.f32 %v5012_v50, %v4824_v45  ;;  %v5014_v61 = vpop.f32.mrb[154].mxu0 }
 0x272   : > { %v5181_v39 = vsel %vm5163_vm7, %v5154_v28, %v5172_v58  ;;  %v5156_v41 = vadd.f32 %v6984_v35, %v5141_v1  ;;  %v5015_v21 = vpop.f32.mrb[155].mxu0 }
 0x273   : > { %v5182_v60 = vsel %vm5164_vm8, %v5155_v36, %v5173_v46  ;;  %v5157_v11 = vadd.f32 %v6984_v35, %v5142_v30  ;;  %v5051_v22 = vpop.f32.mrb[152].mxu1 }
 0x274   : > { %vm5165_vm9 = vcmp.gt.f32.partialorder %v5156_v41, 0.0  ;;  %v5174_v17 = vmul.f32 0.2, %v5156_v41  ;;  %v5449_v54 = vpack.c.bf16 %v5182_v60, %v5181_v39  ;;  %v5143_v25 = vadd.f32 %v5051_v22, %v4825_v33  ;;  %v5053_v3 = vpop.f32.mrb[153].mxu1 }
 0x275   : > { %vm5166_vm10 = vcmp.gt.f32.partialorder %v5157_v11, 0.0  ;;  %v5175_v27 = vmul.f32 0.2, %v5157_v11  ;;  %v5144_v24 = vadd.f32 %v5053_v3, %v4826_v53  ;;  %v5055_v48 = vpop.f32.mrb[154].mxu1 }
 0x276   : > { %v5183_v52 = vsel %vm5165_vm9, %v5156_v41, %v5174_v17  ;;  %5227 = vst [vmem:[%s6993_s6] sm:$0xff] %v5449_v54  ;;  %v5158_v5 = vadd.f32 %v6984_v35, %v5143_v25  ;;  %v5056_v15 = vpop.f32.mrb[155].mxu1 }
 0x277   : > { %v5184_v47 = vsel %vm5166_vm10, %v5157_v11, %v5175_v27  ;;  %v5159_v0 = vadd.f32 %v6984_v35, %v5144_v24  ;;  %v5092_v51 = vpop.f32.mrb[156].mxu0 }
 0x278   : > { %v5450_v4 = vpack.c.bf16 %v5184_v47, %v5183_v52  ;;  %vm5167_vm11 = vcmp.gt.f32.partialorder %v5158_v5, 0.0  ;;  %v5176_v12 = vmul.f32 0.2, %v5158_v5  ;;  %v5145_v29 = vadd.f32 %v5092_v51, %v4827_v56  ;;  %v5094_v7 = vpop.f32.mrb[157].mxu0 }
 0x279   : > { %vm5168_vm12 = vcmp.gt.f32.partialorder %v5159_v0, 0.0  ;;  %v5177_v38 = vmul.f32 0.2, %v5159_v0  ;;  %v5146_v8 = vadd.f32 %v5094_v7, %v4828_v2  ;;  %v5096_v6 = vpop.f32.mrb[158].mxu0 }
 0x27a   : > { %5228 = vst [vmem:[%s6993_s6 + $0x8] sm:$0xff] %v5450_v4  ;;  %v5185_v40 = vsel %vm5167_vm11, %v5158_v5, %v5176_v12  ;;  %v5160_v26 = vadd.f32 %v6984_v35, %v5145_v29  ;;  %v5097_v45 = vpop.f32.mrb[159].mxu0 }
 0x27b   : > { %v5186_v18 = vsel %vm5168_vm12, %v5159_v0, %v5177_v38  ;;  %v5161_v43 = vadd.f32 %v6984_v35, %v5146_v8  ;;  %v5133_v31 = vpop.f32.mrb[156].mxu1 }
 0x27c   : > { %v5451_v33 = vpack.c.bf16 %v5186_v18, %v5185_v40  ;;  %vm5169_vm13 = vcmp.gt.f32.partialorder %v5160_v26, 0.0  ;;  %v5178_v34 = vmul.f32 0.2, %v5160_v26  ;;  %v5147_v53 = vadd.f32 %v5133_v31, %v6982_v62  ;;  %v5580_v20 = vpop.f32.mrb[157].mxu1 }
 0x27d   : > { %vm5170_vm14 = vcmp.gt.f32.partialorder %v5161_v43, 0.0  ;;  %v5179_v16 = vmul.f32 0.2, %v5161_v43  ;;  %v5136_v59 = vpop.f32.mrb[158].mxu1 }
 0x27e   : > { %5229 = vst [vmem:[%s6993_s6 + $0x10] sm:$0xff] %v5451_v33  ;;  %v5187_v56 = vsel %vm5169_vm13, %v5160_v26, %v5178_v34  ;;  %v5162_v63 = vadd.f32 %v6984_v35, %v5147_v53  ;;  %v5581_v2 = vpop.f32.mrb[159].mxu1 }
 0x27f   : > { %v5188_v57 = vsel %vm5170_vm14, %v5161_v43, %v5179_v16 }
 0x280   : > { %v5452_v10 = vpack.c.bf16 %v5188_v57, %v5187_v56  ;;  %vm5171_vm15 = vcmp.gt.f32.partialorder %v5162_v63, 0.0  ;;  %v5180_v23 = vmul.f32 0.2, %v5162_v63 }
 0x282   : > { %5230 = vst [vmem:[%s6993_s6 + $0x18] sm:$0xff] %v5452_v10  ;;  %v5189_v19 = vsel %vm5171_vm15, %v5162_v63, %v5180_v23 }
 0x283   : > { %v5453_v32 = vpack.c.bf16 %v5189_v19, %v5189_v19 }
 0x285   : > { %5232 = vst.msk [vmem:[%s6993_s6 + $0x20] sm:$0xf] %vm5231_vm0, %v5453_v32 }
 0x286 PF: > { %s13_s12 = sadd.s32 1, %s5619_s12  }
 0x287   : > { %p10_p4 = scmp.ge.s32.totalorder %s13_s12, 4  }
 0x289   :  { %12 = sbr.rel (!%p10_p4) target bundleno = 1 (0x1), region = 80 }

// kernel: resnet_discriminator.8
= control target key start
LH: loop header
LB: loop body
LE: loop exit
PB: predicated region body
PF: predicated region fallthrough
CT: control target
= control target key end

     0   :  { %s2034_s18 = smov 0   ;;  %s2313_s0 = inlined_call_operand.vmem [shape: bf16[2,4,8,290], index: 0, kind: input, shape index: {}]   ;;  %s2314_s1 = inlined_call_operand.vmem [shape: bf16[9,16,8], index: 1, kind: input, shape index: {}]   ;;  %s2315_s2 = inlined_call_operand.vmem [shape: bf16[16,8], index: 2, kind: input, shape index: {}]   ;;  %s2316_s3 = inlined_call_operand.vmem [shape: f32[1,272], index: 3, kind: input, shape index: {}]   ;;  %s2317_s4 = inlined_call_operand.vmem [shape: bf16[2,16,272], index: 4, kind: output, shape index: {0}]   ;;  %s2318_s5 = inlined_call_operand.vmem [shape: bf16[2,16,272], index: 5, kind: output, shape index: {1}]  }
   0x1 LB: > { %s1694_s19 = sadd.s32 4294967295, %s1996_s18   ;;  %p1698_p0 = scmp.ge.s32.totalorder %s1996_s18, 1  ;;  %s1996_s18 = sphi %s2034_s18, %s16_s18  }
   0x2   : > { %p190_p1 = scmp.lt.s32.totalorder %s1996_s18, 3 }
   0x4   : > { %p191_p2 = pnand %p1698_p0, %p190_p1 }
   0x5   : > { %p223_p3 = scmp.lt.s32.totalorder (!%p191_p2), %s1694_s19, 1  ;;  %v1998_v0 = vmov (!%p191_p2), 0.0   ;;  %vm1999_vm0 = vmmov (!%p191_p2), 0   ;;  %v2000_v1 = vmov (!%p191_p2), 0   ;;  %vm267_vm1 = vcmask (!%p191_p2), 1043456   ;;  %s2001_s24 = smov (!%p191_p2), 127  }
   0x6   : > { %194 = sbr.rel (%p191_p2) target bundleno = 761 (0x2f9), region = 36  ;;  %1819 = vmatprep.subr.bf16.mxu1 (!%p191_p2), %v1998_v0  ;;  %1821 = vmatprep.mubr.msk.bf16.mxu1 (!%p191_p2), %vm1999_vm0, %v1998_v0  ;;  %v1968_v12 = vld [vmem:[%s2314_s1 + $0x8] sm:$0xff] (!%p191_p2)   ;;  %vm263_vm2 = vcmask (!%p191_p2), 64512   ;;  %s2002_s27 = smov (!%p191_p2), 111   ;;  %v1969_v19 = vld [vmem:[%s2314_s1] sm:$0xff] (!%p191_p2)   ;;  %v1970_v23 = vld [vmem:[%s2314_s1 + $0x10] sm:$0xff] (!%p191_p2)  }
   0x7   : > { %309 = vmatprep.mubr.bf16.mxu0 (!%p191_p2), %v2000_v1  ;;  %s2003_s30 = smov (!%p191_p2), 110   ;;  %vm484_vm3 = vcmask (!%p191_p2), 1039360   ;;  %v1971_v33 = vld [vmem:[%s2314_s1 + $0x18] sm:$0xff] (!%p191_p2)   ;;  %v1973_v41 = vld [vmem:[%s2314_s1 + $0x20] sm:$0xff] (!%p191_p2)   ;;  %vm963_vm4 = vcmask (!%p191_p2), 908288   ;;  %v1976_v49 = vld [vmem:[%s2314_s1 + $0x28] sm:$0xff] (!%p191_p2)  }
   0x8   : > { %v1977_v57 = vld [vmem:[%s2314_s1 + $0x30] sm:$0xff] (!%p191_p2)   ;;  %vm1200_vm5 = vcmask (!%p191_p2), 900096   ;;  %vm1328_vm6 = vcmask (!%p191_p2), 130048   ;;  %vm1407_vm7 = vcmask (!%p191_p2), 125952  }
   0xd   : > { %s2320_s19 = smov (!%p223_p3, %s1694_s19), 1 }
   0xe   : > { %s1943_s20 = smul.u32 48, %s2320_s19 }
   0xf   : > { %s1944_s26 = smul.u32 24, %s2320_s19 }
  0x10   : > { %s2052_s23 = scalar_lea.vmem %s2313_s0, %s1943_s20 }
  0x11   : > { %v1959_v2 = vld [vmem:[%s2052_s23 + $0x8] ss:$0 sps:$4 sm:$0xff]   ;;  %v240_v3 = vld [vmem:[%s2052_s23] sm:$0xff]  ;;  %v1726_v5 = vld [vmem:[%s2052_s23 + $0x18] sm:$0xff]  ;;  %s232_s29 = scalar_lea.vmem %s2317_s4, %s1944_s26  ;;  %s237_s7 = scalar_lea.vmem %s2318_s5, %s1944_s26 }
  0x12   : > { %v1714_v4 = vcombine.low %v240_v3, %v240_v3  ;;  %482 = vrot.lane.b32.xlu1 %v1959_v2, %s2001_s24  ;;  %v2057_v6 = vcombine.low %v1726_v5, %v1726_v5  ;;  %v1702_v7 = vld [vmem:[%s2052_s23 + $0xc] sm:$0xff]  ;;  %v1966_v8 = vld [vmem:[%s2052_s23 + $0x14] ss:$0 sps:$4 sm:$0xff]   ;;  %v1715_v9 = vcombine.high %v240_v3, %v240_v3  ;;  %v1963_v13 = vld [vmem:[%s2052_s23 + $0x20] ss:$0 sps:$4 sm:$0xff]   ;;  %v384_v16 = vsel %vm267_vm1, %v1959_v2, 0 }
  0x13   : > { %v1707_v10 = vcombine.low %v1702_v7, %v1702_v7  ;;  %v1708_v11 = vcombine.high %v1702_v7, %v1702_v7  ;;  %v275_v14 = vsel %vm267_vm1, %v1966_v8, 0  ;;  %v1732_v17 = vcombine.high %v1726_v5, %v1726_v5  ;;  %v1737_v28 = vld [vmem:[%s2052_s23 + $0x24] sm:$0xff]  ;;  %v1972_v32 = vld [vmem:[%s2052_s23 + $0x2c] ss:$0 sps:$4 sm:$0xff]   ;;  %v1978_v3 = vld [vmem:[%s2314_s1 + $0x38] sm:$0xff]  }
  0x14   : > { %478 = vrot.lane.b32.xlu0 %v1714_v4, %s2001_s24  ;;  %1820 = vmatpush3.bf16.msra.mxu1 %v275_v14  ;;  %v378_v18 = vsel %vm267_vm1, %v1714_v4, 0  ;;  %v618_v24 = vsel %vm267_vm1, %v1963_v13, 0  ;;  %v612_v30 = vsel %vm267_vm1, %v2057_v6, 0  ;;  %v2105_v31 = vcombine.high %v1737_v28, %v1737_v28  ;;  %v1980_v7 = vld [vmem:[%s2052_s23 + $0x2c] ss:$0 sps:$4 sm:$0xff]  }
  0x15   : > { %1710 = vmatprep.subr.msk.bf16.mxu0 %vm267_vm1, %v1708_v11  ;;  %v269_v15 = vsel %vm267_vm1, %v1707_v10, 0  ;;  %1825 = vmatprep.subr.bf16.mxu1 %v1998_v0  ;;  %v739_v35 = vsel %vm267_vm1, %v1972_v32, 0  ;;  %v1742_v36 = vcombine.low %v1737_v28, %v1737_v28 }
  0x16   : > { %839 = vrot.lane.b32.xlu1 %v2057_v6, %s2001_s24  ;;  %278 = vmatpush1.bf16.msra.mxu0 %v269_v15 }
  0x17   : > { %1822 = vmatmul.mubr.msk.bf16.vlgmr.msra.gmra.mrb[0].mxu1 %vm263_vm2, %v1968_v12  ;;  %1717 = vmatprep.subr.msk.bf16.mxu0 %vm267_vm1, %v1715_v9  ;;  %v2121_v39 = vsel %vm267_vm1, %v1742_v36, 0 }
  0x18   : > { %480 = vrot.lane.b32.xlu0 %v1715_v9, %s2001_s24  ;;  %1826 = vmatpush3.bf16.msra.mxu1 %v384_v16 }
  0x19   : > { %1711 = vmatmul.mubr.msk.bf16.vlgmr.msra.gmra.mrb[0].mxu0 %vm263_vm2, %v1968_v12  ;;  %1827 = vmatprep.mubr.msk.bf16.mxu1 %vm1999_vm0, %v1998_v0 }
  0x1a   : > { %843 = vrot.lane.b32.xlu1 %v1963_v13, %s2001_s24  ;;  %387 = vmatpush1.bf16.msra.mxu0 %v378_v18 }
  0x1b   : > { %418 = vmatprep.mubr.bf16.mxu0 %v2000_v1  ;;  %1831 = vmatprep.subr.bf16.mxu1 %v1998_v0 }
  0x1c   : > { %841 = vrot.lane.b32.xlu0 %v1732_v17, %s2001_s24 }
  0x1e   : > { %959 = vrot.lane.b32.xlu1 %v1715_v9, %s2002_s27 }
  0x20   : > { %957 = vrot.lane.b32.xlu0 %v1714_v4, %s2002_s27 }
  0x22   : > { %1076 = vrot.lane.b32.xlu1 %v1707_v10, %s2002_s27  ;;  %v1981_v10 = vld [vmem:[%s2315_s2] sm:$0xff]  }
  0x23   : > { %1828 = vmatmul.mubr.msk.bf16.vlgmr.msra.gmra.mrb[0].mxu1 %vm263_vm2, %v1969_v19 }
  0x24   : > { %961 = vrot.lane.b32.xlu0 %v1959_v2, %s2002_s27  ;;  %1833 = vmatprep.mubr.msk.bf16.mxu1 %vm1999_vm0, %v1998_v0 }
  0x25   : > { %1718 = vmatmul.mubr.msk.bf16.vlgmr.msra.gmra.mrb[0].mxu0 %vm263_vm2, %v1969_v19 }
  0x26   : > { %1080 = vrot.lane.b32.xlu1 %v1966_v8, %s2002_s27  ;;  %531 = vmatprep.mubr.bf16.mxu0 %v2000_v1  ;;  %v1979_v8 = vld [vmem:[%s2314_s1 + $0x40] sm:$0xff]  }
  0x28   : > { %1078 = vrot.lane.b32.xlu0 %v1708_v11, %s2002_s27  ;;  %v1306_v11 = vlaneseq }
  0x2a   : > { %1196 = vrot.lane.b32.xlu1 %v1715_v9, %s2003_s30  ;;  %v1438_v9 = vsel %vm267_vm1, %v1980_v7, 0  ;;  %v1307_v12 = vshrl.u32 %v1306_v11, 7 }
  0x2c   : > { %1194 = vrot.lane.b32.xlu0 %v1714_v4, %s2003_s30  ;;  %v1316_v13 = vsub.s32 2, %v1307_v12  ;;  %v1308_v14 = vsub.s32 0, %v1307_v12  ;;  %v1312_v16 = vsub.s32 1, %v1307_v12 }
  0x30   : > { %1198 = vrot.lane.b32.xlu0 %v1959_v2, %s2003_s30 }
  0x84   : > { %v483_v20 = vpop.permute.xlu1 %482 }
  0x85   : > { %v497_v21 = vsel %vm267_vm1, %v483_v20, 0 }
  0x86   : > { %v479_v22 = vpop.permute.xlu0 %478  ;;  %1832 = vmatpush3.bf16.msra.mxu1 %v497_v21 }
  0x87   : > { %1837 = vmatprep.subr.bf16.mxu1 %v1998_v0 }
  0x88   : > { %v840_v34 = vpop.permute.xlu1 %839 }
  0x89   : > { %1834 = vmatmul.mubr.msk.bf16.vlgmr.msra.gmra.mrb[0].mxu1 %vm263_vm2, %v1970_v23 }
  0x8a   : > { %v481_v25 = vpop.permute.xlu0 %480  ;;  %1838 = vmatpush3.bf16.msra.mxu1 %v618_v24  ;;  %1839 = vmatprep.mubr.msk.bf16.mxu1 %vm1999_vm0, %v1998_v0 }
  0x8b   : > { %v485_v26 = vsel %vm484_vm3, %v479_v22, %v481_v25  ;;  %v486_v27 = vsel %vm484_vm3, %v481_v25, %v483_v20  ;;  %1843 = vmatprep.subr.bf16.mxu1 %v1998_v0 }
  0x8c   : > { %v491_v29 = vsel %vm267_vm1, %v485_v26, 0  ;;  %1723 = vmatprep.subr.msk.bf16.mxu0 %vm267_vm1, %v486_v27  ;;  %v844_v37 = vpop.permute.xlu1 %843 }
  0x8d   : > { %500 = vmatpush1.bf16.msra.mxu0 %v491_v29  ;;  %v857_v43 = vsel %vm267_vm1, %v844_v37, 0 }
  0x8e   : > { %1734 = vmatprep.subr.msk.bf16.mxu0 %vm267_vm1, %v1732_v17  ;;  %v842_v38 = vpop.permute.xlu0 %841 }
  0x8f   : > { %v846_v40 = vsel %vm484_vm3, %v842_v38, %v844_v37  ;;  %v845_v44 = vsel %vm484_vm3, %v840_v34, %v842_v38 }
  0x90   : > { %1724 = vmatmul.mubr.msk.bf16.vlgmr.msra.gmra.mrb[0].mxu0 %vm263_vm2, %v1970_v23  ;;  %v960_v45 = vpop.permute.xlu1 %959  ;;  %v851_v47 = vsel %vm267_vm1, %v845_v44, 0 }
  0x91   : > { %621 = vmatpush1.bf16.msra.mxu0 %v612_v30  ;;  %652 = vmatprep.mubr.bf16.mxu0 %v2000_v1 }
  0x92   : > { %1745 = vmatprep.subr.msk.bf16.mxu0 %vm267_vm1, %v2105_v31  ;;  %v958_v42 = vpop.permute.xlu0 %957 }
  0x93   : > { %v964_v52 = vsel %vm963_vm4, %v958_v42, %v960_v45 }
  0x94   : > { %v1077_v50 = vpop.permute.xlu1 %1076  ;;  %v970_v55 = vsel %vm267_vm1, %v964_v52, 0 }
  0x95   : > { %1840 = vmatmul.mubr.msk.bf16.vlgmr.msra.gmra.mrb[0].mxu1 %vm263_vm2, %v1971_v33 }
  0x96   : > { %1844 = vmatpush3.bf16.msra.mxu1 %v739_v35  ;;  %1845 = vmatprep.mubr.msk.bf16.mxu1 %vm1999_vm0, %v1998_v0  ;;  %v962_v46 = vpop.permute.xlu0 %961 }
  0x97   : > { %1849 = vmatprep.subr.bf16.mxu1 %v1998_v0  ;;  %v965_v48 = vsel %vm963_vm4, %v960_v45, %v962_v46  ;;  %v976_v51 = vsel %vm267_vm1, %v962_v46, 0 }
  0x98   : > { %v1081_v53 = vpop.permute.xlu1 %1080 }
  0x99   : > { %v1094_v59 = vsel %vm267_vm1, %v1081_v53, 0 }
  0x9a   : > { %v1079_v54 = vpop.permute.xlu0 %1078 }
  0x9b   : > { %v1083_v56 = vsel %vm963_vm4, %v1079_v54, %v1081_v53  ;;  %v1082_v60 = vsel %vm963_vm4, %v1077_v50, %v1079_v54 }
  0x9c   : > { %1735 = vmatmul.mubr.msk.bf16.vlgmr.msra.gmra.mrb[0].mxu0 %vm263_vm2, %v1971_v33  ;;  %v1197_v61 = vpop.permute.xlu1 %1196  ;;  %v1088_v63 = vsel %vm267_vm1, %v1082_v60, 0 }
  0x9d   : > { %742 = vmatpush1.bf16.msra.mxu0 %v2121_v39  ;;  %773 = vmatprep.mubr.bf16.mxu0 %v2000_v1 }
  0x9e   : > { %1751 = vmatprep.subr.msk.bf16.mxu0 %vm267_vm1, %v846_v40  ;;  %v1195_v58 = vpop.permute.xlu0 %1194 }
  0x9f   : > { %v1201_v5 = vsel %vm1200_vm5, %v1195_v58, %v1197_v61 }
  0xa0   : > { %v1207_v6 = vsel %vm267_vm1, %v1201_v5, 0 }
  0xa1   : > { %1846 = vmatmul.mubr.msk.bf16.vlgmr.msra.gmra.mrb[0].mxu1 %vm263_vm2, %v1973_v41 }
  0xa2   : > { %1850 = vmatpush3.bf16.msra.mxu1 %v857_v43  ;;  %1851 = vmatprep.mubr.msk.bf16.mxu1 %vm1999_vm0, %v1998_v0  ;;  %v1199_v62 = vpop.permute.xlu0 %1198 }
  0xa3   : > { %1855 = vmatprep.subr.bf16.mxu1 %v1998_v0  ;;  %v1202_v2 = vsel %vm1200_vm5, %v1197_v61, %v1199_v62  ;;  %v1213_v4 = vsel %vm267_vm1, %v1199_v62, 0 }
  0xa8   : > { %1746 = vmatmul.mubr.msk.bf16.vlgmr.msra.gmra.mrb[0].mxu0 %vm263_vm2, %v1973_v41 }
  0xa9   : > { %860 = vmatpush1.bf16.msra.mxu0 %v851_v47  ;;  %891 = vmatprep.mubr.bf16.mxu0 %v2000_v1 }
  0xaa   : > { %1757 = vmatprep.subr.msk.bf16.mxu0 %vm267_vm1, %v965_v48 }
  0xad   : > { %1852 = vmatmul.mubr.msk.bf16.vlgmr.msra.gmra.mrb[0].mxu1 %vm263_vm2, %v1976_v49 }
  0xae   : > { %1856 = vmatpush3.bf16.msra.mxu1 %v976_v51  ;;  %1857 = vmatprep.mubr.msk.bf16.mxu1 %vm1999_vm0, %v1998_v0 }
  0xaf   : > { %1861 = vmatprep.subr.bf16.mxu1 %v1998_v0 }
  0xb4   : > { %1752 = vmatmul.mubr.msk.bf16.vlgmr.msra.gmra.mrb[0].mxu0 %vm263_vm2, %v1976_v49 }
  0xb5   : > { %979 = vmatpush1.bf16.msra.mxu0 %v970_v55  ;;  %1010 = vmatprep.mubr.bf16.mxu0 %v2000_v1 }
  0xb6   : > { %1763 = vmatprep.subr.msk.bf16.mxu0 %vm267_vm1, %v1083_v56 }
  0xb9   : > { %1858 = vmatmul.mubr.msk.bf16.vlgmr.msra.gmra.mrb[0].mxu1 %vm263_vm2, %v1977_v57 }
  0xba   : > { %1862 = vmatpush3.bf16.msra.mxu1 %v1094_v59  ;;  %1863 = vmatprep.mubr.msk.bf16.mxu1 %vm1999_vm0, %v1998_v0 }
  0xbb   : > { %1867 = vmatprep.subr.bf16.mxu1 %v1998_v0 }
  0xc0   : > { %1758 = vmatmul.mubr.msk.bf16.vlgmr.msra.gmra.mrb[0].mxu0 %vm263_vm2, %v1977_v57 }
  0xc1   : > { %1097 = vmatpush1.bf16.msra.mxu0 %v1088_v63  ;;  %1128 = vmatprep.mubr.bf16.mxu0 %v2000_v1 }
  0xc2   : > { %1769 = vmatprep.subr.msk.bf16.mxu0 %vm267_vm1, %v1202_v2 }
  0xc5   : > { %1864 = vmatmul.mubr.msk.bf16.vlgmr.msra.gmra.mrb[0].mxu1 %vm263_vm2, %v1978_v3 }
  0xc6   : > { %1868 = vmatpush3.bf16.msra.mxu1 %v1213_v4  ;;  %1869 = vmatprep.mubr.msk.bf16.mxu1 %vm1999_vm0, %v1998_v0 }
  0xc7   : > { %1873 = vmatprep.subr.bf16.mxu1 %v1998_v0 }
  0xcc   : > { %1764 = vmatmul.mubr.msk.bf16.vlgmr.msra.gmra.mrb[0].mxu0 %vm263_vm2, %v1978_v3 }
  0xcd   : > { %1216 = vmatpush1.bf16.msra.mxu0 %v1207_v6  ;;  %1247 = vmatprep.mubr.bf16.mxu0 %v2000_v1 }
  0xce   : > { %1782 = vmatprep.subr.msk.bf16.mxu0 %vm267_vm1, %v2105_v31 }
  0xd1   : > { %1870 = vmatmul.mubr.msk.bf16.vlgmr.msra.gmra.mrb[0].mxu1 %vm263_vm2, %v1979_v8 }
  0xd2   : > { %1874 = vmatpush3.bf16.msra.mxu1 %v1438_v9  ;;  %1875 = vmatprep.mubr.msk.bf16.mxu1 %vm1999_vm0, %v1998_v0  ;;  %v239_v0 = vld [vmem:[%s2316_s3] sm:$0x7] }
  0xd3   : > { %v2201_v19 = vrot.slane %v239_v0, %v1316_v13  ;;  %v2205_v21 = vrot.slane %v239_v0, %v1312_v16 }
  0xd8   : > { %1770 = vmatmul.mubr.msk.bf16.vlgmr.msra.gmra.mrb[0].mxu0 %vm263_vm2, %v1979_v8 }
  0xd9   : > { %1441 = vmatpush1.bf16.msra.mxu0 %v2121_v39  ;;  %1472 = vmatprep.mubr.bf16.mxu0 %v2000_v1  ;;  %v2203_v1 = vrot.slane %v239_v0, %v1308_v14 }
  0xda   : > { %1876 = vmatmul.mubr.msk.bf16.vlgmr.msra.gmra.mrb[4].mxu1 %vm263_vm2, %v1981_v10 }
  0xe0   : > { %1783 = vmatmul.mubr.msk.bf16.vlgmr.msra.gmra.mrb[4].mxu0 %vm263_vm2, %v1981_v10 }
 0x1a4   : > { %v1292_v15 = vpop.f32.mrb[0].mxu1 }
 0x1a5   : > { %v1871_v17 = vpop.f32.mrb[1].mxu1  ;;  %v1323_v23 = vmul.f32 %v2201_v19, %v1292_v15 }
 0x1a6   : > { %v1295_v18 = vpop.f32.mrb[2].mxu1 }
 0x1a7   : > { %v1872_v20 = vpop.f32.mrb[3].mxu1  ;;  %v1326_v29 = vmul.f32 %v2201_v19, %v1295_v18  ;;  %v1329_v36 = vsel %vm1328_vm6, %v1323_v23, 0.0 }
 0x1a9   : > { %v1334_v41 = vsel %vm1328_vm6, %v1326_v29, 0.0 }
 0x1ab   : > { %v1249_v22 = vpop.f32.mrb[0].mxu0 }
 0x1ac   : > { %v1321_v24 = vmul.f32 %v2203_v1, %v1249_v22  ;;  %v1251_v25 = vpop.f32.mrb[1].mxu0 }
 0x1ad   : > { %v1322_v26 = vmul.f32 %v2205_v21, %v1251_v25  ;;  %v1253_v27 = vpop.f32.mrb[2].mxu0  ;;  %v2210_v28 = vpop.f32.mrb[4].mxu1 }
 0x1ae   : > { %v1324_v30 = vmul.f32 %v2203_v1, %v1253_v27  ;;  %v1255_v31 = vpop.f32.mrb[3].mxu0  ;;  %v1877_v32 = vpop.f32.mrb[5].mxu1  ;;  %v1526_v40 = vmul.f32 %v2210_v28, %v2201_v19 }
 0x1af   : > { %v1325_v33 = vmul.f32 %v2205_v21, %v1255_v31  ;;  %v1327_v34 = vadd.f32 %v1322_v26, %v1321_v24  ;;  %v2215_v35 = vpop.f32.mrb[6].mxu1 }
 0x1b0   : > { %v1878_v37 = vpop.f32.mrb[7].mxu1  ;;  %v1529_v50 = vmul.f32 %v2215_v35, %v2201_v19  ;;  %v1531_v51 = vsel %vm1328_vm6, %v1526_v40, 0.0 }
 0x1b1   : > { %v1330_v38 = vadd.f32 %v1329_v36, %v1327_v34  ;;  %v1333_v39 = vadd.f32 %v1325_v33, %v1324_v30 }
 0x1b2   : > { %v1536_v56 = vsel %vm1328_vm6, %v1529_v50, 0.0 }
 0x1b3   : > { %1331 = vadd.xlane.f32.xlu1 %v1330_v38  ;;  %v1474_v42 = vpop.f32.mrb[4].mxu0  ;;  %v1335_v43 = vadd.f32 %v1334_v41, %v1333_v39 }
 0x1b4   : > { %v1524_v44 = vmul.f32 %v1474_v42, %v2203_v1  ;;  %v1476_v45 = vpop.f32.mrb[5].mxu0 }
 0x1b5   : > { %v1525_v46 = vmul.f32 %v1476_v45, %v2205_v21  ;;  %v1478_v47 = vpop.f32.mrb[6].mxu0  ;;  %1336 = vadd.xlane.f32.xlu0 %v1335_v43 }
 0x1b6   : > { %v1527_v48 = vmul.f32 %v1478_v47, %v2203_v1  ;;  %v1480_v49 = vpop.f32.mrb[7].mxu0 }
 0x1b7   : > { %v1528_v52 = vmul.f32 %v1480_v49, %v2205_v21  ;;  %v1530_v53 = vadd.f32 %v1525_v46, %v1524_v44 }
 0x1b9   : > { %v1535_v54 = vadd.f32 %v1528_v52, %v1527_v48  ;;  %v1532_v55 = vadd.f32 %v1531_v51, %v1530_v53 }
 0x1bb   : > { %1533 = vadd.xlane.f32.xlu0 %v1532_v55  ;;  %v1537_v57 = vadd.f32 %v1536_v56, %v1535_v54 }
 0x1bd   : > { %1538 = vadd.xlane.f32.xlu1 %v1537_v57 }
 0x240   : > { %v1332_v58 = vpop.xlane.xlu1 %1331 }
 0x241   : > { %v1338_v59 = vmul.f32 0.00390625, %v1332_v58 }
 0x242   : > { %v1337_v60 = vpop.xlane.xlu0 %1336 }
 0x243   : > { %v2229_v61 = vsub.f32 %v1249_v22, %v1338_v59  ;;  %v2231_v62 = vsub.f32 %v1251_v25, %v1338_v59  ;;  %v2233_v63 = vsub.f32 %v1292_v15, %v1338_v59  ;;  %v1339_v2 = vmul.f32 0.00390625, %v1337_v60 }
 0x245   : > { %v2235_v3 = vsub.f32 %v1253_v27, %v1339_v2  ;;  %v2237_v4 = vsub.f32 %v1255_v31, %v1339_v2  ;;  %v2239_v5 = vsub.f32 %v1295_v18, %v1339_v2  ;;  %v1346_v6 = vmul.f32 %v2229_v61, %v2203_v1 }
 0x246   : > { %v1347_v7 = vmul.f32 %v2231_v62, %v2205_v21  ;;  %v1348_v8 = vmul.f32 %v2233_v63, %v2201_v19 }
 0x247   : > { %v1352_v9 = vmul.f32 %v1346_v6, %v1346_v6  ;;  %v1349_v10 = vmul.f32 %v2235_v3, %v2203_v1  ;;  %v1350_v11 = vmul.f32 %v2237_v4, %v2205_v21  ;;  %v1351_v12 = vmul.f32 %v2239_v5, %v2201_v19 }
 0x248   : > { %v1534_v13 = vpop.xlane.xlu0 %1533  ;;  %v1353_v14 = vmul.f32 %v1347_v7, %v1347_v7  ;;  %v1354_v0 = vmul.f32 %v1348_v8, %v1348_v8 }
 0x249   : > { %v1540_v15 = vmul.f32 0.00390625, %v1534_v13  ;;  %v1355_v16 = vmul.f32 %v1349_v10, %v1349_v10  ;;  %v1356_v17 = vmul.f32 %v1350_v11, %v1350_v11  ;;  %v1357_v18 = vmul.f32 %v1351_v12, %v1351_v12 }
 0x24a   : > { %v1539_v20 = vpop.xlane.xlu1 %1538  ;;  %v1358_v22 = vadd.f32 %v1353_v14, %v1352_v9  ;;  %v1359_v23 = vsel %vm1328_vm6, %v1354_v0, 0.0 }
 0x24b   : > { %v2254_v24 = vsub.f32 %v1474_v42, %v1540_v15  ;;  %v2256_v25 = vsub.f32 %v1476_v45, %v1540_v15  ;;  %v2259_v26 = vsub.f32 %v2210_v28, %v1540_v15  ;;  %v1541_v27 = vmul.f32 0.00390625, %v1539_v20 }
 0x24c   : > { %v1360_v29 = vadd.f32 %v1359_v23, %v1358_v22  ;;  %v1363_v30 = vadd.f32 %v1356_v17, %v1355_v16  ;;  %v1364_v31 = vsel %vm1328_vm6, %v1357_v18, 0.0 }
 0x24d   : > { %v2262_v32 = vsub.f32 %v1478_v47, %v1541_v27  ;;  %v2264_v33 = vsub.f32 %v1480_v49, %v1541_v27  ;;  %v2267_v34 = vsub.f32 %v2215_v35, %v1541_v27  ;;  %v1548_v36 = vmul.f32 %v2254_v24, %v2203_v1 }
 0x24e   : > { %1361 = vadd.xlane.f32.xlu0 %v1360_v29  ;;  %v1365_v37 = vadd.f32 %v1364_v31, %v1363_v30  ;;  %v1549_v28 = vmul.f32 %v2256_v25, %v2205_v21  ;;  %v1550_v38 = vmul.f32 %v2259_v26, %v2201_v19 }
 0x24f   : > { %v1554_v39 = vmul.f32 %v1548_v36, %v1548_v36  ;;  %v1551_v40 = vmul.f32 %v2262_v32, %v2203_v1  ;;  %v1552_v41 = vmul.f32 %v2264_v33, %v2205_v21  ;;  %v1553_v35 = vmul.f32 %v2267_v34, %v2201_v19 }
 0x250   : > { %1366 = vadd.xlane.f32.xlu1 %v1365_v37  ;;  %v1555_v42 = vmul.f32 %v1549_v28, %v1549_v28  ;;  %v1556_v43 = vmul.f32 %v1550_v38, %v1550_v38 }
 0x251   : > { %v1557_v44 = vmul.f32 %v1551_v40, %v1551_v40  ;;  %v1558_v45 = vmul.f32 %v1552_v41, %v1552_v41  ;;  %v1559_v46 = vmul.f32 %v1553_v35, %v1553_v35 }
 0x252   : > { %v1560_v47 = vadd.f32 %v1555_v42, %v1554_v39  ;;  %v1561_v48 = vsel %vm1328_vm6, %v1556_v43, 0.0 }
 0x253   : > { %v1565_v49 = vadd.f32 %v1558_v45, %v1557_v44  ;;  %v1566_v50 = vsel %vm1328_vm6, %v1559_v46, 0.0 }
 0x254   : > { %v1562_v51 = vadd.f32 %v1561_v48, %v1560_v47 }
 0x255   : > { %v1567_v1 = vadd.f32 %v1566_v50, %v1565_v49 }
 0x256   : > { %1563 = vadd.xlane.f32.xlu0 %v1562_v51 }
 0x257   : > { %1568 = vadd.xlane.f32.xlu1 %v1567_v1 }
 0x2db   : > { %v1362_v21 = vpop.xlane.xlu0 %1361 }
 0x2dc   : > { %v1368_v52 = vmul.f32 0.00390625, %v1362_v21 }
 0x2dd   : > { %v1367_v19 = vpop.xlane.xlu1 %1366 }
 0x2de   : > { %v1370_v53 = vadd.f32 1e-05, %v1368_v52  ;;  %v1369_v54 = vmul.f32 0.00390625, %v1367_v19 }
 0x2e0   : > { %1982 = vrsqrt.f32 %v1370_v53  ;;  %v1371_v55 = vadd.f32 1e-05, %v1369_v54 }
 0x2e2   : > { %1984 = vrsqrt.f32 %v1371_v55 }
 0x2e3   : > { %v1564_v56 = vpop.xlane.xlu0 %1563 }
 0x2e4   : > { %v1570_v57 = vmul.f32 0.00390625, %v1564_v56  ;;  %v1569_v58 = vpop.xlane.xlu1 %1568 }
 0x2e5   : > { %v1571_v59 = vmul.f32 0.00390625, %v1569_v58 }
 0x2e6   : > { %v1572_v60 = vadd.f32 1e-05, %v1570_v57 }
 0x2e7   : > { %v1573_v2 = vadd.f32 1e-05, %v1571_v59 }
 0x2e8   : > { %1986 = vrsqrt.f32 %v1572_v60 }
 0x2e9   : > { %1988 = vrsqrt.f32 %v1573_v2 }
 0x2ea   : > { %v1983_v6 = vpop.eup %1982 }
 0x2eb   : > { %v1374_v7 = vmul.f32 %v1983_v6, %v2229_v61  ;;  %v1375_v8 = vmul.f32 %v1983_v6, %v2231_v62  ;;  %v1376_v9 = vmul.f32 %v1983_v6, %v2233_v63 }
 0x2ec   : > { %v1985_v10 = vpop.eup %1984 }
 0x2ed   : > { %v1380_v11 = vmax.f32 %v1374_v7, 0.0  ;;  %v1381_v12 = vmax.f32 %v1375_v8, 0.0  ;;  %v1382_v13 = vmax.f32 %v1376_v9, 0.0  ;;  %v1377_v14 = vmul.f32 %v1985_v10, %v2235_v3 }
 0x2ee   : > { %v1378_v0 = vmul.f32 %v1985_v10, %v2237_v4  ;;  %v1379_v61 = vmul.f32 %v1985_v10, %v2239_v5 }
 0x2ef   : > { %v1791_v15 = vpack.c.bf16 %v1381_v12, %v1380_v11  ;;  %v1792_v62 = vpack.c.bf16 %v1382_v13, %v1382_v13  ;;  %v1383_v63 = vmax.f32 %v1377_v14, 0.0 }
 0x2f0   : > { %v1384_v16 = vmax.f32 %v1378_v0, 0.0  ;;  %v1385_v17 = vmax.f32 %v1379_v61, 0.0 }
 0x2f1   : > { %1406 = vst [vmem:[%s232_s29] sm:$0xff] %v1791_v15  ;;  %1408 = vst.msk [vmem:[%s232_s29 + $0x8] sm:$0xf] %vm1407_vm7, %v1792_v62 }
 0x2f2   : > { %v1987_v3 = vpop.eup %1986  ;;  %v1793_v18 = vpack.c.bf16 %v1384_v16, %v1383_v63  ;;  %v1794_v20 = vpack.c.bf16 %v1385_v17, %v1385_v17 }
 0x2f3   : > { %v1989_v22 = vpop.eup %1988  ;;  %v1576_v23 = vmul.f32 %v1987_v3, %v2254_v24  ;;  %v1577_v27 = vmul.f32 %v1987_v3, %v2256_v25  ;;  %v1578_v4 = vmul.f32 %v1987_v3, %v2259_v26 }
 0x2f4   : > { %1409 = vst [vmem:[%s232_s29 + $0xc] sm:$0xff] %v1793_v18  ;;  %1410 = vst.msk [vmem:[%s232_s29 + $0x14] sm:$0xf] %vm1407_vm7, %v1794_v20  ;;  %v1579_v5 = vmul.f32 %v1989_v22, %v2262_v32  ;;  %v1580_v29 = vmul.f32 %v1989_v22, %v2264_v33  ;;  %v1581_v30 = vmul.f32 %v1989_v22, %v2267_v34 }
 0x2f5   : > { %v1795_v31 = vpack.c.bf16 %v1577_v27, %v1576_v23  ;;  %v1796_v24 = vpack.c.bf16 %v1578_v4, %v1578_v4 }
 0x2f6   : > { %v1797_v36 = vpack.c.bf16 %v1580_v29, %v1579_v5  ;;  %v1798_v25 = vpack.c.bf16 %v1581_v30, %v1581_v30 }
 0x2f7   : > { %1602 = vst [vmem:[%s237_s7] sm:$0xff] %v1795_v31  ;;  %1603 = vst.msk [vmem:[%s237_s7 + $0x8] sm:$0xf] %vm1407_vm7, %v1796_v24 }
 0x2f8   : > { %1604 = vst [vmem:[%s237_s7 + $0xc] sm:$0xff] %v1797_v36  ;;  %1605 = vst.msk [vmem:[%s237_s7 + $0x14] sm:$0xf] %vm1407_vm7, %v1798_v25 }
 0x2f9 PF: > { %s16_s18 = sadd.s32 1, %s1996_s18  }
 0x2fa   : > { %p13_p4 = scmp.ge.s32.totalorder %s16_s18, 4  }
 0x2fc   :  { %15 = sbr.rel (!%p13_p4) target bundleno = 1 (0x1), region = 89 }

// kernel: resnet_discriminator.9
= control target key start
LH: loop header
LB: loop body
LE: loop exit
PB: predicated region body
PF: predicated region fallthrough
CT: control target
= control target key end

     0   :  { %s1703_s15 = smov 0   ;;  %s1830_s0 = inlined_call_operand.vmem [shape: bf16[2,1,16,326], index: 0, kind: input, shape index: {}]   ;;  %s1831_s1 = inlined_call_operand.vmem [shape: bf16[9,16,16], index: 1, kind: input, shape index: {}]   ;;  %s1832_s2 = inlined_call_operand.vmem [shape: bf16[2,16,288], index: 2, kind: input, shape index: {}]   ;;  %s1833_s3 = inlined_call_operand.vmem [shape: f32[1,288], index: 3, kind: input, shape index: {}]   ;;  %s1834_s4 = inlined_call_operand.vmem [shape: bf16[2,16,288], index: 4, kind: output, shape index: {}]  }
   0x1 LB: > { %s1422_s16 = sadd.s32 4294967295, %s1665_s15   ;;  %p1426_p0 = scmp.ge.s32.totalorder %s1665_s15, 1  ;;  %s1665_s15 = sphi %s1703_s15, %s14_s15  }
   0x2   : > { %p172_p1 = scmp.lt.s32.totalorder %s1665_s15, 3 }
   0x4   : > { %p173_p2 = pnand %p1426_p0, %p172_p1 }
   0x5   : > { %p203_p3 = scmp.lt.s32.totalorder (!%p173_p2), %s1422_s16, 1  ;;  %v1667_v0 = vmov (!%p173_p2), 0.0   ;;  %vm1668_vm0 = vmmov (!%p173_p2), 0   ;;  %v1669_v1 = vmov (!%p173_p2), 0   ;;  %s1670_s21 = smov (!%p173_p2), 127   ;;  %vm252_vm1 = vcmask (!%p173_p2), 1039360  }
   0x6   : > { %176 = sbr.rel (%p173_p2) target bundleno = 783 (0x30f), region = 36  ;;  %1504 = vmatprep.subr.bf16.mxu1 (!%p173_p2), %v1667_v0  ;;  %1506 = vmatprep.mubr.msk.bf16.mxu1 (!%p173_p2), %vm1668_vm0, %v1667_v0  ;;  %s1671_s22 = smov (!%p173_p2), 126   ;;  %v1646_v8 = vld [vmem:[%s1831_s1 + $0x8] sm:$0xff] (!%p173_p2)   ;;  %vm258_vm2 = vcmask (!%p173_p2), 130048   ;;  %vm455_vm3 = vcmask (!%p173_p2), 1031168   ;;  %v1647_v15 = vld [vmem:[%s1831_s1] sm:$0xff] (!%p173_p2)   ;;  %v1234_v54 = vlaneseq (!%p173_p2) }
   0x7   : > { %294 = vmatprep.mubr.bf16.mxu0 (!%p173_p2), %v1669_v1  ;;  %s1672_s23 = smov (!%p173_p2), 110   ;;  %s1673_s24 = smov (!%p173_p2), 109   ;;  %vm568_vm4 = vcmask (!%p173_p2), 900096   ;;  %v1648_v21 = vld [vmem:[%s1831_s1 + $0x10] sm:$0xff] (!%p173_p2)   ;;  %vm681_vm5 = vcmask (!%p173_p2), 891904   ;;  %v1649_v27 = vld [vmem:[%s1831_s1 + $0x18] sm:$0xff] (!%p173_p2)  }
   0x8   : > { %s1674_s25 = smov (!%p173_p2), 108   ;;  %s1675_s26 = smov (!%p173_p2), 92   ;;  %vm794_vm6 = vcmask (!%p173_p2), 883712   ;;  %v1650_v33 = vld [vmem:[%s1831_s1 + $0x20] sm:$0xff] (!%p173_p2)   ;;  %vm907_vm7 = vcmask (!%p173_p2), 752640   ;;  %v1651_v39 = vld [vmem:[%s1831_s1 + $0x28] sm:$0xff] (!%p173_p2)  }
   0x9   : > { %s1676_s27 = smov (!%p173_p2), 91   ;;  %s1677_s28 = smov (!%p173_p2), 90   ;;  %vm1020_vm8 = vcmask (!%p173_p2), 744448   ;;  %v1652_v45 = vld [vmem:[%s1831_s1 + $0x30] sm:$0xff] (!%p173_p2)   ;;  %vm1133_vm9 = vcmask (!%p173_p2), 736256   ;;  %v1653_v50 = vld [vmem:[%s1831_s1 + $0x38] sm:$0xff] (!%p173_p2)  }
   0xa   : > { %v1654_v53 = vld [vmem:[%s1831_s1 + $0x40] sm:$0xff] (!%p173_p2)   ;;  %v1235_v55 = vshrl.u32 (!%p173_p2), %v1234_v54, 7  ;;  %vm1256_vm10 = vcmask (!%p173_p2), 261120   ;;  %vm1351_vm11 = vcmask (!%p173_p2), 257024  }
   0xb   : > { %v1232_v58 = vld [vmem:[%s1833_s3] sm:$0x7] (!%p173_p2) }
   0xc   : > { %v1244_v56 = vsub.s32 (!%p173_p2), 2, %v1235_v55  ;;  %v1236_v57 = vsub.s32 (!%p173_p2), 0, %v1235_v55  ;;  %v1240_v59 = vsub.s32 (!%p173_p2), 1, %v1235_v55 }
   0xd   : > { %s1836_s16 = smov (!%p203_p3, %s1422_s16), 1 }
   0xe   : > { %s1714_s17 = smul.u32 24, %s1836_s16  ;;  %v1245_v60 = vrot.slane %v1232_v58, %v1244_v56  ;;  %v1237_v61 = vrot.slane %v1232_v58, %v1236_v57  ;;  %v1241_v63 = vrot.slane %v1232_v58, %v1240_v59 }
  0x10   : > { %s207_s20 = scalar_lea.vmem %s1830_s0, %s1714_s17  ;;  %s217_s30 = scalar_lea.vmem %s1834_s4, %s1714_s17 }
  0x11   : > { %v1642_v2 = vld [vmem:[%s207_s20 + $0x4] ss:$12 sps:$4 sm:$0xff]   ;;  %v1644_v3 = vld [vmem:[%s207_s20] ss:$12 sps:$4 sm:$0xff]   ;;  %v1645_v4 = vld [vmem:[%s207_s20 + $0x8] ss:$12 sps:$4 sm:$0xff]  }
  0x12   : > { %248 = vrot.lane.b32.xlu0 %v1642_v2, %s1670_s21  ;;  %246 = vrot.lane.b32.xlu1 %v1644_v3, %s1670_s21 }
  0x16   : > { %250 = vrot.lane.b32.xlu0 %v1645_v4, %s1670_s21  ;;  %451 = vrot.lane.b32.xlu1 %v1642_v2, %s1671_s22 }
  0x1a   : > { %453 = vrot.lane.b32.xlu0 %v1645_v4, %s1671_s22  ;;  %449 = vrot.lane.b32.xlu1 %v1644_v3, %s1671_s22 }
  0x1e   : > { %564 = vrot.lane.b32.xlu0 %v1642_v2, %s1672_s23  ;;  %566 = vrot.lane.b32.xlu1 %v1645_v4, %s1672_s23 }
  0x22   : > { %562 = vrot.lane.b32.xlu0 %v1644_v3, %s1672_s23  ;;  %677 = vrot.lane.b32.xlu1 %v1642_v2, %s1673_s24 }
  0x26   : > { %679 = vrot.lane.b32.xlu0 %v1645_v4, %s1673_s24  ;;  %675 = vrot.lane.b32.xlu1 %v1644_v3, %s1673_s24 }
  0x2a   : > { %790 = vrot.lane.b32.xlu0 %v1642_v2, %s1674_s25  ;;  %792 = vrot.lane.b32.xlu1 %v1645_v4, %s1674_s25 }
  0x2e   : > { %788 = vrot.lane.b32.xlu0 %v1644_v3, %s1674_s25  ;;  %903 = vrot.lane.b32.xlu1 %v1642_v2, %s1675_s26 }
  0x32   : > { %905 = vrot.lane.b32.xlu0 %v1645_v4, %s1675_s26  ;;  %901 = vrot.lane.b32.xlu1 %v1644_v3, %s1675_s26 }
  0x36   : > { %1016 = vrot.lane.b32.xlu0 %v1642_v2, %s1676_s27  ;;  %1018 = vrot.lane.b32.xlu1 %v1645_v4, %s1676_s27 }
  0x3a   : > { %1014 = vrot.lane.b32.xlu0 %v1644_v3, %s1676_s27  ;;  %1129 = vrot.lane.b32.xlu1 %v1642_v2, %s1677_s28  ;;  %s212_s27 = scalar_lea.vmem %s1832_s2, %s1714_s17 }
  0x3b   : > { %v1309_v54 = vld [vmem:[%s212_s27 + $0x8] ss:$12 sps:$4 sm:$0xff]   ;;  %v1310_v59 = vld [vmem:[%s212_s27 + $0xc] sm:$0xff] }
  0x3c   : > { %v1314_v57 = vunpack.c.l.bf16 %v1309_v54 }
  0x3e   : > { %1131 = vrot.lane.b32.xlu0 %v1645_v4, %s1677_s28  ;;  %1127 = vrot.lane.b32.xlu1 %v1644_v3, %s1677_s28 }
  0x84   : > { %v249_v5 = vpop.permute.xlu0 %248  ;;  %v247_v6 = vpop.permute.xlu1 %246 }
  0x85   : > { %v253_v10 = vsel %vm252_vm1, %v247_v6, %v249_v5 }
  0x88   : > { %v251_v7 = vpop.permute.xlu0 %250  ;;  %v452_v11 = vpop.permute.xlu1 %451 }
  0x89   : > { %1505 = vmatpush3.bf16.msra.mxu1 %v251_v7  ;;  %v254_v9 = vsel %vm252_vm1, %v249_v5, %v251_v7 }
  0x8a   : > { %262 = vmatprep.subr.bf16.mxu0 %v254_v9  ;;  %1510 = vmatprep.subr.bf16.mxu1 %v1667_v0 }
  0x8b   : > { %263 = vmatpush1.bf16.msra.mxu0 %v253_v10 }
  0x8c   : > { %1507 = vmatmul.mubr.msk.bf16.vlgmr.msra.gmra.mrb[0].mxu1 %vm258_vm2, %v1646_v8  ;;  %357 = vmatprep.subr.bf16.mxu0 %v1642_v2  ;;  %v454_v12 = vpop.permute.xlu0 %453  ;;  %v450_v14 = vpop.permute.xlu1 %449 }
  0x8d   : > { %1511 = vmatpush3.bf16.msra.mxu1 %v1645_v4  ;;  %1512 = vmatprep.mubr.msk.bf16.mxu1 %vm1668_vm0, %v1667_v0  ;;  %v457_v13 = vsel %vm455_vm3, %v452_v11, %v454_v12  ;;  %v456_v17 = vsel %vm455_vm3, %v450_v14, %v452_v11 }
  0x8e   : > { %1436 = vmatmul.mubr.msk.bf16.vlgmr.msra.gmra.mrb[0].mxu0 %vm258_vm2, %v1646_v8  ;;  %1516 = vmatprep.subr.bf16.mxu1 %v1667_v0 }
  0x8f   : > { %358 = vmatpush1.bf16.msra.mxu0 %v1644_v3  ;;  %389 = vmatprep.mubr.bf16.mxu0 %v1669_v1 }
  0x90   : > { %464 = vmatprep.subr.bf16.mxu0 %v457_v13  ;;  %v567_v16 = vpop.permute.xlu1 %566  ;;  %v565_v18 = vpop.permute.xlu0 %564 }
  0x91   : > { %v570_v19 = vsel %vm568_vm4, %v565_v18, %v567_v16 }
  0x94   : > { %v563_v20 = vpop.permute.xlu0 %562  ;;  %v678_v24 = vpop.permute.xlu1 %677 }
  0x95   : > { %v569_v23 = vsel %vm568_vm4, %v563_v20, %v565_v18 }
  0x98   : > { %1513 = vmatmul.mubr.msk.bf16.vlgmr.msra.gmra.mrb[0].mxu1 %vm258_vm2, %v1647_v15  ;;  %v680_v22 = vpop.permute.xlu0 %679  ;;  %v676_v26 = vpop.permute.xlu1 %675 }
  0x99   : > { %1517 = vmatpush3.bf16.msra.mxu1 %v454_v12  ;;  %1518 = vmatprep.mubr.msk.bf16.mxu1 %vm1668_vm0, %v1667_v0  ;;  %v683_v25 = vsel %vm681_vm5, %v678_v24, %v680_v22  ;;  %v682_v29 = vsel %vm681_vm5, %v676_v26, %v678_v24 }
  0x9a   : > { %1439 = vmatmul.mubr.msk.bf16.vlgmr.msra.gmra.mrb[0].mxu0 %vm258_vm2, %v1647_v15  ;;  %1522 = vmatprep.subr.bf16.mxu1 %v1667_v0 }
  0x9b   : > { %465 = vmatpush1.bf16.msra.mxu0 %v456_v17  ;;  %496 = vmatprep.mubr.bf16.mxu0 %v1669_v1 }
  0x9c   : > { %577 = vmatprep.subr.bf16.mxu0 %v570_v19  ;;  %v793_v28 = vpop.permute.xlu1 %792  ;;  %v791_v30 = vpop.permute.xlu0 %790 }
  0x9d   : > { %v796_v31 = vsel %vm794_vm6, %v791_v30, %v793_v28 }
  0xa0   : > { %v789_v32 = vpop.permute.xlu0 %788  ;;  %v904_v36 = vpop.permute.xlu1 %903 }
  0xa1   : > { %v795_v35 = vsel %vm794_vm6, %v789_v32, %v791_v30 }
  0xa4   : > { %1519 = vmatmul.mubr.msk.bf16.vlgmr.msra.gmra.mrb[0].mxu1 %vm258_vm2, %v1648_v21  ;;  %v906_v34 = vpop.permute.xlu0 %905  ;;  %v902_v38 = vpop.permute.xlu1 %901 }
  0xa5   : > { %1523 = vmatpush3.bf16.msra.mxu1 %v567_v16  ;;  %1524 = vmatprep.mubr.msk.bf16.mxu1 %vm1668_vm0, %v1667_v0  ;;  %v909_v37 = vsel %vm907_vm7, %v904_v36, %v906_v34  ;;  %v908_v41 = vsel %vm907_vm7, %v902_v38, %v904_v36 }
  0xa6   : > { %1444 = vmatmul.mubr.msk.bf16.vlgmr.msra.gmra.mrb[0].mxu0 %vm258_vm2, %v1648_v21  ;;  %1528 = vmatprep.subr.bf16.mxu1 %v1667_v0 }
  0xa7   : > { %578 = vmatpush1.bf16.msra.mxu0 %v569_v23  ;;  %609 = vmatprep.mubr.bf16.mxu0 %v1669_v1 }
  0xa8   : > { %690 = vmatprep.subr.bf16.mxu0 %v683_v25  ;;  %v1019_v40 = vpop.permute.xlu1 %1018  ;;  %v1017_v42 = vpop.permute.xlu0 %1016 }
  0xa9   : > { %v1022_v43 = vsel %vm1020_vm8, %v1017_v42, %v1019_v40 }
  0xac   : > { %v1015_v44 = vpop.permute.xlu0 %1014  ;;  %v1130_v48 = vpop.permute.xlu1 %1129 }
  0xad   : > { %v1021_v47 = vsel %vm1020_vm8, %v1015_v44, %v1017_v42 }
  0xb0   : > { %1525 = vmatmul.mubr.msk.bf16.vlgmr.msra.gmra.mrb[0].mxu1 %vm258_vm2, %v1649_v27  ;;  %v1132_v46 = vpop.permute.xlu0 %1131  ;;  %v1128_v51 = vpop.permute.xlu1 %1127 }
  0xb1   : > { %1529 = vmatpush3.bf16.msra.mxu1 %v680_v22  ;;  %1530 = vmatprep.mubr.msk.bf16.mxu1 %vm1668_vm0, %v1667_v0  ;;  %v1135_v49 = vsel %vm1133_vm9, %v1130_v48, %v1132_v46  ;;  %v1134_v52 = vsel %vm1133_vm9, %v1128_v51, %v1130_v48 }
  0xb2   : > { %1449 = vmatmul.mubr.msk.bf16.vlgmr.msra.gmra.mrb[0].mxu0 %vm258_vm2, %v1649_v27  ;;  %1534 = vmatprep.subr.bf16.mxu1 %v1667_v0 }
  0xb3   : > { %691 = vmatpush1.bf16.msra.mxu0 %v682_v29  ;;  %722 = vmatprep.mubr.bf16.mxu0 %v1669_v1 }
  0xb4   : > { %803 = vmatprep.subr.bf16.mxu0 %v796_v31 }
  0xbc   : > { %1531 = vmatmul.mubr.msk.bf16.vlgmr.msra.gmra.mrb[0].mxu1 %vm258_vm2, %v1650_v33 }
  0xbd   : > { %1535 = vmatpush3.bf16.msra.mxu1 %v793_v28  ;;  %1536 = vmatprep.mubr.msk.bf16.mxu1 %vm1668_vm0, %v1667_v0 }
  0xbe   : > { %1454 = vmatmul.mubr.msk.bf16.vlgmr.msra.gmra.mrb[0].mxu0 %vm258_vm2, %v1650_v33  ;;  %1540 = vmatprep.subr.bf16.mxu1 %v1667_v0 }
  0xbf   : > { %804 = vmatpush1.bf16.msra.mxu0 %v795_v35  ;;  %835 = vmatprep.mubr.bf16.mxu0 %v1669_v1 }
  0xc0   : > { %916 = vmatprep.subr.bf16.mxu0 %v909_v37 }
  0xc8   : > { %1537 = vmatmul.mubr.msk.bf16.vlgmr.msra.gmra.mrb[0].mxu1 %vm258_vm2, %v1651_v39 }
  0xc9   : > { %1541 = vmatpush3.bf16.msra.mxu1 %v906_v34  ;;  %1542 = vmatprep.mubr.msk.bf16.mxu1 %vm1668_vm0, %v1667_v0 }
  0xca   : > { %1459 = vmatmul.mubr.msk.bf16.vlgmr.msra.gmra.mrb[0].mxu0 %vm258_vm2, %v1651_v39  ;;  %1546 = vmatprep.subr.bf16.mxu1 %v1667_v0 }
  0xcb   : > { %917 = vmatpush1.bf16.msra.mxu0 %v908_v41  ;;  %948 = vmatprep.mubr.bf16.mxu0 %v1669_v1 }
  0xcc   : > { %1029 = vmatprep.subr.bf16.mxu0 %v1022_v43 }
  0xd4   : > { %1543 = vmatmul.mubr.msk.bf16.vlgmr.msra.gmra.mrb[0].mxu1 %vm258_vm2, %v1652_v45 }
  0xd5   : > { %1547 = vmatpush3.bf16.msra.mxu1 %v1019_v40  ;;  %1548 = vmatprep.mubr.msk.bf16.mxu1 %vm1668_vm0, %v1667_v0 }
  0xd6   : > { %1464 = vmatmul.mubr.msk.bf16.vlgmr.msra.gmra.mrb[0].mxu0 %vm258_vm2, %v1652_v45  ;;  %1552 = vmatprep.subr.bf16.mxu1 %v1667_v0 }
  0xd7   : > { %1030 = vmatpush1.bf16.msra.mxu0 %v1021_v47  ;;  %1061 = vmatprep.mubr.bf16.mxu0 %v1669_v1 }
  0xd8   : > { %1142 = vmatprep.subr.bf16.mxu0 %v1135_v49 }
  0xe0   : > { %1549 = vmatmul.mubr.msk.bf16.vlgmr.msra.gmra.mrb[0].mxu1 %vm258_vm2, %v1653_v50 }
  0xe1   : > { %1553 = vmatpush3.bf16.msra.mxu1 %v1132_v46  ;;  %1554 = vmatprep.mubr.msk.bf16.mxu1 %vm1668_vm0, %v1667_v0 }
  0xe2   : > { %1469 = vmatmul.mubr.msk.bf16.vlgmr.msra.gmra.mrb[0].mxu0 %vm258_vm2, %v1653_v50 }
  0xe3   : > { %1143 = vmatpush1.bf16.msra.mxu0 %v1134_v52  ;;  %1174 = vmatprep.mubr.bf16.mxu0 %v1669_v1 }
  0xec   : > { %1555 = vmatmul.mubr.msk.bf16.vlgmr.msra.gmra.mrb[0].mxu1 %vm258_vm2, %v1654_v53 }
  0xee   : > { %1474 = vmatmul.mubr.msk.bf16.vlgmr.msra.gmra.mrb[0].mxu0 %vm258_vm2, %v1654_v53  ;;  %v1308_v53 = vld [vmem:[%s212_s27] sm:$0xff] }
  0xef   : > { %v1312_v55 = vunpack.c.l.bf16 %v1308_v53  ;;  %v1313_v56 = vunpack.c.h.bf16 %v1308_v53 }
 0x1bf   : > { %v1219_v62 = vpop.f32.mrb[0].mxu1 }
 0x1c0   : > { %v1556_v0 = vpop.f32.mrb[1].mxu1  ;;  %v1251_v3 = vmul.f32 %v1245_v60, %v1219_v62 }
 0x1c1   : > { %v1176_v1 = vpop.f32.mrb[0].mxu0  ;;  %v1222_v2 = vpop.f32.mrb[2].mxu1 }
 0x1c2   : > { %v1249_v4 = vmul.f32 %v1237_v61, %v1176_v1  ;;  %v1178_v5 = vpop.f32.mrb[1].mxu0  ;;  %v1557_v6 = vpop.f32.mrb[3].mxu1  ;;  %v1254_v9 = vmul.f32 %v1245_v60, %v1222_v2  ;;  %v1257_v14 = vsel %vm1256_vm10, %v1251_v3, 0.0 }
 0x1c3   : > { %v1250_v7 = vmul.f32 %v1241_v63, %v1178_v5  ;;  %v1180_v8 = vpop.f32.mrb[2].mxu0 }
 0x1c4   : > { %v1252_v10 = vmul.f32 %v1237_v61, %v1180_v8  ;;  %v1182_v11 = vpop.f32.mrb[3].mxu0  ;;  %v1262_v17 = vsel %vm1256_vm10, %v1254_v9, 0.0 }
 0x1c5   : > { %v1253_v12 = vmul.f32 %v1241_v63, %v1182_v11  ;;  %v1255_v13 = vadd.f32 %v1250_v7, %v1249_v4  ;;  %v1316_v4 = vunpack.c.h.bf16 %v1310_v59 }
 0x1c7   : > { %v1261_v15 = vadd.f32 %v1253_v12, %v1252_v10  ;;  %v1258_v16 = vadd.f32 %v1257_v14, %v1255_v13 }
 0x1c9   : > { %1259 = vadd.xlane.f32.xlu0 %v1258_v16  ;;  %v1263_v18 = vadd.f32 %v1262_v17, %v1261_v15 }
 0x1cb   : > { %1264 = vadd.xlane.f32.xlu1 %v1263_v18 }
 0x256   : > { %v1260_v19 = vpop.xlane.xlu0 %1259 }
 0x257   : > { %v1266_v20 = vmul.f32 0.00390625, %v1260_v19 }
 0x258   : > { %v1265_v21 = vpop.xlane.xlu1 %1264 }
 0x259   : > { %v1268_v22 = vsub.f32 %v1176_v1, %v1266_v20  ;;  %v1269_v23 = vsub.f32 %v1178_v5, %v1266_v20  ;;  %v1270_v24 = vsub.f32 %v1219_v62, %v1266_v20  ;;  %v1267_v25 = vmul.f32 0.00390625, %v1265_v21 }
 0x25a   : > { %v1317_v5 = vunpack.c.h.bf16 %v1309_v54 }
 0x25b   : > { %v1271_v26 = vsub.f32 %v1180_v8, %v1267_v25  ;;  %v1272_v27 = vsub.f32 %v1182_v11, %v1267_v25  ;;  %v1273_v28 = vsub.f32 %v1222_v2, %v1267_v25  ;;  %v1274_v29 = vmul.f32 %v1268_v22, %v1237_v61 }
 0x25c   : > { %v1275_v30 = vmul.f32 %v1269_v23, %v1241_v63  ;;  %v1276_v31 = vmul.f32 %v1270_v24, %v1245_v60  ;;  %v1315_v2 = vunpack.c.l.bf16 %v1310_v59 }
 0x25d   : > { %v1280_v32 = vmul.f32 %v1274_v29, %v1274_v29  ;;  %v1277_v33 = vmul.f32 %v1271_v26, %v1237_v61  ;;  %v1278_v34 = vmul.f32 %v1272_v27, %v1241_v63  ;;  %v1279_v35 = vmul.f32 %v1273_v28, %v1245_v60 }
 0x25e   : > { %v1281_v36 = vmul.f32 %v1275_v30, %v1275_v30  ;;  %v1282_v37 = vmul.f32 %v1276_v31, %v1276_v31 }
 0x25f   : > { %v1283_v38 = vmul.f32 %v1277_v33, %v1277_v33  ;;  %v1284_v39 = vmul.f32 %v1278_v34, %v1278_v34  ;;  %v1285_v40 = vmul.f32 %v1279_v35, %v1279_v35 }
 0x260   : > { %v1286_v41 = vadd.f32 %v1281_v36, %v1280_v32  ;;  %v1287_v42 = vsel %vm1256_vm10, %v1282_v37, 0.0 }
 0x261   : > { %v1291_v44 = vadd.f32 %v1284_v39, %v1283_v38  ;;  %v1292_v45 = vsel %vm1256_vm10, %v1285_v40, 0.0 }
 0x262   : > { %v1288_v43 = vadd.f32 %v1287_v42, %v1286_v41 }
 0x263   : > { %v1293_v46 = vadd.f32 %v1292_v45, %v1291_v44 }
 0x264   : > { %1289 = vadd.xlane.f32.xlu0 %v1288_v43 }
 0x268   : > { %1294 = vadd.xlane.f32.xlu0 %v1293_v46 }
 0x2f1   : > { %v1290_v47 = vpop.xlane.xlu0 %1289 }
 0x2f2   : > { %v1296_v48 = vmul.f32 0.00390625, %v1290_v47 }
 0x2f4   : > { %v1298_v49 = vadd.f32 1e-05, %v1296_v48 }
 0x2f5   : > { %v1295_v50 = vpop.xlane.xlu0 %1294 }
 0x2f6   : > { %1655 = vrsqrt.f32 %v1298_v49  ;;  %v1297_v51 = vmul.f32 0.00390625, %v1295_v50 }
 0x2f8   : > { %v1299_v52 = vadd.f32 1e-05, %v1297_v51 }
 0x2fa   : > { %1657 = vrsqrt.f32 %v1299_v52 }
 0x300   : > { %v1656_v58 = vpop.eup %1655 }
 0x301   : > { %v1302_v60 = vmul.f32 %v1656_v58, %v1268_v22  ;;  %v1303_v61 = vmul.f32 %v1656_v58, %v1269_v23  ;;  %v1304_v62 = vmul.f32 %v1656_v58, %v1270_v24 }
 0x303   : > { %v1318_v63 = vadd.f32 %v1312_v55, %v1302_v60  ;;  %v1319_v0 = vadd.f32 %v1313_v56, %v1303_v61  ;;  %v1320_v1 = vadd.f32 %v1314_v57, %v1304_v62 }
 0x304   : > { %v1658_v3 = vpop.eup %1657 }
 0x305   : > { %v1324_v6 = vmax.f32 %v1318_v63, 0.0  ;;  %v1325_v7 = vmax.f32 %v1319_v0, 0.0  ;;  %v1326_v8 = vmax.f32 %v1320_v1, 0.0  ;;  %v1305_v9 = vmul.f32 %v1658_v3, %v1271_v26 }
 0x306   : > { %v1306_v10 = vmul.f32 %v1658_v3, %v1272_v27  ;;  %v1307_v11 = vmul.f32 %v1658_v3, %v1273_v28 }
 0x307   : > { %v1482_v12 = vpack.c.bf16 %v1325_v7, %v1324_v6  ;;  %v1483_v13 = vpack.c.bf16 %v1326_v8, %v1326_v8  ;;  %v1321_v14 = vadd.f32 %v1315_v2, %v1305_v9 }
 0x308   : > { %v1322_v15 = vadd.f32 %v1316_v4, %v1306_v10  ;;  %v1323_v16 = vadd.f32 %v1317_v5, %v1307_v11 }
 0x309   : > { %1350 = vst [vmem:[%s217_s30] sm:$0xff] %v1482_v12  ;;  %1352 = vst.msk [vmem:[%s217_s30 + $0x8] sm:$0xf] %vm1351_vm11, %v1483_v13  ;;  %v1327_v17 = vmax.f32 %v1321_v14, 0.0 }
 0x30a   : > { %v1328_v18 = vmax.f32 %v1322_v15, 0.0  ;;  %v1329_v19 = vmax.f32 %v1323_v16, 0.0 }
 0x30c   : > { %v1484_v20 = vpack.c.bf16 %v1328_v18, %v1327_v17  ;;  %v1485_v21 = vpack.c.bf16 %v1329_v19, %v1329_v19 }
 0x30e   : > { %1353 = vst [vmem:[%s217_s30 + $0xc] sm:$0xff] %v1484_v20  ;;  %1354 = vst.msk [vmem:[%s217_s30 + $0x14] sm:$0xf] %vm1351_vm11, %v1485_v21 }
 0x30f PF: > { %s14_s15 = sadd.s32 1, %s1665_s15  }
 0x310   : > { %p11_p4 = scmp.ge.s32.totalorder %s14_s15, 4  }
 0x312   :  { %13 = sbr.rel (!%p11_p4) target bundleno = 1 (0x1), region = 77 }

// kernel: resnet_discriminator.10
= control target key start
LH: loop header
LB: loop body
LE: loop exit
PB: predicated region body
PF: predicated region fallthrough
CT: control target
= control target key end

     0   :  { %s1618_s18 = smov 0   ;;  %s1824_s0 = inlined_call_operand.vmem [shape: bf16[2,4,16,82], index: 0, kind: input, shape index: {}]   ;;  %s1825_s1 = inlined_call_operand.vmem [shape: bf16[9,32,16], index: 1, kind: input, shape index: {}]   ;;  %s1826_s2 = inlined_call_operand.vmem [shape: bf16[32,16], index: 2, kind: input, shape index: {}]   ;;  %s1827_s3 = inlined_call_operand.vmem [shape: f32[1,72], index: 3, kind: input, shape index: {}]   ;;  %s1828_s4 = inlined_call_operand.vmem [shape: bf16[2,32,72], index: 4, kind: output, shape index: {0}]   ;;  %s1829_s5 = inlined_call_operand.vmem [shape: bf16[2,32,72], index: 5, kind: output, shape index: {1}]  }
   0x1 LB: > { %s1285_s19 = sadd.s32 4294967295, %s1583_s18   ;;  %p1289_p0 = scmp.ge.s32.totalorder %s1583_s18, 1  ;;  %s1583_s18 = sphi %s1618_s18, %s16_s18  }
   0x2   : > { %p190_p1 = scmp.lt.s32.totalorder %s1583_s18, 3 }
   0x4   : > { %p191_p2 = pnand %p1289_p0, %p190_p1 }
   0x5   : > { %p223_p3 = scmp.lt.s32.totalorder (!%p191_p2), %s1285_s19, 1  ;;  %v1539_v0 = vld [vmem:[%s1825_s1 + $0x10] sm:$0xff] (!%p191_p2)   ;;  %vm270_vm0 = vcmask (!%p191_p2), 130048   ;;  %v1543_v1 = vld [vmem:[%s1825_s1 + $0x40] sm:$0xff] (!%p191_p2)   ;;  %s1585_s28 = smov (!%p191_p2), 127   ;;  %v1540_v6 = vld [vmem:[%s1825_s1 + $0x18] sm:$0xff] (!%p191_p2)  }
   0x6   : > { %194 = sbr.rel (%p191_p2) target bundleno = 715 (0x2cb), region = 36  ;;  %1435 = vmatprep.mubr.msk.bf16.mxu1 (!%p191_p2), %vm270_vm0, %v1539_v0  ;;  %1459 = vmatprep.mubr.msk.bf16.mxu0 (!%p191_p2), %vm270_vm0, %v1543_v1  ;;  %v1542_v7 = vld [vmem:[%s1825_s1] sm:$0xff] (!%p191_p2)   ;;  %s1586_s8 = smov (!%p191_p2), 119   ;;  %v1545_v8 = vld [vmem:[%s1825_s1 + $0x48] sm:$0xff] (!%p191_p2)   ;;  %v1547_v9 = vld [vmem:[%s1825_s1 + $0x50] sm:$0xff] (!%p191_p2)   ;;  %vm958_vm1 = vcmask (!%p191_p2), 588800  }
   0x7   : > { %s1587_s13 = smov (!%p191_p2), 118   ;;  %v1544_v10 = vld [vmem:[%s1825_s1 + $0x8] sm:$0xff] (!%p191_p2)   ;;  %v1546_v11 = vld [vmem:[%s1825_s1 + $0x20] sm:$0xff] (!%p191_p2)   ;;  %v1549_v14 = vld [vmem:[%s1825_s1 + $0x58] sm:$0xff] (!%p191_p2)   ;;  %vm1035_vm2 = vcmask (!%p191_p2), 584704  }
   0x8   : > { %v1548_v15 = vld [vmem:[%s1825_s1 + $0x28] sm:$0xff] (!%p191_p2)   ;;  %v1550_v16 = vld [vmem:[%s1825_s1 + $0x30] sm:$0xff] (!%p191_p2)   ;;  %v1551_v18 = vld [vmem:[%s1825_s1 + $0x60] sm:$0xff] (!%p191_p2)  }
   0x9   : > { %v1553_v21 = vld [vmem:[%s1825_s1 + $0x68] sm:$0xff] (!%p191_p2)   ;;  %v1552_v22 = vld [vmem:[%s1825_s1 + $0x38] sm:$0xff] (!%p191_p2)   ;;  %v1555_v23 = vld [vmem:[%s1826_s2] sm:$0xff] (!%p191_p2)  }
   0xa   : > { %v1557_v24 = vld [vmem:[%s1825_s1 + $0x70] sm:$0xff] (!%p191_p2)   ;;  %v1556_v26 = vld [vmem:[%s1826_s2 + $0x8] sm:$0xff] (!%p191_p2)   ;;  %v1558_v27 = vld [vmem:[%s1825_s1 + $0x78] sm:$0xff] (!%p191_p2)  }
   0xb   : > { %v1559_v28 = vld [vmem:[%s1825_s1 + $0x80] sm:$0xff] (!%p191_p2)   ;;  %v1560_v29 = vld [vmem:[%s1825_s1 + $0x88] sm:$0xff] (!%p191_p2)  }
   0xc   : > { %v1722_v34 = vld [vmem:[%s1827_s3] ss:$0 sm:$0xff] (!%p191_p2) }
   0xd   : > { %s1831_s19 = smov (!%p223_p3, %s1285_s19), 1 }
   0xe   : > { %s1392_s22 = sshll.u32 %s1831_s19, 5  ;;  %s1393_s23 = sshll.u32 %s1831_s19, 4 }
   0xf   : > { %s1639_s27 = scalar_lea.vmem %s1824_s0, %s1392_s22  ;;  %s1795_s26 = scalar_lea.vmem %s1829_s5, %s1393_s23 }
  0x10   : > { %v1536_v2 = vld [vmem:[%s1639_s27 + $0x10] sm:$0xff]   ;;  %v1537_v3 = vld [vmem:[%s1639_s27] sm:$0xff]   ;;  %v1538_v4 = vld [vmem:[%s1639_s27 + $0x8] sm:$0xff]   ;;  %s232_s30 = scalar_lea.vmem %s1828_s4, %s1393_s23 }
  0x11   : > { %655 = vrot.lane.b32.xlu0 %v1536_v2, %s1585_s28  ;;  %412 = vrot.lane.b32.xlu1 %v1537_v3, %s1585_s28  ;;  %v1541_v5 = vld [vmem:[%s1639_s27 + $0x18] sm:$0xff]  }
  0x12   : > { %1433 = vmatprep.subr.bf16.mxu1 %v1538_v4  ;;  %1457 = vmatprep.subr.bf16.mxu0 %v1541_v5  ;;  %v1554_v19 = vld [vmem:[%s1639_s27 + $0x18] sm:$0xff]  }
  0x13   : > { %1434 = vmatpush3.bf16.msra.mxu1 %v1538_v4  ;;  %1458 = vmatpush3.bf16.msra.mxu0 %v1541_v5 }
  0x14   : > { %1439 = vmatprep.subr.bf16.mxu1 %v1537_v3 }
  0x15   : > { %732 = vrot.lane.b32.xlu0 %v1537_v3, %s1586_s8  ;;  %809 = vrot.lane.b32.xlu1 %v1538_v4, %s1586_s8 }
  0x16   : > { %1436 = vmatmul.mubr.msk.bf16.vlgmr.msra.gmra.mrb[0].mxu1 %vm270_vm0, %v1540_v6  ;;  %1460 = vmatmul.mubr.msk.bf16.vlgmr.msra.gmra.mrb[0].mxu0 %vm270_vm0, %v1545_v8 }
  0x17   : > { %1440 = vmatpush3.bf16.msra.mxu1 %v1537_v3  ;;  %1441 = vmatprep.mubr.msk.bf16.mxu1 %vm270_vm0, %v1542_v7 }
  0x18   : > { %1465 = vmatprep.mubr.msk.bf16.mxu0 %vm270_vm0, %v1547_v9 }
  0x19   : > { %886 = vrot.lane.b32.xlu0 %v1537_v3, %s1587_s13 }
  0x22   : > { %1442 = vmatmul.mubr.msk.bf16.vlgmr.msra.gmra.mrb[0].mxu1 %vm270_vm0, %v1544_v10 }
  0x23   : > { %1447 = vmatprep.mubr.msk.bf16.mxu1 %vm270_vm0, %v1546_v11 }
  0x83   : > { %v656_v12 = vpop.permute.xlu0 %655  ;;  %v413_v13 = vpop.permute.xlu1 %412 }
  0x84   : > { %1463 = vmatprep.subr.bf16.mxu0 %v656_v12  ;;  %1445 = vmatprep.subr.bf16.mxu1 %v413_v13 }
  0x85   : > { %1464 = vmatpush3.bf16.msra.mxu0 %v656_v12  ;;  %1446 = vmatpush3.bf16.msra.mxu1 %v413_v13 }
  0x86   : > { %1451 = vmatprep.subr.bf16.mxu1 %v1536_v2 }
  0x87   : > { %v733_v17 = vpop.permute.xlu0 %732  ;;  %v810_v20 = vpop.permute.xlu1 %809 }
  0x88   : > { %1466 = vmatmul.mubr.msk.bf16.vlgmr.msra.gmra.mrb[0].mxu0 %vm270_vm0, %v1549_v14  ;;  %1469 = vmatprep.subr.bf16.mxu0 %v733_v17 }
  0x89   : > { %1448 = vmatmul.mubr.msk.bf16.vlgmr.msra.gmra.mrb[0].mxu1 %vm270_vm0, %v1548_v15  ;;  %1470 = vmatpush3.bf16.msra.mxu0 %v733_v17 }
  0x8a   : > { %1452 = vmatpush3.bf16.msra.mxu1 %v1536_v2  ;;  %1453 = vmatprep.mubr.msk.bf16.mxu1 %vm270_vm0, %v1550_v16 }
  0x8b   : > { %1471 = vmatprep.mubr.msk.bf16.mxu0 %vm270_vm0, %v1551_v18  ;;  %1487 = vmatprep.subr.bf16.mxu1 %v1554_v19  ;;  %v887_v25 = vpop.permute.xlu0 %886 }
  0x8c   : > { %1475 = vmatprep.subr.bf16.mxu0 %v810_v20 }
  0x94   : > { %1472 = vmatmul.mubr.msk.bf16.vlgmr.msra.gmra.mrb[0].mxu0 %vm270_vm0, %v1553_v21 }
  0x95   : > { %1454 = vmatmul.mubr.msk.bf16.vlgmr.msra.gmra.mrb[0].mxu1 %vm270_vm0, %v1552_v22  ;;  %1476 = vmatpush3.bf16.msra.mxu0 %v810_v20 }
  0x96   : > { %1488 = vmatpush3.bf16.msra.mxu1 %v1554_v19  ;;  %1489 = vmatprep.mubr.msk.bf16.mxu1 %vm270_vm0, %v1555_v23 }
  0x97   : > { %1477 = vmatprep.mubr.msk.bf16.mxu0 %vm270_vm0, %v1557_v24  ;;  %1481 = vmatprep.subr.bf16.mxu0 %v887_v25 }
  0x9d   : > { %1490 = vmatmul.mubr.msk.bf16.vlgmr.msra.gmra.mrb[4].mxu1 %vm270_vm0, %v1556_v26 }
  0xa0   : > { %1478 = vmatmul.mubr.msk.bf16.vlgmr.msra.gmra.mrb[0].mxu0 %vm270_vm0, %v1558_v27 }
  0xa1   : > { %1482 = vmatpush3.bf16.msra.mxu0 %v887_v25  ;;  %1483 = vmatprep.mubr.msk.bf16.mxu0 %vm270_vm0, %v1559_v28 }
  0xac   : > { %1484 = vmatmul.mubr.msk.bf16.vlgmr.msra.gmra.mrb[0].mxu0 %vm270_vm0, %v1560_v29 }
 0x168   : > { %v1455_v30 = vpop.f32.mrb[0].mxu1 }
 0x169   : > { %v538_v31 = vpop.f32.mrb[1].mxu1 }
 0x16a   : > { %v1456_v32 = vpop.f32.mrb[2].mxu1 }
 0x16b   : > { %v541_v33 = vpop.f32.mrb[3].mxu1 }
 0x170   : > { %v1724_v35 = vpop.f32.mrb[4].mxu1 }
 0x171   : > { %v1102_v36 = vpop.f32.mrb[5].mxu1  ;;  %v1119_v58 = vmul.f32 %v1724_v35, %v1722_v34 }
 0x172   : > { %v1117_v37 = vmul.f32 %v1722_v34, %v1102_v36  ;;  %v1727_v38 = vpop.f32.mrb[6].mxu1 }
 0x173   : > { %v1105_v39 = vpop.f32.mrb[7].mxu1  ;;  %v1120_v59 = vmul.f32 %v1727_v38, %v1722_v34  ;;  %v1127_v61 = vsel %vm958_vm1, %v1119_v58, 0.0 }
 0x174   : > { %v1118_v40 = vmul.f32 %v1722_v34, %v1105_v39  ;;  %v1121_v41 = vsel %vm958_vm1, %v1117_v37, 0.0 }
 0x175   : > { %1122 = vadd.xlane.f32.xlu0 %v1121_v41  ;;  %v1130_v62 = vsel %vm958_vm1, %v1120_v59, 0.0 }
 0x176   : > { %v1124_v42 = vsel %vm958_vm1, %v1118_v40, 0.0 }
 0x177   : > { %1125 = vadd.xlane.f32.xlu1 %v1124_v42 }
 0x17f   : > { %v1485_v43 = vpop.f32.mrb[0].mxu0 }
 0x180   : > { %v1493_v44 = vadd.f32 %v1485_v43, %v1455_v30  ;;  %v929_v45 = vpop.f32.mrb[1].mxu0 }
 0x181   : > { %v1494_v46 = vadd.f32 %v929_v45, %v538_v31  ;;  %v1486_v47 = vpop.f32.mrb[2].mxu0 }
 0x182   : > { %v1495_v48 = vadd.f32 %v1486_v47, %v1456_v32  ;;  %v932_v49 = vpop.f32.mrb[3].mxu0  ;;  %v956_v50 = vmul.f32 %v1493_v44, %v1722_v34 }
 0x183   : > { %v1496_v51 = vadd.f32 %v932_v49, %v541_v33  ;;  %v954_v52 = vmul.f32 %v1494_v46, %v1722_v34 }
 0x184   : > { %v965_v53 = vsel %vm958_vm1, %v956_v50, 0.0  ;;  %v957_v56 = vmul.f32 %v1495_v48, %v1722_v34 }
 0x185   : > { %966 = vadd.xlane.f32.xlu0 %v965_v53  ;;  %v959_v54 = vsel %vm958_vm1, %v954_v52, 0.0  ;;  %v955_v55 = vmul.f32 %v1496_v51, %v1722_v34 }
 0x186   : > { %960 = vadd.xlane.f32.xlu1 %v959_v54  ;;  %v968_v60 = vsel %vm958_vm1, %v957_v56, 0.0 }
 0x187   : > { %v962_v57 = vsel %vm958_vm1, %v955_v55, 0.0 }
 0x189   : > { %963 = vadd.xlane.f32.xlu0 %v962_v57 }
 0x18a   : > { %969 = vadd.xlane.f32.xlu1 %v968_v60 }
 0x18d   : > { %1128 = vadd.xlane.f32.xlu0 %v1127_v61 }
 0x18e   : > { %1131 = vadd.xlane.f32.xlu1 %v1130_v62 }
 0x202   : > { %v1123_v63 = vpop.xlane.xlu0 %1122 }
 0x203   : > { %v1133_v0 = vmul.f32 0.015625, %v1123_v63 }
 0x204   : > { %v1126_v1 = vpop.xlane.xlu1 %1125 }
 0x205   : > { %v1746_v2 = vsub.f32 %v1102_v36, %v1133_v0  ;;  %v1134_v3 = vmul.f32 0.015625, %v1126_v1 }
 0x207   : > { %v1748_v4 = vsub.f32 %v1105_v39, %v1134_v3  ;;  %v1141_v5 = vmul.f32 %v1722_v34, %v1746_v2 }
 0x209   : > { %v1145_v6 = vmul.f32 %v1141_v5, %v1141_v5  ;;  %v1142_v7 = vmul.f32 %v1722_v34, %v1748_v4 }
 0x20b   : > { %v1149_v8 = vsel %vm958_vm1, %v1145_v6, 0.0  ;;  %v1146_v9 = vmul.f32 %v1142_v7, %v1142_v7 }
 0x20c   : > { %1150 = vadd.xlane.f32.xlu0 %v1149_v8 }
 0x20d   : > { %v1152_v10 = vsel %vm958_vm1, %v1146_v9, 0.0 }
 0x20e   : > { %1153 = vadd.xlane.f32.xlu1 %v1152_v10 }
 0x212   : > { %v967_v11 = vpop.xlane.xlu0 %966 }
 0x213   : > { %v973_v12 = vmul.f32 0.015625, %v967_v11  ;;  %v961_v13 = vpop.xlane.xlu1 %960 }
 0x214   : > { %v971_v14 = vmul.f32 0.015625, %v961_v13 }
 0x215   : > { %v1756_v15 = vsub.f32 %v1493_v44, %v973_v12 }
 0x216   : > { %v1758_v16 = vsub.f32 %v1494_v46, %v971_v14  ;;  %v964_v17 = vpop.xlane.xlu0 %963 }
 0x217   : > { %v972_v18 = vmul.f32 0.015625, %v964_v17  ;;  %v970_v19 = vpop.xlane.xlu1 %969  ;;  %v981_v20 = vmul.f32 %v1722_v34, %v1756_v15 }
 0x218   : > { %v974_v21 = vmul.f32 0.015625, %v970_v19  ;;  %v979_v22 = vmul.f32 %v1722_v34, %v1758_v16 }
 0x219   : > { %v1764_v23 = vsub.f32 %v1496_v51, %v972_v18  ;;  %v985_v24 = vmul.f32 %v981_v20, %v981_v20 }
 0x21a   : > { %v1766_v25 = vsub.f32 %v1495_v48, %v974_v21  ;;  %v1129_v26 = vpop.xlane.xlu0 %1128  ;;  %v983_v30 = vmul.f32 %v979_v22, %v979_v22 }
 0x21b   : > { %v1135_v27 = vmul.f32 0.015625, %v1129_v26  ;;  %v1132_v28 = vpop.xlane.xlu1 %1131  ;;  %v993_v29 = vsel %vm958_vm1, %v985_v24, 0.0  ;;  %v980_v33 = vmul.f32 %v1722_v34, %v1764_v23 }
 0x21c   : > { %v1136_v31 = vmul.f32 0.015625, %v1132_v28  ;;  %994 = vadd.xlane.f32.xlu0 %v993_v29  ;;  %v982_v32 = vmul.f32 %v1722_v34, %v1766_v25  ;;  %v987_v40 = vsel %vm958_vm1, %v983_v30, 0.0 }
 0x21d   : > { %v1774_v36 = vsub.f32 %v1724_v35, %v1135_v27  ;;  %v984_v43 = vmul.f32 %v980_v33, %v980_v33 }
 0x21e   : > { %v1777_v37 = vsub.f32 %v1727_v38, %v1136_v31  ;;  %v986_v39 = vmul.f32 %v982_v32, %v982_v32 }
 0x21f   : > { %v1143_v41 = vmul.f32 %v1722_v34, %v1774_v36  ;;  %v990_v38 = vsel %vm958_vm1, %v984_v43, 0.0 }
 0x220   : > { %988 = vadd.xlane.f32.xlu0 %v987_v40  ;;  %v996_v42 = vsel %vm958_vm1, %v986_v39, 0.0  ;;  %v1144_v44 = vmul.f32 %v1722_v34, %v1777_v37 }
 0x221   : > { %997 = vadd.xlane.f32.xlu1 %v996_v42  ;;  %v1147_v45 = vmul.f32 %v1143_v41, %v1143_v41 }
 0x222   : > { %v1148_v46 = vmul.f32 %v1144_v44, %v1144_v44 }
 0x223   : > { %v1155_v35 = vsel %vm958_vm1, %v1147_v45, 0.0 }
 0x224   : > { %1156 = vadd.xlane.f32.xlu0 %v1155_v35  ;;  %v1158_v47 = vsel %vm958_vm1, %v1148_v46, 0.0 }
 0x225   : > { %991 = vadd.xlane.f32.xlu1 %v990_v38 }
 0x229   : > { %1159 = vadd.xlane.f32.xlu1 %v1158_v47 }
 0x299   : > { %v1151_v48 = vpop.xlane.xlu0 %1150 }
 0x29a   : > { %v1161_v49 = vmul.f32 0.015625, %v1151_v48 }
 0x29b   : > { %v1154_v50 = vpop.xlane.xlu1 %1153 }
 0x29c   : > { %v1165_v51 = vadd.f32 1e-05, %v1161_v49  ;;  %v1162_v52 = vmul.f32 0.015625, %v1154_v50 }
 0x29e   : > { %1561 = vrsqrt.f32 %v1165_v51  ;;  %v1166_v34 = vadd.f32 1e-05, %v1162_v52 }
 0x2a0   : > { %1563 = vrsqrt.f32 %v1166_v34 }
 0x2a8   : > { %v1562_v53 = vpop.eup %1561 }
 0x2a9   : > { %v1173_v54 = vmul.f32 %v1562_v53, %v1746_v2  ;;  %v995_v55 = vpop.xlane.xlu0 %994 }
 0x2aa   : > { %v1564_v56 = vpop.eup %1563  ;;  %v1001_v57 = vmul.f32 0.015625, %v995_v55 }
 0x2ab   : > { %v1399_v58 = vpack.c.bf16 %v1173_v54, %v1173_v54  ;;  %v1174_v59 = vmul.f32 %v1564_v56, %v1748_v4 }
 0x2ac   : > { %v1005_v60 = vadd.f32 1e-05, %v1001_v57 }
 0x2ad   : > { %1193 = vst.msk [vmem:[%s1795_s26] sm:$0xf] %vm1035_vm2, %v1399_v58  ;;  %v1400_v61 = vpack.c.bf16 %v1174_v59, %v1174_v59  ;;  %v989_v62 = vpop.xlane.xlu0 %988 }
 0x2ae   : > { %1565 = vrsqrt.f32 %v1005_v60  ;;  %v999_v63 = vmul.f32 0.015625, %v989_v62  ;;  %v998_v0 = vpop.xlane.xlu1 %997 }
 0x2af   : > { %1194 = vst.msk [vmem:[%s1795_s26 + $0x4] sm:$0xf] %vm1035_vm2, %v1400_v61  ;;  %v1002_v1 = vmul.f32 0.015625, %v998_v0 }
 0x2b0   : > { %v1003_v2 = vadd.f32 1e-05, %v999_v63 }
 0x2b1   : > { %v1006_v3 = vadd.f32 1e-05, %v1002_v1  ;;  %v1157_v5 = vpop.xlane.xlu0 %1156 }
 0x2b2   : > { %1567 = vrsqrt.f32 %v1003_v2  ;;  %v1163_v6 = vmul.f32 0.015625, %v1157_v5  ;;  %v992_v7 = vpop.xlane.xlu1 %991 }
 0x2b3   : > { %1569 = vrsqrt.f32 %v1006_v3  ;;  %v1000_v4 = vmul.f32 0.015625, %v992_v7 }
 0x2b4   : > { %v1167_v8 = vadd.f32 1e-05, %v1163_v6 }
 0x2b5   : > { %v1004_v9 = vadd.f32 1e-05, %v1000_v4 }
 0x2b6   : > { %1571 = vrsqrt.f32 %v1167_v8  ;;  %v1160_v10 = vpop.xlane.xlu1 %1159 }
 0x2b7   : > { %1573 = vrsqrt.f32 %v1004_v9  ;;  %v1164_v11 = vmul.f32 0.015625, %v1160_v10 }
 0x2b8   : > { %v1566_v12 = vpop.eup %1565 }
 0x2b9   : > { %v1013_v13 = vmul.f32 %v1566_v12, %v1756_v15  ;;  %v1168_v14 = vadd.f32 1e-05, %v1164_v11 }
 0x2bb   : > { %v1017_v17 = vmax.f32 %v1013_v13, 0.0  ;;  %1575 = vrsqrt.f32 %v1168_v14 }
 0x2bc   : > { %v1568_v18 = vpop.eup %1567 }
 0x2bd   : > { %v1570_v19 = vpop.eup %1569  ;;  %v1397_v20 = vpack.c.bf16 %v1017_v17, %v1017_v17  ;;  %v1011_v21 = vmul.f32 %v1568_v18, %v1758_v16 }
 0x2be   : > { %v1014_v22 = vmul.f32 %v1570_v19, %v1766_v25 }
 0x2bf   : > { %1038 = vst.msk [vmem:[%s232_s30 + $0x8] sm:$0xf] %vm1035_vm2, %v1397_v20  ;;  %v1015_v24 = vmax.f32 %v1011_v21, 0.0 }
 0x2c0   : > { %v1572_v15 = vpop.eup %1571  ;;  %v1018_v26 = vmax.f32 %v1014_v22, 0.0 }
 0x2c1   : > { %v1574_v27 = vpop.eup %1573  ;;  %v1395_v28 = vpack.c.bf16 %v1015_v24, %v1015_v24  ;;  %v1175_v29 = vmul.f32 %v1572_v15, %v1774_v36 }
 0x2c2   : > { %v1398_v30 = vpack.c.bf16 %v1018_v26, %v1018_v26  ;;  %v1012_v31 = vmul.f32 %v1574_v27, %v1764_v23 }
 0x2c3   : > { %1036 = vst.msk [vmem:[%s232_s30] sm:$0xf] %vm1035_vm2, %v1395_v28  ;;  %v1401_v32 = vpack.c.bf16 %v1175_v29, %v1175_v29 }
 0x2c4   : > { %1039 = vst.msk [vmem:[%s232_s30 + $0xc] sm:$0xf] %vm1035_vm2, %v1398_v30  ;;  %v1016_v16 = vmax.f32 %v1012_v31, 0.0 }
 0x2c5   : > { %v1576_v25 = vpop.eup %1575  ;;  %1195 = vst.msk [vmem:[%s1795_s26 + $0x8] sm:$0xf] %vm1035_vm2, %v1401_v32 }
 0x2c6   : > { %v1396_v33 = vpack.c.bf16 %v1016_v16, %v1016_v16  ;;  %v1176_v39 = vmul.f32 %v1576_v25, %v1777_v37 }
 0x2c8   : > { %1037 = vst.msk [vmem:[%s232_s30 + $0x4] sm:$0xf] %vm1035_vm2, %v1396_v33  ;;  %v1402_v40 = vpack.c.bf16 %v1176_v39, %v1176_v39 }
 0x2ca   : > { %1196 = vst.msk [vmem:[%s1795_s26 + $0xc] sm:$0xf] %vm1035_vm2, %v1402_v40 }
 0x2cb PF: > { %s16_s18 = sadd.s32 1, %s1583_s18  }
 0x2cc   : > { %p13_p4 = scmp.ge.s32.totalorder %s16_s18, 4  }
 0x2ce   :  { %15 = sbr.rel (!%p13_p4) target bundleno = 1 (0x1), region = 89 }

// kernel: resnet_discriminator.11
= control target key start
LH: loop header
LB: loop body
LE: loop exit
PB: predicated region body
PF: predicated region fallthrough
CT: control target
= control target key end

     0   :  { %s1442_s15 = smov 0   ;;  %s1554_s0 = inlined_call_operand.vmem [shape: bf16[2,1,32,102], index: 0, kind: input, shape index: {}]   ;;  %s1555_s1 = inlined_call_operand.vmem [shape: bf16[9,32,32], index: 1, kind: input, shape index: {}]   ;;  %s1556_s2 = inlined_call_operand.vmem [shape: bf16[2,32,80], index: 2, kind: input, shape index: {}]   ;;  %s1557_s3 = inlined_call_operand.vmem [shape: f32[1,80], index: 3, kind: input, shape index: {}]   ;;  %s1558_s4 = inlined_call_operand.vmem [shape: bf16[2,32,80], index: 4, kind: output, shape index: {}]  }
   0x1 LB: > { %s1113_s16 = sadd.s32 4294967295, %s1407_s15   ;;  %p1117_p0 = scmp.ge.s32.totalorder %s1407_s15, 1  ;;  %s1407_s15 = sphi %s1442_s15, %s14_s15  }
   0x2   : > { %p172_p1 = scmp.lt.s32.totalorder %s1407_s15, 3 }
   0x4   : > { %p173_p2 = pnand %p1117_p0, %p172_p1 }
   0x5   : > { %p203_p3 = scmp.lt.s32.totalorder (!%p173_p2), %s1113_s16, 1  ;;  %vm258_vm0 = vcmask (!%p173_p2), 261120   ;;  %v1375_v0 = vld [vmem:[%s1555_s1 + $0x40] sm:$0xff] (!%p173_p2)   ;;  %v1377_v1 = vld [vmem:[%s1555_s1 + $0x10] sm:$0xff] (!%p173_p2)   ;;  %s1409_s25 = smov (!%p173_p2), 117   ;;  %v1376_v8 = vld [vmem:[%s1555_s1 + $0x48] sm:$0xff] (!%p173_p2)  }
   0x6   : > { %176 = sbr.rel (%p173_p2) target bundleno = 731 (0x2db), region = 36  ;;  %1289 = vmatprep.mubr.msk.bf16.mxu0 (!%p173_p2), %vm258_vm0, %v1375_v0  ;;  %1257 = vmatprep.mubr.msk.bf16.mxu1 (!%p173_p2), %vm258_vm0, %v1377_v1  ;;  %s1410_s26 = smov (!%p173_p2), 127   ;;  %v1379_v11 = vld [vmem:[%s1555_s1 + $0x50] sm:$0xff] (!%p173_p2)   ;;  %v1378_v12 = vld [vmem:[%s1555_s1 + $0x18] sm:$0xff] (!%p173_p2)   ;;  %v1381_v14 = vld [vmem:[%s1555_s1] sm:$0xff] (!%p173_p2)   ;;  %vm952_vm1 = vcmask (!%p173_p2), 654336  }
   0x7   : > { %s1411_s27 = smov (!%p173_p2), 116   ;;  %s1412_s28 = smov (!%p173_p2), 108   ;;  %v1380_v16 = vld [vmem:[%s1555_s1 + $0x58] sm:$0xff] (!%p173_p2)   ;;  %v1383_v17 = vld [vmem:[%s1555_s1 + $0x60] sm:$0xff] (!%p173_p2)   ;;  %v1382_v19 = vld [vmem:[%s1555_s1 + $0x8] sm:$0xff] (!%p173_p2)   ;;  %vm1041_vm2 = vcmask (!%p173_p2), 650240  }
   0x8   : > { %s1413_s29 = smov (!%p173_p2), 126   ;;  %s1414_s30 = smov (!%p173_p2), 107   ;;  %v1385_v22 = vld [vmem:[%s1555_s1 + $0x20] sm:$0xff] (!%p173_p2)   ;;  %v1384_v24 = vld [vmem:[%s1555_s1 + $0x68] sm:$0xff] (!%p173_p2)   ;;  %v1387_v25 = vld [vmem:[%s1555_s1 + $0x70] sm:$0xff] (!%p173_p2)  }
   0x9   : > { %s1415_s5 = smov (!%p173_p2), 118   ;;  %s1416_s6 = smov (!%p173_p2), 106   ;;  %v1386_v27 = vld [vmem:[%s1555_s1 + $0x28] sm:$0xff] (!%p173_p2)   ;;  %v1389_v30 = vld [vmem:[%s1555_s1 + $0x30] sm:$0xff] (!%p173_p2)   ;;  %v1388_v31 = vld [vmem:[%s1555_s1 + $0x78] sm:$0xff] (!%p173_p2)  }
   0xa   : > { %v1391_v32 = vld [vmem:[%s1555_s1 + $0x80] sm:$0xff] (!%p173_p2)   ;;  %v1390_v34 = vld [vmem:[%s1555_s1 + $0x38] sm:$0xff] (!%p173_p2)   ;;  %v1392_v35 = vld [vmem:[%s1555_s1 + $0x88] sm:$0xff] (!%p173_p2)  }
   0xb   : > { %v1194_v43 = vld [vmem:[%s1557_s3] ss:$0 sm:$0xff] (!%p173_p2) }
   0xd   : > { %s1560_s16 = smov (!%p203_p3, %s1113_s16), 1 }
   0xe   : > { %s1454_s19 = sshll.u32 %s1560_s16, 4 }
   0xf   : > { %s207_s24 = scalar_lea.vmem %s1554_s0, %s1454_s19  ;;  %s212_s21 = scalar_lea.vmem %s1556_s2, %s1454_s19 }
  0x10   : > { %v1373_v2 = vld [vmem:[%s207_s24] sm:$0xff]   ;;  %v1374_v3 = vld [vmem:[%s207_s24 + $0x8] sm:$0xff]   ;;  %s217_s24 = scalar_lea.vmem %s1558_s4, %s1454_s19 }
  0x11   : > { %556 = vrot.lane.b32.xlu0 %v1373_v2, %s1409_s25  ;;  %252 = vrot.lane.b32.xlu1 %v1373_v2, %s1410_s26 }
  0x15   : > { %558 = vrot.lane.b32.xlu0 %v1374_v3, %s1409_s25  ;;  %636 = vrot.lane.b32.xlu1 %v1373_v2, %s1411_s27 }
  0x19   : > { %254 = vrot.lane.b32.xlu0 %v1374_v3, %s1410_s26  ;;  %638 = vrot.lane.b32.xlu1 %v1374_v3, %s1411_s27 }
  0x1d   : > { %716 = vrot.lane.b32.xlu0 %v1373_v2, %s1412_s28  ;;  %718 = vrot.lane.b32.xlu1 %v1374_v3, %s1412_s28 }
  0x21   : > { %396 = vrot.lane.b32.xlu0 %v1373_v2, %s1413_s29  ;;  %796 = vrot.lane.b32.xlu1 %v1373_v2, %s1414_s30 }
  0x25   : > { %398 = vrot.lane.b32.xlu0 %v1374_v3, %s1413_s29  ;;  %798 = vrot.lane.b32.xlu1 %v1374_v3, %s1414_s30 }
  0x29   : > { %476 = vrot.lane.b32.xlu0 %v1373_v2, %s1415_s5  ;;  %876 = vrot.lane.b32.xlu1 %v1373_v2, %s1416_s6 }
  0x2d   : > { %478 = vrot.lane.b32.xlu0 %v1374_v3, %s1415_s5  ;;  %878 = vrot.lane.b32.xlu1 %v1374_v3, %s1416_s6 }
  0x83   : > { %v557_v4 = vpop.permute.xlu0 %556  ;;  %v253_v5 = vpop.permute.xlu1 %252 }
  0x84   : > { %1285 = vmatprep.subr.bf16.mxu0 %v557_v4  ;;  %1253 = vmatprep.subr.bf16.mxu1 %v253_v5 }
  0x85   : > { %1286 = vmatpush3.bf16.msra.mxu0 %v557_v4  ;;  %1254 = vmatpush3.bf16.msra.mxu1 %v253_v5 }
  0x87   : > { %v559_v6 = vpop.permute.xlu0 %558  ;;  %v637_v7 = vpop.permute.xlu1 %636 }
  0x88   : > { %1287 = vmatprep.subr.bf16.mxu0 %v559_v6 }
  0x89   : > { %1288 = vmatpush3.bf16.msra.mxu0 %v559_v6 }
  0x8a   : > { %1293 = vmatprep.subr.bf16.mxu0 %v637_v7 }
  0x8b   : > { %v255_v9 = vpop.permute.xlu0 %254  ;;  %v639_v10 = vpop.permute.xlu1 %638 }
  0x8c   : > { %1255 = vmatprep.subr.bf16.mxu1 %v255_v9  ;;  %1290 = vmatmul.mubr.msk.bf16.vlgmr.msra.gmra.mrb[0].mxu0 %vm258_vm0, %v1376_v8 }
  0x8d   : > { %1256 = vmatpush3.bf16.msra.mxu1 %v255_v9  ;;  %1294 = vmatpush3.bf16.msra.mxu0 %v637_v7 }
  0x8e   : > { %1295 = vmatprep.subr.bf16.mxu0 %v639_v10  ;;  %1261 = vmatprep.subr.bf16.mxu1 %v1373_v2 }
  0x8f   : > { %v717_v13 = vpop.permute.xlu0 %716  ;;  %1297 = vmatprep.mubr.msk.bf16.mxu0 %vm258_vm0, %v1379_v11  ;;  %v719_v18 = vpop.permute.xlu1 %718 }
  0x90   : > { %1258 = vmatmul.mubr.msk.bf16.vlgmr.msra.gmra.mrb[0].mxu1 %vm258_vm0, %v1378_v12 }
  0x91   : > { %1296 = vmatpush3.bf16.msra.mxu0 %v639_v10  ;;  %1262 = vmatpush3.bf16.msra.mxu1 %v1373_v2 }
  0x92   : > { %1301 = vmatprep.subr.bf16.mxu0 %v717_v13  ;;  %1263 = vmatprep.subr.bf16.mxu1 %v1374_v3 }
  0x93   : > { %1265 = vmatprep.mubr.msk.bf16.mxu1 %vm258_vm0, %v1381_v14  ;;  %v397_v15 = vpop.permute.xlu0 %396  ;;  %v797_v20 = vpop.permute.xlu1 %796 }
  0x95   : > { %1264 = vmatpush3.bf16.msra.mxu1 %v1374_v3 }
  0x96   : > { %1269 = vmatprep.subr.bf16.mxu1 %v397_v15 }
  0x97   : > { %v399_v21 = vpop.permute.xlu0 %398  ;;  %v799_v26 = vpop.permute.xlu1 %798 }
  0x98   : > { %1298 = vmatmul.mubr.msk.bf16.vlgmr.msra.gmra.mrb[0].mxu0 %vm258_vm0, %v1380_v16 }
  0x99   : > { %1302 = vmatpush3.bf16.msra.mxu0 %v717_v13  ;;  %1305 = vmatprep.mubr.msk.bf16.mxu0 %vm258_vm0, %v1383_v17 }
  0x9a   : > { %1303 = vmatprep.subr.bf16.mxu0 %v719_v18 }
  0x9b   : > { %v477_v23 = vpop.permute.xlu0 %476  ;;  %v877_v28 = vpop.permute.xlu1 %876 }
  0x9c   : > { %1266 = vmatmul.mubr.msk.bf16.vlgmr.msra.gmra.mrb[0].mxu1 %vm258_vm0, %v1382_v19 }
  0x9d   : > { %1304 = vmatpush3.bf16.msra.mxu0 %v719_v18  ;;  %1270 = vmatpush3.bf16.msra.mxu1 %v397_v15 }
  0x9e   : > { %1309 = vmatprep.subr.bf16.mxu0 %v797_v20  ;;  %1271 = vmatprep.subr.bf16.mxu1 %v399_v21 }
  0x9f   : > { %1273 = vmatprep.mubr.msk.bf16.mxu1 %vm258_vm0, %v1385_v22  ;;  %v479_v29 = vpop.permute.xlu0 %478  ;;  %v879_v33 = vpop.permute.xlu1 %878 }
  0xa1   : > { %1272 = vmatpush3.bf16.msra.mxu1 %v399_v21 }
  0xa2   : > { %1277 = vmatprep.subr.bf16.mxu1 %v477_v23 }
  0xa4   : > { %1306 = vmatmul.mubr.msk.bf16.vlgmr.msra.gmra.mrb[0].mxu0 %vm258_vm0, %v1384_v24 }
  0xa5   : > { %1310 = vmatpush3.bf16.msra.mxu0 %v797_v20  ;;  %1313 = vmatprep.mubr.msk.bf16.mxu0 %vm258_vm0, %v1387_v25 }
  0xa6   : > { %1311 = vmatprep.subr.bf16.mxu0 %v799_v26 }
  0xa8   : > { %1274 = vmatmul.mubr.msk.bf16.vlgmr.msra.gmra.mrb[0].mxu1 %vm258_vm0, %v1386_v27 }
  0xa9   : > { %1312 = vmatpush3.bf16.msra.mxu0 %v799_v26  ;;  %1278 = vmatpush3.bf16.msra.mxu1 %v477_v23 }
  0xaa   : > { %1317 = vmatprep.subr.bf16.mxu0 %v877_v28  ;;  %1279 = vmatprep.subr.bf16.mxu1 %v479_v29 }
  0xab   : > { %1281 = vmatprep.mubr.msk.bf16.mxu1 %vm258_vm0, %v1389_v30 }
  0xad   : > { %1280 = vmatpush3.bf16.msra.mxu1 %v479_v29 }
  0xb0   : > { %1314 = vmatmul.mubr.msk.bf16.vlgmr.msra.gmra.mrb[0].mxu0 %vm258_vm0, %v1388_v31 }
  0xb1   : > { %1318 = vmatpush3.bf16.msra.mxu0 %v877_v28  ;;  %1321 = vmatprep.mubr.msk.bf16.mxu0 %vm258_vm0, %v1391_v32  ;;  %v1209_v28 = vld [vmem:[%s212_s21] sm:$0xff]   ;;  %v1216_v32 = vld [vmem:[%s212_s21 + $0x8] sm:$0xff]  }
  0xb2   : > { %1319 = vmatprep.subr.bf16.mxu0 %v879_v33  ;;  %v1210_v30 = vunpack.c.l.bf16 %v1209_v28 }
  0xb4   : > { %1282 = vmatmul.mubr.msk.bf16.vlgmr.msra.gmra.mrb[0].mxu1 %vm258_vm0, %v1390_v34  ;;  %v1211_v34 = vunpack.c.h.bf16 %v1209_v28 }
  0xb5   : > { %1320 = vmatpush3.bf16.msra.mxu0 %v879_v33 }
  0xbc   : > { %1322 = vmatmul.mubr.msk.bf16.vlgmr.msra.gmra.mrb[0].mxu0 %vm258_vm0, %v1392_v35 }
 0x187   : > { %v1283_v36 = vpop.f32.mrb[0].mxu1 }
 0x188   : > { %v522_v37 = vpop.f32.mrb[1].mxu1 }
 0x189   : > { %v1284_v38 = vpop.f32.mrb[2].mxu1 }
 0x18a   : > { %v525_v39 = vpop.f32.mrb[3].mxu1 }
 0x18f   : > { %v1323_v40 = vpop.f32.mrb[0].mxu0 }
 0x190   : > { %v1325_v41 = vadd.f32 %v1323_v40, %v1283_v36  ;;  %v922_v42 = vpop.f32.mrb[1].mxu0 }
 0x191   : > { %v1326_v44 = vadd.f32 %v922_v42, %v522_v37  ;;  %v1324_v45 = vpop.f32.mrb[2].mxu0 }
 0x192   : > { %v1327_v46 = vadd.f32 %v1324_v45, %v1284_v38  ;;  %v925_v47 = vpop.f32.mrb[3].mxu0  ;;  %v950_v52 = vmul.f32 %v1325_v41, %v1194_v43  ;;  %v1214_v38 = vunpack.c.l.bf16 %v1216_v32 }
 0x193   : > { %v1328_v48 = vadd.f32 %v925_v47, %v525_v39  ;;  %v948_v49 = vmul.f32 %v1326_v44, %v1194_v43 }
 0x194   : > { %v959_v54 = vsel %vm952_vm1, %v950_v52, 0.0  ;;  %v951_v55 = vmul.f32 %v1327_v46, %v1194_v43 }
 0x195   : > { %v953_v50 = vsel %vm952_vm1, %v948_v49, 0.0  ;;  %v949_v51 = vmul.f32 %v1328_v48, %v1194_v43 }
 0x196   : > { %954 = vadd.xlane.f32.xlu0 %v953_v50  ;;  %v962_v56 = vsel %vm952_vm1, %v951_v55, 0.0 }
 0x197   : > { %v956_v53 = vsel %vm952_vm1, %v949_v51, 0.0 }
 0x198   : > { %957 = vadd.xlane.f32.xlu1 %v956_v53 }
 0x19a   : > { %960 = vadd.xlane.f32.xlu0 %v959_v54 }
 0x19e   : > { %963 = vadd.xlane.f32.xlu0 %v962_v56 }
 0x223   : > { %v955_v57 = vpop.xlane.xlu0 %954 }
 0x224   : > { %v965_v58 = vmul.f32 0.015625, %v955_v57 }
 0x225   : > { %v958_v59 = vpop.xlane.xlu1 %957 }
 0x226   : > { %v969_v60 = vsub.f32 %v1326_v44, %v965_v58  ;;  %v966_v61 = vmul.f32 0.015625, %v958_v59 }
 0x227   : > { %v961_v62 = vpop.xlane.xlu0 %960 }
 0x228   : > { %v970_v63 = vsub.f32 %v1328_v48, %v966_v61  ;;  %v967_v0 = vmul.f32 0.015625, %v961_v62  ;;  %v973_v1 = vmul.f32 %v1194_v43, %v969_v60 }
 0x22a   : > { %v971_v2 = vsub.f32 %v1325_v41, %v967_v0  ;;  %v977_v3 = vmul.f32 %v973_v1, %v973_v1  ;;  %v974_v4 = vmul.f32 %v1194_v43, %v970_v63 }
 0x22b   : > { %v964_v5 = vpop.xlane.xlu0 %963 }
 0x22c   : > { %v968_v6 = vmul.f32 0.015625, %v964_v5  ;;  %v981_v7 = vsel %vm952_vm1, %v977_v3, 0.0  ;;  %v978_v8 = vmul.f32 %v974_v4, %v974_v4  ;;  %v975_v9 = vmul.f32 %v1194_v43, %v971_v2 }
 0x22d   : > { %982 = vadd.xlane.f32.xlu1 %v981_v7 }
 0x22e   : > { %v972_v10 = vsub.f32 %v1327_v46, %v968_v6  ;;  %v984_v11 = vsel %vm952_vm1, %v978_v8, 0.0  ;;  %v979_v12 = vmul.f32 %v975_v9, %v975_v9  ;;  %v1215_v46 = vunpack.c.h.bf16 %v1216_v32 }
 0x22f   : > { %985 = vadd.xlane.f32.xlu0 %v984_v11 }
 0x230   : > { %v987_v13 = vsel %vm952_vm1, %v979_v12, 0.0  ;;  %v976_v14 = vmul.f32 %v1194_v43, %v972_v10 }
 0x231   : > { %988 = vadd.xlane.f32.xlu1 %v987_v13 }
 0x232   : > { %v980_v15 = vmul.f32 %v976_v14, %v976_v14 }
 0x234   : > { %v990_v16 = vsel %vm952_vm1, %v980_v15, 0.0 }
 0x235   : > { %991 = vadd.xlane.f32.xlu0 %v990_v16 }
 0x2ba   : > { %v983_v17 = vpop.xlane.xlu1 %982 }
 0x2bb   : > { %v993_v18 = vmul.f32 0.015625, %v983_v17 }
 0x2bc   : > { %v986_v19 = vpop.xlane.xlu0 %985 }
 0x2bd   : > { %v997_v20 = vadd.f32 1e-05, %v993_v18  ;;  %v994_v21 = vmul.f32 0.015625, %v986_v19 }
 0x2be   : > { %v989_v22 = vpop.xlane.xlu1 %988 }
 0x2bf   : > { %1393 = vrsqrt.f32 %v997_v20  ;;  %v998_v23 = vadd.f32 1e-05, %v994_v21  ;;  %v995_v24 = vmul.f32 0.015625, %v989_v22 }
 0x2c1   : > { %1395 = vrsqrt.f32 %v998_v23  ;;  %v999_v25 = vadd.f32 1e-05, %v995_v24 }
 0x2c2   : > { %v992_v26 = vpop.xlane.xlu0 %991 }
 0x2c3   : > { %1397 = vrsqrt.f32 %v999_v25  ;;  %v996_v27 = vmul.f32 0.015625, %v992_v26 }
 0x2c5   : > { %v1000_v29 = vadd.f32 1e-05, %v996_v27 }
 0x2c7   : > { %1399 = vrsqrt.f32 %v1000_v29 }
 0x2c9   : > { %v1394_v31 = vpop.eup %1393 }
 0x2ca   : > { %v1005_v33 = vmul.f32 %v1394_v31, %v969_v60 }
 0x2cb   : > { %v1396_v35 = vpop.eup %1395 }
 0x2cc   : > { %v1017_v36 = vadd.f32 %v1210_v30, %v1005_v33  ;;  %v1006_v37 = vmul.f32 %v1396_v35, %v970_v63 }
 0x2cd   : > { %v1398_v39 = vpop.eup %1397 }
 0x2ce   : > { %v1021_v40 = vmax.f32 %v1017_v36, 0.0  ;;  %v1018_v41 = vadd.f32 %v1211_v34, %v1006_v37  ;;  %v1007_v42 = vmul.f32 %v1398_v39, %v971_v2 }
 0x2d0   : > { %v1204_v43 = vpack.c.bf16 %v1021_v40, %v1021_v40  ;;  %v1022_v44 = vmax.f32 %v1018_v41, 0.0  ;;  %v1019_v45 = vadd.f32 %v1214_v38, %v1007_v42 }
 0x2d1   : > { %v1400_v47 = vpop.eup %1399 }
 0x2d2   : > { %1042 = vst.msk [vmem:[%s217_s24] sm:$0xf] %vm1041_vm2, %v1204_v43  ;;  %v1205_v48 = vpack.c.bf16 %v1022_v44, %v1022_v44  ;;  %v1023_v49 = vmax.f32 %v1019_v45, 0.0  ;;  %v1008_v50 = vmul.f32 %v1400_v47, %v972_v10 }
 0x2d4   : > { %1043 = vst.msk [vmem:[%s217_s24 + $0x4] sm:$0xf] %vm1041_vm2, %v1205_v48  ;;  %v1206_v51 = vpack.c.bf16 %v1023_v49, %v1023_v49  ;;  %v1020_v52 = vadd.f32 %v1215_v46, %v1008_v50 }
 0x2d6   : > { %1044 = vst.msk [vmem:[%s217_s24 + $0x8] sm:$0xf] %vm1041_vm2, %v1206_v51  ;;  %v1024_v53 = vmax.f32 %v1020_v52, 0.0 }
 0x2d8   : > { %v1207_v54 = vpack.c.bf16 %v1024_v53, %v1024_v53 }
 0x2da   : > { %1045 = vst.msk [vmem:[%s217_s24 + $0xc] sm:$0xf] %vm1041_vm2, %v1207_v54 }
 0x2db PF: > { %s14_s15 = sadd.s32 1, %s1407_s15  }
 0x2dc   : > { %p11_p4 = scmp.ge.s32.totalorder %s14_s15, 4  }
 0x2de   :  { %13 = sbr.rel (!%p11_p4) target bundleno = 1 (0x1), region = 77 }

// kernel: resnet_discriminator.12
= control target key start
LH: loop header
LB: loop body
LE: loop exit
PB: predicated region body
PF: predicated region fallthrough
CT: control target
= control target key end

     0   :  { %s2489_s18 = smov 0   ;;  %s2932_s0 = inlined_call_operand.vmem [shape: bf16[2,4,32,26], index: 0, kind: input, shape index: {}]   ;;  %s2933_s1 = inlined_call_operand.vmem [shape: bf16[9,64,32], index: 1, kind: input, shape index: {}]   ;;  %s2934_s2 = inlined_call_operand.vmem [shape: bf16[64,32], index: 2, kind: input, shape index: {}]   ;;  %s2935_s3 = inlined_call_operand.vmem [shape: f32[1,20], index: 3, kind: input, shape index: {}]   ;;  %s2936_s4 = inlined_call_operand.vmem [shape: bf16[2,64,20], index: 4, kind: output, shape index: {0}]   ;;  %s2937_s5 = inlined_call_operand.vmem [shape: bf16[2,64,20], index: 5, kind: output, shape index: {1}]  }
   0x1 LB: > { %s1892_s19 = sadd.s32 4294967295, %s2454_s18   ;;  %p1896_p0 = scmp.ge.s32.totalorder %s2454_s18, 1  ;;  %s2454_s18 = sphi %s2489_s18, %s16_s18  }
   0x2   : > { %p190_p1 = scmp.lt.s32.totalorder %s2454_s18, 3 }
   0x4   : > { %p191_p2 = pnand %p1896_p0, %p190_p1 }
   0x5   : > { %p223_p3 = scmp.lt.s32.totalorder (!%p191_p2), %s1892_s19, 1  ;;  %v2372_v0 = vld [vmem:[%s2933_s1 + $0x20] sm:$0xff] (!%p191_p2)   ;;  %vm298_vm0 = vcmask (!%p191_p2), 261120   ;;  %s2456_s28 = smov (!%p191_p2), 127   ;;  %v2373_v10 = vld [vmem:[%s2933_s1 + $0x28] sm:$0xff] (!%p191_p2)   ;;  %v2375_v11 = vld [vmem:[%s2933_s1 + $0x30] sm:$0xff] (!%p191_p2)  }
   0x6   : > { %194 = sbr.rel (%p191_p2) target bundleno = 745 (0x2e9), region = 36  ;;  %2175 = vmatprep.mubr.msk.bf16.mxu1 (!%p191_p2), %vm298_vm0, %v2372_v0  ;;  %v2378_v1 = vld [vmem:[%s2933_s1 + $0x80] sm:$0xff] (!%p191_p2)   ;;  %s2457_s29 = smov (!%p191_p2), 123   ;;  %v2379_v12 = vld [vmem:[%s2933_s1 + $0x88] sm:$0xff] (!%p191_p2)   ;;  %v2382_v13 = vld [vmem:[%s2933_s1 + $0x90] sm:$0xff] (!%p191_p2)   ;;  %vm1361_vm1 = vcmask (!%p191_p2), 162816  }
   0x7   : > { %2223 = vmatprep.mubr.msk.bf16.mxu0 (!%p191_p2), %vm298_vm0, %v2378_v1  ;;  %s2458_s13 = smov (!%p191_p2), 122   ;;  %v2376_v14 = vld [vmem:[%s2933_s1 + $0x38] sm:$0xff] (!%p191_p2)   ;;  %v2380_v15 = vld [vmem:[%s2933_s1] sm:$0xff] (!%p191_p2)   ;;  %v2381_v18 = vld [vmem:[%s2933_s1 + $0x8] sm:$0xff] (!%p191_p2)   ;;  %vm1514_vm2 = vcmask (!%p191_p2), 158720  }
   0x8   : > { %v2383_v16 = vld [vmem:[%s2933_s1 + $0x98] sm:$0xff] (!%p191_p2)   ;;  %v2386_v17 = vld [vmem:[%s2933_s1 + $0xa0] sm:$0xff] (!%p191_p2)   ;;  %v2384_v19 = vld [vmem:[%s2933_s1 + $0x10] sm:$0xff] (!%p191_p2)  }
   0x9   : > { %v2385_v20 = vld [vmem:[%s2933_s1 + $0x18] sm:$0xff] (!%p191_p2)   ;;  %v2388_v21 = vld [vmem:[%s2933_s1 + $0x40] sm:$0xff] (!%p191_p2)   ;;  %v2387_v26 = vld [vmem:[%s2933_s1 + $0xa8] sm:$0xff] (!%p191_p2)  }
   0xa   : > { %v2390_v27 = vld [vmem:[%s2933_s1 + $0xb0] sm:$0xff] (!%p191_p2)   ;;  %v2389_v30 = vld [vmem:[%s2933_s1 + $0x48] sm:$0xff] (!%p191_p2)   ;;  %v2391_v32 = vld [vmem:[%s2933_s1 + $0xb8] sm:$0xff] (!%p191_p2)  }
   0xb   : > { %v2392_v31 = vld [vmem:[%s2933_s1 + $0x50] sm:$0xff] (!%p191_p2)   ;;  %v2394_v34 = vld [vmem:[%s2933_s1 + $0xc0] sm:$0xff] (!%p191_p2)   ;;  %v2393_v36 = vld [vmem:[%s2933_s1 + $0x58] sm:$0xff] (!%p191_p2)  }
   0xc   : > { %v2396_v37 = vld [vmem:[%s2933_s1 + $0x60] sm:$0xff] (!%p191_p2)   ;;  %v2395_v38 = vld [vmem:[%s2933_s1 + $0xc8] sm:$0xff] (!%p191_p2)   ;;  %v2398_v39 = vld [vmem:[%s2933_s1 + $0xd0] sm:$0xff] (!%p191_p2)  }
   0xd   : > { %s2939_s19 = smov (!%p223_p3, %s1892_s19), 1  ;;  %v2397_v41 = vld [vmem:[%s2933_s1 + $0x68] sm:$0xff]   ;;  %v2400_v42 = vld [vmem:[%s2933_s1 + $0x70] sm:$0xff]   ;;  %v2399_v44 = vld [vmem:[%s2933_s1 + $0xd8] sm:$0xff]  }
   0xe   : > { %s2092_s22 = sshll.u32 %s2939_s19, 6  ;;  %v2403_v46 = vld [vmem:[%s2933_s1 + $0xe0] sm:$0xff]   ;;  %v2401_v47 = vld [vmem:[%s2933_s1 + $0x78] sm:$0xff]   ;;  %v2404_v49 = vld [vmem:[%s2933_s1 + $0xe8] sm:$0xff]   ;;  %s2093_s16 = sshll.u32 %s2939_s19, 5 }
   0xf   : > { %s2507_s25 = scalar_lea.vmem %s2932_s0, %s2092_s22  ;;  %v2406_v48 = vld [vmem:[%s2934_s2] sm:$0xff]   ;;  %v2408_v50 = vld [vmem:[%s2933_s1 + $0xf0] sm:$0xff]   ;;  %v2407_v52 = vld [vmem:[%s2934_s2 + $0x8] sm:$0xff]   ;;  %s2873_s21 = scalar_lea.vmem %s2937_s5, %s2093_s16 }
  0x10   : > { %v2513_v2 = vld [vmem:[%s2507_s25 + $0x20] sm:$0xff]   ;;  %v2519_v4 = vld [vmem:[%s2507_s25 + $0x28] sm:$0xff]   ;;  %v2370_v5 = vld [vmem:[%s2507_s25 + $0x10] sm:$0xff]   ;;  %s2898_s24 = scalar_lea.vmem %s2936_s4, %s2093_s16 }
  0x11   : > { %v2367_v3 = vld [vmem:[%s2507_s25] sm:$0xff]   ;;  %896 = vrot.lane.b32.xlu0 %v2513_v2, %s2456_s28  ;;  %v2369_v6 = vld [vmem:[%s2507_s25 + $0x8] sm:$0xff]   ;;  %v2371_v7 = vld [vmem:[%s2507_s25 + $0x18] sm:$0xff]   ;;  %2171 = vmatprep.subr.bf16.mxu1 %v2370_v5 }
  0x12   : > { %1016 = vrot.lane.b32.xlu1 %v2367_v3, %s2457_s29  ;;  %v2374_v8 = vld [vmem:[%s2507_s25 + $0x30] sm:$0xff]   ;;  %2172 = vmatpush3.bf16.msra.mxu1 %v2370_v5  ;;  %v2377_v9 = vld [vmem:[%s2507_s25 + $0x38] sm:$0xff]   ;;  %v2412_v55 = vld [vmem:[%s2933_s1 + $0x100] sm:$0xff]  }
  0x13   : > { %2173 = vmatprep.subr.bf16.mxu1 %v2371_v7  ;;  %2219 = vmatprep.subr.bf16.mxu0 %v2374_v8  ;;  %v2402_v35 = vld [vmem:[%s2507_s25 + $0x30] sm:$0xff]   ;;  %v2405_v43 = vld [vmem:[%s2507_s25 + $0x38] sm:$0xff]   ;;  %v2413_v57 = vld [vmem:[%s2933_s1 + $0x108] sm:$0xff]  }
  0x14   : > { %2220 = vmatpush3.bf16.msra.mxu0 %v2374_v8  ;;  %v2410_v53 = vld [vmem:[%s2934_s2 + $0x10] sm:$0xff]   ;;  %v2409_v54 = vld [vmem:[%s2933_s1 + $0xf8] sm:$0xff]  }
  0x15   : > { %898 = vrot.lane.b32.xlu0 %v2519_v4, %s2456_s28  ;;  %2221 = vmatprep.subr.bf16.mxu0 %v2377_v9  ;;  %v2411_v56 = vld [vmem:[%s2934_s2 + $0x18] sm:$0xff]   ;;  %v2414_v58 = vld [vmem:[%s2933_s1 + $0x110] sm:$0xff]  }
  0x16   : > { %514 = vrot.lane.b32.xlu1 %v2367_v3, %s2456_s28  ;;  %2174 = vmatpush3.bf16.msra.mxu1 %v2371_v7  ;;  %v2415_v59 = vld [vmem:[%s2933_s1 + $0x118] sm:$0xff]  }
  0x17   : > { %2183 = vmatprep.subr.bf16.mxu1 %v2367_v3 }
  0x18   : > { %2222 = vmatpush3.bf16.msra.mxu0 %v2377_v9 }
  0x19   : > { %1018 = vrot.lane.b32.xlu0 %v2369_v6, %s2457_s29  ;;  %2176 = vmatmul.mubr.msk.bf16.vlgmr.msra.gmra.mrb[0].mxu1 %vm298_vm0, %v2373_v10 }
  0x1a   : > { %516 = vrot.lane.b32.xlu1 %v2369_v6, %s2456_s28  ;;  %2179 = vmatprep.mubr.msk.bf16.mxu1 %vm298_vm0, %v2375_v11 }
  0x1b   : > { %2184 = vmatpush3.bf16.msra.mxu1 %v2367_v3  ;;  %2224 = vmatmul.mubr.msk.bf16.vlgmr.msra.gmra.mrb[0].mxu0 %vm298_vm0, %v2379_v12 }
  0x1c   : > { %2185 = vmatprep.subr.bf16.mxu1 %v2369_v6  ;;  %2227 = vmatprep.mubr.msk.bf16.mxu0 %vm298_vm0, %v2382_v13 }
  0x1d   : > { %1136 = vrot.lane.b32.xlu0 %v2370_v5, %s2457_s29 }
  0x1e   : > { %1138 = vrot.lane.b32.xlu1 %v2371_v7, %s2457_s29 }
  0x1f   : > { %2186 = vmatpush3.bf16.msra.mxu1 %v2369_v6 }
  0x21   : > { %1256 = vrot.lane.b32.xlu0 %v2367_v3, %s2458_s13  ;;  %2180 = vmatmul.mubr.msk.bf16.gmra.mrb[4].mxu1 %vm298_vm0, %v2376_v14 }
  0x22   : > { %1258 = vrot.lane.b32.xlu1 %v2369_v6, %s2458_s13  ;;  %2187 = vmatprep.mubr.msk.bf16.mxu1 %vm298_vm0, %v2380_v15 }
  0x23   : > { %2228 = vmatmul.mubr.msk.bf16.gmra.mrb[4].mxu0 %vm298_vm0, %v2383_v16 }
  0x24   : > { %2235 = vmatprep.mubr.msk.bf16.mxu0 %vm298_vm0, %v2386_v17 }
  0x29   : > { %2188 = vmatmul.mubr.msk.bf16.vlgmr.msra.gmra.mrb[0].mxu1 %vm298_vm0, %v2381_v18 }
  0x2a   : > { %2191 = vmatprep.mubr.msk.bf16.mxu1 %vm298_vm0, %v2384_v19 }
  0x31   : > { %2192 = vmatmul.mubr.msk.bf16.gmra.mrb[4].mxu1 %vm298_vm0, %v2385_v20 }
  0x32   : > { %2199 = vmatprep.mubr.msk.bf16.mxu1 %vm298_vm0, %v2388_v21 }
  0x83   : > { %v897_v22 = vpop.permute.xlu0 %896 }
  0x84   : > { %v1017_v23 = vpop.permute.xlu1 %1016  ;;  %2231 = vmatprep.subr.bf16.mxu0 %v897_v22 }
  0x85   : > { %2232 = vmatpush3.bf16.msra.mxu0 %v897_v22 }
  0x87   : > { %v899_v24 = vpop.permute.xlu0 %898 }
  0x88   : > { %v515_v25 = vpop.permute.xlu1 %514  ;;  %2233 = vmatprep.subr.bf16.mxu0 %v899_v24 }
  0x89   : > { %2195 = vmatprep.subr.bf16.mxu1 %v515_v25  ;;  %2234 = vmatpush3.bf16.msra.mxu0 %v899_v24 }
  0x8a   : > { %2196 = vmatpush3.bf16.msra.mxu1 %v515_v25  ;;  %2243 = vmatprep.subr.bf16.mxu0 %v1017_v23 }
  0x8b   : > { %v1019_v29 = vpop.permute.xlu0 %1018 }
  0x8c   : > { %v517_v28 = vpop.permute.xlu1 %516  ;;  %2236 = vmatmul.mubr.msk.bf16.vlgmr.msra.gmra.mrb[0].mxu0 %vm298_vm0, %v2387_v26 }
  0x8d   : > { %2197 = vmatprep.subr.bf16.mxu1 %v517_v28  ;;  %2244 = vmatpush3.bf16.msra.mxu0 %v1017_v23 }
  0x8e   : > { %2198 = vmatpush3.bf16.msra.mxu1 %v517_v28  ;;  %2239 = vmatprep.mubr.msk.bf16.mxu0 %vm298_vm0, %v2390_v27 }
  0x8f   : > { %2207 = vmatprep.subr.bf16.mxu1 %v2513_v2  ;;  %2245 = vmatprep.subr.bf16.mxu0 %v1019_v29  ;;  %v1137_v33 = vpop.permute.xlu0 %1136 }
  0x90   : > { %v1139_v40 = vpop.permute.xlu1 %1138 }
  0x91   : > { %2200 = vmatmul.mubr.msk.bf16.vlgmr.msra.gmra.mrb[0].mxu1 %vm298_vm0, %v2389_v30  ;;  %2246 = vmatpush3.bf16.msra.mxu0 %v1019_v29 }
  0x92   : > { %2203 = vmatprep.mubr.msk.bf16.mxu1 %vm298_vm0, %v2392_v31  ;;  %2208 = vmatpush3.bf16.msra.mxu1 %v2513_v2 }
  0x93   : > { %2209 = vmatprep.subr.bf16.mxu1 %v2519_v4  ;;  %2255 = vmatprep.subr.bf16.mxu0 %v1137_v33  ;;  %v1257_v45 = vpop.permute.xlu0 %1256 }
  0x94   : > { %2240 = vmatmul.mubr.msk.bf16.gmra.mrb[4].mxu0 %vm298_vm0, %v2391_v32  ;;  %v1259_v51 = vpop.permute.xlu1 %1258 }
  0x95   : > { %2247 = vmatprep.mubr.msk.bf16.mxu0 %vm298_vm0, %v2394_v34 }
  0x96   : > { %2210 = vmatpush3.bf16.msra.mxu1 %v2519_v4  ;;  %v2688_v4 = vld [vmem:[%s2935_s3] ss:$0 sm:$0xff] }
  0x97   : > { %2279 = vmatprep.subr.bf16.mxu1 %v2402_v35 }
  0x99   : > { %2204 = vmatmul.mubr.msk.bf16.gmra.mrb[4].mxu1 %vm298_vm0, %v2393_v36 }
  0x9a   : > { %2211 = vmatprep.mubr.msk.bf16.mxu1 %vm298_vm0, %v2396_v37 }
  0x9c   : > { %2248 = vmatmul.mubr.msk.bf16.vlgmr.msra.gmra.mrb[0].mxu0 %vm298_vm0, %v2395_v38 }
  0x9d   : > { %2251 = vmatprep.mubr.msk.bf16.mxu0 %vm298_vm0, %v2398_v39  ;;  %2256 = vmatpush3.bf16.msra.mxu0 %v1137_v33 }
  0x9e   : > { %2257 = vmatprep.subr.bf16.mxu0 %v1139_v40 }
  0xa1   : > { %2212 = vmatmul.mubr.msk.bf16.vlgmr.msra.gmra.mrb[0].mxu1 %vm298_vm0, %v2397_v41  ;;  %2258 = vmatpush3.bf16.msra.mxu0 %v1139_v40 }
  0xa2   : > { %2215 = vmatprep.mubr.msk.bf16.mxu1 %vm298_vm0, %v2400_v42  ;;  %2280 = vmatpush3.bf16.msra.mxu1 %v2402_v35 }
  0xa3   : > { %2281 = vmatprep.subr.bf16.mxu1 %v2405_v43  ;;  %2267 = vmatprep.subr.bf16.mxu0 %v1257_v45 }
  0xa4   : > { %2252 = vmatmul.mubr.msk.bf16.gmra.mrb[4].mxu0 %vm298_vm0, %v2399_v44 }
  0xa5   : > { %2259 = vmatprep.mubr.msk.bf16.mxu0 %vm298_vm0, %v2403_v46 }
  0xa6   : > { %2282 = vmatpush3.bf16.msra.mxu1 %v2405_v43 }
  0xa9   : > { %2216 = vmatmul.mubr.msk.bf16.gmra.mrb[4].mxu1 %vm298_vm0, %v2401_v47 }
  0xaa   : > { %2283 = vmatprep.mubr.msk.bf16.mxu1 %vm298_vm0, %v2406_v48 }
  0xac   : > { %2260 = vmatmul.mubr.msk.bf16.vlgmr.msra.gmra.mrb[0].mxu0 %vm298_vm0, %v2404_v49 }
  0xad   : > { %2263 = vmatprep.mubr.msk.bf16.mxu0 %vm298_vm0, %v2408_v50  ;;  %2268 = vmatpush3.bf16.msra.mxu0 %v1257_v45 }
  0xae   : > { %2269 = vmatprep.subr.bf16.mxu0 %v1259_v51 }
  0xb1   : > { %2284 = vmatmul.mubr.msk.bf16.vlgmr.msra.gmra.mrb[8].mxu1 %vm298_vm0, %v2407_v52  ;;  %2270 = vmatpush3.bf16.msra.mxu0 %v1259_v51 }
  0xb2   : > { %2287 = vmatprep.mubr.msk.bf16.mxu1 %vm298_vm0, %v2410_v53 }
  0xb4   : > { %2264 = vmatmul.mubr.msk.bf16.gmra.mrb[4].mxu0 %vm298_vm0, %v2409_v54 }
  0xb5   : > { %2271 = vmatprep.mubr.msk.bf16.mxu0 %vm298_vm0, %v2412_v55 }
  0xb9   : > { %2288 = vmatmul.mubr.msk.bf16.gmra.mrb[12].mxu1 %vm298_vm0, %v2411_v56 }
  0xbc   : > { %2272 = vmatmul.mubr.msk.bf16.vlgmr.msra.gmra.mrb[0].mxu0 %vm298_vm0, %v2413_v57 }
  0xbd   : > { %2275 = vmatprep.mubr.msk.bf16.mxu0 %vm298_vm0, %v2414_v58 }
  0xc4   : > { %2276 = vmatmul.mubr.msk.bf16.gmra.mrb[4].mxu0 %vm298_vm0, %v2415_v59 }
 0x174   : > { %v2213_v60 = vpop.f32.mrb[0].mxu1 }
 0x175   : > { %v697_v61 = vpop.f32.mrb[1].mxu1 }
 0x176   : > { %v2214_v62 = vpop.f32.mrb[2].mxu1 }
 0x177   : > { %v700_v63 = vpop.f32.mrb[3].mxu1 }
 0x17c   : > { %v2217_v0 = vpop.f32.mrb[4].mxu1 }
 0x17d   : > { %v713_v1 = vpop.f32.mrb[5].mxu1 }
 0x17e   : > { %v2218_v2 = vpop.f32.mrb[6].mxu1 }
 0x17f   : > { %v716_v3 = vpop.f32.mrb[7].mxu1 }
 0x184   : > { %v2690_v5 = vpop.f32.mrb[8].mxu1 }
 0x185   : > { %v1646_v6 = vmul.f32 %v2690_v5, %v2688_v4  ;;  %v2694_v7 = vpop.f32.mrb[9].mxu1 }
 0x186   : > { %v2696_v8 = vpop.f32.mrb[10].mxu1  ;;  %v1644_v9 = vmul.f32 %v2688_v4, %v2694_v7 }
 0x187   : > { %v1647_v10 = vmul.f32 %v2696_v8, %v2688_v4  ;;  %v1658_v11 = vsel %vm1361_vm1, %v1646_v6, 0.0  ;;  %v2703_v12 = vpop.f32.mrb[11].mxu1 }
 0x188   : > { %1659 = vadd.xlane.f32.xlu1 %v1658_v11  ;;  %v1645_v14 = vmul.f32 %v2688_v4, %v2703_v12  ;;  %v1652_v15 = vsel %vm1361_vm1, %v1644_v9, 0.0 }
 0x189   : > { %v1661_v13 = vsel %vm1361_vm1, %v1647_v10, 0.0 }
 0x18a   : > { %1662 = vadd.xlane.f32.xlu0 %v1661_v13  ;;  %v1655_v18 = vsel %vm1361_vm1, %v1645_v14, 0.0 }
 0x18c   : > { %1653 = vadd.xlane.f32.xlu1 %v1652_v15  ;;  %v2709_v16 = vpop.f32.mrb[12].mxu1 }
 0x18d   : > { %v2711_v17 = vpop.f32.mrb[13].mxu1  ;;  %v1650_v53 = vmul.f32 %v2709_v16, %v2688_v4 }
 0x18e   : > { %v1648_v19 = vmul.f32 %v2688_v4, %v2711_v17  ;;  %1656 = vadd.xlane.f32.xlu0 %v1655_v18  ;;  %v2716_v20 = vpop.f32.mrb[14].mxu1 }
 0x18f   : > { %v2718_v21 = vpop.f32.mrb[15].mxu1  ;;  %v2273_v22 = vpop.f32.mrb[0].mxu0  ;;  %v1670_v57 = vsel %vm1361_vm1, %v1650_v53, 0.0  ;;  %v1651_v58 = vmul.f32 %v2716_v20, %v2688_v4 }
 0x190   : > { %v1649_v23 = vmul.f32 %v2688_v4, %v2718_v21  ;;  %v2722_v24 = vadd.f32 %v2273_v22, %v2213_v60  ;;  %v1308_v25 = vpop.f32.mrb[1].mxu0  ;;  %v1664_v26 = vsel %vm1361_vm1, %v1648_v19, 0.0 }
 0x191   : > { %v2725_v27 = vadd.f32 %v1308_v25, %v697_v61  ;;  %1665 = vadd.xlane.f32.xlu1 %v1664_v26  ;;  %v2274_v28 = vpop.f32.mrb[2].mxu0  ;;  %v1673_v60 = vsel %vm1361_vm1, %v1651_v58, 0.0 }
 0x192   : > { %v2727_v29 = vadd.f32 %v2274_v28, %v2214_v62  ;;  %v1311_v30 = vpop.f32.mrb[3].mxu0  ;;  %v1667_v31 = vsel %vm1361_vm1, %v1649_v23, 0.0  ;;  %v1355_v32 = vmul.f32 %v2722_v24, %v2688_v4 }
 0x193   : > { %v2732_v33 = vadd.f32 %v1311_v30, %v700_v63  ;;  %1668 = vadd.xlane.f32.xlu0 %v1667_v31  ;;  %v1353_v36 = vmul.f32 %v2725_v27, %v2688_v4 }
 0x194   : > { %v1368_v34 = vsel %vm1361_vm1, %v1355_v32, 0.0  ;;  %v1356_v47 = vmul.f32 %v2727_v29, %v2688_v4 }
 0x195   : > { %v1354_v35 = vmul.f32 %v2732_v33, %v2688_v4  ;;  %v1362_v45 = vsel %vm1361_vm1, %v1353_v36, 0.0 }
 0x196   : > { %v1371_v51 = vsel %vm1361_vm1, %v1356_v47, 0.0 }
 0x197   : > { %1369 = vadd.xlane.f32.xlu0 %v1368_v34  ;;  %v2277_v37 = vpop.f32.mrb[4].mxu0  ;;  %v1365_v38 = vsel %vm1361_vm1, %v1354_v35, 0.0 }
 0x198   : > { %v2740_v39 = vadd.f32 %v2277_v37, %v2217_v0  ;;  %v1324_v40 = vpop.f32.mrb[5].mxu0  ;;  %1366 = vadd.xlane.f32.xlu1 %v1365_v38 }
 0x199   : > { %v2742_v41 = vadd.f32 %v1324_v40, %v713_v1  ;;  %v2278_v42 = vpop.f32.mrb[6].mxu0 }
 0x19a   : > { %v2744_v43 = vadd.f32 %v2278_v42, %v2218_v2  ;;  %v1327_v44 = vpop.f32.mrb[7].mxu0  ;;  %v1359_v46 = vmul.f32 %v2740_v39, %v2688_v4 }
 0x19b   : > { %v2751_v48 = vadd.f32 %v1327_v44, %v716_v3  ;;  %1363 = vadd.xlane.f32.xlu0 %v1362_v45  ;;  %v1357_v50 = vmul.f32 %v2742_v41, %v2688_v4 }
 0x19c   : > { %v1380_v49 = vsel %vm1361_vm1, %v1359_v46, 0.0  ;;  %v1360_v52 = vmul.f32 %v2744_v43, %v2688_v4 }
 0x19d   : > { %1381 = vadd.xlane.f32.xlu1 %v1380_v49  ;;  %v1374_v54 = vsel %vm1361_vm1, %v1357_v50, 0.0  ;;  %v1358_v56 = vmul.f32 %v2751_v48, %v2688_v4 }
 0x19e   : > { %v1383_v55 = vsel %vm1361_vm1, %v1360_v52, 0.0 }
 0x19f   : > { %1372 = vadd.xlane.f32.xlu0 %v1371_v51  ;;  %v1377_v59 = vsel %vm1361_vm1, %v1358_v56, 0.0 }
 0x1a1   : > { %1375 = vadd.xlane.f32.xlu1 %v1374_v54 }
 0x1a3   : > { %1384 = vadd.xlane.f32.xlu0 %v1383_v55 }
 0x1a5   : > { %1671 = vadd.xlane.f32.xlu1 %v1670_v57 }
 0x1a7   : > { %1378 = vadd.xlane.f32.xlu0 %v1377_v59 }
 0x1ab   : > { %1674 = vadd.xlane.f32.xlu0 %v1673_v60 }
 0x215   : > { %v1660_v61 = vpop.xlane.xlu1 %1659 }
 0x216   : > { %v1678_v62 = vmul.f32 0.0625, %v1660_v61 }
 0x217   : > { %v1663_v63 = vpop.xlane.xlu0 %1662 }
 0x218   : > { %v2771_v0 = vsub.f32 %v2690_v5, %v1678_v62  ;;  %v1679_v1 = vmul.f32 0.0625, %v1663_v63 }
 0x219   : > { %v1654_v2 = vpop.xlane.xlu1 %1653 }
 0x21a   : > { %v2774_v3 = vsub.f32 %v2696_v8, %v1679_v1  ;;  %v1676_v6 = vmul.f32 0.0625, %v1654_v2  ;;  %v1694_v9 = vmul.f32 %v2688_v4, %v2771_v0 }
 0x21b   : > { %v1657_v10 = vpop.xlane.xlu0 %1656 }
 0x21c   : > { %v2779_v11 = vsub.f32 %v2694_v7, %v1676_v6  ;;  %v1677_v13 = vmul.f32 0.0625, %v1657_v10  ;;  %v1702_v14 = vmul.f32 %v1694_v9, %v1694_v9  ;;  %v1695_v15 = vmul.f32 %v2688_v4, %v2774_v3 }
 0x21e   : > { %v2784_v5 = vsub.f32 %v2703_v12, %v1677_v13  ;;  %v1666_v18 = vpop.xlane.xlu1 %1665  ;;  %v1714_v8 = vsel %vm1361_vm1, %v1702_v14, 0.0  ;;  %v1703_v19 = vmul.f32 %v1695_v15, %v1695_v15  ;;  %v1692_v22 = vmul.f32 %v2688_v4, %v2779_v11 }
 0x21f   : > { %v1680_v23 = vmul.f32 0.0625, %v1666_v18  ;;  %1715 = vadd.xlane.f32.xlu1 %v1714_v8 }
 0x220   : > { %v1669_v25 = vpop.xlane.xlu0 %1668  ;;  %v1717_v7 = vsel %vm1361_vm1, %v1703_v19, 0.0  ;;  %v1700_v26 = vmul.f32 %v1692_v22, %v1692_v22  ;;  %v1693_v28 = vmul.f32 %v2688_v4, %v2784_v5 }
 0x221   : > { %v2793_v30 = vsub.f32 %v2711_v17, %v1680_v23  ;;  %v1681_v12 = vmul.f32 0.0625, %v1669_v25  ;;  %1718 = vadd.xlane.f32.xlu0 %v1717_v7 }
 0x222   : > { %v1708_v31 = vsel %vm1361_vm1, %v1700_v26, 0.0  ;;  %v1701_v32 = vmul.f32 %v1693_v28, %v1693_v28 }
 0x223   : > { %v2797_v34 = vsub.f32 %v2718_v21, %v1681_v12  ;;  %1709 = vadd.xlane.f32.xlu1 %v1708_v31  ;;  %v1696_v35 = vmul.f32 %v2688_v4, %v2793_v30 }
 0x224   : > { %v1370_v36 = vpop.xlane.xlu0 %1369  ;;  %v1711_v37 = vsel %vm1361_vm1, %v1701_v32, 0.0 }
 0x225   : > { %v1388_v38 = vmul.f32 0.0625, %v1370_v36  ;;  %1712 = vadd.xlane.f32.xlu0 %v1711_v37  ;;  %v1367_v40 = vpop.xlane.xlu1 %1366  ;;  %v1704_v17 = vmul.f32 %v1696_v35, %v1696_v35  ;;  %v1697_v42 = vmul.f32 %v2688_v4, %v2797_v34 }
 0x226   : > { %v1387_v51 = vmul.f32 0.0625, %v1367_v40 }
 0x227   : > { %v2805_v44 = vsub.f32 %v2722_v24, %v1388_v38  ;;  %v1720_v21 = vsel %vm1361_vm1, %v1704_v17, 0.0  ;;  %v1705_v45 = vmul.f32 %v1697_v42, %v1697_v42 }
 0x228   : > { %1721 = vadd.xlane.f32.xlu1 %v1720_v21  ;;  %v1364_v46 = vpop.xlane.xlu0 %1363  ;;  %v2821_v60 = vsub.f32 %v2732_v33, %v1387_v51 }
 0x229   : > { %v1386_v47 = vmul.f32 0.0625, %v1364_v46  ;;  %v1723_v49 = vsel %vm1361_vm1, %v1705_v45, 0.0  ;;  %v1404_v50 = vmul.f32 %v2688_v4, %v2805_v44 }
 0x22a   : > { %1724 = vadd.xlane.f32.xlu0 %v1723_v49  ;;  %v1382_v52 = vpop.xlane.xlu1 %1381 }
 0x22b   : > { %v2812_v53 = vsub.f32 %v2725_v27, %v1386_v47  ;;  %v1392_v54 = vmul.f32 0.0625, %v1382_v52  ;;  %v1412_v24 = vmul.f32 %v1404_v50, %v1404_v50 }
 0x22c   : > { %v1373_v55 = vpop.xlane.xlu0 %1372 }
 0x22d   : > { %v2815_v56 = vsub.f32 %v2740_v39, %v1392_v54  ;;  %v1389_v57 = vmul.f32 0.0625, %v1373_v55  ;;  %v1424_v58 = vsel %vm1361_vm1, %v1412_v24, 0.0  ;;  %v1402_v59 = vmul.f32 %v2688_v4, %v2812_v53 }
 0x22e   : > { %1425 = vadd.xlane.f32.xlu1 %v1424_v58  ;;  %v1376_v61 = vpop.xlane.xlu1 %1375 }
 0x22f   : > { %v2824_v27 = vsub.f32 %v2727_v29, %v1389_v57  ;;  %v1390_v62 = vmul.f32 0.0625, %v1376_v61  ;;  %v1410_v63 = vmul.f32 %v1402_v59, %v1402_v59  ;;  %v1408_v39 = vmul.f32 %v2688_v4, %v2815_v56 }
 0x230   : > { %v1385_v1 = vpop.xlane.xlu0 %1384  ;;  %v1403_v29 = vmul.f32 %v2688_v4, %v2821_v60 }
 0x231   : > { %v2829_v2 = vsub.f32 %v2742_v41, %v1390_v62  ;;  %v1393_v6 = vmul.f32 0.0625, %v1385_v1  ;;  %v1418_v9 = vsel %vm1361_vm1, %v1410_v63, 0.0  ;;  %v1416_v10 = vmul.f32 %v1408_v39, %v1408_v39 }
 0x232   : > { %1419 = vadd.xlane.f32.xlu1 %v1418_v9  ;;  %v1672_v33 = vpop.xlane.xlu1 %1671  ;;  %v1405_v13 = vmul.f32 %v2688_v4, %v2824_v27  ;;  %v1411_v26 = vmul.f32 %v1403_v29, %v1403_v29 }
 0x233   : > { %v2837_v14 = vsub.f32 %v2744_v43, %v1393_v6  ;;  %v1682_v15 = vmul.f32 0.0625, %v1672_v33  ;;  %v1436_v18 = vsel %vm1361_vm1, %v1416_v10, 0.0  ;;  %v1406_v41 = vmul.f32 %v2688_v4, %v2829_v2 }
 0x234   : > { %v1379_v8 = vpop.xlane.xlu0 %1378  ;;  %v1413_v19 = vmul.f32 %v1405_v13, %v1405_v13  ;;  %v1421_v36 = vsel %vm1361_vm1, %v1411_v26, 0.0 }
 0x235   : > { %v2843_v22 = vsub.f32 %v2709_v16, %v1682_v15  ;;  %v1391_v23 = vmul.f32 0.0625, %v1379_v8  ;;  %v1414_v25 = vmul.f32 %v1406_v41, %v1406_v41  ;;  %v1409_v43 = vmul.f32 %v2688_v4, %v2837_v14 }
 0x236   : > { %1437 = vadd.xlane.f32.xlu1 %v1436_v18  ;;  %v1427_v7 = vsel %vm1361_vm1, %v1413_v19, 0.0 }
 0x237   : > { %v2849_v28 = vsub.f32 %v2751_v48, %v1391_v23  ;;  %1428 = vadd.xlane.f32.xlu0 %v1427_v7  ;;  %v1430_v12 = vsel %vm1361_vm1, %v1414_v25, 0.0  ;;  %v1698_v31 = vmul.f32 %v2688_v4, %v2843_v22  ;;  %v1417_v37 = vmul.f32 %v1409_v43, %v1409_v43 }
 0x238   : > { %v1675_v16 = vpop.xlane.xlu0 %1674 }
 0x239   : > { %v1683_v32 = vmul.f32 0.0625, %v1675_v16  ;;  %v1706_v35 = vmul.f32 %v1698_v31, %v1698_v31  ;;  %v1407_v38 = vmul.f32 %v2688_v4, %v2849_v28  ;;  %v1439_v17 = vsel %vm1361_vm1, %v1417_v37, 0.0 }
 0x23a   : > { %1431 = vadd.xlane.f32.xlu1 %v1430_v12 }
 0x23b   : > { %v2858_v40 = vsub.f32 %v2716_v20, %v1683_v32  ;;  %1422 = vadd.xlane.f32.xlu0 %v1421_v36  ;;  %v1726_v48 = vsel %vm1361_vm1, %v1706_v35, 0.0  ;;  %v1415_v42 = vmul.f32 %v1407_v38, %v1407_v38 }
 0x23d   : > { %v1699_v21 = vmul.f32 %v2688_v4, %v2858_v40  ;;  %v1433_v45 = vsel %vm1361_vm1, %v1415_v42, 0.0 }
 0x23e   : > { %1727 = vadd.xlane.f32.xlu1 %v1726_v48 }
 0x23f   : > { %1440 = vadd.xlane.f32.xlu0 %v1439_v17  ;;  %v1707_v46 = vmul.f32 %v1699_v21, %v1699_v21 }
 0x241   : > { %v1729_v47 = vsel %vm1361_vm1, %v1707_v46, 0.0 }
 0x243   : > { %1434 = vadd.xlane.f32.xlu0 %v1433_v45 }
 0x247   : > { %1730 = vadd.xlane.f32.xlu0 %v1729_v47 }
 0x2ac   : > { %v1716_v20 = vpop.xlane.xlu1 %1715 }
 0x2ad   : > { %v1734_v49 = vmul.f32 0.0625, %v1716_v20 }
 0x2ae   : > { %v1719_v50 = vpop.xlane.xlu0 %1718 }
 0x2af   : > { %v1742_v51 = vadd.f32 1e-05, %v1734_v49  ;;  %v1735_v52 = vmul.f32 0.0625, %v1719_v50 }
 0x2b0   : > { %v1710_v54 = vpop.xlane.xlu1 %1709 }
 0x2b1   : > { %2416 = vrsqrt.f32 %v1742_v51  ;;  %v1743_v24 = vadd.f32 1e-05, %v1735_v52  ;;  %v1732_v55 = vmul.f32 0.0625, %v1710_v54 }
 0x2b2   : > { %v1713_v57 = vpop.xlane.xlu0 %1712 }
 0x2b3   : > { %2418 = vrsqrt.f32 %v1743_v24  ;;  %v1740_v4 = vadd.f32 1e-05, %v1732_v55  ;;  %v1733_v58 = vmul.f32 0.0625, %v1713_v57 }
 0x2b5   : > { %2420 = vrsqrt.f32 %v1740_v4  ;;  %v1741_v59 = vadd.f32 1e-05, %v1733_v58  ;;  %v1722_v61 = vpop.xlane.xlu1 %1721 }
 0x2b6   : > { %v1736_v62 = vmul.f32 0.0625, %v1722_v61 }
 0x2b7   : > { %2422 = vrsqrt.f32 %v1741_v59  ;;  %v1725_v63 = vpop.xlane.xlu0 %1724 }
 0x2b8   : > { %v1744_v39 = vadd.f32 1e-05, %v1736_v62  ;;  %v1737_v1 = vmul.f32 0.0625, %v1725_v63 }
 0x2ba   : > { %2424 = vrsqrt.f32 %v1744_v39  ;;  %v1745_v6 = vadd.f32 1e-05, %v1737_v1 }
 0x2bb   : > { %v2417_v9 = vpop.eup %2416  ;;  %v1426_v10 = vpop.xlane.xlu1 %1425 }
 0x2bc   : > { %v1758_v33 = vmul.f32 %v2417_v9, %v2771_v0  ;;  %2426 = vrsqrt.f32 %v1745_v6  ;;  %v1444_v13 = vmul.f32 0.0625, %v1426_v10 }
 0x2bd   : > { %v2419_v29 = vpop.eup %2418 }
 0x2be   : > { %v2105_v15 = vpack.c.bf16 %v1758_v33, %v1758_v33  ;;  %v1759_v18 = vmul.f32 %v2419_v29, %v2774_v3  ;;  %v1452_v41 = vadd.f32 1e-05, %v1444_v13 }
 0x2bf   : > { %v2421_v8 = vpop.eup %2420  ;;  %v1420_v19 = vpop.xlane.xlu1 %1419 }
 0x2c0   : > { %1798 = vst.msk [vmem:[%s2873_s21 + $0x8] sm:$0xf] %vm1514_vm2, %v2105_v15  ;;  %v2106_v0 = vpack.c.bf16 %v1759_v18, %v1759_v18  ;;  %v1756_v23 = vmul.f32 %v2421_v8, %v2779_v11  ;;  %2428 = vrsqrt.f32 %v1452_v41  ;;  %v1442_v25 = vmul.f32 0.0625, %v1420_v19 }
 0x2c1   : > { %v2423_v7 = vpop.eup %2422 }
 0x2c2   : > { %1799 = vst.msk [vmem:[%s2873_s21 + $0xc] sm:$0xf] %vm1514_vm2, %v2106_v0  ;;  %v2103_v26 = vpack.c.bf16 %v1756_v23, %v1756_v23  ;;  %v1757_v43 = vmul.f32 %v2423_v7, %v2784_v5  ;;  %v1450_v12 = vadd.f32 1e-05, %v1442_v25 }
 0x2c3   : > { %v1438_v3 = vpop.xlane.xlu1 %1437 }
 0x2c4   : > { %v2425_v31 = vpop.eup %2424  ;;  %1796 = vst.msk [vmem:[%s2873_s21] sm:$0xf] %vm1514_vm2, %v2103_v26  ;;  %v2104_v16 = vpack.c.bf16 %v1757_v43, %v1757_v43  ;;  %2430 = vrsqrt.f32 %v1450_v12  ;;  %v1448_v32 = vmul.f32 0.0625, %v1438_v3  ;;  %v1429_v35 = vpop.xlane.xlu0 %1428 }
 0x2c5   : > { %v1760_v11 = vmul.f32 %v2425_v31, %v2793_v30  ;;  %v1445_v36 = vmul.f32 0.0625, %v1429_v35 }
 0x2c6   : > { %v2427_v37 = vpop.eup %2426  ;;  %1797 = vst.msk [vmem:[%s2873_s21 + $0x4] sm:$0xf] %vm1514_vm2, %v2104_v16  ;;  %v1456_v38 = vadd.f32 1e-05, %v1448_v32 }
 0x2c7   : > { %v2107_v48 = vpack.c.bf16 %v1760_v11, %v1760_v11  ;;  %v1761_v5 = vmul.f32 %v2427_v37, %v2797_v34  ;;  %v1453_v17 = vadd.f32 1e-05, %v1445_v36  ;;  %v1432_v42 = vpop.xlane.xlu1 %1431 }
 0x2c8   : > { %2432 = vrsqrt.f32 %v1456_v38  ;;  %v1446_v21 = vmul.f32 0.0625, %v1432_v42  ;;  %v1423_v45 = vpop.xlane.xlu0 %1422 }
 0x2c9   : > { %1800 = vst.msk [vmem:[%s2873_s21 + $0x10] sm:$0xf] %vm1514_vm2, %v2107_v48  ;;  %v2108_v46 = vpack.c.bf16 %v1761_v5, %v1761_v5  ;;  %2434 = vrsqrt.f32 %v1453_v17  ;;  %v1443_v30 = vmul.f32 0.0625, %v1423_v45 }
 0x2ca   : > { %v2429_v47 = vpop.eup %2428  ;;  %v1454_v20 = vadd.f32 1e-05, %v1446_v21 }
 0x2cb   : > { %1801 = vst.msk [vmem:[%s2873_s21 + $0x14] sm:$0xf] %vm1514_vm2, %v2108_v46  ;;  %v1468_v49 = vmul.f32 %v2429_v47, %v2805_v44  ;;  %v1451_v50 = vadd.f32 1e-05, %v1443_v30  ;;  %v1728_v51 = vpop.xlane.xlu1 %1727 }
 0x2cc   : > { %2436 = vrsqrt.f32 %v1454_v20  ;;  %v1738_v34 = vmul.f32 0.0625, %v1728_v51  ;;  %v1441_v52 = vpop.xlane.xlu0 %1440 }
 0x2cd   : > { %v1476_v54 = vmax.f32 %v1468_v49, 0.0  ;;  %2438 = vrsqrt.f32 %v1451_v50  ;;  %v1449_v24 = vmul.f32 0.0625, %v1441_v52 }
 0x2ce   : > { %v2431_v55 = vpop.eup %2430  ;;  %v1746_v57 = vadd.f32 1e-05, %v1738_v34 }
 0x2cf   : > { %v2097_v4 = vpack.c.bf16 %v1476_v54, %v1476_v54  ;;  %v1466_v44 = vmul.f32 %v2431_v55, %v2812_v53  ;;  %v1457_v58 = vadd.f32 1e-05, %v1449_v24 }
 0x2d0   : > { %2440 = vrsqrt.f32 %v1746_v57  ;;  %v1435_v59 = vpop.xlane.xlu0 %1434 }
 0x2d1   : > { %1517 = vst.msk [vmem:[%s2898_s24 + $0x8] sm:$0xf] %vm1514_vm2, %v2097_v4  ;;  %v1474_v61 = vmax.f32 %v1466_v44, 0.0  ;;  %2442 = vrsqrt.f32 %v1457_v58  ;;  %v1447_v62 = vmul.f32 0.0625, %v1435_v59 }
 0x2d2   : > { %v2433_v63 = vpop.eup %2432 }
 0x2d3   : > { %v2435_v39 = vpop.eup %2434  ;;  %v2095_v1 = vpack.c.bf16 %v1474_v61, %v1474_v61  ;;  %v1472_v6 = vmul.f32 %v2433_v63, %v2815_v56  ;;  %v1455_v9 = vadd.f32 1e-05, %v1447_v62 }
 0x2d4   : > { %v1469_v10 = vmul.f32 %v2435_v39, %v2824_v27  ;;  %v1731_v33 = vpop.xlane.xlu0 %1730 }
 0x2d5   : > { %1515 = vst.msk [vmem:[%s2898_s24] sm:$0xf] %vm1514_vm2, %v2095_v1  ;;  %v1480_v53 = vmax.f32 %v1472_v6, 0.0  ;;  %2444 = vrsqrt.f32 %v1455_v9  ;;  %v1739_v13 = vmul.f32 0.0625, %v1731_v33 }
 0x2d6   : > { %v2437_v29 = vpop.eup %2436  ;;  %v1477_v15 = vmax.f32 %v1469_v10, 0.0 }
 0x2d7   : > { %v2439_v18 = vpop.eup %2438  ;;  %v2101_v41 = vpack.c.bf16 %v1480_v53, %v1480_v53  ;;  %v1470_v8 = vmul.f32 %v2437_v29, %v2829_v2  ;;  %v1747_v19 = vadd.f32 1e-05, %v1739_v13 }
 0x2d8   : > { %v2098_v56 = vpack.c.bf16 %v1477_v15, %v1477_v15  ;;  %v1467_v0 = vmul.f32 %v2439_v18, %v2821_v60 }
 0x2d9   : > { %1521 = vst.msk [vmem:[%s2898_s24 + $0x18] sm:$0xf] %vm1514_vm2, %v2101_v41  ;;  %v1478_v27 = vmax.f32 %v1470_v8, 0.0  ;;  %2446 = vrsqrt.f32 %v1747_v19 }
 0x2da   : > { %v2441_v23 = vpop.eup %2440  ;;  %1518 = vst.msk [vmem:[%s2898_s24 + $0xc] sm:$0xf] %vm1514_vm2, %v2098_v56  ;;  %v1475_v25 = vmax.f32 %v1467_v0, 0.0 }
 0x2db   : > { %v2443_v7 = vpop.eup %2442  ;;  %v2099_v26 = vpack.c.bf16 %v1478_v27, %v1478_v27  ;;  %v1762_v43 = vmul.f32 %v2441_v23, %v2843_v22 }
 0x2dc   : > { %v2096_v2 = vpack.c.bf16 %v1475_v25, %v1475_v25  ;;  %v1473_v12 = vmul.f32 %v2443_v7, %v2837_v14 }
 0x2dd   : > { %1519 = vst.msk [vmem:[%s2898_s24 + $0x10] sm:$0xf] %vm1514_vm2, %v2099_v26  ;;  %v2109_v60 = vpack.c.bf16 %v1762_v43, %v1762_v43 }
 0x2de   : > { %1516 = vst.msk [vmem:[%s2898_s24 + $0x4] sm:$0xf] %vm1514_vm2, %v2096_v2  ;;  %v1481_v3 = vmax.f32 %v1473_v12, 0.0 }
 0x2df   : > { %v2445_v31 = vpop.eup %2444  ;;  %1802 = vst.msk [vmem:[%s2873_s21 + $0x18] sm:$0xf] %vm1514_vm2, %v2109_v60 }
 0x2e0   : > { %v2102_v16 = vpack.c.bf16 %v1481_v3, %v1481_v3  ;;  %v1471_v32 = vmul.f32 %v2445_v31, %v2849_v28 }
 0x2e2   : > { %1522 = vst.msk [vmem:[%s2898_s24 + $0x1c] sm:$0xf] %vm1514_vm2, %v2102_v16  ;;  %v1479_v22 = vmax.f32 %v1471_v32, 0.0 }
 0x2e3   : > { %v2447_v35 = vpop.eup %2446 }
 0x2e4   : > { %v2100_v11 = vpack.c.bf16 %v1479_v22, %v1479_v22  ;;  %v1763_v14 = vmul.f32 %v2447_v35, %v2858_v40 }
 0x2e6   : > { %1520 = vst.msk [vmem:[%s2898_s24 + $0x14] sm:$0xf] %vm1514_vm2, %v2100_v11  ;;  %v2110_v36 = vpack.c.bf16 %v1763_v14, %v1763_v14 }
 0x2e8   : > { %1803 = vst.msk [vmem:[%s2873_s21 + $0x1c] sm:$0xf] %vm1514_vm2, %v2110_v36 }
 0x2e9 PF: > { %s16_s18 = sadd.s32 1, %s2454_s18  }
 0x2ea   : > { %p13_p4 = scmp.ge.s32.totalorder %s16_s18, 4  }
 0x2ec   :  { %15 = sbr.rel (!%p13_p4) target bundleno = 1 (0x1), region = 89 }

// kernel: resnet_discriminator.13
= control target key start
LH: loop header
LB: loop body
LE: loop exit
PB: predicated region body
PF: predicated region fallthrough
CT: control target
= control target key end

     0   :  { %s2283_s23 = smov 0   ;;  %s2614_s0 = inlined_call_operand.vmem [shape: bf16[2,1,64,38], index: 0, kind: input, shape index: {}]   ;;  %s2615_s1 = inlined_call_operand.vmem [shape: bf16[9,64,64], index: 1, kind: input, shape index: {}]   ;;  %s2616_s2 = inlined_call_operand.vmem [shape: bf16[2,64,24], index: 2, kind: input, shape index: {}]   ;;  %s2617_s3 = inlined_call_operand.vmem [shape: f32[1,24], index: 3, kind: input, shape index: {}]   ;;  %s2618_s4 = inlined_call_operand.vmem [shape: f32[64,24], index: 4, kind: input, shape index: {}]   ;;  %s2619_s5 = inlined_call_operand.<no memory space> [shape: f32[1,1], index: 5, kind: input, shape index: {}]   ;;  %s2620_s6 = inlined_call_operand.vmem [shape: f32[2,1,1], index: 6, kind: output, shape index: {}]  }
   0x1   :  { %v11_v0 = vstv %s2619_s5 }
   0x2   :  { %12 = vst [vmem:[#allocation2] sm:$0x1] %v11_v0 }
   0x3 LB: > { %s1691_s24 = sadd.s32 4294967295, %s2235_s23   ;;  %p1695_p0 = scmp.ge.s32.totalorder %s2235_s23, 1  ;;  %s2235_s23 = sphi %s2283_s23, %s18_s23  }
   0x4   : > { %p224_p1 = scmp.lt.s32.totalorder %s2235_s23, 3 }
   0x6   : > { %p225_p2 = pnand %p1695_p0, %p224_p1 }
   0x7   : > { %p257_p3 = scmp.lt.s32.totalorder (!%p225_p2), %s1691_s24, 1  ;;  %s2237_s28 = smov (!%p225_p2), 121   ;;  %vm348_vm0 = vcmask (!%p225_p2), 523264   ;;  %v2173_v4 = vld [vmem:[%s2615_s1 + $0x80] sm:$0xff] (!%p225_p2)   ;;  %v2174_v15 = vld [vmem:[%s2615_s1 + $0x88] sm:$0xff] (!%p225_p2)   ;;  %v2177_v18 = vld [vmem:[%s2615_s1 + $0x90] sm:$0xff] (!%p225_p2)  }
   0x8   : > { %228 = sbr.rel (%p225_p2) target bundleno = 950 (0x3b6), region = 44  ;;  %s2238_s29 = smov (!%p225_p2), 127   ;;  %v2175_v6 = vld [vmem:[%s2615_s1 + $0x20] sm:$0xff] (!%p225_p2)   ;;  %2009 = vmatprep.mubr.msk.bf16.mxu0 (!%p225_p2), %vm348_vm0, %v2173_v4  ;;  %v2176_v19 = vld [vmem:[%s2615_s1 + $0x28] sm:$0xff] (!%p225_p2)   ;;  %v2179_v22 = vld [vmem:[%s2615_s1 + $0x30] sm:$0xff] (!%p225_p2)   ;;  %vm1424_vm1 = vcmask (!%p225_p2), 195584  }
   0x9   : > { %1945 = vmatprep.mubr.msk.bf16.mxu1 (!%p225_p2), %vm348_vm0, %v2175_v6  ;;  %s2239_s10 = smov (!%p225_p2), 120   ;;  %s2240_s11 = smov (!%p225_p2), 116   ;;  %v2178_v23 = vld [vmem:[%s2615_s1 + $0x98] sm:$0xff] (!%p225_p2)   ;;  %v2181_v24 = vld [vmem:[%s2615_s1 + $0xa0] sm:$0xff] (!%p225_p2)   ;;  %v2182_v31 = vld [vmem:[%s2615_s1 + $0xa8] sm:$0xff] (!%p225_p2)   ;;  %vm1630_vm2 = vcmask (!%p225_p2), 0  }
   0xa   : > { %s2241_s12 = smov (!%p225_p2), 126   ;;  %s2242_s13 = smov (!%p225_p2), 115   ;;  %v2180_v27 = vld [vmem:[%s2615_s1 + $0x38] sm:$0xff] (!%p225_p2)   ;;  %v2183_v28 = vld [vmem:[%s2615_s1] sm:$0xff] (!%p225_p2)   ;;  %v2185_v32 = vld [vmem:[%s2615_s1 + $0xb0] sm:$0xff] (!%p225_p2)  }
   0xb   : > { %s2243_s14 = smov (!%p225_p2), 122   ;;  %s2244_s15 = smov (!%p225_p2), 114   ;;  %v2184_v35 = vld [vmem:[%s2615_s1 + $0x8] sm:$0xff] (!%p225_p2)   ;;  %v2187_v36 = vld [vmem:[%s2615_s1 + $0x10] sm:$0xff] (!%p225_p2)   ;;  %v2186_v39 = vld [vmem:[%s2615_s1 + $0xb8] sm:$0xff] (!%p225_p2)  }
   0xc   : > { %v2189_v40 = vld [vmem:[%s2615_s1 + $0xc0] sm:$0xff] (!%p225_p2)   ;;  %v2188_v43 = vld [vmem:[%s2615_s1 + $0x18] sm:$0xff] (!%p225_p2)   ;;  %v2190_v46 = vld [vmem:[%s2615_s1 + $0xc8] sm:$0xff] (!%p225_p2)  }
   0xd   : > { %v2191_v44 = vld [vmem:[%s2615_s1 + $0x40] sm:$0xff] (!%p225_p2)   ;;  %v2193_v48 = vld [vmem:[%s2615_s1 + $0xd0] sm:$0xff] (!%p225_p2)   ;;  %v2192_v50 = vld [vmem:[%s2615_s1 + $0x48] sm:$0xff] (!%p225_p2)  }
   0xe   : > { %v2195_v52 = vld [vmem:[%s2615_s1 + $0x50] sm:$0xff] (!%p225_p2)   ;;  %v2194_v53 = vld [vmem:[%s2615_s1 + $0xd8] sm:$0xff] (!%p225_p2)   ;;  %v2197_v55 = vld [vmem:[%s2615_s1 + $0xe0] sm:$0xff] (!%p225_p2)  }
   0xf   : > { %s2622_s24 = smov (!%p257_p3, %s1691_s24), 1  ;;  %v2196_v56 = vld [vmem:[%s2615_s1 + $0x58] sm:$0xff]   ;;  %v2199_v59 = vld [vmem:[%s2615_s1 + $0x60] sm:$0xff]   ;;  %v2198_v60 = vld [vmem:[%s2615_s1 + $0xe8] sm:$0xff]  }
  0x10   : > { %s1844_s5 = sshll.u32 %s2622_s24, 5  ;;  %v2201_v62 = vld [vmem:[%s2615_s1 + $0xf0] sm:$0xff]   ;;  %v2200_v63 = vld [vmem:[%s2615_s1 + $0x68] sm:$0xff]   ;;  %v2205_v4 = vld [vmem:[%s2615_s1 + $0x100] sm:$0xff]   ;;  %s269_s18 = scalar_lea.vmem %s2620_s6, %s2622_s24 }
  0x11   : > { %s261_s27 = scalar_lea.vmem %s2614_s0, %s1844_s5  ;;  %v2207_v6 = vld [vmem:[%s2615_s1 + $0x110] sm:$0xff]   ;;  %s2561_s22 = scalar_lea.vmem %s2616_s2, %s1844_s5 }
  0x12   : > { %v2299_v1 = vld [vmem:[%s261_s27] sm:$0xff]   ;;  %v2301_v2 = vld [vmem:[%s261_s27 + $0x8] sm:$0xff]   ;;  %v2305_v3 = vld [vmem:[%s261_s27 + $0x10] sm:$0xff]  }
  0x13   : > { %808 = vrot.lane.b32.xlu0 %v2299_v1, %s2237_s28  ;;  %336 = vrot.lane.b32.xlu1 %v2299_v1, %s2238_s29  ;;  %v2312_v5 = vld [vmem:[%s261_s27 + $0x18] sm:$0xff]  }
  0x17   : > { %810 = vrot.lane.b32.xlu0 %v2301_v2, %s2237_s28  ;;  %812 = vrot.lane.b32.xlu1 %v2305_v3, %s2237_s28 }
  0x1b   : > { %338 = vrot.lane.b32.xlu0 %v2301_v2, %s2238_s29  ;;  %814 = vrot.lane.b32.xlu1 %v2312_v5, %s2237_s28 }
  0x1f   : > { %340 = vrot.lane.b32.xlu0 %v2305_v3, %s2238_s29  ;;  %934 = vrot.lane.b32.xlu1 %v2299_v1, %s2239_s10 }
  0x23   : > { %342 = vrot.lane.b32.xlu0 %v2312_v5, %s2238_s29  ;;  %936 = vrot.lane.b32.xlu1 %v2301_v2, %s2239_s10 }
  0x27   : > { %938 = vrot.lane.b32.xlu0 %v2305_v3, %s2239_s10  ;;  %940 = vrot.lane.b32.xlu1 %v2312_v5, %s2239_s10 }
  0x2b   : > { %1060 = vrot.lane.b32.xlu0 %v2299_v1, %s2240_s11  ;;  %1062 = vrot.lane.b32.xlu1 %v2301_v2, %s2240_s11 }
  0x2f   : > { %556 = vrot.lane.b32.xlu0 %v2299_v1, %s2241_s12  ;;  %1064 = vrot.lane.b32.xlu1 %v2305_v3, %s2240_s11 }
  0x33   : > { %558 = vrot.lane.b32.xlu0 %v2301_v2, %s2241_s12  ;;  %1066 = vrot.lane.b32.xlu1 %v2312_v5, %s2240_s11 }
  0x37   : > { %560 = vrot.lane.b32.xlu0 %v2305_v3, %s2241_s12  ;;  %1186 = vrot.lane.b32.xlu1 %v2299_v1, %s2242_s13 }
  0x3b   : > { %562 = vrot.lane.b32.xlu0 %v2312_v5, %s2241_s12  ;;  %1188 = vrot.lane.b32.xlu1 %v2301_v2, %s2242_s13 }
  0x3f   : > { %682 = vrot.lane.b32.xlu0 %v2299_v1, %s2243_s14  ;;  %1190 = vrot.lane.b32.xlu1 %v2305_v3, %s2242_s13 }
  0x43   : > { %684 = vrot.lane.b32.xlu0 %v2301_v2, %s2243_s14  ;;  %1192 = vrot.lane.b32.xlu1 %v2312_v5, %s2242_s13 }
  0x47   : > { %686 = vrot.lane.b32.xlu0 %v2305_v3, %s2243_s14  ;;  %1312 = vrot.lane.b32.xlu1 %v2299_v1, %s2244_s15 }
  0x4b   : > { %688 = vrot.lane.b32.xlu0 %v2312_v5, %s2243_s14  ;;  %1314 = vrot.lane.b32.xlu1 %v2301_v2, %s2244_s15 }
  0x4f   : > { %1316 = vrot.lane.b32.xlu0 %v2305_v3, %s2244_s15  ;;  %1318 = vrot.lane.b32.xlu1 %v2312_v5, %s2244_s15 }
  0x85   : > { %v809_v7 = vpop.permute.xlu0 %808  ;;  %v337_v8 = vpop.permute.xlu1 %336 }
  0x86   : > { %2001 = vmatprep.subr.bf16.mxu0 %v809_v7  ;;  %1937 = vmatprep.subr.bf16.mxu1 %v337_v8 }
  0x87   : > { %2002 = vmatpush3.bf16.msra.mxu0 %v809_v7  ;;  %1938 = vmatpush3.bf16.msra.mxu1 %v337_v8  ;;  %v2206_v7 = vld [vmem:[%s2615_s1 + $0x108] sm:$0xff]   ;;  %v2208_v8 = vld [vmem:[%s2615_s1 + $0x118] sm:$0xff]  }
  0x89   : > { %v811_v9 = vpop.permute.xlu0 %810  ;;  %v813_v10 = vpop.permute.xlu1 %812 }
  0x8a   : > { %2003 = vmatprep.subr.bf16.mxu0 %v811_v9 }
  0x8b   : > { %2004 = vmatpush3.bf16.msra.mxu0 %v811_v9 }
  0x8c   : > { %2005 = vmatprep.subr.bf16.mxu0 %v813_v10 }
  0x8d   : > { %v339_v11 = vpop.permute.xlu0 %338  ;;  %v815_v12 = vpop.permute.xlu1 %814 }
  0x8e   : > { %1939 = vmatprep.subr.bf16.mxu1 %v339_v11 }
  0x8f   : > { %1940 = vmatpush3.bf16.msra.mxu1 %v339_v11  ;;  %2006 = vmatpush3.bf16.msra.mxu0 %v813_v10 }
  0x90   : > { %2007 = vmatprep.subr.bf16.mxu0 %v815_v12 }
  0x91   : > { %v341_v13 = vpop.permute.xlu0 %340  ;;  %v935_v14 = vpop.permute.xlu1 %934 }
  0x92   : > { %1941 = vmatprep.subr.bf16.mxu1 %v341_v13 }
  0x93   : > { %1942 = vmatpush3.bf16.msra.mxu1 %v341_v13  ;;  %2008 = vmatpush3.bf16.msra.mxu0 %v815_v12 }
  0x94   : > { %2017 = vmatprep.subr.bf16.mxu0 %v935_v14 }
  0x95   : > { %v343_v16 = vpop.permute.xlu0 %342  ;;  %v937_v17 = vpop.permute.xlu1 %936 }
  0x96   : > { %1943 = vmatprep.subr.bf16.mxu1 %v343_v16  ;;  %2010 = vmatmul.mubr.msk.bf16.vlgmr.msra.gmra.mrb[0].mxu0 %vm348_vm0, %v2174_v15 }
  0x97   : > { %1944 = vmatpush3.bf16.msra.mxu1 %v343_v16  ;;  %2018 = vmatpush3.bf16.msra.mxu0 %v935_v14 }
  0x98   : > { %1953 = vmatprep.subr.bf16.mxu1 %v2299_v1  ;;  %2019 = vmatprep.subr.bf16.mxu0 %v937_v17 }
  0x99   : > { %2013 = vmatprep.mubr.msk.bf16.mxu0 %vm348_vm0, %v2177_v18  ;;  %v939_v20 = vpop.permute.xlu0 %938  ;;  %v941_v21 = vpop.permute.xlu1 %940 }
  0x9a   : > { %1946 = vmatmul.mubr.msk.bf16.vlgmr.msra.gmra.mrb[0].mxu1 %vm348_vm0, %v2176_v19 }
  0x9b   : > { %1954 = vmatpush3.bf16.msra.mxu1 %v2299_v1  ;;  %2020 = vmatpush3.bf16.msra.mxu0 %v937_v17  ;;  %v2203_v1 = vld [vmem:[%s2615_s1 + $0x70] sm:$0xff]  }
  0x9c   : > { %1955 = vmatprep.subr.bf16.mxu1 %v2301_v2  ;;  %2021 = vmatprep.subr.bf16.mxu0 %v939_v20 }
  0x9d   : > { %1949 = vmatprep.mubr.msk.bf16.mxu1 %vm348_vm0, %v2179_v22  ;;  %v1061_v25 = vpop.permute.xlu0 %1060  ;;  %v1063_v26 = vpop.permute.xlu1 %1062 }
  0x9e   : > { %2014 = vmatmul.mubr.msk.bf16.gmra.mrb[4].mxu0 %vm348_vm0, %v2178_v23 }
  0x9f   : > { %1956 = vmatpush3.bf16.msra.mxu1 %v2301_v2  ;;  %2022 = vmatpush3.bf16.msra.mxu0 %v939_v20  ;;  %v2202_v2 = vld [vmem:[%s2615_s1 + $0xf8] sm:$0xff]  }
  0xa0   : > { %1957 = vmatprep.subr.bf16.mxu1 %v2305_v3  ;;  %2023 = vmatprep.subr.bf16.mxu0 %v941_v21 }
  0xa1   : > { %2025 = vmatprep.mubr.msk.bf16.mxu0 %vm348_vm0, %v2181_v24  ;;  %v557_v29 = vpop.permute.xlu0 %556  ;;  %v1065_v30 = vpop.permute.xlu1 %1064 }
  0xa2   : > { %1950 = vmatmul.mubr.msk.bf16.gmra.mrb[4].mxu1 %vm348_vm0, %v2180_v27 }
  0xa3   : > { %1958 = vmatpush3.bf16.msra.mxu1 %v2305_v3  ;;  %2024 = vmatpush3.bf16.msra.mxu0 %v941_v21 }
  0xa4   : > { %1959 = vmatprep.subr.bf16.mxu1 %v2312_v5  ;;  %2033 = vmatprep.subr.bf16.mxu0 %v1061_v25 }
  0xa5   : > { %1961 = vmatprep.mubr.msk.bf16.mxu1 %vm348_vm0, %v2183_v28  ;;  %v559_v33 = vpop.permute.xlu0 %558  ;;  %v1067_v34 = vpop.permute.xlu1 %1066  ;;  %v2494_v28 = vld [vmem:[%s2617_s3] ss:$0 sm:$0xff] }
  0xa6   : > { %2026 = vmatmul.mubr.msk.bf16.vlgmr.msra.gmra.mrb[0].mxu0 %vm348_vm0, %v2182_v31 }
  0xa7   : > { %1960 = vmatpush3.bf16.msra.mxu1 %v2312_v5  ;;  %2034 = vmatpush3.bf16.msra.mxu0 %v1061_v25  ;;  %v2204_v5 = vld [vmem:[%s2615_s1 + $0x78] sm:$0xff]  }
  0xa8   : > { %1969 = vmatprep.subr.bf16.mxu1 %v557_v29  ;;  %2035 = vmatprep.subr.bf16.mxu0 %v1063_v26 }
  0xa9   : > { %2029 = vmatprep.mubr.msk.bf16.mxu0 %vm348_vm0, %v2185_v32  ;;  %v561_v37 = vpop.permute.xlu0 %560  ;;  %v1187_v38 = vpop.permute.xlu1 %1186 }
  0xaa   : > { %1962 = vmatmul.mubr.msk.bf16.vlgmr.msra.gmra.mrb[0].mxu1 %vm348_vm0, %v2184_v35 }
  0xab   : > { %1970 = vmatpush3.bf16.msra.mxu1 %v557_v29  ;;  %2036 = vmatpush3.bf16.msra.mxu0 %v1063_v26 }
  0xac   : > { %1971 = vmatprep.subr.bf16.mxu1 %v559_v33  ;;  %2037 = vmatprep.subr.bf16.mxu0 %v1065_v30 }
  0xad   : > { %1965 = vmatprep.mubr.msk.bf16.mxu1 %vm348_vm0, %v2187_v36  ;;  %v563_v41 = vpop.permute.xlu0 %562  ;;  %v1189_v42 = vpop.permute.xlu1 %1188 }
  0xae   : > { %2030 = vmatmul.mubr.msk.bf16.gmra.mrb[4].mxu0 %vm348_vm0, %v2186_v39 }
  0xaf   : > { %1972 = vmatpush3.bf16.msra.mxu1 %v559_v33  ;;  %2038 = vmatpush3.bf16.msra.mxu0 %v1065_v30 }
  0xb0   : > { %1973 = vmatprep.subr.bf16.mxu1 %v561_v37  ;;  %2039 = vmatprep.subr.bf16.mxu0 %v1067_v34 }
  0xb1   : > { %2041 = vmatprep.mubr.msk.bf16.mxu0 %vm348_vm0, %v2189_v40  ;;  %v683_v45 = vpop.permute.xlu0 %682  ;;  %v1191_v47 = vpop.permute.xlu1 %1190 }
  0xb2   : > { %1966 = vmatmul.mubr.msk.bf16.gmra.mrb[4].mxu1 %vm348_vm0, %v2188_v43 }
  0xb3   : > { %1974 = vmatpush3.bf16.msra.mxu1 %v561_v37  ;;  %2040 = vmatpush3.bf16.msra.mxu0 %v1067_v34 }
  0xb4   : > { %1975 = vmatprep.subr.bf16.mxu1 %v563_v41  ;;  %2049 = vmatprep.subr.bf16.mxu0 %v1187_v38 }
  0xb5   : > { %1977 = vmatprep.mubr.msk.bf16.mxu1 %vm348_vm0, %v2191_v44  ;;  %v685_v49 = vpop.permute.xlu0 %684  ;;  %v1193_v51 = vpop.permute.xlu1 %1192 }
  0xb6   : > { %2042 = vmatmul.mubr.msk.bf16.vlgmr.msra.gmra.mrb[0].mxu0 %vm348_vm0, %v2190_v46 }
  0xb7   : > { %1976 = vmatpush3.bf16.msra.mxu1 %v563_v41  ;;  %2050 = vmatpush3.bf16.msra.mxu0 %v1187_v38 }
  0xb8   : > { %1985 = vmatprep.subr.bf16.mxu1 %v683_v45  ;;  %2051 = vmatprep.subr.bf16.mxu0 %v1189_v42 }
  0xb9   : > { %2045 = vmatprep.mubr.msk.bf16.mxu0 %vm348_vm0, %v2193_v48  ;;  %v687_v54 = vpop.permute.xlu0 %686  ;;  %v1313_v57 = vpop.permute.xlu1 %1312 }
  0xba   : > { %1978 = vmatmul.mubr.msk.bf16.vlgmr.msra.gmra.mrb[0].mxu1 %vm348_vm0, %v2192_v50 }
  0xbb   : > { %1986 = vmatpush3.bf16.msra.mxu1 %v683_v45  ;;  %2052 = vmatpush3.bf16.msra.mxu0 %v1189_v42 }
  0xbc   : > { %1987 = vmatprep.subr.bf16.mxu1 %v685_v49  ;;  %2053 = vmatprep.subr.bf16.mxu0 %v1191_v47 }
  0xbd   : > { %1981 = vmatprep.mubr.msk.bf16.mxu1 %vm348_vm0, %v2195_v52  ;;  %v689_v58 = vpop.permute.xlu0 %688  ;;  %v1315_v61 = vpop.permute.xlu1 %1314 }
  0xbe   : > { %2046 = vmatmul.mubr.msk.bf16.gmra.mrb[4].mxu0 %vm348_vm0, %v2194_v53 }
  0xbf   : > { %1988 = vmatpush3.bf16.msra.mxu1 %v685_v49  ;;  %2054 = vmatpush3.bf16.msra.mxu0 %v1191_v47 }
  0xc0   : > { %1989 = vmatprep.subr.bf16.mxu1 %v687_v54  ;;  %2055 = vmatprep.subr.bf16.mxu0 %v1193_v51 }
  0xc1   : > { %2057 = vmatprep.mubr.msk.bf16.mxu0 %vm348_vm0, %v2197_v55  ;;  %v1317_v0 = vpop.permute.xlu0 %1316  ;;  %v1319_v3 = vpop.permute.xlu1 %1318 }
  0xc2   : > { %1982 = vmatmul.mubr.msk.bf16.gmra.mrb[4].mxu1 %vm348_vm0, %v2196_v56 }
  0xc3   : > { %1990 = vmatpush3.bf16.msra.mxu1 %v687_v54  ;;  %2056 = vmatpush3.bf16.msra.mxu0 %v1193_v51 }
  0xc4   : > { %1991 = vmatprep.subr.bf16.mxu1 %v689_v58  ;;  %2065 = vmatprep.subr.bf16.mxu0 %v1313_v57 }
  0xc5   : > { %1993 = vmatprep.mubr.msk.bf16.mxu1 %vm348_vm0, %v2199_v59 }
  0xc6   : > { %2058 = vmatmul.mubr.msk.bf16.vlgmr.msra.gmra.mrb[0].mxu0 %vm348_vm0, %v2198_v60 }
  0xc7   : > { %1992 = vmatpush3.bf16.msra.mxu1 %v689_v58  ;;  %2066 = vmatpush3.bf16.msra.mxu0 %v1313_v57 }
  0xc8   : > { %2081 = vmatprep.subr.bf16.mxu1 %v1313_v57  ;;  %2067 = vmatprep.subr.bf16.mxu0 %v1315_v61 }
  0xc9   : > { %2061 = vmatprep.mubr.msk.bf16.mxu0 %vm348_vm0, %v2201_v62 }
  0xca   : > { %1994 = vmatmul.mubr.msk.bf16.vlgmr.msra.gmra.mrb[0].mxu1 %vm348_vm0, %v2200_v63 }
  0xcb   : > { %2085 = vmatpush3.bf16.msra.mxu1 %v1313_v57  ;;  %2068 = vmatpush3.bf16.msra.mxu0 %v1315_v61 }
  0xcc   : > { %2082 = vmatprep.subr.bf16.mxu1 %v1315_v61  ;;  %2069 = vmatprep.subr.bf16.mxu0 %v1317_v0 }
  0xcd   : > { %1997 = vmatprep.mubr.msk.bf16.mxu1 %vm348_vm0, %v2203_v1 }
  0xce   : > { %2062 = vmatmul.mubr.msk.bf16.gmra.mrb[4].mxu0 %vm348_vm0, %v2202_v2 }
  0xcf   : > { %2086 = vmatpush3.bf16.msra.mxu1 %v1315_v61  ;;  %2070 = vmatpush3.bf16.msra.mxu0 %v1317_v0 }
  0xd0   : > { %2083 = vmatprep.subr.bf16.mxu1 %v1317_v0  ;;  %2071 = vmatprep.subr.bf16.mxu0 %v1319_v3 }
  0xd1   : > { %2073 = vmatprep.mubr.msk.bf16.mxu0 %vm348_vm0, %v2205_v4 }
  0xd2   : > { %1998 = vmatmul.mubr.msk.bf16.gmra.mrb[4].mxu1 %vm348_vm0, %v2204_v5 }
  0xd3   : > { %2087 = vmatpush3.bf16.msra.mxu1 %v1317_v0  ;;  %2072 = vmatpush3.bf16.msra.mxu0 %v1319_v3 }
  0xd4   : > { %2084 = vmatprep.subr.bf16.mxu1 %v1319_v3  ;;  %2077 = vmatprep.mubr.msk.bf16.mxu1 %vm348_vm0, %v2207_v6 }
  0xd6   : > { %2074 = vmatmul.mubr.msk.bf16.vlgmr.msra.gmra.mrb[0].mxu0 %vm348_vm0, %v2206_v7 }
  0xd7   : > { %2088 = vmatpush3.bf16.msra.mxu1 %v1319_v3 }
  0xda   : > { %2078 = vmatmul.mubr.msk.bf16.vlgmr.msra.gmra.mrb[8].mxu1 %vm348_vm0, %v2208_v8 }
 0x19d   : > { %v1995_v9 = vpop.f32.mrb[0].mxu1 }
 0x19e   : > { %v740_v10 = vpop.f32.mrb[1].mxu1 }
 0x19f   : > { %v1996_v11 = vpop.f32.mrb[2].mxu1 }
 0x1a0   : > { %v743_v12 = vpop.f32.mrb[3].mxu1 }
 0x1a1   : > { %v2063_v13 = vpop.f32.mrb[4].mxu0 }
 0x1a2   : > { %v1260_v14 = vpop.f32.mrb[5].mxu0 }
 0x1a3   : > { %v2064_v15 = vpop.f32.mrb[6].mxu0 }
 0x1a4   : > { %v1263_v16 = vpop.f32.mrb[7].mxu0 }
 0x1a5   : > { %v1999_v17 = vpop.f32.mrb[4].mxu1 }
 0x1a6   : > { %v2093_v18 = vadd.f32 %v2063_v13, %v1999_v17  ;;  %v756_v19 = vpop.f32.mrb[5].mxu1 }
 0x1a7   : > { %v2095_v20 = vadd.f32 %v1260_v14, %v756_v19  ;;  %v2000_v21 = vpop.f32.mrb[6].mxu1 }
 0x1a8   : > { %v2097_v22 = vadd.f32 %v2064_v15, %v2000_v21  ;;  %v759_v23 = vpop.f32.mrb[7].mxu1 }
 0x1a9   : > { %v2099_v24 = vadd.f32 %v1263_v16, %v759_v23  ;;  %v2075_v25 = vpop.f32.mrb[0].mxu0 }
 0x1aa   : > { %v2089_v26 = vadd.f32 %v2075_v25, %v1995_v9  ;;  %v1370_v27 = vpop.f32.mrb[1].mxu0 }
 0x1ab   : > { %v2090_v29 = vadd.f32 %v1370_v27, %v740_v10  ;;  %v2076_v30 = vpop.f32.mrb[2].mxu0 }
 0x1ac   : > { %v2091_v31 = vadd.f32 %v2076_v30, %v1996_v11  ;;  %v1373_v32 = vpop.f32.mrb[3].mxu0  ;;  %v1418_v42 = vmul.f32 %v2089_v26, %v2494_v28 }
 0x1ad   : > { %v2092_v33 = vadd.f32 %v1373_v32, %v743_v12  ;;  %v2079_v34 = vpop.f32.mrb[8].mxu1  ;;  %v1416_v35 = vmul.f32 %v2090_v29, %v2494_v28 }
 0x1ae   : > { %v2094_v36 = vadd.f32 %v2093_v18, %v2079_v34  ;;  %v1386_v37 = vpop.f32.mrb[9].mxu1  ;;  %v1431_v48 = vsel %vm1424_vm1, %v1418_v42, 0.0  ;;  %v1419_v49 = vmul.f32 %v2091_v31, %v2494_v28 }
 0x1af   : > { %v2096_v38 = vadd.f32 %v2095_v20, %v1386_v37  ;;  %v2080_v39 = vpop.f32.mrb[10].mxu1  ;;  %v1425_v40 = vsel %vm1424_vm1, %v1416_v35, 0.0  ;;  %v1417_v41 = vmul.f32 %v2092_v33, %v2494_v28 }
 0x1b0   : > { %v2500_v43 = vadd.f32 %v2097_v22, %v2080_v39  ;;  %v1389_v44 = vpop.f32.mrb[11].mxu1  ;;  %1426 = vadd.xlane.f32.xlu0 %v1425_v40  ;;  %v1422_v51 = vmul.f32 %v2094_v36, %v2494_v28  ;;  %v1434_v52 = vsel %vm1424_vm1, %v1419_v49, 0.0 }
 0x1b1   : > { %v2100_v45 = vadd.f32 %v2099_v24, %v1389_v44  ;;  %v1428_v46 = vsel %vm1424_vm1, %v1417_v41, 0.0  ;;  %v1420_v47 = vmul.f32 %v2096_v38, %v2494_v28 }
 0x1b2   : > { %1429 = vadd.xlane.f32.xlu1 %v1428_v46  ;;  %v1443_v54 = vsel %vm1424_vm1, %v1422_v51, 0.0  ;;  %v1423_v56 = vmul.f32 %v2500_v43, %v2494_v28 }
 0x1b3   : > { %v1437_v50 = vsel %vm1424_vm1, %v1420_v47, 0.0  ;;  %v1421_v53 = vmul.f32 %v2100_v45, %v2494_v28 }
 0x1b4   : > { %1432 = vadd.xlane.f32.xlu0 %v1431_v48  ;;  %v1446_v57 = vsel %vm1424_vm1, %v1423_v56, 0.0  ;;  %v1847_v56 = vld [vmem:[%s2561_s22] sm:$0xff]  }
 0x1b5   : > { %v1440_v55 = vsel %vm1424_vm1, %v1421_v53, 0.0 }
 0x1b6   : > { %1438 = vadd.xlane.f32.xlu1 %v1437_v50 }
 0x1b8   : > { %1435 = vadd.xlane.f32.xlu0 %v1434_v52 }
 0x1ba   : > { %1444 = vadd.xlane.f32.xlu1 %v1443_v54 }
 0x1bc   : > { %1441 = vadd.xlane.f32.xlu0 %v1440_v55 }
 0x1c0   : > { %1447 = vadd.xlane.f32.xlu0 %v1446_v57 }
 0x23d   : > { %v1427_v58 = vpop.xlane.xlu0 %1426 }
 0x23e   : > { %v1449_v59 = vmul.f32 0.0625, %v1427_v58 }
 0x23f   : > { %v1430_v60 = vpop.xlane.xlu1 %1429 }
 0x240   : > { %v2515_v61 = vsub.f32 %v2090_v29, %v1449_v59  ;;  %v1450_v62 = vmul.f32 0.0625, %v1430_v60 }
 0x241   : > { %v1433_v63 = vpop.xlane.xlu0 %1432 }
 0x242   : > { %v2517_v0 = vsub.f32 %v2092_v33, %v1450_v62  ;;  %v1451_v1 = vmul.f32 0.0625, %v1433_v63  ;;  %v1465_v2 = vmul.f32 %v2494_v28, %v2515_v61  ;;  %v1848_v63 = vunpack.c.l.bf16 %v1847_v56 }
 0x243   : > { %v1439_v3 = vpop.xlane.xlu1 %1438 }
 0x244   : > { %v2521_v4 = vsub.f32 %v2089_v26, %v1451_v1  ;;  %v1453_v5 = vmul.f32 0.0625, %v1439_v3  ;;  %v1473_v6 = vmul.f32 %v1465_v2, %v1465_v2  ;;  %v1466_v7 = vmul.f32 %v2494_v28, %v2517_v0 }
 0x245   : > { %v1436_v8 = vpop.xlane.xlu0 %1435 }
 0x246   : > { %v2525_v9 = vsub.f32 %v2096_v38, %v1453_v5  ;;  %v1452_v10 = vmul.f32 0.0625, %v1436_v8  ;;  %v1481_v11 = vsel %vm1424_vm1, %v1473_v6, 0.0  ;;  %v1474_v12 = vmul.f32 %v1466_v7, %v1466_v7  ;;  %v1862_v8 = vld [vmem:[%s2561_s22 + $0x8] sm:$0xff]  }
 0x247   : > { %1482 = vadd.xlane.f32.xlu1 %v1481_v11  ;;  %v1445_v13 = vpop.xlane.xlu1 %1444  ;;  %v1467_v14 = vmul.f32 %v2494_v28, %v2521_v4  ;;  %v1849_v7 = vunpack.c.h.bf16 %v1847_v56  ;;  %v1574_v56 = vld [vmem:[%s2618_s4 + $0x28] sm:$0xff] }
 0x248   : > { %v2530_v15 = vsub.f32 %v2091_v31, %v1452_v10  ;;  %v1455_v16 = vmul.f32 0.0625, %v1445_v13  ;;  %v1484_v17 = vsel %vm1424_vm1, %v1474_v12, 0.0  ;;  %v1469_v18 = vmul.f32 %v2494_v28, %v2525_v9 }
 0x249   : > { %v1442_v19 = vpop.xlane.xlu0 %1441  ;;  %1485 = vadd.xlane.f32.xlu0 %v1484_v17  ;;  %v1475_v20 = vmul.f32 %v1467_v14, %v1467_v14  ;;  %v1852_v17 = vunpack.c.l.bf16 %v1862_v8 }
 0x24a   : > { %v2535_v21 = vsub.f32 %v2094_v36, %v1455_v16  ;;  %v1454_v22 = vmul.f32 0.0625, %v1442_v19  ;;  %v1468_v23 = vmul.f32 %v2494_v28, %v2530_v15  ;;  %v1477_v25 = vmul.f32 %v1469_v18, %v1469_v18  ;;  %v1569_v16 = vld [vmem:[%s2618_s4] sm:$0xff] }
 0x24b   : > { %v1487_v24 = vsel %vm1424_vm1, %v1475_v20, 0.0 }
 0x24c   : > { %v2540_v26 = vsub.f32 %v2100_v45, %v1454_v22  ;;  %1488 = vadd.xlane.f32.xlu1 %v1487_v24  ;;  %v1476_v27 = vmul.f32 %v1468_v23, %v1468_v23  ;;  %v1471_v29 = vmul.f32 %v2494_v28, %v2535_v21  ;;  %v1493_v34 = vsel %vm1424_vm1, %v1477_v25, 0.0  ;;  %v1570_v22 = vld [vmem:[%s2618_s4 + $0x8] sm:$0xff] }
 0x24d   : > { %v1448_v30 = vpop.xlane.xlu0 %1447  ;;  %v1853_v25 = vunpack.c.h.bf16 %v1862_v8 }
 0x24e   : > { %v1456_v31 = vmul.f32 0.0625, %v1448_v30  ;;  %v1490_v32 = vsel %vm1424_vm1, %v1476_v27, 0.0  ;;  %v1470_v33 = vmul.f32 %v2494_v28, %v2540_v26  ;;  %v1479_v35 = vmul.f32 %v1471_v29, %v1471_v29 }
 0x24f   : > { %1491 = vadd.xlane.f32.xlu0 %v1490_v32 }
 0x250   : > { %v2549_v36 = vsub.f32 %v2500_v43, %v1456_v31  ;;  %1494 = vadd.xlane.f32.xlu1 %v1493_v34  ;;  %v1478_v37 = vmul.f32 %v1470_v33, %v1470_v33  ;;  %v1499_v40 = vsel %vm1424_vm1, %v1479_v35, 0.0  ;;  %v1571_v34 = vld [vmem:[%s2618_s4 + $0x10] sm:$0xff] }
 0x252   : > { %v1496_v38 = vsel %vm1424_vm1, %v1478_v37, 0.0  ;;  %v1472_v39 = vmul.f32 %v2494_v28, %v2549_v36  ;;  %v1864_v37 = vld [vmem:[%s2561_s22 + $0x18] sm:$0xff]  }
 0x253   : > { %1497 = vadd.xlane.f32.xlu0 %v1496_v38 }
 0x254   : > { %1500 = vadd.xlane.f32.xlu1 %v1499_v40  ;;  %v1480_v41 = vmul.f32 %v1472_v39, %v1472_v39 }
 0x256   : > { %v1502_v42 = vsel %vm1424_vm1, %v1480_v41, 0.0 }
 0x257   : > { %1503 = vadd.xlane.f32.xlu0 %v1502_v42 }
 0x2d4   : > { %v1483_v44 = vpop.xlane.xlu1 %1482 }
 0x2d5   : > { %v1505_v45 = vmul.f32 0.0625, %v1483_v44 }
 0x2d6   : > { %v1486_v43 = vpop.xlane.xlu0 %1485 }
 0x2d7   : > { %v1513_v46 = vadd.f32 1e-05, %v1505_v45  ;;  %v1506_v47 = vmul.f32 0.0625, %v1486_v43  ;;  %v1572_v45 = vld [vmem:[%s2618_s4 + $0x18] sm:$0xff] }
 0x2d9   : > { %2209 = vrsqrt.f32 %v1513_v46  ;;  %v1514_v48 = vadd.f32 1e-05, %v1506_v47  ;;  %v1489_v49 = vpop.xlane.xlu1 %1488  ;;  %v1860_v46 = vunpack.c.l.bf16 %v1864_v37 }
 0x2da   : > { %v1507_v50 = vmul.f32 0.0625, %v1489_v49 }
 0x2db   : > { %2211 = vrsqrt.f32 %v1514_v48  ;;  %v1573_v48 = vld [vmem:[%s2618_s4 + $0x20] sm:$0xff] }
 0x2dc   : > { %v1515_v28 = vadd.f32 1e-05, %v1507_v50  ;;  %v1492_v51 = vpop.xlane.xlu0 %1491 }
 0x2dd   : > { %v1508_v52 = vmul.f32 0.0625, %v1492_v51  ;;  %v1495_v53 = vpop.xlane.xlu1 %1494 }
 0x2de   : > { %2213 = vrsqrt.f32 %v1515_v28  ;;  %v1509_v54 = vmul.f32 0.0625, %v1495_v53  ;;  %v1861_v53 = vunpack.c.h.bf16 %v1864_v37 }
 0x2df   : > { %v1516_v55 = vadd.f32 1e-05, %v1508_v52 }
 0x2e0   : > { %v1517_v57 = vadd.f32 1e-05, %v1509_v54  ;;  %v1498_v58 = vpop.xlane.xlu0 %1497 }
 0x2e1   : > { %2215 = vrsqrt.f32 %v1516_v55  ;;  %v1510_v59 = vmul.f32 0.0625, %v1498_v58  ;;  %v1501_v60 = vpop.xlane.xlu1 %1500 }
 0x2e2   : > { %2217 = vrsqrt.f32 %v1517_v57  ;;  %v1511_v62 = vmul.f32 0.0625, %v1501_v60 }
 0x2e3   : > { %v2210_v1 = vpop.eup %2209  ;;  %v1518_v2 = vadd.f32 1e-05, %v1510_v59 }
 0x2e4   : > { %v1519_v3 = vadd.f32 1e-05, %v1511_v62  ;;  %v1504_v5 = vpop.xlane.xlu0 %1503  ;;  %v1529_v6 = vmul.f32 %v2210_v1, %v2515_v61  ;;  %v1863_v61 = vld [vmem:[%s2561_s22 + $0x10] sm:$0xff]  }
 0x2e5   : > { %v2212_v10 = vpop.eup %2211  ;;  %2219 = vrsqrt.f32 %v1518_v2  ;;  %v1512_v11 = vmul.f32 0.0625, %v1504_v5  ;;  %v1856_v30 = vunpack.c.l.bf16 %v1863_v61  ;;  %v1857_v41 = vunpack.c.h.bf16 %v1863_v61 }
 0x2e6   : > { %2221 = vrsqrt.f32 %v1519_v3  ;;  %v1553_v12 = vadd.f32 %v1848_v63, %v1529_v6  ;;  %v1530_v13 = vmul.f32 %v2212_v10, %v2517_v0  ;;  %v1576_v3 = vld [vmem:[%s2618_s4 + $0x38] sm:$0xff] }
 0x2e7   : > { %v1520_v14 = vadd.f32 1e-05, %v1512_v11 }
 0x2e8   : > { %v2214_v18 = vpop.eup %2213  ;;  %v1561_v19 = vmax.f32 %v1553_v12, 0.0  ;;  %v1554_v20 = vadd.f32 %v1849_v7, %v1530_v13 }
 0x2e9   : > { %2223 = vrsqrt.f32 %v1520_v14  ;;  %v1531_v23 = vmul.f32 %v2214_v18, %v2521_v4 }
 0x2ea   : > { %v1577_v24 = vmul.f32 %v1569_v16, %v1561_v19  ;;  %v1562_v0 = vmax.f32 %v1554_v20, 0.0 }
 0x2eb   : > { %v2216_v27 = vpop.eup %2215  ;;  %v1555_v29 = vadd.f32 %v1852_v17, %v1531_v23 }
 0x2ec   : > { %v2218_v31 = vpop.eup %2217  ;;  %v1585_v32 = vsel %vm1424_vm1, %v1577_v24, 0.0  ;;  %v1578_v33 = vmul.f32 %v1570_v22, %v1562_v0  ;;  %v1532_v35 = vmul.f32 %v2216_v27, %v2530_v15 }
 0x2ed   : > { %1586 = vadd.xlane.f32.xlu1 %v1585_v32  ;;  %v1563_v38 = vmax.f32 %v1555_v29, 0.0  ;;  %v1533_v4 = vmul.f32 %v2218_v31, %v2525_v9  ;;  %v1622_v32 = vld [vmem:[#allocation2] sm:$0x1] }
 0x2ee   : > { %v1588_v39 = vsel %vm1424_vm1, %v1578_v33, 0.0  ;;  %v1556_v40 = vadd.f32 %v1853_v25, %v1532_v35 }
 0x2ef   : > { %v2220_v42 = vpop.eup %2219  ;;  %1589 = vadd.xlane.f32.xlu0 %v1588_v39  ;;  %v1579_v44 = vmul.f32 %v1571_v34, %v1563_v38  ;;  %v1557_v43 = vadd.f32 %v1856_v30, %v1533_v4 }
 0x2f0   : > { %v2222_v47 = vpop.eup %2221  ;;  %v1564_v15 = vmax.f32 %v1556_v40, 0.0  ;;  %v1534_v9 = vmul.f32 %v2220_v42, %v2540_v26  ;;  %v1575_v26 = vld [vmem:[%s2618_s4 + $0x30] sm:$0xff] }
 0x2f1   : > { %v1591_v49 = vsel %vm1424_vm1, %v1579_v44, 0.0  ;;  %v1565_v50 = vmax.f32 %v1557_v43, 0.0  ;;  %v1535_v28 = vmul.f32 %v2222_v47, %v2535_v21 }
 0x2f2   : > { %1592 = vadd.xlane.f32.xlu1 %v1591_v49  ;;  %v1580_v51 = vmul.f32 %v1572_v45, %v1564_v15  ;;  %v1558_v52 = vadd.f32 %v1857_v41, %v1534_v9 }
 0x2f3   : > { %v2224_v54 = vpop.eup %2223  ;;  %v1581_v55 = vmul.f32 %v1573_v48, %v1565_v50  ;;  %v1559_v57 = vadd.f32 %v1860_v46, %v1535_v28 }
 0x2f4   : > { %v1594_v58 = vsel %vm1424_vm1, %v1580_v51, 0.0  ;;  %v1566_v59 = vmax.f32 %v1558_v52, 0.0  ;;  %v1536_v21 = vmul.f32 %v2224_v54, %v2549_v36 }
 0x2f5   : > { %1595 = vadd.xlane.f32.xlu0 %v1594_v58  ;;  %v1597_v60 = vsel %vm1424_vm1, %v1581_v55, 0.0  ;;  %v1567_v62 = vmax.f32 %v1559_v57, 0.0 }
 0x2f6   : > { %1598 = vadd.xlane.f32.xlu1 %v1597_v60  ;;  %v1582_v63 = vmul.f32 %v1574_v56, %v1566_v59  ;;  %v1560_v1 = vadd.f32 %v1861_v53, %v1536_v21 }
 0x2f7   : > { %v1583_v2 = vmul.f32 %v1575_v26, %v1567_v62 }
 0x2f8   : > { %v1600_v5 = vsel %vm1424_vm1, %v1582_v63, 0.0  ;;  %v1568_v6 = vmax.f32 %v1560_v1, 0.0 }
 0x2f9   : > { %1601 = vadd.xlane.f32.xlu0 %v1600_v5  ;;  %v1603_v7 = vsel %vm1424_vm1, %v1583_v2, 0.0 }
 0x2fa   : > { %1604 = vadd.xlane.f32.xlu1 %v1603_v7  ;;  %v1584_v36 = vmul.f32 %v1576_v3, %v1568_v6 }
 0x2fc   : > { %v1606_v8 = vsel %vm1424_vm1, %v1584_v36, 0.0 }
 0x2fd   : > { %1607 = vadd.xlane.f32.xlu0 %v1606_v8 }
 0x37a   : > { %v1587_v10 = vpop.xlane.xlu1 %1586 }
 0x37c   : > { %v1590_v11 = vpop.xlane.xlu0 %1589 }
 0x37d   : > { %v1609_v12 = vadd.f32 %v1590_v11, %v1587_v10 }
 0x37f   : > { %v1593_v13 = vpop.xlane.xlu1 %1592 }
 0x380   : > { %v1610_v14 = vadd.f32 %v1609_v12, %v1593_v13 }
 0x382   : > { %v1596_v16 = vpop.xlane.xlu0 %1595 }
 0x383   : > { %v1611_v17 = vadd.f32 %v1610_v14, %v1596_v16  ;;  %v1599_v18 = vpop.xlane.xlu1 %1598 }
 0x385   : > { %v1612_v19 = vadd.f32 %v1611_v17, %v1599_v18 }
 0x386   : > { %v1602_v20 = vpop.xlane.xlu0 %1601 }
 0x387   : > { %v1613_v61 = vadd.f32 %v1612_v19, %v1602_v20  ;;  %v1605_v22 = vpop.xlane.xlu1 %1604 }
 0x389   : > { %v1614_v23 = vadd.f32 %v1613_v61, %v1605_v22 }
 0x38a   : > { %v1608_v24 = vpop.xlane.xlu0 %1607 }
 0x38b   : > { %v1615_v0 = vadd.f32 %v1614_v23, %v1608_v24 }
 0x38d   : > { %v1616_v25 = vrot.slane %v1615_v0, 4 }
 0x38f   : > { %v1617_v27 = vadd.f32 %v1616_v25, %v1615_v0 }
 0x391   : > { %v1618_v29 = vrot.slane %v1617_v27, 2 }
 0x393   : > { %v1619_v30 = vadd.f32 %v1618_v29, %v1617_v27 }
 0x395   : > { %v1620_v31 = vrot.slane %v1619_v30, 1 }
 0x397   : > { %v1621_v33 = vadd.f32 %v1620_v31, %v1619_v30 }
 0x399   : > { %v1623_v34 = vadd.f32 %v1622_v32, %v1621_v33 }
 0x39b   : > { %v1841_v35 = vmul.f32 -1.442695, %v1623_v34 }
 0x39d   : > { %2225 = vpow2.f32 %v1841_v35 }
 0x3a7   : > { %v2226_v37 = vpop.eup %2225 }
 0x3a8   : > { %v1627_v38 = vadd.f32 1.0, %v2226_v37 }
 0x3aa   : > { %2227 = vrcp.f32 %v1627_v38 }
 0x3b4   : > { %v2228_v4 = vpop.eup %2227 }
 0x3b5   : > { %1631 = vst.msk [vmem:[%s269_s18] sm:$0x1] %vm1630_vm2, %v2228_v4 }
 0x3b6 PF: > { %s18_s23 = sadd.s32 1, %s2235_s23  }
 0x3b7   : > { %p15_p4 = scmp.ge.s32.totalorder %s18_s23, 4  }
 0x3b9   :  { %17 = sbr.rel (!%p15_p4) target bundleno = 3 (0x3), region = 85 }

</bundles_post_ra>
